<compile_context>
chip_gen: v5e
topology: v5e:2x2
jax: 0.10.0
libtpu: 0.0.40
codegen_flags: <defaults>
</compile_context>

<pallas_src>
import functools

import jax
import jax.numpy as jnp
from jax.experimental import pallas as pl
from jax.experimental.pallas import tpu as pltpu


def elmo_dan_kernel(x_ref, gxf_ref, gxb_ref,
                    whe_f_ref, whe_b_ref,
                    wdec_f_ref, bd_f_ref,
                    wid_b_ref, whd_b_ref, bd_b_ref,
                    w_out_ref, b_out_ref,
                    out_ref, *, sse_col):
    tb, few, D = x_ref.shape
    out_pad = out_ref.shape[1]

    whe_f = whe_f_ref[...]
    whe_b = whe_b_ref[...]

    def split_gates(gates):
        # full-width nonlinearities over the lane-dense (tb, 4D) tile, then
        # static lane slices in PyTorch gate order i, f, g, o
        sig = jax.nn.sigmoid(gates)
        th = jnp.tanh(gates)
        return (sig[:, 0 * D:1 * D], sig[:, 1 * D:2 * D],
                th[:, 2 * D:3 * D], sig[:, 3 * D:4 * D])

    def cell(gates, c_prev):
        i, f, g, o = split_gates(gates)
        c = f * c_prev + i * g
        return o * jnp.tanh(c), c

    def cell_first(gates):
        # peeled first step: h_prev = c_prev = 0  =>  c = i * g
        i, _, g, o = split_gates(gates)
        c = i * g
        return o * jnp.tanh(c), c

    # ---------------- forward LSTM encoder (input projection hoisted to wrapper) --------------
    h, c = cell_first(gxf_ref[:, 0, :])
    hsum = h                                       # sum over fwd + bwd encoder hidden states
    for t in range(1, few):
        gates = gxf_ref[:, t, :] + jnp.dot(h, whe_f, preferred_element_type=jnp.float32)
        h, c = cell(gates, c)
        hsum = hsum + h
    hf, cf = h, c                                  # state0 of the forward path

    # ---------------- forward LSTM decoder: dec_in == hidden each step -> folded weight ------
    wdec_f = wdec_f_ref[...]
    bd_f = bd_f_ref[...]
    hd, cd = hf, cf
    sq = jnp.zeros((tb, D), jnp.float32)           # elementwise squared-error accumulator
    xsum = jnp.zeros((tb, D), jnp.float32)         # sum_t x_t for the pooled output
    for t in range(few):
        gates = jnp.dot(hd, wdec_f, preferred_element_type=jnp.float32) + bd_f
        hd, cd = cell(gates, cd)
        xt = x_ref[:, t, :]
        xsum = xsum + xt
        diff = hd - xt
        sq = sq + diff * diff

    # ---------------- backward LSTM encoder (time-reversed projection precomputed) -----------
    h, c = cell_first(gxb_ref[:, 0, :])
    hsum = hsum + h
    for t in range(1, few):
        gates = gxb_ref[:, t, :] + jnp.dot(h, whe_b, preferred_element_type=jnp.float32)
        h, c = cell(gates, c)
        hsum = hsum + h                            # sum over few is invariant to re-reversal
    hb, cb = h, c

    # ---------------- backward LSTM decoder -----------------------------------------------
    # The original PyTorch loop never updates the carried state (assigns to a different
    # variable), so every step reuses state0 = (hb, cb); hb @ whd_b + bd_b is loop-invariant.
    wid_b = wid_b_ref[...]
    inv_b = jnp.dot(hb, whd_b_ref[...], preferred_element_type=jnp.float32) + bd_b_ref[...]
    dec_in = hb
    for t in range(few):
        gates = jnp.dot(dec_in, wid_b, preferred_element_type=jnp.float32) + inv_b
        h_t, _ = cell(gates, cb)
        diff = h_t - x_ref[:, few - 1 - t, :]
        sq = sq + diff * diff
        dec_in = h_t

    # ---------------- "attention" pool + output linear -------------------------------------
    # Softmax(dim=2) over a size-1 axis is identically 1, so the bmm reduces to a plain sum
    # over `few`; set_att_W / set_att_u are dead math (exact).
    enc_sum = xsum + hsum
    out = (jnp.dot(enc_sum, w_out_ref[...], preferred_element_type=jnp.float32)
           + b_out_ref[...])
    # one lane-dense (tb, out_pad) store; the per-row SSE rides in column `sse_col`
    sse = jnp.sum(sq, axis=1, keepdims=True)       # single cross-lane reduction
    lane = jax.lax.broadcasted_iota(jnp.int32, (tb, out_pad), 1)
    out_ref[...] = jnp.where(lane == sse_col, sse, out)


def elmo_dan_forward(inputs, params, tile_b=None):
    """inputs: (B, few, 2, E) f32; params: flat tuple of 14 2-D arrays.
    Returns (outputs (B,1,1,out_size), ae_for_loss + ae_back_loss)."""
    (wie_f, whe_f, be_f, wid_f, whd_f, bd_f,
     wie_b, whe_b, be_b, wid_b, whd_b, bd_b, w_out, b_out) = params
    B, few, two, E = inputs.shape
    D = two * E
    out_size = w_out.shape[1]
    x = inputs.reshape(B, few, D).astype(jnp.float32)

    # tile_b: multiple of 8, capped at 128 (vreg pressure, not VMEM, is the cap with small D),
    # and at least two batch tiles when possible so both v7x TensorCores get work.
    if tile_b is None:
        tile_b = B if B <= 8 else min(128, (((B + 1) // 2) + 7) // 8 * 8)
    if B >= 8:
        tile_b = max(8, min(tile_b, 128, B))
        tile_b = (tile_b // 8) * 8
    else:
        tile_b = B

    # pad batch to a multiple of tile_b (padded rows are dropped afterwards)
    Bp = -(-B // tile_b) * tile_b
    if Bp != B:
        x = jnp.concatenate([x, jnp.zeros((Bp - B, few, D), jnp.float32)], axis=0)

    # hoisted encoder input projections: one big XLA matmul per direction (M = Bp*few),
    # streamed into the kernel lane-dense with last dim 4D.
    gx_f = jnp.einsum('btd,dh->bth', x, wie_f) + be_f
    gx_b = jnp.einsum('btd,dh->bth', x[:, ::-1, :], wie_b) + be_b

    # forward decoder: dec_in == hidden at every step -> fold the two weights
    wdec_f = wid_f + whd_f

    # lane-dense output: pad the out linear to a multiple of 128 and pack the per-row SSE
    # into column `out_size` of the same block.
    out_pad = max(128, -(-(out_size + 1) // 128) * 128)
    w_out_p = jnp.zeros((D, out_pad), jnp.float32).at[:, :out_size].set(w_out)
    b_out_p = jnp.zeros((1, out_pad), jnp.float32).at[:, :out_size].set(b_out)

    weights = (whe_f, whe_b, wdec_f, bd_f, wid_b, whd_b, bd_b, w_out_p, b_out_p)
    weight_specs = [pl.BlockSpec(w.shape, lambda i: (0, 0)) for w in weights]

    slab = pl.pallas_call(
        functools.partial(elmo_dan_kernel, sse_col=out_size),
        out_shape=jax.ShapeDtypeStruct((Bp, out_pad), jnp.float32),
        grid=(Bp // tile_b,),
        in_specs=[pl.BlockSpec((tile_b, few, D), lambda i: (i, 0, 0)),
                  pl.BlockSpec((tile_b, few, 4 * D), lambda i: (i, 0, 0)),
                  pl.BlockSpec((tile_b, few, 4 * D), lambda i: (i, 0, 0))] + weight_specs,
        out_specs=pl.BlockSpec((tile_b, out_pad), lambda i: (i, 0)),
        compiler_params=pltpu.CompilerParams(dimension_semantics=("parallel",)),
    )(x, gx_f, gx_b, *weights)

    outputs = slab[:B, :out_size].reshape(B, 1, 1, out_size)
    # both MSELoss terms divide by the same element count B*few*D
    loss = jnp.sum(slab[:B, out_size]) / float(B * few * D)
    return outputs, loss


def make_params(key, embed_size, out_size):
    """Shapes mirror the module; LSTM weights pre-transposed to (D, 4D) and
    b_ih + b_hh folded into one (1, 4D) bias.  The attention Linears are not
    created because softmax over the size-1 dim makes them dead math."""
    D = 2 * embed_size
    H4 = 4 * D
    bound = 1.0 / (D ** 0.5)
    keys = iter(jax.random.split(key, 18))

    def u(shape):
        return jax.random.uniform(next(keys), shape, jnp.float32, -bound, bound)

    def lstm():
        wih = u((D, H4))
        whh = u((D, H4))
        b = u((1, H4)) + u((1, H4))   # b_ih + b_hh folded
        return wih, whh, b

    enc_f = lstm()
    dec_f = lstm()
    enc_b = lstm()
    dec_b = lstm()
    w_out = u((D, out_size))
    b_out = u((1, out_size))
    return (*enc_f, *dec_f, *enc_b, *dec_b, w_out, b_out)


def reference_forward(inputs, params):
    """Pure-JAX reference of the same forward (including the backward-decoder
    state bug and the softmax-over-size-1 attention)."""
    (wie_f, whe_f, be_f, wid_f, whd_f, bd_f,
     wie_b, whe_b, be_b, wid_b, whd_b, bd_b, w_out, b_out) = params
    B, few, two, E = inputs.shape
    D = two * E
    x = inputs.reshape(B, few, D)

    def cell(xt, h, c, wi, wh, b):
        gates = xt @ wi + h @ wh + b
        i, f, g, o = jnp.split(gates, 4, axis=-1)
        c = jax.nn.sigmoid(f) * c + jax.nn.sigmoid(i) * jnp.tanh(g)
        h = jax.nn.sigmoid(o) * jnp.tanh(c)
        return h, c

    def encoder(seq, wi, wh, b):
        h = jnp.zeros((B, D), jnp.float32)
        c = jnp.zeros((B, D), jnp.float32)
        outs = []
        for t in range(few):
            h, c = cell(seq[:, t, :], h, c, wi, wh, b)
            outs.append(h)
        return jnp.stack(outs, axis=1), h, c

    enc_f, hf, cf = encoder(x, wie_f, whe_f, be_f)
    dec_in, hd, cd = hf, hf, cf
    dec_f = []
    for _ in range(few):
        hd, cd = cell(dec_in, hd, cd, wid_f, whd_f, bd_f)
        dec_f.append(hd)
        dec_in = hd
    dec_f = jnp.stack(dec_f, axis=1)
    ae_for = jnp.mean((x - dec_f) ** 2)

    x_rev = x[:, ::-1, :]
    enc_b, hb, cb = encoder(x_rev, wie_b, whe_b, be_b)
    dec_in = hb
    dec_b = []
    for _ in range(few):
        h_t, _ = cell(dec_in, hb, cb, wid_b, whd_b, bd_b)  # state0 reused (PyTorch bug)
        dec_b.append(h_t)
        dec_in = h_t
    dec_b = jnp.stack(dec_b, axis=1)
    ae_back = jnp.mean((x_rev - dec_b) ** 2)

    enc_total = x + enc_f + enc_b[:, ::-1, :]
    pooled = jnp.sum(enc_total, axis=1)          # softmax over size-1 dim == ones -> plain sum
    out = pooled @ w_out + b_out
    return out.reshape(B, 1, 1, -1), ae_for + ae_back


if __name__ == "__main__":
    embed_size, out_size = 16, 32     # D = 2*embed = 32
    B, few = 16, 8

    key = jax.random.PRNGKey(0)
    k_x, k_p = jax.random.split(key)
    inputs = jax.random.normal(k_x, (B, few, 2, embed_size), jnp.float32)
    params = make_params(k_p, embed_size, out_size)

    out, loss = elmo_dan_forward(inputs, params)
    out = jax.block_until_ready(out)
    loss = jax.block_until_ready(loss)

    ref_out, ref_loss = reference_forward(inputs, params)
    assert out.shape == (B, 1, 1, out_size)
    assert jnp.allclose(out, ref_out, atol=1e-3, rtol=1e-3), \
        float(jnp.max(jnp.abs(out - ref_out)))
    assert jnp.allclose(loss, ref_loss, atol=1e-3, rtol=1e-3), \
        (float(loss), float(ref_loss))
    print("KERNEL_OK")
</pallas_src>

<mosaic_0001>
module attributes {stable_mosaic.version = 11 : i64} {
  func.func @elmo_dan_kernel(%arg0: i32, %arg1: memref<8x8x32xf32, #tpu.memory_space<vmem>>, %arg2: memref<8x8x128xf32, #tpu.memory_space<vmem>>, %arg3: memref<8x8x128xf32, #tpu.memory_space<vmem>>, %arg4: memref<32x128xf32, #tpu.memory_space<vmem>>, %arg5: memref<32x128xf32, #tpu.memory_space<vmem>>, %arg6: memref<32x128xf32, #tpu.memory_space<vmem>>, %arg7: memref<1x128xf32, #tpu.memory_space<vmem>>, %arg8: memref<32x128xf32, #tpu.memory_space<vmem>>, %arg9: memref<32x128xf32, #tpu.memory_space<vmem>>, %arg10: memref<1x128xf32, #tpu.memory_space<vmem>>, %arg11: memref<32x128xf32, #tpu.memory_space<vmem>>, %arg12: memref<1x128xf32, #tpu.memory_space<vmem>>, %arg13: memref<8x128xf32, #tpu.memory_space<vmem>>) attributes {dimension_semantics = [#tpu.dimension_semantics<parallel>], iteration_bounds = array<i64: 2>, scalar_prefetch = 0 : i64, scratch_operands = 0 : i64, tpu.core_type = #tpu.core_type<tc>, window_params = [{transform_indices = @transform_0, window_bounds = array<i64: 8, 8, 32>}, {transform_indices = @transform_1, window_bounds = array<i64: 8, 8, 128>}, {transform_indices = @transform_2, window_bounds = array<i64: 8, 8, 128>}, {pipeline_mode = #tpu.pipeline_mode<synchronous>, transform_indices = @transform_3, window_bounds = array<i64: 32, 128>}, {pipeline_mode = #tpu.pipeline_mode<synchronous>, transform_indices = @transform_4, window_bounds = array<i64: 32, 128>}, {pipeline_mode = #tpu.pipeline_mode<synchronous>, transform_indices = @transform_5, window_bounds = array<i64: 32, 128>}, {pipeline_mode = #tpu.pipeline_mode<synchronous>, transform_indices = @transform_6, window_bounds = array<i64: 1, 128>}, {pipeline_mode = #tpu.pipeline_mode<synchronous>, transform_indices = @transform_7, window_bounds = array<i64: 32, 128>}, {pipeline_mode = #tpu.pipeline_mode<synchronous>, transform_indices = @transform_8, window_bounds = array<i64: 32, 128>}, {pipeline_mode = #tpu.pipeline_mode<synchronous>, transform_indices = @transform_9, window_bounds = array<i64: 1, 128>}, {pipeline_mode = #tpu.pipeline_mode<synchronous>, transform_indices = @transform_10, window_bounds = array<i64: 32, 128>}, {pipeline_mode = #tpu.pipeline_mode<synchronous>, transform_indices = @transform_11, window_bounds = array<i64: 1, 128>}, {transform_indices = @transform_12, window_bounds = array<i64: 8, 128>}]} {
    %c0 = arith.constant 0 : index
    %c0_0 = arith.constant 0 : index
    %0 = vector.load %arg4[%c0, %c0_0] : memref<32x128xf32, #tpu.memory_space<vmem>>, vector<32x128xf32>
    %c0_1 = arith.constant 0 : index
    %c0_2 = arith.constant 0 : index
    %1 = vector.load %arg5[%c0_1, %c0_2] : memref<32x128xf32, #tpu.memory_space<vmem>>, vector<32x128xf32>
    %c0_3 = arith.constant 0 : index
    %c0_4 = arith.constant 0 : index
    %c0_5 = arith.constant 0 : index
    %2 = vector.load %arg2[%c0_3, %c0_4, %c0_5] : memref<8x8x128xf32, #tpu.memory_space<vmem>>, vector<8x1x128xf32>
    %3 = vector.shape_cast %2 : vector<8x1x128xf32> to vector<8x128xf32>
    %4 = arith.negf %3 : vector<8x128xf32>
    %5 = math.exp %4 : vector<8x128xf32>
    %cst = arith.constant 1.000000e+00 : f32
    %6 = vector.broadcast %cst : f32 to vector<8x128xf32>
    %7 = arith.addf %6, %5 : vector<8x128xf32>
    %8 = arith.divf %6, %7 : vector<8x128xf32>
    %9 = math.tanh %3 : vector<8x128xf32>
    %10 = vector.extract_strided_slice %8 {offsets = [0, 0], sizes = [8, 32], strides = [1, 1]} : vector<8x128xf32> to vector<8x32xf32>
    %11 = vector.extract_strided_slice %9 {offsets = [0, 64], sizes = [8, 32], strides = [1, 1]} : vector<8x128xf32> to vector<8x32xf32>
    %12 = vector.extract_strided_slice %8 {offsets = [0, 96], sizes = [8, 32], strides = [1, 1]} : vector<8x128xf32> to vector<8x32xf32>
    %13 = arith.mulf %10, %11 : vector<8x32xf32>
    %14 = math.tanh %13 : vector<8x32xf32>
    %15 = arith.mulf %12, %14 : vector<8x32xf32>
    %c0_6 = arith.constant 0 : index
    %c1 = arith.constant 1 : index
    %c0_7 = arith.constant 0 : index
    %16 = vector.load %arg2[%c0_6, %c1, %c0_7] : memref<8x8x128xf32, #tpu.memory_space<vmem>>, vector<8x1x128xf32>
    %17 = vector.shape_cast %16 : vector<8x1x128xf32> to vector<8x128xf32>
    %cst_8 = arith.constant dense<0.000000e+00> : vector<8x128xf32>
    %18 = tpu.matmul %15, %0, %cst_8 {dimension_numbers = #tpu.dot_dimension_numbers<[1], [0], [0], [1], [0, 0, 1, 1], [], []>} : vector<8x32xf32>, vector<32x128xf32>, vector<8x128xf32> -> vector<8x128xf32>
    %19 = arith.addf %17, %18 : vector<8x128xf32>
    %20 = arith.negf %19 : vector<8x128xf32>
    %21 = math.exp %20 : vector<8x128xf32>
    %cst_9 = arith.constant 1.000000e+00 : f32
    %22 = vector.broadcast %cst_9 : f32 to vector<8x128xf32>
    %23 = arith.addf %22, %21 : vector<8x128xf32>
    %24 = arith.divf %22, %23 : vector<8x128xf32>
    %25 = math.tanh %19 : vector<8x128xf32>
    %26 = vector.extract_strided_slice %24 {offsets = [0, 0], sizes = [8, 32], strides = [1, 1]} : vector<8x128xf32> to vector<8x32xf32>
    %27 = vector.extract_strided_slice %24 {offsets = [0, 32], sizes = [8, 32], strides = [1, 1]} : vector<8x128xf32> to vector<8x32xf32>
    %28 = vector.extract_strided_slice %25 {offsets = [0, 64], sizes = [8, 32], strides = [1, 1]} : vector<8x128xf32> to vector<8x32xf32>
    %29 = vector.extract_strided_slice %24 {offsets = [0, 96], sizes = [8, 32], strides = [1, 1]} : vector<8x128xf32> to vector<8x32xf32>
    %30 = arith.mulf %27, %13 : vector<8x32xf32>
    %31 = arith.mulf %26, %28 : vector<8x32xf32>
    %32 = arith.addf %30, %31 : vector<8x32xf32>
    %33 = math.tanh %32 : vector<8x32xf32>
    %34 = arith.mulf %29, %33 : vector<8x32xf32>
    %35 = arith.addf %15, %34 : vector<8x32xf32>
    %c0_10 = arith.constant 0 : index
    %c2 = arith.constant 2 : index
    %c0_11 = arith.constant 0 : index
    %36 = vector.load %arg2[%c0_10, %c2, %c0_11] : memref<8x8x128xf32, #tpu.memory_space<vmem>>, vector<8x1x128xf32>
    %37 = vector.shape_cast %36 : vector<8x1x128xf32> to vector<8x128xf32>
    %cst_12 = arith.constant dense<0.000000e+00> : vector<8x128xf32>
    %38 = tpu.matmul %34, %0, %cst_12 {dimension_numbers = #tpu.dot_dimension_numbers<[1], [0], [0], [1], [0, 0, 1, 1], [], []>} : vector<8x32xf32>, vector<32x128xf32>, vector<8x128xf32> -> vector<8x128xf32>
    %39 = arith.addf %37, %38 : vector<8x128xf32>
    %40 = arith.negf %39 : vector<8x128xf32>
    %41 = math.exp %40 : vector<8x128xf32>
    %cst_13 = arith.constant 1.000000e+00 : f32
    %42 = vector.broadcast %cst_13 : f32 to vector<8x128xf32>
    %43 = arith.addf %42, %41 : vector<8x128xf32>
    %44 = arith.divf %42, %43 : vector<8x128xf32>
    %45 = math.tanh %39 : vector<8x128xf32>
    %46 = vector.extract_strided_slice %44 {offsets = [0, 0], sizes = [8, 32], strides = [1, 1]} : vector<8x128xf32> to vector<8x32xf32>
    %47 = vector.extract_strided_slice %44 {offsets = [0, 32], sizes = [8, 32], strides = [1, 1]} : vector<8x128xf32> to vector<8x32xf32>
    %48 = vector.extract_strided_slice %45 {offsets = [0, 64], sizes = [8, 32], strides = [1, 1]} : vector<8x128xf32> to vector<8x32xf32>
    %49 = vector.extract_strided_slice %44 {offsets = [0, 96], sizes = [8, 32], strides = [1, 1]} : vector<8x128xf32> to vector<8x32xf32>
    %50 = arith.mulf %47, %32 : vector<8x32xf32>
    %51 = arith.mulf %46, %48 : vector<8x32xf32>
    %52 = arith.addf %50, %51 : vector<8x32xf32>
    %53 = math.tanh %52 : vector<8x32xf32>
    %54 = arith.mulf %49, %53 : vector<8x32xf32>
    %55 = arith.addf %35, %54 : vector<8x32xf32>
    %c0_14 = arith.constant 0 : index
    %c3 = arith.constant 3 : index
    %c0_15 = arith.constant 0 : index
    %56 = vector.load %arg2[%c0_14, %c3, %c0_15] : memref<8x8x128xf32, #tpu.memory_space<vmem>>, vector<8x1x128xf32>
    %57 = vector.shape_cast %56 : vector<8x1x128xf32> to vector<8x128xf32>
    %cst_16 = arith.constant dense<0.000000e+00> : vector<8x128xf32>
    %58 = tpu.matmul %54, %0, %cst_16 {dimension_numbers = #tpu.dot_dimension_numbers<[1], [0], [0], [1], [0, 0, 1, 1], [], []>} : vector<8x32xf32>, vector<32x128xf32>, vector<8x128xf32> -> vector<8x128xf32>
    %59 = arith.addf %57, %58 : vector<8x128xf32>
    %60 = arith.negf %59 : vector<8x128xf32>
    %61 = math.exp %60 : vector<8x128xf32>
    %cst_17 = arith.constant 1.000000e+00 : f32
    %62 = vector.broadcast %cst_17 : f32 to vector<8x128xf32>
    %63 = arith.addf %62, %61 : vector<8x128xf32>
    %64 = arith.divf %62, %63 : vector<8x128xf32>
    %65 = math.tanh %59 : vector<8x128xf32>
    %66 = vector.extract_strided_slice %64 {offsets = [0, 0], sizes = [8, 32], strides = [1, 1]} : vector<8x128xf32> to vector<8x32xf32>
    %67 = vector.extract_strided_slice %64 {offsets = [0, 32], sizes = [8, 32], strides = [1, 1]} : vector<8x128xf32> to vector<8x32xf32>
    %68 = vector.extract_strided_slice %65 {offsets = [0, 64], sizes = [8, 32], strides = [1, 1]} : vector<8x128xf32> to vector<8x32xf32>
    %69 = vector.extract_strided_slice %64 {offsets = [0, 96], sizes = [8, 32], strides = [1, 1]} : vector<8x128xf32> to vector<8x32xf32>
    %70 = arith.mulf %67, %52 : vector<8x32xf32>
    %71 = arith.mulf %66, %68 : vector<8x32xf32>
    %72 = arith.addf %70, %71 : vector<8x32xf32>
    %73 = math.tanh %72 : vector<8x32xf32>
    %74 = arith.mulf %69, %73 : vector<8x32xf32>
    %75 = arith.addf %55, %74 : vector<8x32xf32>
    %c0_18 = arith.constant 0 : index
    %c4 = arith.constant 4 : index
    %c0_19 = arith.constant 0 : index
    %76 = vector.load %arg2[%c0_18, %c4, %c0_19] : memref<8x8x128xf32, #tpu.memory_space<vmem>>, vector<8x1x128xf32>
    %77 = vector.shape_cast %76 : vector<8x1x128xf32> to vector<8x128xf32>
    %cst_20 = arith.constant dense<0.000000e+00> : vector<8x128xf32>
    %78 = tpu.matmul %74, %0, %cst_20 {dimension_numbers = #tpu.dot_dimension_numbers<[1], [0], [0], [1], [0, 0, 1, 1], [], []>} : vector<8x32xf32>, vector<32x128xf32>, vector<8x128xf32> -> vector<8x128xf32>
    %79 = arith.addf %77, %78 : vector<8x128xf32>
    %80 = arith.negf %79 : vector<8x128xf32>
    %81 = math.exp %80 : vector<8x128xf32>
    %cst_21 = arith.constant 1.000000e+00 : f32
    %82 = vector.broadcast %cst_21 : f32 to vector<8x128xf32>
    %83 = arith.addf %82, %81 : vector<8x128xf32>
    %84 = arith.divf %82, %83 : vector<8x128xf32>
    %85 = math.tanh %79 : vector<8x128xf32>
    %86 = vector.extract_strided_slice %84 {offsets = [0, 0], sizes = [8, 32], strides = [1, 1]} : vector<8x128xf32> to vector<8x32xf32>
    %87 = vector.extract_strided_slice %84 {offsets = [0, 32], sizes = [8, 32], strides = [1, 1]} : vector<8x128xf32> to vector<8x32xf32>
    %88 = vector.extract_strided_slice %85 {offsets = [0, 64], sizes = [8, 32], strides = [1, 1]} : vector<8x128xf32> to vector<8x32xf32>
    %89 = vector.extract_strided_slice %84 {offsets = [0, 96], sizes = [8, 32], strides = [1, 1]} : vector<8x128xf32> to vector<8x32xf32>
    %90 = arith.mulf %87, %72 : vector<8x32xf32>
    %91 = arith.mulf %86, %88 : vector<8x32xf32>
    %92 = arith.addf %90, %91 : vector<8x32xf32>
    %93 = math.tanh %92 : vector<8x32xf32>
    %94 = arith.mulf %89, %93 : vector<8x32xf32>
    %95 = arith.addf %75, %94 : vector<8x32xf32>
    %c0_22 = arith.constant 0 : index
    %c5 = arith.constant 5 : index
    %c0_23 = arith.constant 0 : index
    %96 = vector.load %arg2[%c0_22, %c5, %c0_23] : memref<8x8x128xf32, #tpu.memory_space<vmem>>, vector<8x1x128xf32>
    %97 = vector.shape_cast %96 : vector<8x1x128xf32> to vector<8x128xf32>
    %cst_24 = arith.constant dense<0.000000e+00> : vector<8x128xf32>
    %98 = tpu.matmul %94, %0, %cst_24 {dimension_numbers = #tpu.dot_dimension_numbers<[1], [0], [0], [1], [0, 0, 1, 1], [], []>} : vector<8x32xf32>, vector<32x128xf32>, vector<8x128xf32> -> vector<8x128xf32>
    %99 = arith.addf %97, %98 : vector<8x128xf32>
    %100 = arith.negf %99 : vector<8x128xf32>
    %101 = math.exp %100 : vector<8x128xf32>
    %cst_25 = arith.constant 1.000000e+00 : f32
    %102 = vector.broadcast %cst_25 : f32 to vector<8x128xf32>
    %103 = arith.addf %102, %101 : vector<8x128xf32>
    %104 = arith.divf %102, %103 : vector<8x128xf32>
    %105 = math.tanh %99 : vector<8x128xf32>
    %106 = vector.extract_strided_slice %104 {offsets = [0, 0], sizes = [8, 32], strides = [1, 1]} : vector<8x128xf32> to vector<8x32xf32>
    %107 = vector.extract_strided_slice %104 {offsets = [0, 32], sizes = [8, 32], strides = [1, 1]} : vector<8x128xf32> to vector<8x32xf32>
    %108 = vector.extract_strided_slice %105 {offsets = [0, 64], sizes = [8, 32], strides = [1, 1]} : vector<8x128xf32> to vector<8x32xf32>
    %109 = vector.extract_strided_slice %104 {offsets = [0, 96], sizes = [8, 32], strides = [1, 1]} : vector<8x128xf32> to vector<8x32xf32>
    %110 = arith.mulf %107, %92 : vector<8x32xf32>
    %111 = arith.mulf %106, %108 : vector<8x32xf32>
    %112 = arith.addf %110, %111 : vector<8x32xf32>
    %113 = math.tanh %112 : vector<8x32xf32>
    %114 = arith.mulf %109, %113 : vector<8x32xf32>
    %115 = arith.addf %95, %114 : vector<8x32xf32>
    %c0_26 = arith.constant 0 : index
    %c6 = arith.constant 6 : index
    %c0_27 = arith.constant 0 : index
    %116 = vector.load %arg2[%c0_26, %c6, %c0_27] : memref<8x8x128xf32, #tpu.memory_space<vmem>>, vector<8x1x128xf32>
    %117 = vector.shape_cast %116 : vector<8x1x128xf32> to vector<8x128xf32>
    %cst_28 = arith.constant dense<0.000000e+00> : vector<8x128xf32>
    %118 = tpu.matmul %114, %0, %cst_28 {dimension_numbers = #tpu.dot_dimension_numbers<[1], [0], [0], [1], [0, 0, 1, 1], [], []>} : vector<8x32xf32>, vector<32x128xf32>, vector<8x128xf32> -> vector<8x128xf32>
    %119 = arith.addf %117, %118 : vector<8x128xf32>
    %120 = arith.negf %119 : vector<8x128xf32>
    %121 = math.exp %120 : vector<8x128xf32>
    %cst_29 = arith.constant 1.000000e+00 : f32
    %122 = vector.broadcast %cst_29 : f32 to vector<8x128xf32>
    %123 = arith.addf %122, %121 : vector<8x128xf32>
    %124 = arith.divf %122, %123 : vector<8x128xf32>
    %125 = math.tanh %119 : vector<8x128xf32>
    %126 = vector.extract_strided_slice %124 {offsets = [0, 0], sizes = [8, 32], strides = [1, 1]} : vector<8x128xf32> to vector<8x32xf32>
    %127 = vector.extract_strided_slice %124 {offsets = [0, 32], sizes = [8, 32], strides = [1, 1]} : vector<8x128xf32> to vector<8x32xf32>
    %128 = vector.extract_strided_slice %125 {offsets = [0, 64], sizes = [8, 32], strides = [1, 1]} : vector<8x128xf32> to vector<8x32xf32>
    %129 = vector.extract_strided_slice %124 {offsets = [0, 96], sizes = [8, 32], strides = [1, 1]} : vector<8x128xf32> to vector<8x32xf32>
    %130 = arith.mulf %127, %112 : vector<8x32xf32>
    %131 = arith.mulf %126, %128 : vector<8x32xf32>
    %132 = arith.addf %130, %131 : vector<8x32xf32>
    %133 = math.tanh %132 : vector<8x32xf32>
    %134 = arith.mulf %129, %133 : vector<8x32xf32>
    %135 = arith.addf %115, %134 : vector<8x32xf32>
    %c0_30 = arith.constant 0 : index
    %c7 = arith.constant 7 : index
    %c0_31 = arith.constant 0 : index
    %136 = vector.load %arg2[%c0_30, %c7, %c0_31] : memref<8x8x128xf32, #tpu.memory_space<vmem>>, vector<8x1x128xf32>
    %137 = vector.shape_cast %136 : vector<8x1x128xf32> to vector<8x128xf32>
    %cst_32 = arith.constant dense<0.000000e+00> : vector<8x128xf32>
    %138 = tpu.matmul %134, %0, %cst_32 {dimension_numbers = #tpu.dot_dimension_numbers<[1], [0], [0], [1], [0, 0, 1, 1], [], []>} : vector<8x32xf32>, vector<32x128xf32>, vector<8x128xf32> -> vector<8x128xf32>
    %139 = arith.addf %137, %138 : vector<8x128xf32>
    %140 = arith.negf %139 : vector<8x128xf32>
    %141 = math.exp %140 : vector<8x128xf32>
    %cst_33 = arith.constant 1.000000e+00 : f32
    %142 = vector.broadcast %cst_33 : f32 to vector<8x128xf32>
    %143 = arith.addf %142, %141 : vector<8x128xf32>
    %144 = arith.divf %142, %143 : vector<8x128xf32>
    %145 = math.tanh %139 : vector<8x128xf32>
    %146 = vector.extract_strided_slice %144 {offsets = [0, 0], sizes = [8, 32], strides = [1, 1]} : vector<8x128xf32> to vector<8x32xf32>
    %147 = vector.extract_strided_slice %144 {offsets = [0, 32], sizes = [8, 32], strides = [1, 1]} : vector<8x128xf32> to vector<8x32xf32>
    %148 = vector.extract_strided_slice %145 {offsets = [0, 64], sizes = [8, 32], strides = [1, 1]} : vector<8x128xf32> to vector<8x32xf32>
    %149 = vector.extract_strided_slice %144 {offsets = [0, 96], sizes = [8, 32], strides = [1, 1]} : vector<8x128xf32> to vector<8x32xf32>
    %150 = arith.mulf %147, %132 : vector<8x32xf32>
    %151 = arith.mulf %146, %148 : vector<8x32xf32>
    %152 = arith.addf %150, %151 : vector<8x32xf32>
    %153 = math.tanh %152 : vector<8x32xf32>
    %154 = arith.mulf %149, %153 : vector<8x32xf32>
    %155 = arith.addf %135, %154 : vector<8x32xf32>
    %c0_34 = arith.constant 0 : index
    %c0_35 = arith.constant 0 : index
    %156 = vector.load %arg6[%c0_34, %c0_35] : memref<32x128xf32, #tpu.memory_space<vmem>>, vector<32x128xf32>
    %c0_36 = arith.constant 0 : index
    %c0_37 = arith.constant 0 : index
    %157 = vector.load %arg7[%c0_36, %c0_37] : memref<1x128xf32, #tpu.memory_space<vmem>>, vector<1x128xf32>
    %cst_38 = arith.constant 0.000000e+00 : f32
    %158 = vector.broadcast %cst_38 : f32 to vector<8x32xf32>
    %cst_39 = arith.constant 0.000000e+00 : f32
    %159 = vector.broadcast %cst_39 : f32 to vector<8x32xf32>
    %cst_40 = arith.constant dense<0.000000e+00> : vector<8x128xf32>
    %160 = tpu.matmul %154, %156, %cst_40 {dimension_numbers = #tpu.dot_dimension_numbers<[1], [0], [0], [1], [0, 0, 1, 1], [], []>} : vector<8x32xf32>, vector<32x128xf32>, vector<8x128xf32> -> vector<8x128xf32>
    %161 = vector.broadcast %157 : vector<1x128xf32> to vector<8x128xf32>
    %162 = arith.addf %160, %161 : vector<8x128xf32>
    %163 = arith.negf %162 : vector<8x128xf32>
    %164 = math.exp %163 : vector<8x128xf32>
    %cst_41 = arith.constant 1.000000e+00 : f32
    %165 = vector.broadcast %cst_41 : f32 to vector<8x128xf32>
    %166 = arith.addf %165, %164 : vector<8x128xf32>
    %167 = arith.divf %165, %166 : vector<8x128xf32>
    %168 = math.tanh %162 : vector<8x128xf32>
    %169 = vector.extract_strided_slice %167 {offsets = [0, 0], sizes = [8, 32], strides = [1, 1]} : vector<8x128xf32> to vector<8x32xf32>
    %170 = vector.extract_strided_slice %167 {offsets = [0, 32], sizes = [8, 32], strides = [1, 1]} : vector<8x128xf32> to vector<8x32xf32>
    %171 = vector.extract_strided_slice %168 {offsets = [0, 64], sizes = [8, 32], strides = [1, 1]} : vector<8x128xf32> to vector<8x32xf32>
    %172 = vector.extract_strided_slice %167 {offsets = [0, 96], sizes = [8, 32], strides = [1, 1]} : vector<8x128xf32> to vector<8x32xf32>
    %173 = arith.mulf %170, %152 : vector<8x32xf32>
    %174 = arith.mulf %169, %171 : vector<8x32xf32>
    %175 = arith.addf %173, %174 : vector<8x32xf32>
    %176 = math.tanh %175 : vector<8x32xf32>
    %177 = arith.mulf %172, %176 : vector<8x32xf32>
    %c0_42 = arith.constant 0 : index
    %c0_43 = arith.constant 0 : index
    %c0_44 = arith.constant 0 : index
    %178 = vector.load %arg1[%c0_42, %c0_43, %c0_44] : memref<8x8x32xf32, #tpu.memory_space<vmem>>, vector<8x1x32xf32>
    %179 = vector.shape_cast %178 : vector<8x1x32xf32> to vector<8x32xf32>
    %180 = arith.addf %159, %179 : vector<8x32xf32>
    %181 = arith.subf %177, %179 : vector<8x32xf32>
    %182 = arith.mulf %181, %181 : vector<8x32xf32>
    %183 = arith.addf %158, %182 : vector<8x32xf32>
    %cst_45 = arith.constant dense<0.000000e+00> : vector<8x128xf32>
    %184 = tpu.matmul %177, %156, %cst_45 {dimension_numbers = #tpu.dot_dimension_numbers<[1], [0], [0], [1], [0, 0, 1, 1], [], []>} : vector<8x32xf32>, vector<32x128xf32>, vector<8x128xf32> -> vector<8x128xf32>
    %185 = vector.broadcast %157 : vector<1x128xf32> to vector<8x128xf32>
    %186 = arith.addf %184, %185 : vector<8x128xf32>
    %187 = arith.negf %186 : vector<8x128xf32>
    %188 = math.exp %187 : vector<8x128xf32>
    %cst_46 = arith.constant 1.000000e+00 : f32
    %189 = vector.broadcast %cst_46 : f32 to vector<8x128xf32>
    %190 = arith.addf %189, %188 : vector<8x128xf32>
    %191 = arith.divf %189, %190 : vector<8x128xf32>
    %192 = math.tanh %186 : vector<8x128xf32>
    %193 = vector.extract_strided_slice %191 {offsets = [0, 0], sizes = [8, 32], strides = [1, 1]} : vector<8x128xf32> to vector<8x32xf32>
    %194 = vector.extract_strided_slice %191 {offsets = [0, 32], sizes = [8, 32], strides = [1, 1]} : vector<8x128xf32> to vector<8x32xf32>
    %195 = vector.extract_strided_slice %192 {offsets = [0, 64], sizes = [8, 32], strides = [1, 1]} : vector<8x128xf32> to vector<8x32xf32>
    %196 = vector.extract_strided_slice %191 {offsets = [0, 96], sizes = [8, 32], strides = [1, 1]} : vector<8x128xf32> to vector<8x32xf32>
    %197 = arith.mulf %194, %175 : vector<8x32xf32>
    %198 = arith.mulf %193, %195 : vector<8x32xf32>
    %199 = arith.addf %197, %198 : vector<8x32xf32>
    %200 = math.tanh %199 : vector<8x32xf32>
    %201 = arith.mulf %196, %200 : vector<8x32xf32>
    %c0_47 = arith.constant 0 : index
    %c1_48 = arith.constant 1 : index
    %c0_49 = arith.constant 0 : index
    %202 = vector.load %arg1[%c0_47, %c1_48, %c0_49] : memref<8x8x32xf32, #tpu.memory_space<vmem>>, vector<8x1x32xf32>
    %203 = vector.shape_cast %202 : vector<8x1x32xf32> to vector<8x32xf32>
    %204 = arith.addf %180, %203 : vector<8x32xf32>
    %205 = arith.subf %201, %203 : vector<8x32xf32>
    %206 = arith.mulf %205, %205 : vector<8x32xf32>
    %207 = arith.addf %183, %206 : vector<8x32xf32>
    %cst_50 = arith.constant dense<0.000000e+00> : vector<8x128xf32>
    %208 = tpu.matmul %201, %156, %cst_50 {dimension_numbers = #tpu.dot_dimension_numbers<[1], [0], [0], [1], [0, 0, 1, 1], [], []>} : vector<8x32xf32>, vector<32x128xf32>, vector<8x128xf32> -> vector<8x128xf32>
    %209 = vector.broadcast %157 : vector<1x128xf32> to vector<8x128xf32>
    %210 = arith.addf %208, %209 : vector<8x128xf32>
    %211 = arith.negf %210 : vector<8x128xf32>
    %212 = math.exp %211 : vector<8x128xf32>
    %cst_51 = arith.constant 1.000000e+00 : f32
    %213 = vector.broadcast %cst_51 : f32 to vector<8x128xf32>
    %214 = arith.addf %213, %212 : vector<8x128xf32>
    %215 = arith.divf %213, %214 : vector<8x128xf32>
    %216 = math.tanh %210 : vector<8x128xf32>
    %217 = vector.extract_strided_slice %215 {offsets = [0, 0], sizes = [8, 32], strides = [1, 1]} : vector<8x128xf32> to vector<8x32xf32>
    %218 = vector.extract_strided_slice %215 {offsets = [0, 32], sizes = [8, 32], strides = [1, 1]} : vector<8x128xf32> to vector<8x32xf32>
    %219 = vector.extract_strided_slice %216 {offsets = [0, 64], sizes = [8, 32], strides = [1, 1]} : vector<8x128xf32> to vector<8x32xf32>
    %220 = vector.extract_strided_slice %215 {offsets = [0, 96], sizes = [8, 32], strides = [1, 1]} : vector<8x128xf32> to vector<8x32xf32>
    %221 = arith.mulf %218, %199 : vector<8x32xf32>
    %222 = arith.mulf %217, %219 : vector<8x32xf32>
    %223 = arith.addf %221, %222 : vector<8x32xf32>
    %224 = math.tanh %223 : vector<8x32xf32>
    %225 = arith.mulf %220, %224 : vector<8x32xf32>
    %c0_52 = arith.constant 0 : index
    %c2_53 = arith.constant 2 : index
    %c0_54 = arith.constant 0 : index
    %226 = vector.load %arg1[%c0_52, %c2_53, %c0_54] : memref<8x8x32xf32, #tpu.memory_space<vmem>>, vector<8x1x32xf32>
    %227 = vector.shape_cast %226 : vector<8x1x32xf32> to vector<8x32xf32>
    %228 = arith.addf %204, %227 : vector<8x32xf32>
    %229 = arith.subf %225, %227 : vector<8x32xf32>
    %230 = arith.mulf %229, %229 : vector<8x32xf32>
    %231 = arith.addf %207, %230 : vector<8x32xf32>
    %cst_55 = arith.constant dense<0.000000e+00> : vector<8x128xf32>
    %232 = tpu.matmul %225, %156, %cst_55 {dimension_numbers = #tpu.dot_dimension_numbers<[1], [0], [0], [1], [0, 0, 1, 1], [], []>} : vector<8x32xf32>, vector<32x128xf32>, vector<8x128xf32> -> vector<8x128xf32>
    %233 = vector.broadcast %157 : vector<1x128xf32> to vector<8x128xf32>
    %234 = arith.addf %232, %233 : vector<8x128xf32>
    %235 = arith.negf %234 : vector<8x128xf32>
    %236 = math.exp %235 : vector<8x128xf32>
    %cst_56 = arith.constant 1.000000e+00 : f32
    %237 = vector.broadcast %cst_56 : f32 to vector<8x128xf32>
    %238 = arith.addf %237, %236 : vector<8x128xf32>
    %239 = arith.divf %237, %238 : vector<8x128xf32>
    %240 = math.tanh %234 : vector<8x128xf32>
    %241 = vector.extract_strided_slice %239 {offsets = [0, 0], sizes = [8, 32], strides = [1, 1]} : vector<8x128xf32> to vector<8x32xf32>
    %242 = vector.extract_strided_slice %239 {offsets = [0, 32], sizes = [8, 32], strides = [1, 1]} : vector<8x128xf32> to vector<8x32xf32>
    %243 = vector.extract_strided_slice %240 {offsets = [0, 64], sizes = [8, 32], strides = [1, 1]} : vector<8x128xf32> to vector<8x32xf32>
    %244 = vector.extract_strided_slice %239 {offsets = [0, 96], sizes = [8, 32], strides = [1, 1]} : vector<8x128xf32> to vector<8x32xf32>
    %245 = arith.mulf %242, %223 : vector<8x32xf32>
    %246 = arith.mulf %241, %243 : vector<8x32xf32>
    %247 = arith.addf %245, %246 : vector<8x32xf32>
    %248 = math.tanh %247 : vector<8x32xf32>
    %249 = arith.mulf %244, %248 : vector<8x32xf32>
    %c0_57 = arith.constant 0 : index
    %c3_58 = arith.constant 3 : index
    %c0_59 = arith.constant 0 : index
    %250 = vector.load %arg1[%c0_57, %c3_58, %c0_59] : memref<8x8x32xf32, #tpu.memory_space<vmem>>, vector<8x1x32xf32>
    %251 = vector.shape_cast %250 : vector<8x1x32xf32> to vector<8x32xf32>
    %252 = arith.addf %228, %251 : vector<8x32xf32>
    %253 = arith.subf %249, %251 : vector<8x32xf32>
    %254 = arith.mulf %253, %253 : vector<8x32xf32>
    %255 = arith.addf %231, %254 : vector<8x32xf32>
    %cst_60 = arith.constant dense<0.000000e+00> : vector<8x128xf32>
    %256 = tpu.matmul %249, %156, %cst_60 {dimension_numbers = #tpu.dot_dimension_numbers<[1], [0], [0], [1], [0, 0, 1, 1], [], []>} : vector<8x32xf32>, vector<32x128xf32>, vector<8x128xf32> -> vector<8x128xf32>
    %257 = vector.broadcast %157 : vector<1x128xf32> to vector<8x128xf32>
    %258 = arith.addf %256, %257 : vector<8x128xf32>
    %259 = arith.negf %258 : vector<8x128xf32>
    %260 = math.exp %259 : vector<8x128xf32>
    %cst_61 = arith.constant 1.000000e+00 : f32
    %261 = vector.broadcast %cst_61 : f32 to vector<8x128xf32>
    %262 = arith.addf %261, %260 : vector<8x128xf32>
    %263 = arith.divf %261, %262 : vector<8x128xf32>
    %264 = math.tanh %258 : vector<8x128xf32>
    %265 = vector.extract_strided_slice %263 {offsets = [0, 0], sizes = [8, 32], strides = [1, 1]} : vector<8x128xf32> to vector<8x32xf32>
    %266 = vector.extract_strided_slice %263 {offsets = [0, 32], sizes = [8, 32], strides = [1, 1]} : vector<8x128xf32> to vector<8x32xf32>
    %267 = vector.extract_strided_slice %264 {offsets = [0, 64], sizes = [8, 32], strides = [1, 1]} : vector<8x128xf32> to vector<8x32xf32>
    %268 = vector.extract_strided_slice %263 {offsets = [0, 96], sizes = [8, 32], strides = [1, 1]} : vector<8x128xf32> to vector<8x32xf32>
    %269 = arith.mulf %266, %247 : vector<8x32xf32>
    %270 = arith.mulf %265, %267 : vector<8x32xf32>
    %271 = arith.addf %269, %270 : vector<8x32xf32>
    %272 = math.tanh %271 : vector<8x32xf32>
    %273 = arith.mulf %268, %272 : vector<8x32xf32>
    %c0_62 = arith.constant 0 : index
    %c4_63 = arith.constant 4 : index
    %c0_64 = arith.constant 0 : index
    %274 = vector.load %arg1[%c0_62, %c4_63, %c0_64] : memref<8x8x32xf32, #tpu.memory_space<vmem>>, vector<8x1x32xf32>
    %275 = vector.shape_cast %274 : vector<8x1x32xf32> to vector<8x32xf32>
    %276 = arith.addf %252, %275 : vector<8x32xf32>
    %277 = arith.subf %273, %275 : vector<8x32xf32>
    %278 = arith.mulf %277, %277 : vector<8x32xf32>
    %279 = arith.addf %255, %278 : vector<8x32xf32>
    %cst_65 = arith.constant dense<0.000000e+00> : vector<8x128xf32>
    %280 = tpu.matmul %273, %156, %cst_65 {dimension_numbers = #tpu.dot_dimension_numbers<[1], [0], [0], [1], [0, 0, 1, 1], [], []>} : vector<8x32xf32>, vector<32x128xf32>, vector<8x128xf32> -> vector<8x128xf32>
    %281 = vector.broadcast %157 : vector<1x128xf32> to vector<8x128xf32>
    %282 = arith.addf %280, %281 : vector<8x128xf32>
    %283 = arith.negf %282 : vector<8x128xf32>
    %284 = math.exp %283 : vector<8x128xf32>
    %cst_66 = arith.constant 1.000000e+00 : f32
    %285 = vector.broadcast %cst_66 : f32 to vector<8x128xf32>
    %286 = arith.addf %285, %284 : vector<8x128xf32>
    %287 = arith.divf %285, %286 : vector<8x128xf32>
    %288 = math.tanh %282 : vector<8x128xf32>
    %289 = vector.extract_strided_slice %287 {offsets = [0, 0], sizes = [8, 32], strides = [1, 1]} : vector<8x128xf32> to vector<8x32xf32>
    %290 = vector.extract_strided_slice %287 {offsets = [0, 32], sizes = [8, 32], strides = [1, 1]} : vector<8x128xf32> to vector<8x32xf32>
    %291 = vector.extract_strided_slice %288 {offsets = [0, 64], sizes = [8, 32], strides = [1, 1]} : vector<8x128xf32> to vector<8x32xf32>
    %292 = vector.extract_strided_slice %287 {offsets = [0, 96], sizes = [8, 32], strides = [1, 1]} : vector<8x128xf32> to vector<8x32xf32>
    %293 = arith.mulf %290, %271 : vector<8x32xf32>
    %294 = arith.mulf %289, %291 : vector<8x32xf32>
    %295 = arith.addf %293, %294 : vector<8x32xf32>
    %296 = math.tanh %295 : vector<8x32xf32>
    %297 = arith.mulf %292, %296 : vector<8x32xf32>
    %c0_67 = arith.constant 0 : index
    %c5_68 = arith.constant 5 : index
    %c0_69 = arith.constant 0 : index
    %298 = vector.load %arg1[%c0_67, %c5_68, %c0_69] : memref<8x8x32xf32, #tpu.memory_space<vmem>>, vector<8x1x32xf32>
    %299 = vector.shape_cast %298 : vector<8x1x32xf32> to vector<8x32xf32>
    %300 = arith.addf %276, %299 : vector<8x32xf32>
    %301 = arith.subf %297, %299 : vector<8x32xf32>
    %302 = arith.mulf %301, %301 : vector<8x32xf32>
    %303 = arith.addf %279, %302 : vector<8x32xf32>
    %cst_70 = arith.constant dense<0.000000e+00> : vector<8x128xf32>
    %304 = tpu.matmul %297, %156, %cst_70 {dimension_numbers = #tpu.dot_dimension_numbers<[1], [0], [0], [1], [0, 0, 1, 1], [], []>} : vector<8x32xf32>, vector<32x128xf32>, vector<8x128xf32> -> vector<8x128xf32>
    %305 = vector.broadcast %157 : vector<1x128xf32> to vector<8x128xf32>
    %306 = arith.addf %304, %305 : vector<8x128xf32>
    %307 = arith.negf %306 : vector<8x128xf32>
    %308 = math.exp %307 : vector<8x128xf32>
    %cst_71 = arith.constant 1.000000e+00 : f32
    %309 = vector.broadcast %cst_71 : f32 to vector<8x128xf32>
    %310 = arith.addf %309, %308 : vector<8x128xf32>
    %311 = arith.divf %309, %310 : vector<8x128xf32>
    %312 = math.tanh %306 : vector<8x128xf32>
    %313 = vector.extract_strided_slice %311 {offsets = [0, 0], sizes = [8, 32], strides = [1, 1]} : vector<8x128xf32> to vector<8x32xf32>
    %314 = vector.extract_strided_slice %311 {offsets = [0, 32], sizes = [8, 32], strides = [1, 1]} : vector<8x128xf32> to vector<8x32xf32>
    %315 = vector.extract_strided_slice %312 {offsets = [0, 64], sizes = [8, 32], strides = [1, 1]} : vector<8x128xf32> to vector<8x32xf32>
    %316 = vector.extract_strided_slice %311 {offsets = [0, 96], sizes = [8, 32], strides = [1, 1]} : vector<8x128xf32> to vector<8x32xf32>
    %317 = arith.mulf %314, %295 : vector<8x32xf32>
    %318 = arith.mulf %313, %315 : vector<8x32xf32>
    %319 = arith.addf %317, %318 : vector<8x32xf32>
    %320 = math.tanh %319 : vector<8x32xf32>
    %321 = arith.mulf %316, %320 : vector<8x32xf32>
    %c0_72 = arith.constant 0 : index
    %c6_73 = arith.constant 6 : index
    %c0_74 = arith.constant 0 : index
    %322 = vector.load %arg1[%c0_72, %c6_73, %c0_74] : memref<8x8x32xf32, #tpu.memory_space<vmem>>, vector<8x1x32xf32>
    %323 = vector.shape_cast %322 : vector<8x1x32xf32> to vector<8x32xf32>
    %324 = arith.addf %300, %323 : vector<8x32xf32>
    %325 = arith.subf %321, %323 : vector<8x32xf32>
    %326 = arith.mulf %325, %325 : vector<8x32xf32>
    %327 = arith.addf %303, %326 : vector<8x32xf32>
    %cst_75 = arith.constant dense<0.000000e+00> : vector<8x128xf32>
    %328 = tpu.matmul %321, %156, %cst_75 {dimension_numbers = #tpu.dot_dimension_numbers<[1], [0], [0], [1], [0, 0, 1, 1], [], []>} : vector<8x32xf32>, vector<32x128xf32>, vector<8x128xf32> -> vector<8x128xf32>
    %329 = vector.broadcast %157 : vector<1x128xf32> to vector<8x128xf32>
    %330 = arith.addf %328, %329 : vector<8x128xf32>
    %331 = arith.negf %330 : vector<8x128xf32>
    %332 = math.exp %331 : vector<8x128xf32>
    %cst_76 = arith.constant 1.000000e+00 : f32
    %333 = vector.broadcast %cst_76 : f32 to vector<8x128xf32>
    %334 = arith.addf %333, %332 : vector<8x128xf32>
    %335 = arith.divf %333, %334 : vector<8x128xf32>
    %336 = math.tanh %330 : vector<8x128xf32>
    %337 = vector.extract_strided_slice %335 {offsets = [0, 0], sizes = [8, 32], strides = [1, 1]} : vector<8x128xf32> to vector<8x32xf32>
    %338 = vector.extract_strided_slice %335 {offsets = [0, 32], sizes = [8, 32], strides = [1, 1]} : vector<8x128xf32> to vector<8x32xf32>
    %339 = vector.extract_strided_slice %336 {offsets = [0, 64], sizes = [8, 32], strides = [1, 1]} : vector<8x128xf32> to vector<8x32xf32>
    %340 = vector.extract_strided_slice %335 {offsets = [0, 96], sizes = [8, 32], strides = [1, 1]} : vector<8x128xf32> to vector<8x32xf32>
    %341 = arith.mulf %338, %319 : vector<8x32xf32>
    %342 = arith.mulf %337, %339 : vector<8x32xf32>
    %343 = arith.addf %341, %342 : vector<8x32xf32>
    %344 = math.tanh %343 : vector<8x32xf32>
    %345 = arith.mulf %340, %344 : vector<8x32xf32>
    %c0_77 = arith.constant 0 : index
    %c7_78 = arith.constant 7 : index
    %c0_79 = arith.constant 0 : index
    %346 = vector.load %arg1[%c0_77, %c7_78, %c0_79] : memref<8x8x32xf32, #tpu.memory_space<vmem>>, vector<8x1x32xf32>
    %347 = vector.shape_cast %346 : vector<8x1x32xf32> to vector<8x32xf32>
    %348 = arith.addf %324, %347 : vector<8x32xf32>
    %349 = arith.subf %345, %347 : vector<8x32xf32>
    %350 = arith.mulf %349, %349 : vector<8x32xf32>
    %351 = arith.addf %327, %350 : vector<8x32xf32>
    %c0_80 = arith.constant 0 : index
    %c0_81 = arith.constant 0 : index
    %c0_82 = arith.constant 0 : index
    %352 = vector.load %arg3[%c0_80, %c0_81, %c0_82] : memref<8x8x128xf32, #tpu.memory_space<vmem>>, vector<8x1x128xf32>
    %353 = vector.shape_cast %352 : vector<8x1x128xf32> to vector<8x128xf32>
    %354 = arith.negf %353 : vector<8x128xf32>
    %355 = math.exp %354 : vector<8x128xf32>
    %cst_83 = arith.constant 1.000000e+00 : f32
    %356 = vector.broadcast %cst_83 : f32 to vector<8x128xf32>
    %357 = arith.addf %356, %355 : vector<8x128xf32>
    %358 = arith.divf %356, %357 : vector<8x128xf32>
    %359 = math.tanh %353 : vector<8x128xf32>
    %360 = vector.extract_strided_slice %358 {offsets = [0, 0], sizes = [8, 32], strides = [1, 1]} : vector<8x128xf32> to vector<8x32xf32>
    %361 = vector.extract_strided_slice %359 {offsets = [0, 64], sizes = [8, 32], strides = [1, 1]} : vector<8x128xf32> to vector<8x32xf32>
    %362 = vector.extract_strided_slice %358 {offsets = [0, 96], sizes = [8, 32], strides = [1, 1]} : vector<8x128xf32> to vector<8x32xf32>
    %363 = arith.mulf %360, %361 : vector<8x32xf32>
    %364 = math.tanh %363 : vector<8x32xf32>
    %365 = arith.mulf %362, %364 : vector<8x32xf32>
    %366 = arith.addf %155, %365 : vector<8x32xf32>
    %c0_84 = arith.constant 0 : index
    %c1_85 = arith.constant 1 : index
    %c0_86 = arith.constant 0 : index
    %367 = vector.load %arg3[%c0_84, %c1_85, %c0_86] : memref<8x8x128xf32, #tpu.memory_space<vmem>>, vector<8x1x128xf32>
    %368 = vector.shape_cast %367 : vector<8x1x128xf32> to vector<8x128xf32>
    %cst_87 = arith.constant dense<0.000000e+00> : vector<8x128xf32>
    %369 = tpu.matmul %365, %1, %cst_87 {dimension_numbers = #tpu.dot_dimension_numbers<[1], [0], [0], [1], [0, 0, 1, 1], [], []>} : vector<8x32xf32>, vector<32x128xf32>, vector<8x128xf32> -> vector<8x128xf32>
    %370 = arith.addf %368, %369 : vector<8x128xf32>
    %371 = arith.negf %370 : vector<8x128xf32>
    %372 = math.exp %371 : vector<8x128xf32>
    %cst_88 = arith.constant 1.000000e+00 : f32
    %373 = vector.broadcast %cst_88 : f32 to vector<8x128xf32>
    %374 = arith.addf %373, %372 : vector<8x128xf32>
    %375 = arith.divf %373, %374 : vector<8x128xf32>
    %376 = math.tanh %370 : vector<8x128xf32>
    %377 = vector.extract_strided_slice %375 {offsets = [0, 0], sizes = [8, 32], strides = [1, 1]} : vector<8x128xf32> to vector<8x32xf32>
    %378 = vector.extract_strided_slice %375 {offsets = [0, 32], sizes = [8, 32], strides = [1, 1]} : vector<8x128xf32> to vector<8x32xf32>
    %379 = vector.extract_strided_slice %376 {offsets = [0, 64], sizes = [8, 32], strides = [1, 1]} : vector<8x128xf32> to vector<8x32xf32>
    %380 = vector.extract_strided_slice %375 {offsets = [0, 96], sizes = [8, 32], strides = [1, 1]} : vector<8x128xf32> to vector<8x32xf32>
    %381 = arith.mulf %378, %363 : vector<8x32xf32>
    %382 = arith.mulf %377, %379 : vector<8x32xf32>
    %383 = arith.addf %381, %382 : vector<8x32xf32>
    %384 = math.tanh %383 : vector<8x32xf32>
    %385 = arith.mulf %380, %384 : vector<8x32xf32>
    %386 = arith.addf %366, %385 : vector<8x32xf32>
    %c0_89 = arith.constant 0 : index
    %c2_90 = arith.constant 2 : index
    %c0_91 = arith.constant 0 : index
    %387 = vector.load %arg3[%c0_89, %c2_90, %c0_91] : memref<8x8x128xf32, #tpu.memory_space<vmem>>, vector<8x1x128xf32>
    %388 = vector.shape_cast %387 : vector<8x1x128xf32> to vector<8x128xf32>
    %cst_92 = arith.constant dense<0.000000e+00> : vector<8x128xf32>
    %389 = tpu.matmul %385, %1, %cst_92 {dimension_numbers = #tpu.dot_dimension_numbers<[1], [0], [0], [1], [0, 0, 1, 1], [], []>} : vector<8x32xf32>, vector<32x128xf32>, vector<8x128xf32> -> vector<8x128xf32>
    %390 = arith.addf %388, %389 : vector<8x128xf32>
    %391 = arith.negf %390 : vector<8x128xf32>
    %392 = math.exp %391 : vector<8x128xf32>
    %cst_93 = arith.constant 1.000000e+00 : f32
    %393 = vector.broadcast %cst_93 : f32 to vector<8x128xf32>
    %394 = arith.addf %393, %392 : vector<8x128xf32>
    %395 = arith.divf %393, %394 : vector<8x128xf32>
    %396 = math.tanh %390 : vector<8x128xf32>
    %397 = vector.extract_strided_slice %395 {offsets = [0, 0], sizes = [8, 32], strides = [1, 1]} : vector<8x128xf32> to vector<8x32xf32>
    %398 = vector.extract_strided_slice %395 {offsets = [0, 32], sizes = [8, 32], strides = [1, 1]} : vector<8x128xf32> to vector<8x32xf32>
    %399 = vector.extract_strided_slice %396 {offsets = [0, 64], sizes = [8, 32], strides = [1, 1]} : vector<8x128xf32> to vector<8x32xf32>
    %400 = vector.extract_strided_slice %395 {offsets = [0, 96], sizes = [8, 32], strides = [1, 1]} : vector<8x128xf32> to vector<8x32xf32>
    %401 = arith.mulf %398, %383 : vector<8x32xf32>
    %402 = arith.mulf %397, %399 : vector<8x32xf32>
    %403 = arith.addf %401, %402 : vector<8x32xf32>
    %404 = math.tanh %403 : vector<8x32xf32>
    %405 = arith.mulf %400, %404 : vector<8x32xf32>
    %406 = arith.addf %386, %405 : vector<8x32xf32>
    %c0_94 = arith.constant 0 : index
    %c3_95 = arith.constant 3 : index
    %c0_96 = arith.constant 0 : index
    %407 = vector.load %arg3[%c0_94, %c3_95, %c0_96] : memref<8x8x128xf32, #tpu.memory_space<vmem>>, vector<8x1x128xf32>
    %408 = vector.shape_cast %407 : vector<8x1x128xf32> to vector<8x128xf32>
    %cst_97 = arith.constant dense<0.000000e+00> : vector<8x128xf32>
    %409 = tpu.matmul %405, %1, %cst_97 {dimension_numbers = #tpu.dot_dimension_numbers<[1], [0], [0], [1], [0, 0, 1, 1], [], []>} : vector<8x32xf32>, vector<32x128xf32>, vector<8x128xf32> -> vector<8x128xf32>
    %410 = arith.addf %408, %409 : vector<8x128xf32>
    %411 = arith.negf %410 : vector<8x128xf32>
    %412 = math.exp %411 : vector<8x128xf32>
    %cst_98 = arith.constant 1.000000e+00 : f32
    %413 = vector.broadcast %cst_98 : f32 to vector<8x128xf32>
    %414 = arith.addf %413, %412 : vector<8x128xf32>
    %415 = arith.divf %413, %414 : vector<8x128xf32>
    %416 = math.tanh %410 : vector<8x128xf32>
    %417 = vector.extract_strided_slice %415 {offsets = [0, 0], sizes = [8, 32], strides = [1, 1]} : vector<8x128xf32> to vector<8x32xf32>
    %418 = vector.extract_strided_slice %415 {offsets = [0, 32], sizes = [8, 32], strides = [1, 1]} : vector<8x128xf32> to vector<8x32xf32>
    %419 = vector.extract_strided_slice %416 {offsets = [0, 64], sizes = [8, 32], strides = [1, 1]} : vector<8x128xf32> to vector<8x32xf32>
    %420 = vector.extract_strided_slice %415 {offsets = [0, 96], sizes = [8, 32], strides = [1, 1]} : vector<8x128xf32> to vector<8x32xf32>
    %421 = arith.mulf %418, %403 : vector<8x32xf32>
    %422 = arith.mulf %417, %419 : vector<8x32xf32>
    %423 = arith.addf %421, %422 : vector<8x32xf32>
    %424 = math.tanh %423 : vector<8x32xf32>
    %425 = arith.mulf %420, %424 : vector<8x32xf32>
    %426 = arith.addf %406, %425 : vector<8x32xf32>
    %c0_99 = arith.constant 0 : index
    %c4_100 = arith.constant 4 : index
    %c0_101 = arith.constant 0 : index
    %427 = vector.load %arg3[%c0_99, %c4_100, %c0_101] : memref<8x8x128xf32, #tpu.memory_space<vmem>>, vector<8x1x128xf32>
    %428 = vector.shape_cast %427 : vector<8x1x128xf32> to vector<8x128xf32>
    %cst_102 = arith.constant dense<0.000000e+00> : vector<8x128xf32>
    %429 = tpu.matmul %425, %1, %cst_102 {dimension_numbers = #tpu.dot_dimension_numbers<[1], [0], [0], [1], [0, 0, 1, 1], [], []>} : vector<8x32xf32>, vector<32x128xf32>, vector<8x128xf32> -> vector<8x128xf32>
    %430 = arith.addf %428, %429 : vector<8x128xf32>
    %431 = arith.negf %430 : vector<8x128xf32>
    %432 = math.exp %431 : vector<8x128xf32>
    %cst_103 = arith.constant 1.000000e+00 : f32
    %433 = vector.broadcast %cst_103 : f32 to vector<8x128xf32>
    %434 = arith.addf %433, %432 : vector<8x128xf32>
    %435 = arith.divf %433, %434 : vector<8x128xf32>
    %436 = math.tanh %430 : vector<8x128xf32>
    %437 = vector.extract_strided_slice %435 {offsets = [0, 0], sizes = [8, 32], strides = [1, 1]} : vector<8x128xf32> to vector<8x32xf32>
    %438 = vector.extract_strided_slice %435 {offsets = [0, 32], sizes = [8, 32], strides = [1, 1]} : vector<8x128xf32> to vector<8x32xf32>
    %439 = vector.extract_strided_slice %436 {offsets = [0, 64], sizes = [8, 32], strides = [1, 1]} : vector<8x128xf32> to vector<8x32xf32>
    %440 = vector.extract_strided_slice %435 {offsets = [0, 96], sizes = [8, 32], strides = [1, 1]} : vector<8x128xf32> to vector<8x32xf32>
    %441 = arith.mulf %438, %423 : vector<8x32xf32>
    %442 = arith.mulf %437, %439 : vector<8x32xf32>
    %443 = arith.addf %441, %442 : vector<8x32xf32>
    %444 = math.tanh %443 : vector<8x32xf32>
    %445 = arith.mulf %440, %444 : vector<8x32xf32>
    %446 = arith.addf %426, %445 : vector<8x32xf32>
    %c0_104 = arith.constant 0 : index
    %c5_105 = arith.constant 5 : index
    %c0_106 = arith.constant 0 : index
    %447 = vector.load %arg3[%c0_104, %c5_105, %c0_106] : memref<8x8x128xf32, #tpu.memory_space<vmem>>, vector<8x1x128xf32>
    %448 = vector.shape_cast %447 : vector<8x1x128xf32> to vector<8x128xf32>
    %cst_107 = arith.constant dense<0.000000e+00> : vector<8x128xf32>
    %449 = tpu.matmul %445, %1, %cst_107 {dimension_numbers = #tpu.dot_dimension_numbers<[1], [0], [0], [1], [0, 0, 1, 1], [], []>} : vector<8x32xf32>, vector<32x128xf32>, vector<8x128xf32> -> vector<8x128xf32>
    %450 = arith.addf %448, %449 : vector<8x128xf32>
    %451 = arith.negf %450 : vector<8x128xf32>
    %452 = math.exp %451 : vector<8x128xf32>
    %cst_108 = arith.constant 1.000000e+00 : f32
    %453 = vector.broadcast %cst_108 : f32 to vector<8x128xf32>
    %454 = arith.addf %453, %452 : vector<8x128xf32>
    %455 = arith.divf %453, %454 : vector<8x128xf32>
    %456 = math.tanh %450 : vector<8x128xf32>
    %457 = vector.extract_strided_slice %455 {offsets = [0, 0], sizes = [8, 32], strides = [1, 1]} : vector<8x128xf32> to vector<8x32xf32>
    %458 = vector.extract_strided_slice %455 {offsets = [0, 32], sizes = [8, 32], strides = [1, 1]} : vector<8x128xf32> to vector<8x32xf32>
    %459 = vector.extract_strided_slice %456 {offsets = [0, 64], sizes = [8, 32], strides = [1, 1]} : vector<8x128xf32> to vector<8x32xf32>
    %460 = vector.extract_strided_slice %455 {offsets = [0, 96], sizes = [8, 32], strides = [1, 1]} : vector<8x128xf32> to vector<8x32xf32>
    %461 = arith.mulf %458, %443 : vector<8x32xf32>
    %462 = arith.mulf %457, %459 : vector<8x32xf32>
    %463 = arith.addf %461, %462 : vector<8x32xf32>
    %464 = math.tanh %463 : vector<8x32xf32>
    %465 = arith.mulf %460, %464 : vector<8x32xf32>
    %466 = arith.addf %446, %465 : vector<8x32xf32>
    %c0_109 = arith.constant 0 : index
    %c6_110 = arith.constant 6 : index
    %c0_111 = arith.constant 0 : index
    %467 = vector.load %arg3[%c0_109, %c6_110, %c0_111] : memref<8x8x128xf32, #tpu.memory_space<vmem>>, vector<8x1x128xf32>
    %468 = vector.shape_cast %467 : vector<8x1x128xf32> to vector<8x128xf32>
    %cst_112 = arith.constant dense<0.000000e+00> : vector<8x128xf32>
    %469 = tpu.matmul %465, %1, %cst_112 {dimension_numbers = #tpu.dot_dimension_numbers<[1], [0], [0], [1], [0, 0, 1, 1], [], []>} : vector<8x32xf32>, vector<32x128xf32>, vector<8x128xf32> -> vector<8x128xf32>
    %470 = arith.addf %468, %469 : vector<8x128xf32>
    %471 = arith.negf %470 : vector<8x128xf32>
    %472 = math.exp %471 : vector<8x128xf32>
    %cst_113 = arith.constant 1.000000e+00 : f32
    %473 = vector.broadcast %cst_113 : f32 to vector<8x128xf32>
    %474 = arith.addf %473, %472 : vector<8x128xf32>
    %475 = arith.divf %473, %474 : vector<8x128xf32>
    %476 = math.tanh %470 : vector<8x128xf32>
    %477 = vector.extract_strided_slice %475 {offsets = [0, 0], sizes = [8, 32], strides = [1, 1]} : vector<8x128xf32> to vector<8x32xf32>
    %478 = vector.extract_strided_slice %475 {offsets = [0, 32], sizes = [8, 32], strides = [1, 1]} : vector<8x128xf32> to vector<8x32xf32>
    %479 = vector.extract_strided_slice %476 {offsets = [0, 64], sizes = [8, 32], strides = [1, 1]} : vector<8x128xf32> to vector<8x32xf32>
    %480 = vector.extract_strided_slice %475 {offsets = [0, 96], sizes = [8, 32], strides = [1, 1]} : vector<8x128xf32> to vector<8x32xf32>
    %481 = arith.mulf %478, %463 : vector<8x32xf32>
    %482 = arith.mulf %477, %479 : vector<8x32xf32>
    %483 = arith.addf %481, %482 : vector<8x32xf32>
    %484 = math.tanh %483 : vector<8x32xf32>
    %485 = arith.mulf %480, %484 : vector<8x32xf32>
    %486 = arith.addf %466, %485 : vector<8x32xf32>
    %c0_114 = arith.constant 0 : index
    %c7_115 = arith.constant 7 : index
    %c0_116 = arith.constant 0 : index
    %487 = vector.load %arg3[%c0_114, %c7_115, %c0_116] : memref<8x8x128xf32, #tpu.memory_space<vmem>>, vector<8x1x128xf32>
    %488 = vector.shape_cast %487 : vector<8x1x128xf32> to vector<8x128xf32>
    %cst_117 = arith.constant dense<0.000000e+00> : vector<8x128xf32>
    %489 = tpu.matmul %485, %1, %cst_117 {dimension_numbers = #tpu.dot_dimension_numbers<[1], [0], [0], [1], [0, 0, 1, 1], [], []>} : vector<8x32xf32>, vector<32x128xf32>, vector<8x128xf32> -> vector<8x128xf32>
    %490 = arith.addf %488, %489 : vector<8x128xf32>
    %491 = arith.negf %490 : vector<8x128xf32>
    %492 = math.exp %491 : vector<8x128xf32>
    %cst_118 = arith.constant 1.000000e+00 : f32
    %493 = vector.broadcast %cst_118 : f32 to vector<8x128xf32>
    %494 = arith.addf %493, %492 : vector<8x128xf32>
    %495 = arith.divf %493, %494 : vector<8x128xf32>
    %496 = math.tanh %490 : vector<8x128xf32>
    %497 = vector.extract_strided_slice %495 {offsets = [0, 0], sizes = [8, 32], strides = [1, 1]} : vector<8x128xf32> to vector<8x32xf32>
    %498 = vector.extract_strided_slice %495 {offsets = [0, 32], sizes = [8, 32], strides = [1, 1]} : vector<8x128xf32> to vector<8x32xf32>
    %499 = vector.extract_strided_slice %496 {offsets = [0, 64], sizes = [8, 32], strides = [1, 1]} : vector<8x128xf32> to vector<8x32xf32>
    %500 = vector.extract_strided_slice %495 {offsets = [0, 96], sizes = [8, 32], strides = [1, 1]} : vector<8x128xf32> to vector<8x32xf32>
    %501 = arith.mulf %498, %483 : vector<8x32xf32>
    %502 = arith.mulf %497, %499 : vector<8x32xf32>
    %503 = arith.addf %501, %502 : vector<8x32xf32>
    %504 = math.tanh %503 : vector<8x32xf32>
    %505 = arith.mulf %500, %504 : vector<8x32xf32>
    %506 = arith.addf %486, %505 : vector<8x32xf32>
    %c0_119 = arith.constant 0 : index
    %c0_120 = arith.constant 0 : index
    %507 = vector.load %arg8[%c0_119, %c0_120] : memref<32x128xf32, #tpu.memory_space<vmem>>, vector<32x128xf32>
    %c0_121 = arith.constant 0 : index
    %c0_122 = arith.constant 0 : index
    %508 = vector.load %arg9[%c0_121, %c0_122] : memref<32x128xf32, #tpu.memory_space<vmem>>, vector<32x128xf32>
    %cst_123 = arith.constant dense<0.000000e+00> : vector<8x128xf32>
    %509 = tpu.matmul %505, %508, %cst_123 {dimension_numbers = #tpu.dot_dimension_numbers<[1], [0], [0], [1], [0, 0, 1, 1], [], []>} : vector<8x32xf32>, vector<32x128xf32>, vector<8x128xf32> -> vector<8x128xf32>
    %c0_124 = arith.constant 0 : index
    %c0_125 = arith.constant 0 : index
    %510 = vector.load %arg10[%c0_124, %c0_125] : memref<1x128xf32, #tpu.memory_space<vmem>>, vector<1x128xf32>
    %511 = vector.broadcast %510 : vector<1x128xf32> to vector<8x128xf32>
    %512 = arith.addf %509, %511 : vector<8x128xf32>
    %cst_126 = arith.constant dense<0.000000e+00> : vector<8x128xf32>
    %513 = tpu.matmul %505, %507, %cst_126 {dimension_numbers = #tpu.dot_dimension_numbers<[1], [0], [0], [1], [0, 0, 1, 1], [], []>} : vector<8x32xf32>, vector<32x128xf32>, vector<8x128xf32> -> vector<8x128xf32>
    %514 = arith.addf %513, %512 : vector<8x128xf32>
    %515 = arith.negf %514 : vector<8x128xf32>
    %516 = math.exp %515 : vector<8x128xf32>
    %cst_127 = arith.constant 1.000000e+00 : f32
    %517 = vector.broadcast %cst_127 : f32 to vector<8x128xf32>
    %518 = arith.addf %517, %516 : vector<8x128xf32>
    %519 = arith.divf %517, %518 : vector<8x128xf32>
    %520 = math.tanh %514 : vector<8x128xf32>
    %521 = vector.extract_strided_slice %519 {offsets = [0, 0], sizes = [8, 32], strides = [1, 1]} : vector<8x128xf32> to vector<8x32xf32>
    %522 = vector.extract_strided_slice %519 {offsets = [0, 32], sizes = [8, 32], strides = [1, 1]} : vector<8x128xf32> to vector<8x32xf32>
    %523 = vector.extract_strided_slice %520 {offsets = [0, 64], sizes = [8, 32], strides = [1, 1]} : vector<8x128xf32> to vector<8x32xf32>
    %524 = vector.extract_strided_slice %519 {offsets = [0, 96], sizes = [8, 32], strides = [1, 1]} : vector<8x128xf32> to vector<8x32xf32>
    %525 = arith.mulf %522, %503 : vector<8x32xf32>
    %526 = arith.mulf %521, %523 : vector<8x32xf32>
    %527 = arith.addf %525, %526 : vector<8x32xf32>
    %528 = math.tanh %527 : vector<8x32xf32>
    %529 = arith.mulf %524, %528 : vector<8x32xf32>
    %c0_128 = arith.constant 0 : index
    %c7_129 = arith.constant 7 : index
    %c0_130 = arith.constant 0 : index
    %530 = vector.load %arg1[%c0_128, %c7_129, %c0_130] : memref<8x8x32xf32, #tpu.memory_space<vmem>>, vector<8x1x32xf32>
    %531 = vector.shape_cast %530 : vector<8x1x32xf32> to vector<8x32xf32>
    %532 = arith.subf %529, %531 : vector<8x32xf32>
    %533 = arith.mulf %532, %532 : vector<8x32xf32>
    %534 = arith.addf %351, %533 : vector<8x32xf32>
    %cst_131 = arith.constant dense<0.000000e+00> : vector<8x128xf32>
    %535 = tpu.matmul %529, %507, %cst_131 {dimension_numbers = #tpu.dot_dimension_numbers<[1], [0], [0], [1], [0, 0, 1, 1], [], []>} : vector<8x32xf32>, vector<32x128xf32>, vector<8x128xf32> -> vector<8x128xf32>
    %536 = arith.addf %535, %512 : vector<8x128xf32>
    %537 = arith.negf %536 : vector<8x128xf32>
    %538 = math.exp %537 : vector<8x128xf32>
    %cst_132 = arith.constant 1.000000e+00 : f32
    %539 = vector.broadcast %cst_132 : f32 to vector<8x128xf32>
    %540 = arith.addf %539, %538 : vector<8x128xf32>
    %541 = arith.divf %539, %540 : vector<8x128xf32>
    %542 = math.tanh %536 : vector<8x128xf32>
    %543 = vector.extract_strided_slice %541 {offsets = [0, 0], sizes = [8, 32], strides = [1, 1]} : vector<8x128xf32> to vector<8x32xf32>
    %544 = vector.extract_strided_slice %541 {offsets = [0, 32], sizes = [8, 32], strides = [1, 1]} : vector<8x128xf32> to vector<8x32xf32>
    %545 = vector.extract_strided_slice %542 {offsets = [0, 64], sizes = [8, 32], strides = [1, 1]} : vector<8x128xf32> to vector<8x32xf32>
    %546 = vector.extract_strided_slice %541 {offsets = [0, 96], sizes = [8, 32], strides = [1, 1]} : vector<8x128xf32> to vector<8x32xf32>
    %547 = arith.mulf %544, %503 : vector<8x32xf32>
    %548 = arith.mulf %543, %545 : vector<8x32xf32>
    %549 = arith.addf %547, %548 : vector<8x32xf32>
    %550 = math.tanh %549 : vector<8x32xf32>
    %551 = arith.mulf %546, %550 : vector<8x32xf32>
    %c0_133 = arith.constant 0 : index
    %c6_134 = arith.constant 6 : index
    %c0_135 = arith.constant 0 : index
    %552 = vector.load %arg1[%c0_133, %c6_134, %c0_135] : memref<8x8x32xf32, #tpu.memory_space<vmem>>, vector<8x1x32xf32>
    %553 = vector.shape_cast %552 : vector<8x1x32xf32> to vector<8x32xf32>
    %554 = arith.subf %551, %553 : vector<8x32xf32>
    %555 = arith.mulf %554, %554 : vector<8x32xf32>
    %556 = arith.addf %534, %555 : vector<8x32xf32>
    %cst_136 = arith.constant dense<0.000000e+00> : vector<8x128xf32>
    %557 = tpu.matmul %551, %507, %cst_136 {dimension_numbers = #tpu.dot_dimension_numbers<[1], [0], [0], [1], [0, 0, 1, 1], [], []>} : vector<8x32xf32>, vector<32x128xf32>, vector<8x128xf32> -> vector<8x128xf32>
    %558 = arith.addf %557, %512 : vector<8x128xf32>
    %559 = arith.negf %558 : vector<8x128xf32>
    %560 = math.exp %559 : vector<8x128xf32>
    %cst_137 = arith.constant 1.000000e+00 : f32
    %561 = vector.broadcast %cst_137 : f32 to vector<8x128xf32>
    %562 = arith.addf %561, %560 : vector<8x128xf32>
    %563 = arith.divf %561, %562 : vector<8x128xf32>
    %564 = math.tanh %558 : vector<8x128xf32>
    %565 = vector.extract_strided_slice %563 {offsets = [0, 0], sizes = [8, 32], strides = [1, 1]} : vector<8x128xf32> to vector<8x32xf32>
    %566 = vector.extract_strided_slice %563 {offsets = [0, 32], sizes = [8, 32], strides = [1, 1]} : vector<8x128xf32> to vector<8x32xf32>
    %567 = vector.extract_strided_slice %564 {offsets = [0, 64], sizes = [8, 32], strides = [1, 1]} : vector<8x128xf32> to vector<8x32xf32>
    %568 = vector.extract_strided_slice %563 {offsets = [0, 96], sizes = [8, 32], strides = [1, 1]} : vector<8x128xf32> to vector<8x32xf32>
    %569 = arith.mulf %566, %503 : vector<8x32xf32>
    %570 = arith.mulf %565, %567 : vector<8x32xf32>
    %571 = arith.addf %569, %570 : vector<8x32xf32>
    %572 = math.tanh %571 : vector<8x32xf32>
    %573 = arith.mulf %568, %572 : vector<8x32xf32>
    %c0_138 = arith.constant 0 : index
    %c5_139 = arith.constant 5 : index
    %c0_140 = arith.constant 0 : index
    %574 = vector.load %arg1[%c0_138, %c5_139, %c0_140] : memref<8x8x32xf32, #tpu.memory_space<vmem>>, vector<8x1x32xf32>
    %575 = vector.shape_cast %574 : vector<8x1x32xf32> to vector<8x32xf32>
    %576 = arith.subf %573, %575 : vector<8x32xf32>
    %577 = arith.mulf %576, %576 : vector<8x32xf32>
    %578 = arith.addf %556, %577 : vector<8x32xf32>
    %cst_141 = arith.constant dense<0.000000e+00> : vector<8x128xf32>
    %579 = tpu.matmul %573, %507, %cst_141 {dimension_numbers = #tpu.dot_dimension_numbers<[1], [0], [0], [1], [0, 0, 1, 1], [], []>} : vector<8x32xf32>, vector<32x128xf32>, vector<8x128xf32> -> vector<8x128xf32>
    %580 = arith.addf %579, %512 : vector<8x128xf32>
    %581 = arith.negf %580 : vector<8x128xf32>
    %582 = math.exp %581 : vector<8x128xf32>
    %cst_142 = arith.constant 1.000000e+00 : f32
    %583 = vector.broadcast %cst_142 : f32 to vector<8x128xf32>
    %584 = arith.addf %583, %582 : vector<8x128xf32>
    %585 = arith.divf %583, %584 : vector<8x128xf32>
    %586 = math.tanh %580 : vector<8x128xf32>
    %587 = vector.extract_strided_slice %585 {offsets = [0, 0], sizes = [8, 32], strides = [1, 1]} : vector<8x128xf32> to vector<8x32xf32>
    %588 = vector.extract_strided_slice %585 {offsets = [0, 32], sizes = [8, 32], strides = [1, 1]} : vector<8x128xf32> to vector<8x32xf32>
    %589 = vector.extract_strided_slice %586 {offsets = [0, 64], sizes = [8, 32], strides = [1, 1]} : vector<8x128xf32> to vector<8x32xf32>
    %590 = vector.extract_strided_slice %585 {offsets = [0, 96], sizes = [8, 32], strides = [1, 1]} : vector<8x128xf32> to vector<8x32xf32>
    %591 = arith.mulf %588, %503 : vector<8x32xf32>
    %592 = arith.mulf %587, %589 : vector<8x32xf32>
    %593 = arith.addf %591, %592 : vector<8x32xf32>
    %594 = math.tanh %593 : vector<8x32xf32>
    %595 = arith.mulf %590, %594 : vector<8x32xf32>
    %c0_143 = arith.constant 0 : index
    %c4_144 = arith.constant 4 : index
    %c0_145 = arith.constant 0 : index
    %596 = vector.load %arg1[%c0_143, %c4_144, %c0_145] : memref<8x8x32xf32, #tpu.memory_space<vmem>>, vector<8x1x32xf32>
    %597 = vector.shape_cast %596 : vector<8x1x32xf32> to vector<8x32xf32>
    %598 = arith.subf %595, %597 : vector<8x32xf32>
    %599 = arith.mulf %598, %598 : vector<8x32xf32>
    %600 = arith.addf %578, %599 : vector<8x32xf32>
    %cst_146 = arith.constant dense<0.000000e+00> : vector<8x128xf32>
    %601 = tpu.matmul %595, %507, %cst_146 {dimension_numbers = #tpu.dot_dimension_numbers<[1], [0], [0], [1], [0, 0, 1, 1], [], []>} : vector<8x32xf32>, vector<32x128xf32>, vector<8x128xf32> -> vector<8x128xf32>
    %602 = arith.addf %601, %512 : vector<8x128xf32>
    %603 = arith.negf %602 : vector<8x128xf32>
    %604 = math.exp %603 : vector<8x128xf32>
    %cst_147 = arith.constant 1.000000e+00 : f32
    %605 = vector.broadcast %cst_147 : f32 to vector<8x128xf32>
    %606 = arith.addf %605, %604 : vector<8x128xf32>
    %607 = arith.divf %605, %606 : vector<8x128xf32>
    %608 = math.tanh %602 : vector<8x128xf32>
    %609 = vector.extract_strided_slice %607 {offsets = [0, 0], sizes = [8, 32], strides = [1, 1]} : vector<8x128xf32> to vector<8x32xf32>
    %610 = vector.extract_strided_slice %607 {offsets = [0, 32], sizes = [8, 32], strides = [1, 1]} : vector<8x128xf32> to vector<8x32xf32>
    %611 = vector.extract_strided_slice %608 {offsets = [0, 64], sizes = [8, 32], strides = [1, 1]} : vector<8x128xf32> to vector<8x32xf32>
    %612 = vector.extract_strided_slice %607 {offsets = [0, 96], sizes = [8, 32], strides = [1, 1]} : vector<8x128xf32> to vector<8x32xf32>
    %613 = arith.mulf %610, %503 : vector<8x32xf32>
    %614 = arith.mulf %609, %611 : vector<8x32xf32>
    %615 = arith.addf %613, %614 : vector<8x32xf32>
    %616 = math.tanh %615 : vector<8x32xf32>
    %617 = arith.mulf %612, %616 : vector<8x32xf32>
    %c0_148 = arith.constant 0 : index
    %c3_149 = arith.constant 3 : index
    %c0_150 = arith.constant 0 : index
    %618 = vector.load %arg1[%c0_148, %c3_149, %c0_150] : memref<8x8x32xf32, #tpu.memory_space<vmem>>, vector<8x1x32xf32>
    %619 = vector.shape_cast %618 : vector<8x1x32xf32> to vector<8x32xf32>
    %620 = arith.subf %617, %619 : vector<8x32xf32>
    %621 = arith.mulf %620, %620 : vector<8x32xf32>
    %622 = arith.addf %600, %621 : vector<8x32xf32>
    %cst_151 = arith.constant dense<0.000000e+00> : vector<8x128xf32>
    %623 = tpu.matmul %617, %507, %cst_151 {dimension_numbers = #tpu.dot_dimension_numbers<[1], [0], [0], [1], [0, 0, 1, 1], [], []>} : vector<8x32xf32>, vector<32x128xf32>, vector<8x128xf32> -> vector<8x128xf32>
    %624 = arith.addf %623, %512 : vector<8x128xf32>
    %625 = arith.negf %624 : vector<8x128xf32>
    %626 = math.exp %625 : vector<8x128xf32>
    %cst_152 = arith.constant 1.000000e+00 : f32
    %627 = vector.broadcast %cst_152 : f32 to vector<8x128xf32>
    %628 = arith.addf %627, %626 : vector<8x128xf32>
    %629 = arith.divf %627, %628 : vector<8x128xf32>
    %630 = math.tanh %624 : vector<8x128xf32>
    %631 = vector.extract_strided_slice %629 {offsets = [0, 0], sizes = [8, 32], strides = [1, 1]} : vector<8x128xf32> to vector<8x32xf32>
    %632 = vector.extract_strided_slice %629 {offsets = [0, 32], sizes = [8, 32], strides = [1, 1]} : vector<8x128xf32> to vector<8x32xf32>
    %633 = vector.extract_strided_slice %630 {offsets = [0, 64], sizes = [8, 32], strides = [1, 1]} : vector<8x128xf32> to vector<8x32xf32>
    %634 = vector.extract_strided_slice %629 {offsets = [0, 96], sizes = [8, 32], strides = [1, 1]} : vector<8x128xf32> to vector<8x32xf32>
    %635 = arith.mulf %632, %503 : vector<8x32xf32>
    %636 = arith.mulf %631, %633 : vector<8x32xf32>
    %637 = arith.addf %635, %636 : vector<8x32xf32>
    %638 = math.tanh %637 : vector<8x32xf32>
    %639 = arith.mulf %634, %638 : vector<8x32xf32>
    %c0_153 = arith.constant 0 : index
    %c2_154 = arith.constant 2 : index
    %c0_155 = arith.constant 0 : index
    %640 = vector.load %arg1[%c0_153, %c2_154, %c0_155] : memref<8x8x32xf32, #tpu.memory_space<vmem>>, vector<8x1x32xf32>
    %641 = vector.shape_cast %640 : vector<8x1x32xf32> to vector<8x32xf32>
    %642 = arith.subf %639, %641 : vector<8x32xf32>
    %643 = arith.mulf %642, %642 : vector<8x32xf32>
    %644 = arith.addf %622, %643 : vector<8x32xf32>
    %cst_156 = arith.constant dense<0.000000e+00> : vector<8x128xf32>
    %645 = tpu.matmul %639, %507, %cst_156 {dimension_numbers = #tpu.dot_dimension_numbers<[1], [0], [0], [1], [0, 0, 1, 1], [], []>} : vector<8x32xf32>, vector<32x128xf32>, vector<8x128xf32> -> vector<8x128xf32>
    %646 = arith.addf %645, %512 : vector<8x128xf32>
    %647 = arith.negf %646 : vector<8x128xf32>
    %648 = math.exp %647 : vector<8x128xf32>
    %cst_157 = arith.constant 1.000000e+00 : f32
    %649 = vector.broadcast %cst_157 : f32 to vector<8x128xf32>
    %650 = arith.addf %649, %648 : vector<8x128xf32>
    %651 = arith.divf %649, %650 : vector<8x128xf32>
    %652 = math.tanh %646 : vector<8x128xf32>
    %653 = vector.extract_strided_slice %651 {offsets = [0, 0], sizes = [8, 32], strides = [1, 1]} : vector<8x128xf32> to vector<8x32xf32>
    %654 = vector.extract_strided_slice %651 {offsets = [0, 32], sizes = [8, 32], strides = [1, 1]} : vector<8x128xf32> to vector<8x32xf32>
    %655 = vector.extract_strided_slice %652 {offsets = [0, 64], sizes = [8, 32], strides = [1, 1]} : vector<8x128xf32> to vector<8x32xf32>
    %656 = vector.extract_strided_slice %651 {offsets = [0, 96], sizes = [8, 32], strides = [1, 1]} : vector<8x128xf32> to vector<8x32xf32>
    %657 = arith.mulf %654, %503 : vector<8x32xf32>
    %658 = arith.mulf %653, %655 : vector<8x32xf32>
    %659 = arith.addf %657, %658 : vector<8x32xf32>
    %660 = math.tanh %659 : vector<8x32xf32>
    %661 = arith.mulf %656, %660 : vector<8x32xf32>
    %c0_158 = arith.constant 0 : index
    %c1_159 = arith.constant 1 : index
    %c0_160 = arith.constant 0 : index
    %662 = vector.load %arg1[%c0_158, %c1_159, %c0_160] : memref<8x8x32xf32, #tpu.memory_space<vmem>>, vector<8x1x32xf32>
    %663 = vector.shape_cast %662 : vector<8x1x32xf32> to vector<8x32xf32>
    %664 = arith.subf %661, %663 : vector<8x32xf32>
    %665 = arith.mulf %664, %664 : vector<8x32xf32>
    %666 = arith.addf %644, %665 : vector<8x32xf32>
    %cst_161 = arith.constant dense<0.000000e+00> : vector<8x128xf32>
    %667 = tpu.matmul %661, %507, %cst_161 {dimension_numbers = #tpu.dot_dimension_numbers<[1], [0], [0], [1], [0, 0, 1, 1], [], []>} : vector<8x32xf32>, vector<32x128xf32>, vector<8x128xf32> -> vector<8x128xf32>
    %668 = arith.addf %667, %512 : vector<8x128xf32>
    %669 = arith.negf %668 : vector<8x128xf32>
    %670 = math.exp %669 : vector<8x128xf32>
    %cst_162 = arith.constant 1.000000e+00 : f32
    %671 = vector.broadcast %cst_162 : f32 to vector<8x128xf32>
    %672 = arith.addf %671, %670 : vector<8x128xf32>
    %673 = arith.divf %671, %672 : vector<8x128xf32>
    %674 = math.tanh %668 : vector<8x128xf32>
    %675 = vector.extract_strided_slice %673 {offsets = [0, 0], sizes = [8, 32], strides = [1, 1]} : vector<8x128xf32> to vector<8x32xf32>
    %676 = vector.extract_strided_slice %673 {offsets = [0, 32], sizes = [8, 32], strides = [1, 1]} : vector<8x128xf32> to vector<8x32xf32>
    %677 = vector.extract_strided_slice %674 {offsets = [0, 64], sizes = [8, 32], strides = [1, 1]} : vector<8x128xf32> to vector<8x32xf32>
    %678 = vector.extract_strided_slice %673 {offsets = [0, 96], sizes = [8, 32], strides = [1, 1]} : vector<8x128xf32> to vector<8x32xf32>
    %679 = arith.mulf %676, %503 : vector<8x32xf32>
    %680 = arith.mulf %675, %677 : vector<8x32xf32>
    %681 = arith.addf %679, %680 : vector<8x32xf32>
    %682 = math.tanh %681 : vector<8x32xf32>
    %683 = arith.mulf %678, %682 : vector<8x32xf32>
    %c0_163 = arith.constant 0 : index
    %c0_164 = arith.constant 0 : index
    %c0_165 = arith.constant 0 : index
    %684 = vector.load %arg1[%c0_163, %c0_164, %c0_165] : memref<8x8x32xf32, #tpu.memory_space<vmem>>, vector<8x1x32xf32>
    %685 = vector.shape_cast %684 : vector<8x1x32xf32> to vector<8x32xf32>
    %686 = arith.subf %683, %685 : vector<8x32xf32>
    %687 = arith.mulf %686, %686 : vector<8x32xf32>
    %688 = arith.addf %666, %687 : vector<8x32xf32>
    %689 = arith.addf %348, %506 : vector<8x32xf32>
    %c0_166 = arith.constant 0 : index
    %c0_167 = arith.constant 0 : index
    %690 = vector.load %arg11[%c0_166, %c0_167] : memref<32x128xf32, #tpu.memory_space<vmem>>, vector<32x128xf32>
    %cst_168 = arith.constant dense<0.000000e+00> : vector<8x128xf32>
    %691 = tpu.matmul %689, %690, %cst_168 {dimension_numbers = #tpu.dot_dimension_numbers<[1], [0], [0], [1], [0, 0, 1, 1], [], []>} : vector<8x32xf32>, vector<32x128xf32>, vector<8x128xf32> -> vector<8x128xf32>
    %c0_169 = arith.constant 0 : index
    %c0_170 = arith.constant 0 : index
    %692 = vector.load %arg12[%c0_169, %c0_170] : memref<1x128xf32, #tpu.memory_space<vmem>>, vector<1x128xf32>
    %693 = vector.broadcast %692 : vector<1x128xf32> to vector<8x128xf32>
    %694 = arith.addf %691, %693 : vector<8x128xf32>
    %cst_171 = arith.constant dense<0.000000e+00> : vector<8xf32>
    %695 = vector.multi_reduction <add>, %688, %cst_171 [1] : vector<8x32xf32> to vector<8xf32>
    %696 = vector.shape_cast %695 : vector<8xf32> to vector<8x1xf32>
    %697 = tpu.iota {dimensions = array<i32: 1>} : vector<8x128xi32>
    %c32_i32 = arith.constant 32 : i32
    %698 = vector.broadcast %c32_i32 : i32 to vector<8x128xi32>
    %699 = arith.cmpi eq, %697, %698 : vector<8x128xi32>
    %700 = vector.shape_cast %696 : vector<8x1xf32> to vector<8x1xf32>
    %701 = vector.broadcast %700 : vector<8x1xf32> to vector<8x128xf32>
    %702 = arith.select %699, %701, %694 : vector<8x128xi1>, vector<8x128xf32>
    %c0_172 = arith.constant 0 : index
    %c0_173 = arith.constant 0 : index
    %703 = vector.load %arg13[%c0_172, %c0_173] : memref<8x128xf32, #tpu.memory_space<vmem>>, vector<8x128xf32>
    tpu.vector_store %arg13[%c0_172, %c0_173], %702 {strides = array<i32>} : memref<8x128xf32, #tpu.memory_space<vmem>>, vector<8x128xf32>,
    return
  }
  func.func @transform_0(%arg0: i32) -> (i32, i32, i32) {
    %c0_i32 = arith.constant 0 : i32
    %c0_i32_0 = arith.constant 0 : i32
    %c0_i32_1 = arith.constant 0 : i32
    return %arg0, %c0_i32, %c0_i32_0 : i32, i32, i32
  }
  func.func @transform_1(%arg0: i32) -> (i32, i32, i32) {
    %c0_i32 = arith.constant 0 : i32
    %c0_i32_0 = arith.constant 0 : i32
    %c0_i32_1 = arith.constant 0 : i32
    return %arg0, %c0_i32, %c0_i32_0 : i32, i32, i32
  }
  func.func @transform_2(%arg0: i32) -> (i32, i32, i32) {
    %c0_i32 = arith.constant 0 : i32
    %c0_i32_0 = arith.constant 0 : i32
    %c0_i32_1 = arith.constant 0 : i32
    return %arg0, %c0_i32, %c0_i32_0 : i32, i32, i32
  }
  func.func @transform_3(%arg0: i32) -> (i32, i32) {
    %c0_i32 = arith.constant 0 : i32
    %c0_i32_0 = arith.constant 0 : i32
    %c0_i32_1 = arith.constant 0 : i32
    return %c0_i32, %c0_i32_0 : i32, i32
  }
  func.func @transform_4(%arg0: i32) -> (i32, i32) {
    %c0_i32 = arith.constant 0 : i32
    %c0_i32_0 = arith.constant 0 : i32
    %c0_i32_1 = arith.constant 0 : i32
    return %c0_i32, %c0_i32_0 : i32, i32
  }
  func.func @transform_5(%arg0: i32) -> (i32, i32) {
    %c0_i32 = arith.constant 0 : i32
    %c0_i32_0 = arith.constant 0 : i32
    %c0_i32_1 = arith.constant 0 : i32
    return %c0_i32, %c0_i32_0 : i32, i32
  }
  func.func @transform_6(%arg0: i32) -> (i32, i32) {
    %c0_i32 = arith.constant 0 : i32
    %c0_i32_0 = arith.constant 0 : i32
    %c0_i32_1 = arith.constant 0 : i32
    return %c0_i32, %c0_i32_0 : i32, i32
  }
  func.func @transform_7(%arg0: i32) -> (i32, i32) {
    %c0_i32 = arith.constant 0 : i32
    %c0_i32_0 = arith.constant 0 : i32
    %c0_i32_1 = arith.constant 0 : i32
    return %c0_i32, %c0_i32_0 : i32, i32
  }
  func.func @transform_8(%arg0: i32) -> (i32, i32) {
    %c0_i32 = arith.constant 0 : i32
    %c0_i32_0 = arith.constant 0 : i32
    %c0_i32_1 = arith.constant 0 : i32
    return %c0_i32, %c0_i32_0 : i32, i32
  }
  func.func @transform_9(%arg0: i32) -> (i32, i32) {
    %c0_i32 = arith.constant 0 : i32
    %c0_i32_0 = arith.constant 0 : i32
    %c0_i32_1 = arith.constant 0 : i32
    return %c0_i32, %c0_i32_0 : i32, i32
  }
  func.func @transform_10(%arg0: i32) -> (i32, i32) {
    %c0_i32 = arith.constant 0 : i32
    %c0_i32_0 = arith.constant 0 : i32
    %c0_i32_1 = arith.constant 0 : i32
    return %c0_i32, %c0_i32_0 : i32, i32
  }
  func.func @transform_11(%arg0: i32) -> (i32, i32) {
    %c0_i32 = arith.constant 0 : i32
    %c0_i32_0 = arith.constant 0 : i32
    %c0_i32_1 = arith.constant 0 : i32
    return %c0_i32, %c0_i32_0 : i32, i32
  }
  func.func @transform_12(%arg0: i32) -> (i32, i32) {
    %c0_i32 = arith.constant 0 : i32
    %c0_i32_0 = arith.constant 0 : i32
    return %arg0, %c0_i32 : i32, i32
  }
}

</mosaic_0001>

<bundles_post_ra>
// kernel: tpu_custom_call.1
= control target key start
LH: loop header
LB: loop body
LE: loop exit
PB: predicated region body
PF: predicated region fallthrough
CT: control target
= control target key end

     0   :  { %s14892_s0 = inlined_call_operand.hbm [shape: f32[16,8,32], index: 0, kind: input, shape index: {}]   ;;  %s14893_s1 = inlined_call_operand.hbm [shape: f32[16,8,128], index: 1, kind: input, shape index: {}]   ;;  %s14894_s2 = inlined_call_operand.hbm [shape: f32[16,8,128], index: 2, kind: input, shape index: {}]   ;;  %s14895_s3 = inlined_call_operand.hbm [shape: f32[32,128], index: 3, kind: input, shape index: {}]   ;;  %s14896_s4 = inlined_call_operand.hbm [shape: f32[32,128], index: 4, kind: input, shape index: {}]   ;;  %s14897_s5 = inlined_call_operand.hbm [shape: f32[32,128], index: 5, kind: input, shape index: {}]   ;;  %s14898_s6 = inlined_call_operand.vmem [shape: f32[1,128], index: 6, kind: input, shape index: {}]   ;;  %s14899_s7 = inlined_call_operand.hbm [shape: f32[32,128], index: 7, kind: input, shape index: {}]   ;;  %s14900_s8 = inlined_call_operand.hbm [shape: f32[32,128], index: 8, kind: input, shape index: {}]   ;;  %s14901_s9 = inlined_call_operand.vmem [shape: f32[1,128], index: 9, kind: input, shape index: {}]   ;;  %s14902_s10 = inlined_call_operand.hbm [shape: f32[32,128], index: 10, kind: input, shape index: {}]   ;;  %s14903_s11 = inlined_call_operand.vmem [shape: f32[1,128], index: 11, kind: input, shape index: {}]   ;;  %s14904_s12 = inlined_call_operand.hbm [shape: f32[16,128], index: 12, kind: output, shape index: {}]  }
   0x1   :  { %14922 = sst [smem:[#allocation33_spill]] %s14893_s1 }
   0x2   :  { %14923 = sst [smem:[#allocation34_spill]] %s14895_s3 }
   0x3   :  { %14924 = sst [smem:[#allocation35_spill]] %s14897_s5 }
   0x4   :  { %14925 = sst [smem:[#allocation36_spill]] %s14900_s8 }
   0x5   :  { %14926 = sst [smem:[#allocation37_spill]] %s14903_s11 }
   0x6   :  { %14927 = sst [smem:[#allocation38_spill]] %s14904_s12 }
   0x7   :  { %17 = vsyncpa [#allocation3], 0 }
   0x8   :  { %19 = vsyncpa [#allocation3 + $0x1], 0 }
   0x9   :  { %20 = vsyncpa [#allocation6], 0 }
   0xa   :  { %22 = vsyncpa [#allocation6 + $0x1], 0 }
   0xb   :  { %23 = vsyncpa [#allocation9], 0 }
   0xc   :  { %24 = vsyncpa [#allocation12], 0 }
   0xd   :  { %25 = vsyncpa [#allocation15], 0 }
   0xe   :  { %26 = vsyncpa [#allocation4], 0 }
   0xf   :  { %28 = vsyncpa [#allocation4 + $0x1], 0  ;;  %s10276_s21 = smov 0   ;;  %s10278_s22 = smov 0  }
  0x10   :  { %s10280_s23 = smov 0   ;;  %s10282_s24 = smov 0  }
  0x11 LB: > { %14928 = sst [smem:[#allocation24_spill]] %s10186_s21  ;;  %s10300_s28 = sadd.s32 4294967295, %s10198_s24   ;;  %s10198_s24 = sphi %s10282_s24, %s15022_s24   ;;  %s10194_s23 = sphi %s10280_s23, %s15026_s23   ;;  %s10190_s22 = sphi %s10278_s22, %s15025_s22   ;;  %s10186_s21 = sphi %s10276_s21, %s15024_s21  }
  0x12   : > { %14929 = sst [smem:[#allocation25_spill]] %s10198_s24  ;;  %p8352_p0 = scmp.ge.s32.totalorder %s10198_s24, 1 }
  0x13   : > { %s14930_s3 = sld [smem:[#allocation34_spill]]  ;;  %p14918_p1 = scmp.eq.s32.totalorder %s10300_s28, 0 }
  0x14   : > { %p332_p2 = scmp.lt.s32.totalorder %s10198_s24, 3  ;;  %s10200_s30 = smov [#allocation8]  }
  0x15   : > { %s345_s13 = sshll.u32 %s10200_s30, 4  ;;  %s14932_s5 = sld [smem:[#allocation35_spill]]  ;;  %s346_s13 = int_to_ptr.vmem [resolvable:$true] %s345_s13 }
  0x16   : > { %p10305_p3 = pnand %p8352_p0, %p332_p2  ;;  %s14934_s8 = sld [smem:[#allocation36_spill]] }
  0x17   : > { %s10201_s25 = smov [#allocation11]   ;;  %s14905_s30 = smov 128  }
  0x18   : > { %p8595_p4 = pneg %p10305_p3  ;;  %s373_s26 = sshll.u32 %s10201_s25, 4  ;;  %s374_s26 = int_to_ptr.vmem [resolvable:$true] %s373_s26 }
  0x19   : > { %s343_s27 = sshll.u32 %s14930_s3, 4  ;;  %s14907_s14 = smov 8   ;;  %s344_s27 = int_to_ptr.hbm [resolvable:$true] %s343_s27 }
  0x1a   : > { %p10317_p6 = pnand %p8595_p4, %p14918_p1  ;;  %s10204_s15 = smov [#allocation14]  }
  0x1b   : > { %s371_s16 = sshll.u32 %s14932_s5, 4  ;;  %s404_s18 = sshll.u32 %s10204_s15, 4  ;;  %s372_s16 = int_to_ptr.hbm [resolvable:$true] %s371_s16  ;;  %s405_s18 = int_to_ptr.vmem [resolvable:$true] %s404_s18 }
  0x1c   : > { %s402_s20 = sshll.u32 %s14934_s8, 4  ;;  %s41_s19 = sadd.s32 1, %s10194_s23  ;;  %s403_s20 = int_to_ptr.hbm [resolvable:$true] %s402_s20 }
  0x1d   : > { %8598 = dma.hbm_to_vmem [thread:$0]  (!%p10317_p6), %s344_s27, 512, %s346_s13, [#allocation9], %s14905_s30, %s14905_s30, %s14907_s14  }
  0x1e   : > { %8604 = dma.hbm_to_vmem [thread:$0]  (!%p10317_p6), %s372_s16, 512, %s374_s26, [#allocation12], %s14905_s30, %s14905_s30, %s14907_s14  }
  0x1f   : > { %8610 = dma.hbm_to_vmem [thread:$0]  (!%p10317_p6), %s403_s20, 512, %s405_s18, [#allocation15], %s14905_s30, %s14905_s30, %s14907_s14  }
  0x20   : > { %s8351_s27 = sadd.s32 4294967294, %s10198_s24   ;;  %s10341_s13 = sadd.s32 1, %s10198_s24  }
  0x21   : > { %14935 = sst [smem:[#allocation26_spill]] %s10341_s13  ;;  %s38_s25 = ssub.s32 %s10198_s24, %s10341_s13 }
  0x22   : > { %p48_p7 = scmp.ne.s32.totalorder %s10194_s23, %s10190_s22  ;;  %p39_p8 = scmp.eq.s32.totalorder %s38_s25, 0 }
  0x23   : > { %p49_p9 = scmp.eq.s32.totalorder %s10198_s24, 0  ;;  %p54_p10 = scmp.ne.s32.totalorder %s10190_s22, %s10186_s21 }
  0x24   : > { %p319_p11 = scmp.eq.s32.totalorder %s10300_s28, 1  ;;  %p325_p2 = scmp.eq.s32.totalorder %s8351_s27, 1 }
  0x25   : > { %s10353_s16 = scalar_select %p39_p8, %s10194_s23, %s41_s19  }
  0x26   : > { %p50_p12 = por %p49_p9, %p48_p7  ;;  %p10357_p13 = por %p14918_p1, %p54_p10 }
  0x27   : > { %14936 = sst [smem:[#allocation27_spill]] %s10353_s16  ;;  %p10361_p0 = por %p319_p11, %p48_p7 }
  0x28   : > { %p8634_p4 = scmp.lt.s32.totalorder %s10198_s24, 2  ;;  %s14911_s15 = sand.u32 1, %s10194_s23  }
  0x29   : > { %s14938_s26 = scalar_select %p10361_p0, 1, 0 }
  0x2a   : > { %p10367_p5 = por %p325_p2, %p54_p10  ;;  %s10373_s19 = sshll.u32 %s14911_s15, 6 }
  0x2b   : > { %14939 = sst [smem:[#allocation28_spill]] %s14938_s26  ;;  %s10376_s25 = sshll.u32 %s10198_s24, 6 }
  0x2c   : > { %s14940_s18 = scalar_select %p10367_p5, 1, 0 }
  0x2d   : > { %p10378_p8 = pnand %p8634_p4, %p50_p12  ;;  %s460_s27 = sand.u32 1, %s10198_s24  }
  0x2e   : > { %14941 = sst [smem:[#allocation29_spill]] %s14940_s18  ;;  %s464_s8 = scalar_lea.vmem [#allocation5], %s10373_s19 }
  0x2f   : > { %s14943_s1 = sld [smem:[#allocation33_spill]]  ;;  %s472_s16 = sshll.u32 %s464_s8, 4  ;;  %s473_s16 = int_to_ptr.vmem [resolvable:$true] %s472_s16 }
  0x30   : > { %s357_s21 = sshll.u32 %s14896_s4, 4  ;;  %s10391_s26 = scalar_lea.sflag [#allocation6], %s460_s27  ;;  %s358_s21 = int_to_ptr.hbm [resolvable:$true] %s357_s21 }
  0x31   : > { %p9940_p9 = pneg %p10378_p8 }
  0x35   : > { %s469_s5 = scalar_lea.hbm %s14943_s1, %s10376_s25  ;;  %s9943_s8 = scalar_lea.hbm %s14943_s1, 128 }
  0x36   : > { %s470_s13 = sshll.u32 %s469_s5, 4  ;;  %s471_s13 = int_to_ptr.hbm [resolvable:$true] %s470_s13 }
  0x37   : > { %s9936_s11 = sshra.s32 %s471_s13, 4  ;;  %s9937_s11 = int_to_ptr.hbm [resolvable:$true] %s9936_s11 }
  0x38   : > { %s9938_s12 = scalar_lea.hbm %s9937_s11, 64  ;;  %p9944_p12 = scmp.lt.s32.totalorder %s9937_s11, %s14943_s1 }
  0x39   : > { %p9939_p7 = scmp.ne.s32.totalorder %s9937_s11, %s9938_s12  ;;  %p9945_p2 = scmp.lt.s32.totalorder %s9943_s8, %s9938_s12 }
  0x3b   : > { %p9941_p10 = pnand %p9940_p9, %p9939_p7  ;;  %p9946_p4 = por %p9945_p2, %p9944_p12 }
  0x3d   : > { %p9942_p11 = pneg %p9941_p10 }
  0x3f   : > { %p9947_p1 = pnand %p9946_p4, %p9942_p11 }
  0x41   : > { %9950 = shalt.err (!%p9947_p1)
}
  0x42   : > { %s14944_s15 = smov 8   ;;  %s14945_s18 = smov 128  }
  0x43   : > { %8620 = dma.hbm_to_vmem [thread:$0]  (!%p10378_p8), %s471_s13, 1024, %s473_s16, %s10391_s26, %s14945_s18, %s14945_s18, %s14944_s15  }
  0x44   : > { %s10205_s27 = smov [#allocation10]   ;;  %s388_s12 = sshll.u32 %s14899_s7, 4  ;;  %s389_s12 = int_to_ptr.hbm [resolvable:$true] %s388_s12 }
  0x45   : > { %s359_s3 = sshll.u32 %s10205_s27, 4  ;;  %s419_s13 = sshll.u32 %s14902_s10, 4  ;;  %s360_s3 = int_to_ptr.vmem [resolvable:$true] %s359_s3  ;;  %s420_s13 = int_to_ptr.hbm [resolvable:$true] %s419_s13 }
  0x46   : > { %8601 = dma.hbm_to_vmem [thread:$0]  (!%p10317_p6), %s358_s21, 512, %s360_s3, [#allocation9], %s14945_s18, %s14945_s18, %s14944_s15  }
  0x47   : > { %s10206_s16 = smov [#allocation13]   ;;  %s10207_s27 = smov [#allocation16]  }
  0x48   : > { %s390_s14 = sshll.u32 %s10206_s16, 4  ;;  %s421_s24 = sshll.u32 %s10207_s27, 4  ;;  %s391_s14 = int_to_ptr.vmem [resolvable:$true] %s390_s14  ;;  %s422_s24 = int_to_ptr.vmem [resolvable:$true] %s421_s24 }
  0x49   : > { %8607 = dma.hbm_to_vmem [thread:$0]  (!%p10317_p6), %s389_s12, 512, %s391_s14, [#allocation12], %s14945_s18, %s14945_s18, %s14944_s15  }
  0x4a   : > { %8613 = dma.hbm_to_vmem [thread:$0]  (!%p10317_p6), %s420_s13, 512, %s422_s24, [#allocation15], %s14945_s18, %s14945_s18, %s14944_s15  }
  0x4b   : > { %s447_s11 = scalar_lea.hbm %s14892_s0, %s10376_s25  ;;  %s442_s5 = scalar_lea.vmem [#allocation2], %s10373_s19 }
  0x4c   : > { %s450_s8 = sshll.u32 %s442_s5, 4  ;;  %s448_s16 = sshll.u32 %s447_s11, 4  ;;  %s451_s8 = int_to_ptr.vmem [resolvable:$true] %s450_s8  ;;  %s449_s16 = int_to_ptr.hbm [resolvable:$true] %s448_s16 }
  0x4d   : > { %s14946_s1 = sand.u32 1, %s10194_s23   ;;  %s10056_s14 = sshra.s32 %s449_s16, 4  ;;  %s10057_s14 = int_to_ptr.hbm [resolvable:$true] %s10056_s14 }
  0x4e   : > { %s439_s12 = scalar_lea.sflag [#allocation3], %s14946_s1  ;;  %s10058_s27 = scalar_lea.hbm %s10057_s14, 64 }
  0x4f   : > { %p10059_p1 = scmp.ne.s32.totalorder %s10057_s14, %s10058_s27  ;;  %s10063_s24 = scalar_lea.hbm %s14892_s0, 128 }
  0x50   : > { %p10064_p6 = scmp.lt.s32.totalorder %s10057_s14, %s14892_s0  ;;  %p10065_p11 = scmp.lt.s32.totalorder %s10063_s24, %s10058_s27 }
  0x51   : > { %p10061_p7 = pnand %p10059_p1, %p9940_p9 }
  0x52   : > { %p10066_p12 = por %p10065_p11, %p10064_p6 }
  0x53   : > { %p10062_p10 = pneg %p10061_p7 }
  0x55   : > { %p10067_p2 = pnand %p10066_p12, %p10062_p10 }
  0x57   : > { %10070 = shalt.err (!%p10067_p2)
}
  0x58   : > { %8617 = dma.hbm_to_vmem [thread:$0]  (!%p10378_p8), %s449_s16, 1024, %s451_s8, %s439_s12, %s14945_s18, %s14945_s18, %s14944_s15  }
  0x59   : > { %s491_s5 = scalar_lea.hbm %s14894_s2, %s10376_s25  ;;  %s486_s17 = scalar_lea.vmem [#allocation7], %s10373_s19 }
  0x5a   : > { %s494_s13 = sshll.u32 %s486_s17, 4  ;;  %s492_s14 = sshll.u32 %s491_s5, 4  ;;  %s495_s13 = int_to_ptr.vmem [resolvable:$true] %s494_s13  ;;  %s493_s14 = int_to_ptr.hbm [resolvable:$true] %s492_s14 }
  0x5b   : > { %s10086_s27 = sshra.s32 %s493_s14, 4  ;;  %s10093_s8 = scalar_lea.hbm %s14894_s2, 128  ;;  %s10087_s27 = int_to_ptr.hbm [resolvable:$true] %s10086_s27 }
  0x5c   : > { %s10088_s24 = scalar_lea.hbm %s10087_s27, 64  ;;  %p10094_p10 = scmp.lt.s32.totalorder %s10087_s27, %s14894_s2 }
  0x5d   : > { %p10089_p4 = scmp.ne.s32.totalorder %s10087_s27, %s10088_s24  ;;  %p10095_p6 = scmp.lt.s32.totalorder %s10093_s8, %s10088_s24 }
  0x5f   : > { %p10091_p1 = pnand %p10089_p4, %p9940_p9  ;;  %p10096_p11 = por %p10095_p6, %p10094_p10 }
  0x61   : > { %p10092_p7 = pneg %p10091_p1 }
  0x63   : > { %p10097_p12 = pnand %p10096_p11, %p10092_p7 }
  0x65   : > { %10100 = shalt.err (!%p10097_p12)
}
  0x66   : > { %8623 = dma.hbm_to_vmem [thread:$0]  (!%p10378_p8), %s493_s14, 1024, %s495_s13, %s10391_s26, %s14945_s18, %s14945_s18, %s14944_s15  }
  0x67   : > { %506 = sbr.rel (%p10305_p3) target bundleno = 16125 (0x3efd), region = 68 }
  0x6c   : > { %s10475_s19 = sand.u32 1, %s10190_s22  }
  0x6d   : > { %s8370_s25 = sshll.u32 %s10475_s19, 6  ;;  %s509_s1 = scalar_lea.sflag [#allocation3], %s10475_s19 }
  0x6e   : > { %s10479_s11 = scalar_lea.vmem [#allocation2], %s8370_s25 }
  0x6f   : > { %10161 = dma.done.wait (%p10357_p13), %s509_s1, 1024  }
  0x70   : > { %10163 = vsyncadd (%p10357_p13), %s509_s1, 4294966272  ;;  %s518_s30 = sand.u32 1, %s10300_s28   ;;  %s10486_s26 = scalar_lea.vmem [#allocation5], %s8370_s25 }
  0x71   : > { %s519_s29 = scalar_lea.sflag [#allocation6], %s518_s30 }
  0x72   : > { %10165 = dma.done.wait (%p10357_p13), %s519_s29, 2048  }
  0x73   : > { %10167 = vsyncadd (%p10357_p13), %s519_s29, 4294965248  ;;  %s10492_s15 = scalar_lea.vmem [#allocation7], %s8370_s25  ;;  %p14947_p3 = scmp.eq.s32.totalorder %s10300_s28, 0 }
  0x75   : > { %10169 = dma.done.wait (%p14947_p3), [#allocation9], 1024   ;;  %p14948_p8 = pmov %p14947_p3 }
  0x76   : > { %p14949_p9 = pmov %p14947_p3 }
  0x77   : > { %10171 = vsyncadd (%p14948_p8), [#allocation9], 4294966272 }
  0x78   : > { %10173 = dma.done.wait (%p14949_p9), [#allocation12], 1024   ;;  %p14950_p2 = pmov %p14947_p3 }
  0x7a   : > { %10175 = vsyncadd (%p14950_p2), [#allocation12], 4294966272  ;;  %p14951_p4 = pmov %p14950_p2 }
  0x7b   : > { %p14952_p1 = pmov %p14950_p2 }
  0x7c   : > { %10177 = dma.done.wait (%p14951_p4), [#allocation15], 1024  }
  0x7d   : > { %10179 = vsyncadd (%p14952_p1), [#allocation15], 4294966272  ;;  %v626_v0 = vld [vmem:[%s10486_s26 + $0x8] sm:$0x1]  ;;  %v625_v1 = vld [vmem:[%s10486_s26] sm:$0x1] }
  0x7e   : > { %8688 = vtanh.f32 %v626_v0  ;;  %v627_v2 = vld [vmem:[%s10486_s26 + $0x10] sm:$0x1]  ;;  %v628_v3 = vld [vmem:[%s10486_s26 + $0x18] sm:$0x1]  ;;  %s10208_s20 = smov 64   ;;  %s10209_s18 = smov 96  }
  0x7f   : > { %8690 = vtanh.f32 %v625_v1  ;;  %v629_v6 = vld [vmem:[%s10486_s26 + $0x20] sm:$0x1]  ;;  %v632_v8 = vld [vmem:[%s10486_s26 + $0x38] sm:$0x1]  ;;  %v630_v10 = vld [vmem:[%s10486_s26 + $0x28] sm:$0x1] }
  0x80   : > { %8692 = vtanh.f32 %v627_v2  ;;  %v631_v11 = vld [vmem:[%s10486_s26 + $0x30] sm:$0x1]  ;;  %v8381_v16 = vmul.f32 -1.442695, %v626_v0  ;;  %v8380_v17 = vmul.f32 -1.442695, %v625_v1 }
  0x81   : > { %8694 = vtanh.f32 %v628_v3  ;;  %v8382_v18 = vmul.f32 -1.442695, %v627_v2  ;;  %v8385_v19 = vmul.f32 -1.442695, %v630_v10  ;;  %v8383_v22 = vmul.f32 -1.442695, %v628_v3 }
  0x82   : > { %8696 = vtanh.f32 %v629_v6  ;;  %v8384_v26 = vmul.f32 -1.442695, %v629_v6  ;;  %v8387_v33 = vmul.f32 -1.442695, %v632_v8  ;;  %v8386_v38 = vmul.f32 -1.442695, %v631_v11 }
  0x83   : > { %8698 = vtanh.f32 %v632_v8  ;;  %s10210_s5 = smov 32   ;;  %s8379_s16 = sshll.u32 %s10475_s19, 3 }
  0x84   : > { %v8689_v4 = vpop.eup %8688  ;;  %8700 = vtanh.f32 %v630_v10  ;;  %s8557_s12 = sshll.u32 %s10300_s28, 3  ;;  %s8166_s28 = scalar_lea.sflag [#allocation4], %s10475_s19 }
  0x85   : > { %v8691_v5 = vpop.eup %8690  ;;  %803 = vrot.lane.b32.xlu0 %v8689_v4, %s10208_s20  ;;  %8702 = vtanh.f32 %v631_v11 }
  0x86   : > { %801 = vrot.lane.b32.xlu1 %v8691_v5, %s10208_s20  ;;  %v8693_v7 = vpop.eup %8692  ;;  %8704 = vpow2.f32 %v8381_v16 }
  0x87   : > { %v8695_v9 = vpop.eup %8694  ;;  %8706 = vpow2.f32 %v8380_v17 }
  0x88   : > { %v8697_v12 = vpop.eup %8696  ;;  %8708 = vpow2.f32 %v8382_v18 }
  0x89   : > { %809 = vrot.lane.b32.xlu2 %v8697_v12, %s10208_s20  ;;  %v8699_v13 = vpop.eup %8698  ;;  %8710 = vpow2.f32 %v8385_v19 }
  0x8a   : > { %v8701_v14 = vpop.eup %8700  ;;  %8712 = vpow2.f32 %v8383_v22 }
  0x8b   : > { %v8703_v15 = vpop.eup %8702 }
  0x8c   : > { %v8705_v20 = vpop.eup %8704 }
  0x8d   : > { %805 = vrot.lane.b32.xlu0 %v8693_v7, %s10208_s20  ;;  %v8707_v21 = vpop.eup %8706  ;;  %v658_v23 = vadd.f32 1.0, %v8705_v20 }
  0x8e   : > { %807 = vrot.lane.b32.xlu1 %v8695_v9, %s10208_s20  ;;  %v657_v24 = vadd.f32 1.0, %v8707_v21  ;;  %v8709_v25 = vpop.eup %8708 }
  0x8f   : > { %8714 = vrcp.f32 %v658_v23  ;;  %v8711_v27 = vpop.eup %8710  ;;  %v10522_v28 = vadd.f32 1.0, %v8709_v25  ;;  %vm685_vm0 = vweird.f32 %v658_v23  ;;  %v691_v50 = vand.u32 2147483648, %v658_v23 }
  0x90   : > { %8716 = vrcp.f32 %v657_v24  ;;  %v8713_v29 = vpop.eup %8712  ;;  %v10524_v30 = vadd.f32 1.0, %v8711_v27  ;;  %vm670_vm2 = vweird.f32 %v657_v24  ;;  %v689_v53 = vand.u32 2147483647, %v658_v23 }
  0x91   : > { %811 = vrot.lane.b32.xlu2 %v8701_v14, %s10208_s20  ;;  %8718 = vpow2.f32 %v8384_v26  ;;  %v10532_v35 = vadd.f32 1.0, %v8713_v29  ;;  %v676_v54 = vand.u32 2147483648, %v657_v24  ;;  %v674_v58 = vand.u32 2147483647, %v657_v24 }
  0x92   : > { %8720 = vrcp.f32 %v10522_v28  ;;  %v692_v0 = vor.u32 1.1754944e-38, %v691_v50  ;;  %vm10574_vm6 = vcmp.eq.f32.partialorder %v689_v53, 8.507059e+37  ;;  %vm700_vm8 = vweird.f32 %v10522_v28 }
  0x93   : > { %8722 = vrcp.f32 %v10524_v30  ;;  %v677_v3 = vor.u32 1.1754944e-38, %v676_v54  ;;  %vm10582_vm7 = vcmp.eq.f32.partialorder %v674_v58, 8.507059e+37  ;;  %v704_v12 = vand.u32 2147483647, %v10522_v28 }
  0x94   : > { %8724 = vpow2.f32 %v8387_v33  ;;  %vm745_vm10 = vweird.f32 %v10524_v30  ;;  %v749_v20 = vand.u32 2147483647, %v10524_v30  ;;  %vm715_vm15 = vweird.f32 %v10532_v35 }
  0x95   : > { %813 = vrot.lane.b32.xlu0 %v8703_v15, %s10208_s20  ;;  %v10526_v31 = vpop.eup %8714  ;;  %8726 = vrcp.f32 %v10532_v35  ;;  %v751_v15 = vand.u32 2147483648, %v10524_v30  ;;  %vm10623_vm14 = vcmp.eq.f32.partialorder %v704_v12, 8.507059e+37  ;;  %v719_v33 = vand.u32 2147483647, %v10532_v35 }
  0x96   : > { %815 = vrot.lane.b32.xlu1 %v8699_v13, %s10208_s20  ;;  %v10528_v32 = vpop.eup %8716  ;;  %v681_v34 = vmul.f32 %v10526_v31, %v658_v23  ;;  %8728 = vpow2.f32 %v8386_v38  ;;  %vm686_vm1 = vweird.f32 %v10526_v31  ;;  %v706_v13 = vand.u32 2147483648, %v10522_v28 }
  0x97   : > { %v666_v36 = vmul.f32 %v10528_v32, %v657_v24  ;;  %v8719_v37 = vpop.eup %8718  ;;  %vm671_vm3 = vweird.f32 %v10528_v32  ;;  %vm10557_vm4 = vmor %vm685_vm0, %vm686_vm1  ;;  %v752_v29 = vor.u32 1.1754944e-38, %v751_v15  ;;  %vm750_vm1 = vcmp.eq.f32.partialorder %v749_v20, 8.507059e+37 }
  0x98   : > { %v682_v39 = vsub.f32 1.0, %v681_v34  ;;  %v10537_v40 = vpop.eup %8720  ;;  %v10539_v41 = vadd.f32 1.0, %v8719_v37  ;;  %vm10564_vm5 = vmor %vm670_vm2, %vm671_vm3  ;;  %v707_v26 = vor.u32 1.1754944e-38, %v706_v13 }
  0x99   : > { %v667_v42 = vsub.f32 1.0, %v666_v36  ;;  %v10541_v43 = vpop.eup %8722  ;;  %v696_v46 = vmul.f32 %v10537_v40, %v10522_v28  ;;  %vm701_vm9 = vweird.f32 %v10537_v40  ;;  %v721_v28 = vand.u32 2147483648, %v10532_v35 }
  0x9a   : > { %v8725_v44 = vpop.eup %8724  ;;  %v683_v45 = vmul.f32 %v10526_v31, %v682_v39  ;;  %8730 = vrcp.f32 %v10539_v41  ;;  %v741_v48 = vmul.f32 %v10541_v43, %v10524_v30  ;;  %vm746_vm11 = vweird.f32 %v10541_v43  ;;  %vm10604_vm12 = vmor %vm700_vm8, %vm701_vm9 }
  0x9b   : > { %v668_v47 = vmul.f32 %v10528_v32, %v667_v42  ;;  %v10550_v49 = vpop.eup %8726  ;;  %v10554_v51 = vadd.f32 1.0, %v8725_v44  ;;  %v697_v55 = vsub.f32 1.0, %v696_v46  ;;  %vm10619_vm13 = vmor %vm745_vm10, %vm746_vm11  ;;  %vm730_vm2 = vweird.f32 %v10539_v41 }
  0x9c   : > { %v684_v52 = vadd.f32 %v10526_v31, %v683_v45  ;;  %v711_v59 = vmul.f32 %v10550_v49, %v10532_v35  ;;  %v742_v60 = vsub.f32 1.0, %v741_v48  ;;  %v8729_v61 = vpop.eup %8728  ;;  %vm716_vm0 = vweird.f32 %v10550_v49 }
  0x9d   : > { %v669_v57 = vadd.f32 %v10528_v32, %v668_v47  ;;  %8732 = vrcp.f32 %v10554_v51  ;;  %v698_v4 = vmul.f32 %v10537_v40, %v697_v55  ;;  %v10593_v11 = vadd.f32 1.0, %v8729_v61 }
  0x9e   : > { %v688_v1 = vsel %vm10557_vm4, %v10526_v31, %v684_v52  ;;  %v712_v7 = vsub.f32 1.0, %v711_v59  ;;  %v743_v8 = vmul.f32 %v10541_v43, %v742_v60  ;;  %vm10652_vm4 = vmor %vm715_vm15, %vm716_vm0  ;;  %v736_v44 = vand.u32 2147483648, %v10539_v41 }
  0x9f   : > { %v673_v5 = vsel %vm10564_vm5, %v10528_v32, %v669_v57  ;;  %v699_v14 = vadd.f32 %v10537_v40, %v698_v4  ;;  %8734 = vrcp.f32 %v10593_v11  ;;  %v10613_v21 = vsel %vm10574_vm6, %v692_v0, %v688_v1 }
  0xa0   : > { %v10568_v63 = vpop.eup %8730  ;;  %v713_v18 = vmul.f32 %v10550_v49, %v712_v7  ;;  %v744_v19 = vadd.f32 %v10541_v43, %v743_v8  ;;  %v10617_v22 = vsel %vm10582_vm7, %v677_v3, %v673_v5  ;;  %v722_v46 = vor.u32 1.1754944e-38, %v721_v28 }
  0xa1   : > { %v726_v10 = vmul.f32 %v10568_v63, %v10539_v41  ;;  %v703_v27 = vsel %vm10604_vm12, %v10537_v40, %v699_v14  ;;  %vm731_vm3 = vweird.f32 %v10568_v63  ;;  %vm720_vm5 = vcmp.eq.f32.partialorder %v719_v33, 8.507059e+37 }
  0xa2   : > { %v714_v32 = vadd.f32 %v10550_v49, %v713_v18  ;;  %v748_v34 = vsel %vm10619_vm13, %v10541_v43, %v744_v19  ;;  %v734_v43 = vand.u32 2147483647, %v10539_v41  ;;  %v10672_v53 = vsel %vm10623_vm14, %v707_v26, %v703_v27  ;;  %vm10679_vm6 = vmor %vm730_vm2, %vm731_vm3 }
  0xa3   : > { %v10602_v16 = vpop.eup %8732  ;;  %v727_v23 = vsub.f32 1.0, %v726_v10  ;;  %v10664_v47 = vsel %vm750_vm1, %v752_v29, %v748_v34  ;;  %vm760_vm7 = vweird.f32 %v10593_v11  ;;  %v766_v59 = vand.u32 2147483648, %v10593_v11  ;;  %v620_v29 = vld [vmem:[#allocation8 + $0x18] sm:$0xff] }
  0xa4   : > { %v771_v30 = vmul.f32 %v10602_v16, %v10554_v51  ;;  %v718_v50 = vsel %vm10652_vm4, %v10550_v49, %v714_v32  ;;  %vm10693_vm9 = vcmp.eq.f32.partialorder %v734_v43, 8.507059e+37  ;;  %v737_v61 = vor.u32 1.1754944e-38, %v736_v44  ;;  %935 = vmatpush.msra.mxu0 %v620_v29  ;;  %1349 = vmatpush.msra.mxu1 %v620_v29 }
  0xa5   : > { %v10640_v36 = vpop.eup %8734  ;;  %v728_v39 = vmul.f32 %v10568_v63, %v727_v23  ;;  %v10689_v57 = vsel %vm720_vm5, %v722_v46, %v718_v50  ;;  %v764_v0 = vand.u32 2147483647, %v10593_v11  ;;  %vm775_vm10 = vweird.f32 %v10554_v51  ;;  %1731 = vmatpush.msra.mxu2 %v620_v29  ;;  %2113 = vmatpush.msra.mxu3 %v620_v29 }
  0xa6   : > { %v756_v45 = vmul.f32 %v10640_v36, %v10593_v11  ;;  %v772_v48 = vsub.f32 1.0, %v771_v30  ;;  %vm761_vm8 = vweird.f32 %v10640_v36  ;;  %vm776_vm11 = vweird.f32 %v10602_v16  ;;  %v619_v30 = vld [vmem:[#allocation8 + $0x10] sm:$0xff] }
  0xa7   : > { %v729_v54 = vadd.f32 %v10568_v63, %v728_v39  ;;  %vm10711_vm12 = vmor %vm760_vm7, %vm761_vm8  ;;  %v779_v10 = vand.u32 2147483647, %v10554_v51  ;;  %v767_v11 = vor.u32 1.1754944e-38, %v766_v59  ;;  %vm765_vm14 = vcmp.eq.f32.partialorder %v764_v0, 8.507059e+37  ;;  %936 = vmatpush.msra.mxu0 %v619_v30  ;;  %1350 = vmatpush.msra.mxu1 %v619_v30 }
  0xa8   : > { %v757_v52 = vsub.f32 1.0, %v756_v45  ;;  %v773_v58 = vmul.f32 %v10602_v16, %v772_v48  ;;  %vm777_vm13 = vmor %vm775_vm10, %vm776_vm11  ;;  %1732 = vmatpush.msra.mxu2 %v619_v30  ;;  %2114 = vmatpush.msra.mxu3 %v619_v30  ;;  %vm898_vm0 = vcmask 1041409   ;;  %vm901_vm1 = vcmask 1042434  }
  0xa9   : > { %v733_v3 = vsel %vm10679_vm6, %v10568_v63, %v729_v54  ;;  %v781_v63 = vand.u32 2147483648, %v10554_v51  ;;  %vm780_vm15 = vcmp.eq.f32.partialorder %v779_v10, 8.507059e+37  ;;  %vm904_vm2 = vcmask 1043459   ;;  %v882_v10 = vld [vmem:[%s10486_s26 + $0x9] sm:$0x1] }
  0xaa   : > { %v758_v49 = vmul.f32 %v10640_v36, %v757_v52  ;;  %v774_v8 = vadd.f32 %v10602_v16, %v773_v58  ;;  %v738_v12 = vsel %vm10693_vm9, %v737_v61, %v733_v3  ;;  %vm907_vm3 = vcmask 1044484  }
  0xab   : > { %v782_v14 = vor.u32 1.1754944e-38, %v781_v63  ;;  %vm910_vm4 = vcmask 1045509   ;;  %vm913_vm5 = vcmask 1046534   ;;  %vm916_vm6 = vcmask 1047559  }
  0xac   : > { %v759_v62 = vadd.f32 %v10640_v36, %v758_v49  ;;  %v778_v17 = vsel %vm777_vm13, %v10602_v16, %v774_v8  ;;  %vm920_vm7 = vcmask 261120  }
  0xad   : > { %v783_v51 = vsel %vm780_vm15, %v782_v14, %v778_v17  ;;  %v886_v17 = vld [vmem:[%s10486_s26 + $0x29] sm:$0x1] }
  0xae   : > { %v763_v13 = vsel %vm10711_vm12, %v10640_v36, %v759_v62 }
  0xaf   : > { %v768_v18 = vsel %vm765_vm14, %v767_v11, %v763_v13 }
  0xe3   : > { %v10589_v9 = vpop.permute.xlu2 %809 }
  0xe4   : > { %v10736_v15 = vmul.f32 %v10589_v9, %v738_v12 }
  0xeb   : > { %v812_v35 = vpop.permute.xlu2 %811 }
  0xec   : > { %v10684_v56 = vmul.f32 %v812_v35, %v10664_v47 }
  0xf7   : > { %v804_v31 = vpop.permute.xlu0 %803 }
  0xf8   : > { %v10643_v37 = vmul.f32 %v804_v31, %v10613_v21  ;;  %v802_v38 = vpop.permute.xlu1 %801  ;;  %v618_v31 = vld [vmem:[#allocation8 + $0x8] sm:$0xff] }
  0xf9   : > { %v10657_v42 = vmul.f32 %v802_v38, %v10617_v22  ;;  %937 = vmatpush.msra.mxu0 %v618_v31  ;;  %1351 = vmatpush.msra.mxu1 %v618_v31 }
  0xfa   : > { %8736 = vtanh.f32 %v10643_v37  ;;  %1733 = vmatpush.msra.mxu2 %v618_v31  ;;  %2115 = vmatpush.msra.mxu3 %v618_v31 }
  0xfb   : > { %8738 = vtanh.f32 %v10657_v42 }
  0xfc   : > { %8740 = vtanh.f32 %v10684_v56 }
  0xff   : > { %v806_v41 = vpop.permute.xlu0 %805 }
 0x100   : > { %v8737_v1 = vpop.eup %8736  ;;  %v10700_v2 = vmul.f32 %v806_v41, %v10672_v53  ;;  %v808_v4 = vpop.permute.xlu1 %807 }
 0x101   : > { %v8739_v6 = vpop.eup %8738  ;;  %851 = vrot.lane.b32.xlu2 %v8737_v1, %s10209_s18  ;;  %v10717_v7 = vmul.f32 %v808_v4, %v10689_v57  ;;  %v617_v1 = vld [vmem:[#allocation8] sm:$0xff] }
 0x102   : > { %8742 = vtanh.f32 %v10700_v2  ;;  %849 = vrot.lane.b32.xlu1 %v8739_v6, %s10209_s18  ;;  %v8741_v19 = vpop.eup %8740  ;;  %938 = vmatpush.msra.mxu0 %v617_v1  ;;  %v881_v4 = vld [vmem:[%s10486_s26 + $0x1] sm:$0x1]  ;;  %v883_v6 = vld [vmem:[%s10486_s26 + $0x11] sm:$0x1] }
 0x103   : > { %8744 = vtanh.f32 %v10717_v7  ;;  %1352 = vmatpush.msra.mxu1 %v617_v1  ;;  %1734 = vmatpush.msra.mxu2 %v617_v1 }
 0x104   : > { %8746 = vtanh.f32 %v10736_v15  ;;  %2116 = vmatpush.msra.mxu3 %v617_v1  ;;  %2495 = vmatpush.msrb.mxu0 %v620_v29 }
 0x105   : > { %2877 = vmatpush.msrb.mxu1 %v620_v29  ;;  %3259 = vmatpush.msrb.mxu2 %v620_v29 }
 0x106   : > { %2496 = vmatpush.msrb.mxu0 %v619_v30 }
 0x107   : > { %v814_v23 = vpop.permute.xlu0 %813  ;;  %2878 = vmatpush.msrb.mxu1 %v619_v30  ;;  %3260 = vmatpush.msrb.mxu2 %v619_v30  ;;  %v888_v30 = vld [vmem:[%s10486_s26 + $0x39] sm:$0x1] }
 0x108   : > { %v8743_v20 = vpop.eup %8742  ;;  %v816_v25 = vpop.permute.xlu1 %815  ;;  %v10740_v26 = vmul.f32 %v814_v23, %v768_v18  ;;  %2497 = vmatpush.msrb.mxu0 %v618_v31 }
 0x109   : > { %v8745_v24 = vpop.eup %8744  ;;  %853 = vrot.lane.b32.xlu0 %v8743_v20, %s10209_s18  ;;  %v10745_v9 = vmul.f32 %v816_v25, %v783_v51  ;;  %2879 = vmatpush.msrb.mxu1 %v618_v31  ;;  %v885_v20 = vld [vmem:[%s10486_s26 + $0x21] sm:$0x1] }
 0x10a   : > { %855 = vrot.lane.b32.xlu2 %v8745_v24, %s10209_s18  ;;  %859 = vrot.lane.b32.xlu1 %v8741_v19, %s10209_s18  ;;  %8748 = vtanh.f32 %v10740_v26  ;;  %v8747_v16 = vpop.eup %8746 }
 0x10b   : > { %8750 = vtanh.f32 %v10745_v9  ;;  %3261 = vmatpush.msrb.mxu2 %v618_v31  ;;  %2498 = vmatpush.msrb.mxu0 %v617_v1 }
 0x10c   : > { %2880 = vmatpush.msrb.mxu1 %v617_v1 }
 0x10d   : > { %3262 = vmatpush.msrb.mxu2 %v617_v1 }
 0x110   : > { %v8749_v27 = vpop.eup %8748 }
 0x111   : > { %857 = vrot.lane.b32.xlu0 %v8747_v16, %s10209_s18  ;;  %v8751_v28 = vpop.eup %8750 }
 0x112   : > { %861 = vrot.lane.b32.xlu2 %v8749_v27, %s10209_s18 }
 0x119   : > { %863 = vrot.lane.b32.xlu0 %v8751_v28, %s10209_s18 }
 0x15b   : > { %v852_v32 = vpop.permute.xlu2 %851 }
 0x15c   : > { %v10756_v39 = vmul.f32 %v852_v32, %v10613_v21 }
 0x15e   : > { %v897_v45 = vrot.slane %v10756_v39, 7 }
 0x164   : > { %v856_v36 = vpop.permute.xlu2 %855 }
 0x165   : > { %v10764_v46 = vmul.f32 %v856_v36, %v10689_v57 }
 0x174   : > { %v850_v33 = vpop.permute.xlu1 %849 }
 0x175   : > { %v10759_v40 = vmul.f32 %v850_v33, %v10617_v22  ;;  %v862_v22 = vpop.permute.xlu2 %861  ;;  %v887_v33 = vld [vmem:[%s10486_s26 + $0x31] sm:$0x1] }
 0x176   : > { %v10776_v55 = vmul.f32 %v862_v22, %v768_v18 }
 0x177   : > { %v899_v48 = vsel %vm898_vm0, %v897_v45, %v10759_v40 }
 0x17b   : > { %v854_v34 = vpop.permute.xlu0 %853 }
 0x17c   : > { %v10753_v38 = vmul.f32 %v854_v34, %v10672_v53  ;;  %v860_v44 = vpop.permute.xlu1 %859  ;;  %v903_v53 = vrot.slane %v10764_v46, 5 }
 0x17d   : > { %v10771_v21 = vmul.f32 %v860_v44, %v10664_v47  ;;  %v912_v47 = vrot.slane %v10776_v55, 2 }
 0x17e   : > { %v900_v43 = vrot.slane %v10753_v38, 6 }
 0x17f   : > { %v909_v57 = vrot.slane %v10771_v21, 3 }
 0x180   : > { %v902_v52 = vsel %vm901_vm1, %v900_v43, %v899_v48 }
 0x181   : > { %v905_v49 = vsel %vm904_vm2, %v903_v53, %v902_v52 }
 0x183   : > { %v858_v35 = vpop.permute.xlu0 %857 }
 0x184   : > { %v10768_v50 = vmul.f32 %v858_v35, %v738_v12 }
 0x186   : > { %v906_v54 = vrot.slane %v10768_v50, 4 }
 0x188   : > { %v908_v58 = vsel %vm907_vm3, %v906_v54, %v905_v49 }
 0x189   : > { %v911_v60 = vsel %vm910_vm4, %v909_v57, %v908_v58 }
 0x18a   : > { %v914_v62 = vsel %vm913_vm5, %v912_v47, %v911_v60 }
 0x18b   : > { %v864_v59 = vpop.permute.xlu0 %863 }
 0x18c   : > { %v10782_v41 = vmul.f32 %v864_v59, %v783_v51  ;;  %v884_v51 = vld [vmem:[%s10486_s26 + $0x19] sm:$0x1] }
 0x18e   : > { %v915_v61 = vrot.slane %v10782_v41, 1 }
 0x190   : > { %v917_v0 = vsel %vm916_vm6, %v915_v61, %v914_v62 }
 0x191   : > { %918 = vrot.lane.b32.xlu1 %v917_v0, %s10210_s5 }
 0x203   : > { %v919_v3 = vpop.permute.xlu1 %918 }
 0x204   : > { %8388 = vmatmul.msk.f32.vlgmr.msra.gmra.mxu0 %vm920_vm7, %v919_v3 }
 0x281   : > { %v940_v5 = vpop.f32.mrf.mxu0 }
 0x282   : > { %v959_v63 = vadd.f32 %v940_v5, %v881_v4  ;;  %v945_v8 = vrot.slane %v940_v5, 2  ;;  %v944_v11 = vrot.slane %v940_v5, 1  ;;  %v948_v13 = vrot.slane %v940_v5, 5 }
 0x283   : > { %v947_v18 = vrot.slane %v940_v5, 4  ;;  %v946_v23 = vrot.slane %v940_v5, 3  ;;  %v950_v29 = vrot.slane %v940_v5, 7  ;;  %v949_v31 = vrot.slane %v940_v5, 6 }
 0x284   : > { %8752 = vtanh.f32 %v959_v63  ;;  %v961_v12 = vadd.f32 %v945_v8, %v883_v6  ;;  %v960_v14 = vadd.f32 %v944_v11, %v882_v10  ;;  %v964_v19 = vadd.f32 %v948_v13, %v886_v17 }
 0x285   : > { %v963_v25 = vadd.f32 %v947_v18, %v885_v20  ;;  %v962_v27 = vadd.f32 %v946_v23, %v884_v51  ;;  %v966_v34 = vadd.f32 %v950_v29, %v888_v30  ;;  %v965_v43 = vadd.f32 %v949_v31, %v887_v33 }
 0x286   : > { %8754 = vtanh.f32 %v961_v12  ;;  %v8391_v22 = vmul.f32 -1.442695, %v961_v12  ;;  %v8394_v52 = vmul.f32 -1.442695, %v964_v19 }
 0x287   : > { %8756 = vtanh.f32 %v960_v14  ;;  %v8393_v54 = vmul.f32 -1.442695, %v963_v25  ;;  %v8395_v59 = vmul.f32 -1.442695, %v965_v43  ;;  %v8396_v60 = vmul.f32 -1.442695, %v966_v34 }
 0x288   : > { %8758 = vtanh.f32 %v964_v19 }
 0x289   : > { %8760 = vtanh.f32 %v963_v25 }
 0x28a   : > { %v8753_v24 = vpop.eup %8752  ;;  %8762 = vtanh.f32 %v962_v27 }
 0x28b   : > { %1175 = vrot.lane.b32.xlu1 %v8753_v24, %s10208_s20  ;;  %8764 = vtanh.f32 %v966_v34 }
 0x28c   : > { %v8755_v16 = vpop.eup %8754  ;;  %8766 = vtanh.f32 %v965_v43 }
 0x28d   : > { %1179 = vrot.lane.b32.xlu0 %v8755_v16, %s10208_s20  ;;  %v8757_v28 = vpop.eup %8756 }
 0x28e   : > { %1177 = vrot.lane.b32.xlu2 %v8757_v28, %s10208_s20  ;;  %v8759_v32 = vpop.eup %8758 }
 0x28f   : > { %v8761_v36 = vpop.eup %8760 }
 0x290   : > { %v8763_v44 = vpop.eup %8762 }
 0x291   : > { %v8765_v45 = vpop.eup %8764 }
 0x292   : > { %v8767_v35 = vpop.eup %8766 }
 0x293   : > { %1185 = vrot.lane.b32.xlu1 %v8759_v32, %s10208_s20 }
 0x295   : > { %1183 = vrot.lane.b32.xlu0 %v8761_v36, %s10208_s20 }
 0x296   : > { %1181 = vrot.lane.b32.xlu2 %v8763_v44, %s10208_s20 }
 0x29b   : > { %1137 = vrot.lane.b32.xlu1 %v10643_v37, %s10210_s5  ;;  %v8390_v37 = vmul.f32 -1.442695, %v960_v14 }
 0x29d   : > { %1189 = vrot.lane.b32.xlu0 %v8765_v45, %s10208_s20  ;;  %8768 = vpow2.f32 %v8390_v37 }
 0x29e   : > { %1187 = vrot.lane.b32.xlu2 %v8767_v35, %s10208_s20 }
 0x2a3   : > { %1141 = vrot.lane.b32.xlu1 %v10717_v7, %s10210_s5  ;;  %v8769_v7 = vpop.eup %8768 }
 0x2a4   : > { %v992_v48 = vadd.f32 1.0, %v8769_v7 }
 0x2a5   : > { %1135 = vrot.lane.b32.xlu0 %v10657_v42, %s10210_s5  ;;  %v8389_v42 = vmul.f32 -1.442695, %v959_v63 }
 0x2a6   : > { %1139 = vrot.lane.b32.xlu2 %v10700_v2, %s10210_s5  ;;  %8770 = vrcp.f32 %v992_v48  ;;  %v1025_v0 = vand.u32 2147483648, %v992_v48  ;;  %vm1019_vm9 = vweird.f32 %v992_v48  ;;  %v1023_v3 = vand.u32 2147483647, %v992_v48 }
 0x2a7   : > { %8772 = vpow2.f32 %v8389_v42 }
 0x2a8   : > { %8774 = vpow2.f32 %v8391_v22  ;;  %v1026_v8 = vor.u32 1.1754944e-38, %v1025_v0  ;;  %vm1024_vm11 = vcmp.eq.f32.partialorder %v1023_v3, 8.507059e+37 }
 0x2a9   : > { %8776 = vpow2.f32 %v8394_v52 }
 0x2ab   : > { %1149 = vrot.lane.b32.xlu1 %v10745_v9, %s10210_s5 }
 0x2ac   : > { %v8771_v2 = vpop.eup %8770 }
 0x2ad   : > { %1143 = vrot.lane.b32.xlu0 %v10736_v15, %s10210_s5  ;;  %v1015_v9 = vmul.f32 %v8771_v2, %v992_v48  ;;  %v8773_v53 = vpop.eup %8772  ;;  %v8392_v15 = vmul.f32 -1.442695, %v962_v27  ;;  %vm1020_vm8 = vweird.f32 %v8771_v2 }
 0x2ae   : > { %1145 = vrot.lane.b32.xlu2 %v10684_v56, %s10210_s5  ;;  %v8775_v56 = vpop.eup %8774  ;;  %v10822_v57 = vadd.f32 1.0, %v8773_v53  ;;  %vm1021_vm10 = vmor %vm1019_vm9, %vm1020_vm8 }
 0x2af   : > { %v1016_v49 = vsub.f32 1.0, %v1015_v9  ;;  %8778 = vpow2.f32 %v8392_v15  ;;  %v10824_v58 = vadd.f32 1.0, %v8775_v56  ;;  %v8777_v47 = vpop.eup %8776 }
 0x2b0   : > { %8780 = vpow2.f32 %v8393_v54  ;;  %v10828_v4 = vadd.f32 1.0, %v8777_v47  ;;  %v1010_v43 = vand.u32 2147483648, %v10822_v57  ;;  %vm1004_vm13 = vweird.f32 %v10822_v57 }
 0x2b1   : > { %8782 = vrcp.f32 %v10822_v57  ;;  %v1008_v45 = vand.u32 2147483647, %v10822_v57  ;;  %vm1034_vm8 = vweird.f32 %v10824_v58  ;;  %v1038_v53 = vand.u32 2147483647, %v10824_v58 }
 0x2b2   : > { %8784 = vrcp.f32 %v10824_v58  ;;  %v1011_v52 = vor.u32 1.1754944e-38, %v1010_v43  ;;  %v1085_v0 = vand.u32 2147483648, %v10828_v4 }
 0x2b3   : > { %8786 = vpow2.f32 %v8395_v59  ;;  %vm1009_vm9 = vcmp.eq.f32.partialorder %v1008_v45, 8.507059e+37 }
 0x2b4   : > { %8788 = vpow2.f32 %v8396_v60 }
 0x2b5   : > { %v8779_v62 = vpop.eup %8778  ;;  %8790 = vrcp.f32 %v10828_v4 }
 0x2b6   : > { %1147 = vrot.lane.b32.xlu2 %v10740_v26, %s10210_s5  ;;  %v1017_v26 = vmul.f32 %v8771_v2, %v1016_v49  ;;  %v8781_v1 = vpop.eup %8780  ;;  %v10830_v63 = vadd.f32 1.0, %v8779_v62  ;;  %v1083_v62 = vand.u32 2147483647, %v10828_v4 }
 0x2b7   : > { %v8783_v5 = vpop.eup %8782  ;;  %v10832_v10 = vadd.f32 1.0, %v8781_v1 }
 0x2b8   : > { %v1018_v61 = vadd.f32 %v8771_v2, %v1017_v26  ;;  %v10835_v11 = vpop.eup %8784  ;;  %v1000_v14 = vmul.f32 %v8783_v5, %v10822_v57  ;;  %8792 = vrcp.f32 %v10830_v63  ;;  %vm1005_vm12 = vweird.f32 %v8783_v5 }
 0x2b9   : > { %v8787_v18 = vpop.eup %8786  ;;  %8794 = vrcp.f32 %v10832_v10  ;;  %v1030_v20 = vmul.f32 %v10835_v11, %v10824_v58  ;;  %vm10870_vm14 = vmor %vm1004_vm13, %vm1005_vm12  ;;  %vm1035_vm15 = vweird.f32 %v10835_v11  ;;  %vm1039_vm12 = vcmp.eq.f32.partialorder %v1038_v53, 8.507059e+37 }
 0x2ba   : > { %v1022_v6 = vsel %vm1021_vm10, %v8771_v2, %v1018_v61  ;;  %v8789_v19 = vpop.eup %8788  ;;  %v1001_v23 = vsub.f32 1.0, %v1000_v14  ;;  %v10848_v51 = vadd.f32 1.0, %v8787_v18  ;;  %v1040_v2 = vand.u32 2147483648, %v10824_v58  ;;  %vm10887_vm10 = vmor %vm1034_vm8, %vm1035_vm15 }
 0x2bb   : > { %v10837_v13 = vsel %vm1024_vm11, %v1026_v8, %v1022_v6  ;;  %v10846_v24 = vpop.eup %8790  ;;  %v10850_v25 = vadd.f32 1.0, %v8789_v19  ;;  %v1031_v27 = vsub.f32 1.0, %v1030_v20  ;;  %vm1079_vm13 = vweird.f32 %v10828_v4 }
 0x2bc   : > { %v1002_v29 = vmul.f32 %v8783_v5, %v1001_v23  ;;  %v1075_v30 = vmul.f32 %v10846_v24, %v10828_v4  ;;  %8796 = vrcp.f32 %v10848_v51  ;;  %v1041_v60 = vor.u32 1.1754944e-38, %v1040_v2 }
 0x2bd   : > { %8798 = vrcp.f32 %v10850_v25  ;;  %v1032_v32 = vmul.f32 %v10835_v11, %v1031_v27  ;;  %vm1080_vm11 = vweird.f32 %v10846_v24  ;;  %v1055_v14 = vand.u32 2147483648, %v10830_v63 }
 0x2be   : > { %v10852_v16 = vpop.eup %8792  ;;  %v1003_v34 = vadd.f32 %v8783_v5, %v1002_v29  ;;  %v1076_v36 = vsub.f32 1.0, %v1075_v30  ;;  %vm10912_vm8 = vmor %vm1079_vm13, %vm1080_vm11  ;;  %v1070_v18 = vand.u32 2147483648, %v10832_v10  ;;  %v1053_v20 = vand.u32 2147483647, %v10830_v63 }
 0x2bf   : > { %v10854_v28 = vpop.eup %8794  ;;  %v1045_v31 = vmul.f32 %v10852_v16, %v10830_v63  ;;  %v1033_v7 = vadd.f32 %v10835_v11, %v1032_v32  ;;  %v1086_v23 = vor.u32 1.1754944e-38, %v1085_v0  ;;  %vm1064_vm11 = vweird.f32 %v10832_v10 }
 0x2c0   : > { %v1060_v33 = vmul.f32 %v10854_v28, %v10832_v10  ;;  %v1007_v22 = vsel %vm10870_vm14, %v8783_v5, %v1003_v34  ;;  %v1077_v9 = vmul.f32 %v10846_v24, %v1076_v36  ;;  %vm1050_vm14 = vweird.f32 %v10852_v16 }
 0x2c1   : > { %v1046_v44 = vsub.f32 1.0, %v1045_v31  ;;  %v10891_v57 = vsel %vm1009_vm9, %v1011_v52, %v1007_v22  ;;  %v1037_v26 = vsel %vm10887_vm10, %v10835_v11, %v1033_v7  ;;  %vm1065_vm15 = vweird.f32 %v10854_v28 }
 0x2c2   : > { %v10868_v35 = vpop.eup %8796  ;;  %v1061_v48 = vsub.f32 1.0, %v1060_v33  ;;  %v1078_v61 = vadd.f32 %v10846_v24, %v1077_v9  ;;  %v10906_v5 = vsel %vm1039_vm12, %v1041_v60, %v1037_v26  ;;  %vm1049_vm9 = vweird.f32 %v10830_v63  ;;  %vm1066_vm13 = vmor %vm1064_vm11, %vm1065_vm15 }
 0x2c3   : > { %v10876_v42 = vpop.eup %8798  ;;  %v1047_v15 = vmul.f32 %v10852_v16, %v1046_v44  ;;  %v1090_v54 = vmul.f32 %v10868_v35, %v10848_v51  ;;  %vm10925_vm10 = vmor %vm1049_vm9, %vm1050_vm14  ;;  %v1068_v27 = vand.u32 2147483647, %v10832_v10  ;;  %vm1084_vm12 = vcmp.eq.f32.partialorder %v1083_v62, 8.507059e+37 }
 0x2c4   : > { %v1062_v47 = vmul.f32 %v10854_v28, %v1061_v48  ;;  %v1105_v58 = vmul.f32 %v10876_v42, %v10850_v25  ;;  %v1056_v34 = vor.u32 1.1754944e-38, %v1055_v14  ;;  %v1071_v36 = vor.u32 1.1754944e-38, %v1070_v18 }
 0x2c5   : > { %v1091_v1 = vsub.f32 1.0, %v1090_v54  ;;  %v1048_v6 = vadd.f32 %v10852_v16, %v1047_v15  ;;  %vm1054_vm14 = vcmp.eq.f32.partialorder %v1053_v20, 8.507059e+37  ;;  %vm1095_vm15 = vweird.f32 %v10868_v35 }
 0x2c6   : > { %v1063_v4 = vadd.f32 %v10854_v28, %v1062_v47  ;;  %vm1110_vm9 = vweird.f32 %v10876_v42  ;;  %v1100_v48 = vand.u32 2147483648, %v10848_v51  ;;  %v1115_v22 = vand.u32 2147483648, %v10850_v25 }
 0x2c7   : > { %v1052_v30 = vsel %vm10925_vm10, %v10852_v16, %v1048_v6  ;;  %vm1094_vm10 = vweird.f32 %v10848_v51  ;;  %v1098_v2 = vand.u32 2147483647, %v10848_v51  ;;  %v1113_v9 = vand.u32 2147483647, %v10850_v25 }
 0x2c8   : > { %v1067_v32 = vsel %vm1066_vm13, %v10854_v28, %v1063_v4  ;;  %v10944_v43 = vsel %vm1054_vm14, %v1056_v34, %v1052_v30  ;;  %vm1096_vm11 = vmor %vm1094_vm10, %vm1095_vm15  ;;  %v1101_v15 = vor.u32 1.1754944e-38, %v1100_v48  ;;  %v1116_v49 = vor.u32 1.1754944e-38, %v1115_v22 }
 0x2c9   : > { %vm1099_vm14 = vcmp.eq.f32.partialorder %v1098_v2, 8.507059e+37 }
 0x2e8   : > { %v1178_v12 = vpop.permute.xlu2 %1177 }
 0x2e9   : > { %v1200_v17 = vmul.f32 %v1178_v12, %v10837_v13  ;;  %v1106_v12 = vsub.f32 1.0, %v1105_v58 }
 0x2eb   : > { %1217 = vrot.lane.b32.xlu2 %v1200_v17, %s10210_s5  ;;  %v1082_v17 = vsel %vm10912_vm8, %v10846_v24, %v1078_v61  ;;  %v1092_v24 = vmul.f32 %v10868_v35, %v1091_v1  ;;  %v1107_v33 = vmul.f32 %v10876_v42, %v1106_v12  ;;  %vm1069_vm8 = vcmp.eq.f32.partialorder %v1068_v27, 8.507059e+37 }
 0x2ec   : > { %v10939_v63 = vsel %vm1084_vm12, %v1086_v23, %v1082_v17  ;;  %v10948_v16 = vsel %vm1069_vm8, %v1071_v36, %v1067_v32  ;;  %vm1109_vm12 = vweird.f32 %v10850_v25  ;;  %vm1114_vm8 = vcmp.eq.f32.partialorder %v1113_v9, 8.507059e+37 }
 0x2ed   : > { %v1093_v44 = vadd.f32 %v10868_v35, %v1092_v24  ;;  %v1108_v7 = vadd.f32 %v10876_v42, %v1107_v33  ;;  %vm1111_vm13 = vmor %vm1109_vm12, %vm1110_vm9 }
 0x2ef   : > { %v1097_v52 = vsel %vm1096_vm11, %v10868_v35, %v1093_v44  ;;  %v1112_v53 = vsel %vm1111_vm13, %v10876_v42, %v1108_v7 }
 0x2f0   : > { %v1182_v29 = vpop.permute.xlu2 %1181  ;;  %v10967_v51 = vsel %vm1114_vm8, %v1116_v49, %v1112_v53 }
 0x2f1   : > { %v1202_v28 = vmul.f32 %v1182_v29, %v10944_v43 }
 0x2f8   : > { %v1188_v54 = vpop.permute.xlu2 %1187 }
 0x2fd   : > { %v1176_v56 = vpop.permute.xlu1 %1175 }
 0x2fe   : > { %v1199_v59 = vmul.f32 %v1176_v56, %v10891_v57  ;;  %v10965_v56 = vsel %vm1099_vm14, %v1101_v15, %v1097_v52 }
 0x2ff   : > { %v1180_v3 = vpop.permute.xlu0 %1179  ;;  %v1205_v47 = vmul.f32 %v1188_v54, %v10965_v56 }
 0x300   : > { %1215 = vrot.lane.b32.xlu0 %v1199_v59, %s10210_s5  ;;  %v1201_v8 = vmul.f32 %v1180_v3, %v10906_v5  ;;  %v1140_v25 = vpop.permute.xlu2 %1139 }
 0x301   : > { %v1161_v14 = vmul.f32 %v1140_v25, %v10906_v5 }
 0x302   : > { %1219 = vrot.lane.b32.xlu1 %v1201_v8, %s10210_s5 }
 0x305   : > { %v1186_v31 = vpop.permute.xlu1 %1185 }
 0x306   : > { %v1204_v10 = vmul.f32 %v1186_v31, %v10939_v63 }
 0x307   : > { %v1184_v45 = vpop.permute.xlu0 %1183 }
 0x308   : > { %1225 = vrot.lane.b32.xlu2 %v1204_v10, %s10210_s5  ;;  %v1203_v37 = vmul.f32 %v1184_v45, %v10948_v16  ;;  %v1146_v35 = vpop.permute.xlu2 %1145 }
 0x309   : > { %v1164_v20 = vmul.f32 %v1146_v35, %v10939_v63 }
 0x30a   : > { %1223 = vrot.lane.b32.xlu0 %v1203_v37, %s10210_s5  ;;  %1221 = vrot.lane.b32.xlu1 %v1202_v28, %s10210_s5 }
 0x30d   : > { %v1138_v59 = vpop.permute.xlu1 %1137 }
 0x30e   : > { %v1160_v60 = vmul.f32 %v1138_v59, %v10837_v13 }
 0x30f   : > { %v1190_v26 = vpop.permute.xlu0 %1189 }
 0x310   : > { %v1206_v58 = vmul.f32 %v1190_v26, %v10967_v51  ;;  %v1148_v42 = vpop.permute.xlu2 %1147 }
 0x311   : > { %v1165_v36 = vmul.f32 %v1148_v42, %v10965_v56 }
 0x312   : > { %1229 = vrot.lane.b32.xlu1 %v1206_v58, %s10210_s5  ;;  %1227 = vrot.lane.b32.xlu0 %v1205_v47, %s10210_s5 }
 0x315   : > { %v1142_v3 = vpop.permute.xlu1 %1141 }
 0x316   : > { %v1162_v29 = vmul.f32 %v1142_v3, %v10944_v43 }
 0x317   : > { %v1136_v1 = vpop.permute.xlu0 %1135 }
 0x318   : > { %v1159_v11 = vmul.f32 %v1136_v1, %v10891_v57 }
 0x31d   : > { %v1150_v8 = vpop.permute.xlu1 %1149 }
 0x31e   : > { %v1166_v44 = vmul.f32 %v1150_v8, %v10967_v51 }
 0x31f   : > { %v1144_v6 = vpop.permute.xlu0 %1143 }
 0x320   : > { %v1163_v24 = vmul.f32 %v1144_v6, %v10948_v16 }
 0x345   : > { %v1218_v61 = vpop.permute.xlu2 %1217 }
 0x346   : > { %v10974_v62 = vadd.f32 %v1218_v61, %v1160_v60 }
 0x348   : > { %8800 = vtanh.f32 %v10974_v62 }
 0x34e   : > { %v8801_v0 = vpop.eup %8800 }
 0x34f   : > { %1265 = vrot.lane.b32.xlu2 %v8801_v0, %s10208_s20 }
 0x362   : > { %v1226_v18 = vpop.permute.xlu2 %1225 }
 0x363   : > { %v10987_v23 = vadd.f32 %v1226_v18, %v1164_v20  ;;  %v1303_v20 = vld [vmem:[%s10486_s26 + $0x2] sm:$0x1] }
 0x372   : > { %v1216_v4 = vpop.permute.xlu0 %1215 }
 0x373   : > { %v10979_v12 = vadd.f32 %v1216_v4, %v1159_v11 }
 0x374   : > { %v1220_v17 = vpop.permute.xlu1 %1219 }
 0x375   : > { %8802 = vtanh.f32 %v10979_v12  ;;  %v10983_v19 = vadd.f32 %v1220_v17, %v1161_v14 }
 0x377   : > { %8804 = vtanh.f32 %v10983_v19 }
 0x378   : > { %8806 = vtanh.f32 %v10987_v23 }
 0x37b   : > { %v8803_v27 = vpop.eup %8802 }
 0x37c   : > { %1263 = vrot.lane.b32.xlu1 %v8803_v27, %s10208_s20  ;;  %v1224_v30 = vpop.permute.xlu0 %1223  ;;  %v1222_v31 = vpop.permute.xlu1 %1221  ;;  %v1305_v27 = vld [vmem:[%s10486_s26 + $0x12] sm:$0x1] }
 0x37d   : > { %v8805_v32 = vpop.eup %8804  ;;  %v10993_v33 = vadd.f32 %v1224_v30, %v1163_v24  ;;  %v10995_v34 = vadd.f32 %v1222_v31, %v1162_v29  ;;  %v1304_v30 = vld [vmem:[%s10486_s26 + $0xa] sm:$0x1] }
 0x37e   : > { %1267 = vrot.lane.b32.xlu0 %v8805_v32, %s10208_s20  ;;  %v8807_v10 = vpop.eup %8806 }
 0x37f   : > { %8808 = vtanh.f32 %v10993_v33 }
 0x380   : > { %8810 = vtanh.f32 %v10995_v34 }
 0x384   : > { %1273 = vrot.lane.b32.xlu1 %v8807_v10, %s10208_s20  ;;  %v1230_v45 = vpop.permute.xlu1 %1229  ;;  %v1228_v28 = vpop.permute.xlu0 %1227 }
 0x385   : > { %v8809_v37 = vpop.eup %8808  ;;  %v11003_v7 = vadd.f32 %v1230_v45, %v1166_v44  ;;  %v11005_v48 = vadd.f32 %v1228_v28, %v1165_v36  ;;  %v1308_v44 = vld [vmem:[%s10486_s26 + $0x2a] sm:$0x1] }
 0x386   : > { %v8811_v22 = vpop.eup %8810  ;;  %1271 = vrot.lane.b32.xlu0 %v8809_v37, %s10208_s20  ;;  %v1307_v37 = vld [vmem:[%s10486_s26 + $0x22] sm:$0x1] }
 0x387   : > { %8812 = vtanh.f32 %v11003_v7  ;;  %1269 = vrot.lane.b32.xlu2 %v8811_v22, %s10208_s20 }
 0x388   : > { %8814 = vtanh.f32 %v11005_v48 }
 0x38d   : > { %v8813_v2 = vpop.eup %8812 }
 0x38e   : > { %v8815_v9 = vpop.eup %8814  ;;  %1277 = vrot.lane.b32.xlu0 %v8813_v2, %s10208_s20 }
 0x38f   : > { %1275 = vrot.lane.b32.xlu2 %v8815_v9, %s10208_s20  ;;  %v1306_v9 = vld [vmem:[%s10486_s26 + $0x1a] sm:$0x1] }
 0x3a9   : > { %v1266_v52 = vpop.permute.xlu2 %1265 }
 0x3aa   : > { %v11017_v26 = vmul.f32 %v1266_v52, %v10837_v13 }
 0x3ac   : > { %v1319_v25 = vrot.slane %v11017_v26, 7 }
 0x3e1   : > { %v1270_v54 = vpop.permute.xlu2 %1269 }
 0x3e2   : > { %v11025_v35 = vmul.f32 %v1270_v54, %v10944_v43 }
 0x3e9   : > { %v1276_v61 = vpop.permute.xlu2 %1275 }
 0x3ea   : > { %v11040_v3 = vmul.f32 %v1276_v61, %v10965_v56 }
 0x3ec   : > { %v1329_v4 = vrot.slane %v11040_v3, 2 }
 0x3ee   : > { %v1264_v53 = vpop.permute.xlu1 %1263 }
 0x3ef   : > { %v11020_v47 = vmul.f32 %v1264_v53, %v10891_v57  ;;  %v1323_v57 = vrot.slane %v11025_v35, 5 }
 0x3f0   : > { %v1268_v15 = vpop.permute.xlu0 %1267 }
 0x3f1   : > { %v11014_v49 = vmul.f32 %v1268_v15, %v10906_v5  ;;  %v1320_v60 = vsel %vm898_vm0, %v1319_v25, %v11020_v47  ;;  %v1310_v25 = vld [vmem:[%s10486_s26 + $0x3a] sm:$0x1] }
 0x3f3   : > { %v1321_v58 = vrot.slane %v11014_v49, 6 }
 0x3f5   : > { %v1322_v13 = vsel %vm901_vm1, %v1321_v58, %v1320_v60  ;;  %v1309_v60 = vld [vmem:[%s10486_s26 + $0x32] sm:$0x1] }
 0x3f6   : > { %v1274_v42 = vpop.permute.xlu1 %1273  ;;  %v1324_v1 = vsel %vm904_vm2, %v1323_v57, %v1322_v13 }
 0x3f7   : > { %v11035_v0 = vmul.f32 %v1274_v42, %v10939_v63 }
 0x3f8   : > { %v1272_v59 = vpop.permute.xlu0 %1271 }
 0x3f9   : > { %v11030_v5 = vmul.f32 %v1272_v59, %v10948_v16  ;;  %v1327_v6 = vrot.slane %v11035_v0, 3 }
 0x3fb   : > { %v1325_v43 = vrot.slane %v11030_v5, 4 }
 0x3fd   : > { %v1326_v16 = vsel %vm907_vm3, %v1325_v43, %v1324_v1 }
 0x3fe   : > { %v1328_v63 = vsel %vm910_vm4, %v1327_v6, %v1326_v16 }
 0x3ff   : > { %v1330_v17 = vsel %vm913_vm5, %v1329_v4, %v1328_v63 }
 0x400   : > { %v1278_v8 = vpop.permute.xlu0 %1277 }
 0x401   : > { %v11045_v11 = vmul.f32 %v1278_v8, %v10967_v51 }
 0x403   : > { %v1331_v14 = vrot.slane %v11045_v11, 1 }
 0x405   : > { %v1332_v56 = vsel %vm916_vm6, %v1331_v14, %v1330_v17 }
 0x406   : > { %1333 = vrot.lane.b32.xlu1 %v1332_v56, %s10210_s5 }
 0x478   : > { %v1334_v18 = vpop.permute.xlu1 %1333 }
 0x479   : > { %8397 = vmatmul.msk.f32.vlgmr.msra.gmra.mxu1 %vm920_vm7, %v1334_v18 }
 0x4f6   : > { %v1354_v51 = vpop.f32.mrf.mxu1 }
 0x4f7   : > { %v1373_v29 = vadd.f32 %v1354_v51, %v1303_v20  ;;  %v1359_v24 = vrot.slane %v1354_v51, 2  ;;  %v1358_v31 = vrot.slane %v1354_v51, 1  ;;  %v1362_v10 = vrot.slane %v1354_v51, 5 }
 0x4f8   : > { %v1361_v45 = vrot.slane %v1354_v51, 4  ;;  %v1360_v22 = vrot.slane %v1354_v51, 3  ;;  %v1364_v58 = vrot.slane %v1354_v51, 7  ;;  %v1363_v42 = vrot.slane %v1354_v51, 6 }
 0x4f9   : > { %8816 = vtanh.f32 %v1373_v29  ;;  %v1375_v32 = vadd.f32 %v1359_v24, %v1305_v27  ;;  %v1374_v36 = vadd.f32 %v1358_v31, %v1304_v30  ;;  %v1378_v28 = vadd.f32 %v1362_v10, %v1308_v44 }
 0x4fa   : > { %v1377_v52 = vadd.f32 %v1361_v45, %v1307_v37  ;;  %v1376_v15 = vadd.f32 %v1360_v22, %v1306_v9  ;;  %v1380_v13 = vadd.f32 %v1364_v58, %v1310_v25  ;;  %v1379_v61 = vadd.f32 %v1363_v42, %v1309_v60 }
 0x4fb   : > { %8818 = vtanh.f32 %v1375_v32  ;;  %v8399_v6 = vmul.f32 -1.442695, %v1374_v36  ;;  %v8398_v56 = vmul.f32 -1.442695, %v1373_v29  ;;  %v8400_v20 = vmul.f32 -1.442695, %v1375_v32 }
 0x4fc   : > { %8820 = vtanh.f32 %v1374_v36  ;;  %v8401_v8 = vmul.f32 -1.442695, %v1376_v15  ;;  %v8404_v14 = vmul.f32 -1.442695, %v1379_v61  ;;  %v8403_v30 = vmul.f32 -1.442695, %v1378_v28 }
 0x4fd   : > { %8822 = vtanh.f32 %v1378_v28  ;;  %v8402_v36 = vmul.f32 -1.442695, %v1377_v52  ;;  %v8405_v9 = vmul.f32 -1.442695, %v1380_v13 }
 0x4fe   : > { %8824 = vtanh.f32 %v1377_v52 }
 0x4ff   : > { %v8817_v2 = vpop.eup %8816  ;;  %8826 = vtanh.f32 %v1376_v15 }
 0x500   : > { %1557 = vrot.lane.b32.xlu1 %v8817_v2, %s10208_s20  ;;  %8828 = vtanh.f32 %v1380_v13 }
 0x501   : > { %v8819_v53 = vpop.eup %8818  ;;  %8830 = vtanh.f32 %v1379_v61 }
 0x502   : > { %1561 = vrot.lane.b32.xlu0 %v8819_v53, %s10208_s20  ;;  %v8821_v54 = vpop.eup %8820  ;;  %8832 = vpow2.f32 %v8399_v6 }
 0x503   : > { %1559 = vrot.lane.b32.xlu2 %v8821_v54, %s10208_s20  ;;  %v8823_v59 = vpop.eup %8822  ;;  %8834 = vpow2.f32 %v8401_v8 }
 0x504   : > { %v8825_v57 = vpop.eup %8824 }
 0x505   : > { %v8827_v43 = vpop.eup %8826 }
 0x506   : > { %v8829_v1 = vpop.eup %8828 }
 0x507   : > { %v8831_v16 = vpop.eup %8830 }
 0x508   : > { %1567 = vrot.lane.b32.xlu1 %v8823_v59, %s10208_s20  ;;  %v8833_v63 = vpop.eup %8832 }
 0x509   : > { %v1406_v4 = vadd.f32 1.0, %v8833_v63  ;;  %v8835_v17 = vpop.eup %8834 }
 0x50a   : > { %1565 = vrot.lane.b32.xlu0 %v8825_v57, %s10208_s20  ;;  %v11070_v18 = vadd.f32 1.0, %v8835_v17 }
 0x50b   : > { %1563 = vrot.lane.b32.xlu2 %v8827_v43, %s10208_s20  ;;  %8836 = vrcp.f32 %v1406_v4  ;;  %v1439_v54 = vand.u32 2147483648, %v1406_v4  ;;  %vm1433_vm9 = vweird.f32 %v1406_v4  ;;  %v1437_v25 = vand.u32 2147483647, %v1406_v4 }
 0x50c   : > { %8838 = vpow2.f32 %v8404_v14  ;;  %v1469_v17 = vand.u32 2147483648, %v11070_v18  ;;  %vm1463_vm13 = vweird.f32 %v11070_v18 }
 0x50d   : > { %8840 = vpow2.f32 %v8398_v56  ;;  %v1440_v61 = vor.u32 1.1754944e-38, %v1439_v54  ;;  %vm1438_vm11 = vcmp.eq.f32.partialorder %v1437_v25, 8.507059e+37 }
 0x50e   : > { %8842 = vrcp.f32 %v11070_v18 }
 0x50f   : > { %8844 = vpow2.f32 %v8400_v20  ;;  %v1467_v20 = vand.u32 2147483647, %v11070_v18 }
 0x510   : > { %8846 = vpow2.f32 %v8403_v30 }
 0x511   : > { %v8837_v51 = vpop.eup %8836  ;;  %vm1468_vm8 = vcmp.eq.f32.partialorder %v1467_v20, 8.507059e+37 }
 0x512   : > { %1571 = vrot.lane.b32.xlu0 %v8829_v1, %s10208_s20  ;;  %v8839_v27 = vpop.eup %8838  ;;  %v1429_v24 = vmul.f32 %v8837_v51, %v1406_v4  ;;  %vm1434_vm15 = vweird.f32 %v8837_v51 }
 0x513   : > { %1569 = vrot.lane.b32.xlu2 %v8831_v16, %s10208_s20  ;;  %v8841_v31 = vpop.eup %8840  ;;  %v11073_v10 = vadd.f32 1.0, %v8839_v27  ;;  %vm1435_vm10 = vmor %vm1433_vm9, %vm1434_vm15 }
 0x514   : > { %v1430_v44 = vsub.f32 1.0, %v1429_v24  ;;  %v8843_v45 = vpop.eup %8842  ;;  %v11075_v37 = vadd.f32 1.0, %v8841_v31 }
 0x515   : > { %v8845_v29 = vpop.eup %8844  ;;  %8848 = vrcp.f32 %v11073_v10  ;;  %v1459_v22 = vmul.f32 %v8843_v45, %v11070_v18  ;;  %vm1464_vm12 = vweird.f32 %v8843_v45  ;;  %vm1508_vm9 = vweird.f32 %v11073_v10 }
 0x516   : > { %8850 = vpow2.f32 %v8402_v36  ;;  %v1431_v32 = vmul.f32 %v8837_v51, %v1430_v44  ;;  %v11079_v2 = vadd.f32 1.0, %v8845_v29  ;;  %v8847_v28 = vpop.eup %8846  ;;  %vm1465_vm14 = vmor %vm1463_vm13, %vm1464_vm12  ;;  %v1470_v36 = vor.u32 1.1754944e-38, %v1469_v17 }
 0x517   : > { %8852 = vrcp.f32 %v11075_v37  ;;  %v1460_v52 = vsub.f32 1.0, %v1459_v22  ;;  %v11085_v42 = vadd.f32 1.0, %v8847_v28  ;;  %v1512_v54 = vand.u32 2147483647, %v11073_v10 }
 0x518   : > { %v1432_v53 = vadd.f32 %v8837_v51, %v1431_v32  ;;  %8854 = vrcp.f32 %v11079_v2  ;;  %vm1418_vm12 = vweird.f32 %v11075_v37 }
 0x519   : > { %8856 = vpow2.f32 %v8405_v9  ;;  %v1461_v57 = vmul.f32 %v8843_v45, %v1460_v52  ;;  %v1514_v52 = vand.u32 2147483648, %v11073_v10  ;;  %vm1513_vm13 = vcmp.eq.f32.partialorder %v1512_v54, 8.507059e+37 }
 0x51a   : > { %v1436_v60 = vsel %vm1435_vm10, %v8837_v51, %v1432_v53  ;;  %8858 = vrcp.f32 %v11085_v42 }
 0x51b   : > { %v11082_v15 = vpop.eup %8848  ;;  %v11096_v6 = vsel %vm1438_vm11, %v1440_v61, %v1436_v60  ;;  %v1462_v4 = vadd.f32 %v8843_v45, %v1461_v57 }
 0x51c   : > { %v8851_v58 = vpop.eup %8850  ;;  %v1504_v13 = vmul.f32 %v11082_v15, %v11073_v10  ;;  %vm1509_vm15 = vweird.f32 %v11082_v15  ;;  %v1424_v10 = vand.u32 2147483648, %v11075_v37 }
 0x51d   : > { %v11087_v59 = vpop.eup %8852  ;;  %v11091_v43 = vadd.f32 1.0, %v8851_v58  ;;  %v1466_v30 = vsel %vm1465_vm14, %v8843_v45, %v1462_v4  ;;  %vm11131_vm10 = vmor %vm1508_vm9, %vm1509_vm15  ;;  %vm1448_vm15 = vweird.f32 %v11079_v2 }
 0x51e   : > { %v11094_v1 = vpop.eup %8854  ;;  %v1414_v8 = vmul.f32 %v11087_v59, %v11075_v37  ;;  %v1505_v14 = vsub.f32 1.0, %v1504_v13  ;;  %v11115_v22 = vsel %vm1468_vm8, %v1470_v36, %v1466_v30  ;;  %vm1419_vm11 = vweird.f32 %v11087_v59 }
 0x51f   : > { %8860 = vrcp.f32 %v11091_v43  ;;  %v8857_v56 = vpop.eup %8856  ;;  %v1444_v51 = vmul.f32 %v11094_v1, %v11079_v2  ;;  %vm11143_vm14 = vmor %vm1418_vm12, %vm1419_vm11  ;;  %vm1449_vm8 = vweird.f32 %v11094_v1  ;;  %v1425_v30 = vor.u32 1.1754944e-38, %v1424_v10 }
 0x520   : > { %v1415_v27 = vsub.f32 1.0, %v1414_v8  ;;  %v11108_v24 = vpop.eup %8858  ;;  %v1506_v31 = vmul.f32 %v11082_v15, %v1505_v14  ;;  %v11111_v44 = vadd.f32 1.0, %v8857_v56  ;;  %v1422_v8 = vand.u32 2147483647, %v11075_v37 }
 0x521   : > { %v1445_v29 = vsub.f32 1.0, %v1444_v51  ;;  %v1489_v9 = vmul.f32 %v11108_v24, %v11085_v42  ;;  %v1454_v37 = vand.u32 2147483648, %v11079_v2  ;;  %vm1494_vm11 = vweird.f32 %v11108_v24 }
 0x522   : > { %v1416_v28 = vmul.f32 %v11087_v59, %v1415_v27  ;;  %v1507_v45 = vadd.f32 %v11082_v15, %v1506_v31  ;;  %8862 = vrcp.f32 %v11111_v44  ;;  %v1452_v31 = vand.u32 2147483647, %v11079_v2 }
 0x523   : > { %v1446_v58 = vmul.f32 %v11094_v1, %v1445_v29  ;;  %v1490_v13 = vsub.f32 1.0, %v1489_v9  ;;  %vm1423_vm9 = vcmp.eq.f32.partialorder %v1422_v8, 8.507059e+37  ;;  %v1499_v2 = vand.u32 2147483648, %v11085_v42 }
 0x524   : > { %v1417_v57 = vadd.f32 %v11087_v59, %v1416_v28  ;;  %v1511_v61 = vsel %vm11131_vm10, %v11082_v15, %v1507_v45  ;;  %vm1450_vm10 = vmor %vm1448_vm15, %vm1449_vm8  ;;  %vm1453_vm12 = vcmp.eq.f32.partialorder %v1452_v31, 8.507059e+37  ;;  %vm1478_vm15 = vweird.f32 %v11091_v43 }
 0x525   : > { %v11113_v32 = vpop.eup %8860  ;;  %v1447_v4 = vadd.f32 %v11094_v1, %v1446_v58  ;;  %v1491_v51 = vmul.f32 %v11108_v24, %v1490_v13  ;;  %v1484_v13 = vand.u32 2147483648, %v11091_v43  ;;  %v1482_v10 = vand.u32 2147483647, %v11091_v43 }
 0x526   : > { %v1474_v25 = vmul.f32 %v11113_v32, %v11091_v43  ;;  %v1421_v20 = vsel %vm11143_vm14, %v11087_v59, %v1417_v57  ;;  %vm1479_vm8 = vweird.f32 %v11113_v32 }
 0x527   : > { %v11162_v29 = vsel %vm1423_vm9, %v1425_v30, %v1421_v20  ;;  %v1451_v59 = vsel %vm1450_vm10, %v11094_v1, %v1447_v4  ;;  %v1492_v45 = vadd.f32 %v11108_v24, %v1491_v51  ;;  %v1497_v1 = vand.u32 2147483647, %v11085_v42  ;;  %vm1480_vm10 = vmor %vm1478_vm15, %vm1479_vm8 }
 0x528   : > { %v1475_v14 = vsub.f32 1.0, %v1474_v25  ;;  %v11149_v17 = vpop.eup %8862  ;;  %v1485_v4 = vor.u32 1.1754944e-38, %v1484_v13 }
 0x529   : > { %v1519_v28 = vmul.f32 %v11149_v17, %v11111_v44  ;;  %vm1498_vm9 = vcmp.eq.f32.partialorder %v1497_v1, 8.507059e+37 }
 0x52b   : > { %v1520_v60 = vsub.f32 1.0, %v1519_v28 }
 0x55d   : > { %v1560_v16 = vpop.permute.xlu2 %1559 }
 0x55e   : > { %v1582_v63 = vmul.f32 %v1560_v16, %v11096_v6  ;;  %v1515_v16 = vor.u32 1.1754944e-38, %v1514_v52 }
 0x560   : > { %1599 = vrot.lane.b32.xlu1 %v1582_v63, %s10210_s5  ;;  %v11151_v15 = vsel %vm1513_vm13, %v1515_v16, %v1511_v61  ;;  %vm1493_vm13 = vweird.f32 %v11085_v42  ;;  %v1500_v61 = vor.u32 1.1754944e-38, %v1499_v2  ;;  %v1521_v63 = vmul.f32 %v11149_v17, %v1520_v60 }
 0x561   : > { %vm1495_vm14 = vmor %vm1493_vm13, %vm1494_vm11  ;;  %vm1483_vm11 = vcmp.eq.f32.partialorder %v1482_v10, 8.507059e+37  ;;  %vm1523_vm13 = vweird.f32 %v11111_v44 }
 0x562   : > { %v1496_v57 = vsel %vm1495_vm14, %v11108_v24, %v1492_v45  ;;  %v1522_v20 = vadd.f32 %v11149_v17, %v1521_v63 }
 0x563   : > { %v11185_v16 = vsel %vm1498_vm9, %v1500_v61, %v1496_v57 }
 0x565   : > { %v1564_v18 = vpop.permute.xlu2 %1563 }
 0x566   : > { %v1584_v53 = vmul.f32 %v1564_v18, %v11115_v22  ;;  %v1476_v18 = vmul.f32 %v11113_v32, %v1475_v14 }
 0x568   : > { %1603 = vrot.lane.b32.xlu1 %v1584_v53, %s10210_s5  ;;  %v1455_v53 = vor.u32 1.1754944e-38, %v1454_v37  ;;  %v1477_v25 = vadd.f32 %v11113_v32, %v1476_v18  ;;  %v1529_v37 = vand.u32 2147483648, %v11111_v44 }
 0x56a   : > { %v11172_v54 = vsel %vm1453_vm12, %v1455_v53, %v1451_v59  ;;  %v1481_v8 = vsel %vm1480_vm10, %v11113_v32, %v1477_v25  ;;  %vm1524_vm12 = vweird.f32 %v11149_v17  ;;  %v1527_v32 = vand.u32 2147483647, %v11111_v44 }
 0x56b   : > { %v11190_v14 = vsel %vm1483_vm11, %v1485_v4, %v1481_v8  ;;  %vm1525_vm14 = vmor %vm1523_vm13, %vm1524_vm12  ;;  %v1543_v59 = vmul.f32 %v11172_v54, %v10983_v19  ;;  %v1542_v44 = vmul.f32 %v11096_v6, %v10974_v62  ;;  %v1544_v19 = vmul.f32 %v11115_v22, %v10995_v34 }
 0x56c   : > { %v1526_v51 = vsel %vm1525_vm14, %v11149_v17, %v1522_v20  ;;  %vm1528_vm8 = vcmp.eq.f32.partialorder %v1527_v32, 8.507059e+37  ;;  %v1545_v53 = vmul.f32 %v11190_v14, %v10993_v33  ;;  %v1547_v34 = vmul.f32 %v11151_v15, %v11005_v48 }
 0x56d   : > { %v1570_v56 = vpop.permute.xlu2 %1569 }
 0x56e   : > { %v1587_v27 = vmul.f32 %v1570_v56, %v11151_v15 }
 0x570   : > { %1609 = vrot.lane.b32.xlu1 %v1587_v27, %s10210_s5  ;;  %v1530_v27 = vor.u32 1.1754944e-38, %v1529_v37  ;;  %v1295_v37 = vadd.f32 %v11020_v47, %v10759_v40  ;;  %v1300_v47 = vadd.f32 %v11035_v0, %v10771_v21 }
 0x572   : > { %v1558_v36 = vpop.permute.xlu1 %1557  ;;  %v11201_v30 = vsel %vm1528_vm8, %v1530_v27, %v1526_v51  ;;  %v1297_v27 = vadd.f32 %v11014_v49, %v10753_v38 }
 0x573   : > { %v1581_v9 = vmul.f32 %v1558_v36, %v11162_v29  ;;  %v1548_v33 = vmul.f32 %v11201_v30, %v11003_v7  ;;  %v1541_v7 = vmul.f32 %v11162_v29, %v10979_v12 }
 0x574   : > { %v1562_v52 = vpop.permute.xlu0 %1561 }
 0x575   : > { %1597 = vrot.lane.b32.xlu0 %v1581_v9, %s10210_s5  ;;  %v1583_v58 = vmul.f32 %v1562_v52, %v11172_v54 }
 0x577   : > { %1601 = vrot.lane.b32.xlu2 %v1583_v58, %s10210_s5 }
 0x57a   : > { %v1568_v42 = vpop.permute.xlu1 %1567 }
 0x57b   : > { %v1586_v24 = vmul.f32 %v1568_v42, %v11185_v16 }
 0x57c   : > { %v1566_v56 = vpop.permute.xlu0 %1565 }
 0x57d   : > { %1607 = vrot.lane.b32.xlu0 %v1586_v24, %s10210_s5  ;;  %v1585_v43 = vmul.f32 %v1566_v56, %v11190_v14  ;;  %v1546_v24 = vmul.f32 %v11185_v16, %v10987_v23 }
 0x57f   : > { %1605 = vrot.lane.b32.xlu2 %v1585_v43, %s10210_s5 }
 0x584   : > { %v1572_v31 = vpop.permute.xlu0 %1571 }
 0x585   : > { %v1588_v36 = vmul.f32 %v1572_v31, %v11201_v30 }
 0x587   : > { %1611 = vrot.lane.b32.xlu2 %v1588_v36, %s10210_s5 }
 0x5d1   : > { %v1602_v18 = vpop.permute.xlu2 %1601 }
 0x5d2   : > { %v11207_v28 = vadd.f32 %v1602_v18, %v1543_v59  ;;  %v1600_v9 = vpop.permute.xlu1 %1599  ;;  %v1296_v59 = vadd.f32 %v11017_v26, %v10756_v39 }
 0x5d3   : > { %v11212_v17 = vadd.f32 %v1600_v9, %v1542_v44 }
 0x5d4   : > { %8864 = vtanh.f32 %v11207_v28 }
 0x5d5   : > { %8866 = vtanh.f32 %v11212_v17 }
 0x5d9   : > { %v1606_v45 = vpop.permute.xlu2 %1605 }
 0x5da   : > { %v8865_v2 = vpop.eup %8864  ;;  %v11217_v52 = vadd.f32 %v1606_v45, %v1545_v53  ;;  %v1604_v1 = vpop.permute.xlu1 %1603 }
 0x5db   : > { %1649 = vrot.lane.b32.xlu1 %v8865_v2, %s10208_s20  ;;  %v8867_v62 = vpop.eup %8866  ;;  %v11223_v58 = vadd.f32 %v1604_v1, %v1544_v19 }
 0x5dc   : > { %8868 = vtanh.f32 %v11217_v52  ;;  %1647 = vrot.lane.b32.xlu0 %v8867_v62, %s10208_s20 }
 0x5dd   : > { %8870 = vtanh.f32 %v11223_v58 }
 0x5e1   : > { %v1612_v25 = vpop.permute.xlu2 %1611 }
 0x5e2   : > { %v8869_v60 = vpop.eup %8868  ;;  %v11229_v57 = vadd.f32 %v1612_v25, %v1548_v33  ;;  %v1610_v13 = vpop.permute.xlu1 %1609 }
 0x5e3   : > { %1653 = vrot.lane.b32.xlu1 %v8869_v60, %s10208_s20  ;;  %v8871_v61 = vpop.eup %8870  ;;  %v11235_v10 = vadd.f32 %v1610_v13, %v1547_v34 }
 0x5e4   : > { %8872 = vtanh.f32 %v11229_v57  ;;  %1651 = vrot.lane.b32.xlu0 %v8871_v61, %s10208_s20 }
 0x5e5   : > { %8874 = vtanh.f32 %v11235_v10 }
 0x5e7   : > { %v1598_v42 = vpop.permute.xlu0 %1597 }
 0x5e8   : > { %v11241_v8 = vadd.f32 %v1598_v42, %v1541_v7  ;;  %v1687_v42 = vld [vmem:[%s10486_s26 + $0x13] sm:$0x1] }
 0x5ea   : > { %8876 = vtanh.f32 %v11241_v8  ;;  %v8873_v48 = vpop.eup %8872 }
 0x5eb   : > { %1659 = vrot.lane.b32.xlu1 %v8873_v48, %s10208_s20  ;;  %v8875_v63 = vpop.eup %8874 }
 0x5ec   : > { %1657 = vrot.lane.b32.xlu0 %v8875_v63, %s10208_s20 }
 0x5ef   : > { %v1608_v4 = vpop.permute.xlu0 %1607 }
 0x5f0   : > { %v8877_v56 = vpop.eup %8876  ;;  %v11248_v43 = vadd.f32 %v1608_v4, %v1546_v24  ;;  %v1686_v24 = vld [vmem:[%s10486_s26 + $0xb] sm:$0x1] }
 0x5f1   : > { %1645 = vrot.lane.b32.xlu2 %v8877_v56, %s10208_s20 }
 0x5f2   : > { %8878 = vtanh.f32 %v11248_v43 }
 0x5f8   : > { %v8879_v12 = vpop.eup %8878 }
 0x5f9   : > { %1655 = vrot.lane.b32.xlu2 %v8879_v12, %s10208_s20 }
 0x64b   : > { %v1646_v20 = vpop.permute.xlu2 %1645 }
 0x64c   : > { %v1669_v32 = vmul.f32 %v1646_v20, %v11162_v29 }
 0x64d   : > { %v1650_v23 = vpop.permute.xlu1 %1649 }
 0x64e   : > { %v11256_v51 = vadd.f32 %v1669_v32, %v1295_v37  ;;  %v1671_v31 = vmul.f32 %v1650_v23, %v11172_v54  ;;  %v1648_v36 = vpop.permute.xlu0 %1647  ;;  %v1299_v54 = vadd.f32 %v11030_v5, %v10768_v50  ;;  %v1690_v37 = vld [vmem:[%s10486_s26 + $0x2b] sm:$0x1] }
 0x64f   : > { %v1670_v44 = vmul.f32 %v1648_v36, %v11096_v6  ;;  %v1298_v6 = vadd.f32 %v11025_v35, %v10764_v46 }
 0x650   : > { %v11263_v18 = vadd.f32 %v1671_v31, %v1297_v27  ;;  %v1703_v45 = vrot.slane %v1671_v31, 6  ;;  %v1689_v27 = vld [vmem:[%s10486_s26 + $0x23] sm:$0x1] }
 0x651   : > { %v11266_v9 = vadd.f32 %v1670_v44, %v1296_v59  ;;  %v1701_v53 = vrot.slane %v1670_v44, 7  ;;  %v1688_v59 = vld [vmem:[%s10486_s26 + $0x1b] sm:$0x1] }
 0x653   : > { %v1656_v40 = vpop.permute.xlu2 %1655  ;;  %v1702_v0 = vsel %vm898_vm0, %v1701_v53, %v1669_v32 }
 0x654   : > { %v1674_v29 = vmul.f32 %v1656_v40, %v11185_v16  ;;  %v1704_v62 = vsel %vm901_vm1, %v1703_v45, %v1702_v0 }
 0x655   : > { %v1654_v49 = vpop.permute.xlu1 %1653 }
 0x656   : > { %v11271_v38 = vadd.f32 %v1674_v29, %v1300_v47  ;;  %v1673_v39 = vmul.f32 %v1654_v49, %v11190_v14  ;;  %v1652_v26 = vpop.permute.xlu0 %1651  ;;  %v1302_v14 = vadd.f32 %v11045_v11, %v10782_v41  ;;  %v1709_v34 = vrot.slane %v1674_v29, 3  ;;  %v1692_v49 = vld [vmem:[%s10486_s26 + $0x3b] sm:$0x1] }
 0x657   : > { %v1672_v21 = vmul.f32 %v1652_v26, %v11115_v22  ;;  %v1301_v22 = vadd.f32 %v11040_v3, %v10776_v55  ;;  %v1691_v26 = vld [vmem:[%s10486_s26 + $0x33] sm:$0x1] }
 0x658   : > { %v11278_v2 = vadd.f32 %v1673_v39, %v1299_v54  ;;  %v1707_v1 = vrot.slane %v1673_v39, 4 }
 0x659   : > { %v11282_v16 = vadd.f32 %v1672_v21, %v1298_v6  ;;  %v1705_v19 = vrot.slane %v1672_v21, 5 }
 0x65b   : > { %v1706_v50 = vsel %vm904_vm2, %v1705_v19, %v1704_v62 }
 0x65c   : > { %v1708_v60 = vsel %vm907_vm3, %v1707_v1, %v1706_v50 }
 0x65d   : > { %v1660_v5 = vpop.permute.xlu1 %1659  ;;  %v1710_v11 = vsel %vm910_vm4, %v1709_v34, %v1708_v60 }
 0x65e   : > { %v1676_v46 = vmul.f32 %v1660_v5, %v11201_v30  ;;  %v1658_v35 = vpop.permute.xlu0 %1657 }
 0x65f   : > { %v1675_v25 = vmul.f32 %v1658_v35, %v11151_v15  ;;  %v1685_v15 = vld [vmem:[%s10486_s26 + $0x3] sm:$0x1] }
 0x660   : > { %v11291_v33 = vadd.f32 %v1676_v46, %v1302_v14  ;;  %v1713_v13 = vrot.slane %v1676_v46, 1 }
 0x661   : > { %v11295_v61 = vadd.f32 %v1675_v25, %v1301_v22  ;;  %v1711_v41 = vrot.slane %v1675_v25, 2 }
 0x663   : > { %v1712_v30 = vsel %vm913_vm5, %v1711_v41, %v1710_v11 }
 0x664   : > { %v1714_v55 = vsel %vm916_vm6, %v1713_v13, %v1712_v30 }
 0x665   : > { %1715 = vrot.lane.b32.xlu2 %v1714_v55, %s10210_s5 }
 0x6bf   : > { %v1716_v3 = vpop.permute.xlu2 %1715 }
 0x6c0   : > { %8406 = vmatmul.msk.f32.vlgmr.msra.gmra.mxu2 %vm920_vm7, %v1716_v3 }
 0x743   : > { %v1736_v7 = vpop.f32.mrf.mxu2 }
 0x744   : > { %v1755_v48 = vadd.f32 %v1736_v7, %v1685_v15  ;;  %v1741_v63 = vrot.slane %v1736_v7, 2  ;;  %v1740_v4 = vrot.slane %v1736_v7, 1  ;;  %v1744_v12 = vrot.slane %v1736_v7, 5 }
 0x745   : > { %v1743_v32 = vrot.slane %v1736_v7, 4  ;;  %v1742_v31 = vrot.slane %v1736_v7, 3  ;;  %v1746_v53 = vrot.slane %v1736_v7, 7  ;;  %v1745_v54 = vrot.slane %v1736_v7, 6 }
 0x746   : > { %8880 = vtanh.f32 %v1755_v48  ;;  %v1757_v56 = vadd.f32 %v1741_v63, %v1687_v42  ;;  %v1756_v20 = vadd.f32 %v1740_v4, %v1686_v24  ;;  %v1760_v23 = vadd.f32 %v1744_v12, %v1690_v37 }
 0x747   : > { %v1759_v44 = vadd.f32 %v1743_v32, %v1689_v27  ;;  %v1758_v47 = vadd.f32 %v1742_v31, %v1688_v59  ;;  %v1762_v6 = vadd.f32 %v1746_v53, %v1692_v49  ;;  %v1761_v21 = vadd.f32 %v1745_v54, %v1691_v26 }
 0x748   : > { %8882 = vtanh.f32 %v1757_v56  ;;  %v8407_v62 = vmul.f32 -1.442695, %v1755_v48  ;;  %v8412_v50 = vmul.f32 -1.442695, %v1760_v23  ;;  %v8409_v60 = vmul.f32 -1.442695, %v1757_v56 }
 0x749   : > { %8884 = vtanh.f32 %v1756_v20  ;;  %v8408_v34 = vmul.f32 -1.442695, %v1756_v20  ;;  %v8411_v55 = vmul.f32 -1.442695, %v1759_v44  ;;  %v8410_v15 = vmul.f32 -1.442695, %v1758_v47 }
 0x74a   : > { %8886 = vtanh.f32 %v1760_v23  ;;  %v8414_v37 = vmul.f32 -1.442695, %v1762_v6  ;;  %v8413_v27 = vmul.f32 -1.442695, %v1761_v21 }
 0x74b   : > { %8888 = vtanh.f32 %v1759_v44 }
 0x74c   : > { %v8881_v36 = vpop.eup %8880  ;;  %8890 = vtanh.f32 %v1758_v47 }
 0x74d   : > { %1939 = vrot.lane.b32.xlu2 %v8881_v36, %s10208_s20  ;;  %8892 = vtanh.f32 %v1762_v6 }
 0x74e   : > { %v8883_v40 = vpop.eup %8882  ;;  %8894 = vtanh.f32 %v1761_v21 }
 0x74f   : > { %1943 = vrot.lane.b32.xlu1 %v8883_v40, %s10208_s20  ;;  %v8885_v29 = vpop.eup %8884  ;;  %8896 = vpow2.f32 %v8407_v62 }
 0x750   : > { %1941 = vrot.lane.b32.xlu0 %v8885_v29, %s10208_s20  ;;  %v8887_v39 = vpop.eup %8886  ;;  %8898 = vpow2.f32 %v8412_v50 }
 0x751   : > { %v8889_v45 = vpop.eup %8888 }
 0x752   : > { %v8891_v0 = vpop.eup %8890 }
 0x753   : > { %v8893_v19 = vpop.eup %8892 }
 0x754   : > { %v8895_v1 = vpop.eup %8894 }
 0x755   : > { %1949 = vrot.lane.b32.xlu2 %v8887_v39, %s10208_s20  ;;  %v8897_v5 = vpop.eup %8896 }
 0x756   : > { %v1787_v14 = vadd.f32 1.0, %v8897_v5  ;;  %v8899_v46 = vpop.eup %8898 }
 0x757   : > { %1947 = vrot.lane.b32.xlu1 %v8889_v45, %s10208_s20  ;;  %v1792_v35 = vadd.f32 1.0, %v8899_v46 }
 0x758   : > { %1945 = vrot.lane.b32.xlu0 %v8891_v0, %s10208_s20  ;;  %8900 = vrcp.f32 %v1787_v14  ;;  %v1806_v63 = vand.u32 2147483648, %v1787_v14  ;;  %vm1800_vm9 = vweird.f32 %v1787_v14  ;;  %v1804_v24 = vand.u32 2147483647, %v1787_v14 }
 0x759   : > { %8902 = vrcp.f32 %v1792_v35  ;;  %v1881_v47 = vand.u32 2147483648, %v1792_v35  ;;  %vm1875_vm13 = vweird.f32 %v1792_v35  ;;  %v1879_v29 = vand.u32 2147483647, %v1792_v35 }
 0x75a   : > { %8904 = vpow2.f32 %v8409_v60  ;;  %v1807_v32 = vor.u32 1.1754944e-38, %v1806_v63  ;;  %vm1805_vm11 = vcmp.eq.f32.partialorder %v1804_v24, 8.507059e+37 }
 0x75b   : > { %8906 = vpow2.f32 %v8408_v34  ;;  %v1882_v26 = vor.u32 1.1754944e-38, %v1881_v47  ;;  %vm1880_vm8 = vcmp.eq.f32.partialorder %v1879_v29, 8.507059e+37 }
 0x75c   : > { %8908 = vpow2.f32 %v8411_v55 }
 0x75d   : > { %8910 = vpow2.f32 %v8410_v15 }
 0x75e   : > { %v8901_v22 = vpop.eup %8900 }
 0x75f   : > { %1953 = vrot.lane.b32.xlu1 %v8893_v19, %s10208_s20  ;;  %v1796_v25 = vmul.f32 %v8901_v22, %v1787_v14  ;;  %v8903_v41 = vpop.eup %8902  ;;  %vm1801_vm15 = vweird.f32 %v8901_v22 }
 0x760   : > { %1951 = vrot.lane.b32.xlu0 %v8895_v1, %s10208_s20  ;;  %v1871_v30 = vmul.f32 %v8903_v41, %v1792_v35  ;;  %v8905_v3 = vpop.eup %8904  ;;  %vm1802_vm10 = vmor %vm1800_vm9, %vm1801_vm15  ;;  %vm1876_vm12 = vweird.f32 %v8903_v41 }
 0x761   : > { %v1797_v13 = vsub.f32 1.0, %v1796_v25  ;;  %v8907_v48 = vpop.eup %8906  ;;  %v11318_v4 = vadd.f32 1.0, %v8905_v3  ;;  %vm1877_vm14 = vmor %vm1875_vm13, %vm1876_vm12 }
 0x762   : > { %v1872_v42 = vsub.f32 1.0, %v1871_v30  ;;  %v11320_v20 = vadd.f32 1.0, %v8907_v48  ;;  %v8909_v23 = vpop.eup %8908 }
 0x763   : > { %v1798_v11 = vmul.f32 %v8901_v22, %v1797_v13  ;;  %8912 = vrcp.f32 %v11318_v4  ;;  %v8911_v40 = vpop.eup %8910  ;;  %v11328_v53 = vadd.f32 1.0, %v8909_v23  ;;  %vm1830_vm9 = vweird.f32 %v11318_v4 }
 0x764   : > { %v1873_v12 = vmul.f32 %v8903_v41, %v1872_v42  ;;  %8914 = vrcp.f32 %v11320_v20  ;;  %v11330_v39 = vadd.f32 1.0, %v8911_v40  ;;  %v1836_v3 = vand.u32 2147483648, %v11318_v4 }
 0x765   : > { %v1799_v7 = vadd.f32 %v8901_v22, %v1798_v11  ;;  %8916 = vpow2.f32 %v8414_v37  ;;  %v1834_v15 = vand.u32 2147483647, %v11318_v4  ;;  %v1819_v63 = vand.u32 2147483647, %v11320_v20 }
 0x766   : > { %v1874_v44 = vadd.f32 %v8903_v41, %v1873_v12  ;;  %8918 = vpow2.f32 %v8413_v27  ;;  %v1821_v24 = vand.u32 2147483648, %v11320_v20  ;;  %vm1815_vm12 = vweird.f32 %v11320_v20 }
 0x767   : > { %v1803_v56 = vsel %vm1802_vm10, %v8901_v22, %v1799_v7  ;;  %8920 = vrcp.f32 %v11328_v53 }
 0x768   : > { %v11323_v36 = vsel %vm1805_vm11, %v1807_v32, %v1803_v56  ;;  %v1878_v54 = vsel %vm1877_vm14, %v8903_v41, %v1874_v44  ;;  %8922 = vrcp.f32 %v11330_v39  ;;  %v1837_v32 = vor.u32 1.1754944e-38, %v1836_v3 }
 0x769   : > { %v8913_v49 = vpop.eup %8912  ;;  %v11333_v0 = vsel %vm1880_vm8, %v1882_v26, %v1878_v54  ;;  %vm1835_vm14 = vcmp.eq.f32.partialorder %v1834_v15, 8.507059e+37  ;;  %vm1820_vm8 = vcmp.eq.f32.partialorder %v1819_v63, 8.507059e+37  ;;  %v1822_v44 = vor.u32 1.1754944e-38, %v1821_v24 }
 0x76a   : > { %v8915_v6 = vpop.eup %8914  ;;  %v1826_v19 = vmul.f32 %v8913_v49, %v11318_v4  ;;  %vm1831_vm15 = vweird.f32 %v8913_v49  ;;  %v1864_v54 = vand.u32 2147483647, %v11328_v53  ;;  %v1866_v26 = vand.u32 2147483648, %v11328_v53 }
 0x76b   : > { %v8917_v45 = vpop.eup %8916  ;;  %v1811_v50 = vmul.f32 %v8915_v6, %v11320_v20  ;;  %vm1816_vm10 = vweird.f32 %v8915_v6  ;;  %vm1832_vm11 = vmor %vm1830_vm9, %vm1831_vm15  ;;  %vm1860_vm9 = vweird.f32 %v11328_v53 }
 0x76c   : > { %v8919_v62 = vpop.eup %8918  ;;  %v11340_v5 = vadd.f32 1.0, %v8917_v45  ;;  %v1827_v14 = vsub.f32 1.0, %v1826_v19  ;;  %vm1817_vm13 = vmor %vm1815_vm12, %vm1816_vm10  ;;  %v1851_v19 = vand.u32 2147483648, %v11330_v39  ;;  %vm1845_vm12 = vweird.f32 %v11330_v39 }
 0x76d   : > { %v11342_v46 = vpop.eup %8920  ;;  %v11344_v35 = vadd.f32 1.0, %v8919_v62  ;;  %v1812_v22 = vsub.f32 1.0, %v1811_v50  ;;  %v1867_v50 = vor.u32 1.1754944e-38, %v1866_v26 }
 0x76e   : > { %v11346_v25 = vpop.eup %8922  ;;  %8924 = vrcp.f32 %v11340_v5  ;;  %v1828_v60 = vmul.f32 %v8913_v49, %v1827_v14  ;;  %v1856_v34 = vmul.f32 %v11342_v46, %v11328_v53  ;;  %vm1861_vm15 = vweird.f32 %v11342_v46 }
 0x76f   : > { %8926 = vrcp.f32 %v11344_v35  ;;  %v1813_v13 = vmul.f32 %v8915_v6, %v1812_v22  ;;  %v1841_v41 = vmul.f32 %v11346_v25, %v11330_v39  ;;  %vm1846_vm10 = vweird.f32 %v11346_v25 }
 0x770   : > { %v1829_v11 = vadd.f32 %v8913_v49, %v1828_v60  ;;  %v1857_v30 = vsub.f32 1.0, %v1856_v34  ;;  %v1849_v53 = vand.u32 2147483647, %v11330_v39  ;;  %v1909_v3 = vand.u32 2147483647, %v11340_v5 }
 0x771   : > { %v1814_v7 = vadd.f32 %v8915_v6, %v1813_v13  ;;  %v1842_v42 = vsub.f32 1.0, %v1841_v41  ;;  %v1852_v13 = vor.u32 1.1754944e-38, %v1851_v19  ;;  %v1894_v63 = vand.u32 2147483647, %v11344_v35 }
 0x772   : > { %v1833_v56 = vsel %vm1832_vm11, %v8913_v49, %v1829_v11  ;;  %v1858_v12 = vmul.f32 %v11342_v46, %v1857_v30  ;;  %vm1862_vm11 = vmor %vm1860_vm9, %vm1861_vm15  ;;  %vm1905_vm9 = vweird.f32 %v11340_v5 }
 0x773   : > { %v1818_v4 = vsel %vm1817_vm13, %v8915_v6, %v1814_v7  ;;  %v1843_v23 = vmul.f32 %v11346_v25, %v1842_v42  ;;  %vm1847_vm13 = vmor %vm1845_vm12, %vm1846_vm10  ;;  %v1896_v7 = vand.u32 2147483648, %v11344_v35  ;;  %vm1890_vm12 = vweird.f32 %v11344_v35 }
 0x774   : > { %v11354_v55 = vpop.eup %8924  ;;  %v1859_v40 = vadd.f32 %v11342_v46, %v1858_v12  ;;  %v11375_v49 = vsel %vm1820_vm8, %v1822_v44, %v1818_v4  ;;  %vm1850_vm8 = vcmp.eq.f32.partialorder %v1849_v53, 8.507059e+37 }
 0x775   : > { %v11359_v48 = vpop.eup %8926  ;;  %v1901_v37 = vmul.f32 %v11354_v55, %v11340_v5  ;;  %v1844_v45 = vadd.f32 %v11346_v25, %v1843_v23  ;;  %vm1906_vm15 = vweird.f32 %v11354_v55 }
 0x776   : > { %v1886_v27 = vmul.f32 %v11359_v48, %v11344_v35  ;;  %vm1891_vm10 = vweird.f32 %v11359_v48  ;;  %v1923_v35 = vmul.f32 %v11323_v36, %v11241_v8 }
 0x777   : > { %v1902_v47 = vsub.f32 1.0, %v1901_v37  ;;  %v1848_v14 = vsel %vm1847_vm13, %v11346_v25, %v1844_v45  ;;  %v1911_v25 = vand.u32 2147483648, %v11340_v5  ;;  %vm1892_vm13 = vmor %vm1890_vm12, %vm1891_vm10  ;;  %v1897_v37 = vor.u32 1.1754944e-38, %v1896_v7 }
 0x778   : > { %v11397_v39 = vsel %vm1850_vm8, %v1852_v13, %v1848_v14  ;;  %vm1895_vm8 = vcmp.eq.f32.partialorder %v1894_v63, 8.507059e+37 }
 0x779   : > { %v1903_v62 = vmul.f32 %v11354_v55, %v1902_v47  ;;  %v1912_v24 = vor.u32 1.1754944e-38, %v1911_v25  ;;  %v1926_v8 = vmul.f32 %v11397_v39, %v11223_v58 }
 0x7a7   : > { %v1940_v31 = vpop.permute.xlu2 %1939 }
 0x7a8   : > { %v1963_v59 = vmul.f32 %v1940_v31, %v11323_v36 }
 0x7aa   : > { %1979 = vrot.lane.b32.xlu1 %v1963_v59, %s10210_s5  ;;  %v11370_v59 = vsel %vm1835_vm14, %v1837_v32, %v1833_v56  ;;  %vm1865_vm14 = vcmp.eq.f32.partialorder %v1864_v54, 8.507059e+37 }
 0x7ab   : > { %v1925_v58 = vmul.f32 %v11370_v59, %v11207_v28 }
 0x7af   : > { %v1950_v21 = vpop.permute.xlu2 %1949 }
 0x7b0   : > { %v1968_v1 = vmul.f32 %v1950_v21, %v11333_v0  ;;  %v1887_v21 = vsub.f32 1.0, %v1886_v27 }
 0x7b2   : > { %1989 = vrot.lane.b32.xlu1 %v1968_v1, %s10210_s5  ;;  %v1863_v1 = vsel %vm1862_vm11, %v11342_v46, %v1859_v40  ;;  %v1888_v22 = vmul.f32 %v11359_v48, %v1887_v21  ;;  %v1904_v46 = vadd.f32 %v11354_v55, %v1903_v62  ;;  %vm1907_vm11 = vmor %vm1905_vm9, %vm1906_vm15  ;;  %v1928_v40 = vmul.f32 %v11333_v0, %v11248_v43 }
 0x7b3   : > { %v11392_v60 = vsel %vm1865_vm14, %v1867_v50, %v1863_v1  ;;  %vm1910_vm14 = vcmp.eq.f32.partialorder %v1909_v3, 8.507059e+37 }
 0x7b4   : > { %v1889_v15 = vadd.f32 %v11359_v48, %v1888_v22  ;;  %v1908_v42 = vsel %vm1907_vm11, %v11354_v55, %v1904_v46 }
 0x7b5   : > { %v11412_v56 = vsel %vm1910_vm14, %v1912_v24, %v1908_v42 }
 0x7b6   : > { %v1893_v5 = vsel %vm1892_vm13, %v11359_v48, %v1889_v15  ;;  %v1930_v28 = vmul.f32 %v11412_v56, %v11229_v57 }
 0x7b7   : > { %v11415_v4 = vsel %vm1895_vm8, %v1897_v37, %v1893_v5 }
 0x7b8   : > { %v1929_v45 = vmul.f32 %v11415_v4, %v11235_v10  ;;  %v1927_v10 = vmul.f32 %v11392_v60, %v11217_v52 }
 0x7c1   : > { %v1944_v31 = vpop.permute.xlu1 %1943 }
 0x7c2   : > { %v1965_v20 = vmul.f32 %v1944_v31, %v11370_v59  ;;  %v1942_v29 = vpop.permute.xlu0 %1941  ;;  %v1924_v31 = vmul.f32 %v11375_v49, %v11212_v17 }
 0x7c3   : > { %v1964_v6 = vmul.f32 %v1942_v29, %v11375_v49 }
 0x7c4   : > { %1983 = vrot.lane.b32.xlu0 %v1965_v20, %s10210_s5 }
 0x7c5   : > { %1981 = vrot.lane.b32.xlu2 %v1964_v6, %s10210_s5 }
 0x7c9   : > { %v1948_v34 = vpop.permute.xlu1 %1947 }
 0x7ca   : > { %v1967_v41 = vmul.f32 %v1948_v34, %v11392_v60  ;;  %v1946_v11 = vpop.permute.xlu0 %1945 }
 0x7cb   : > { %v1966_v30 = vmul.f32 %v1946_v11, %v11397_v39 }
 0x7cc   : > { %1987 = vrot.lane.b32.xlu0 %v1967_v41, %s10210_s5 }
 0x7cd   : > { %1985 = vrot.lane.b32.xlu2 %v1966_v30, %s10210_s5 }
 0x7d1   : > { %v1954_v12 = vpop.permute.xlu1 %1953 }
 0x7d2   : > { %v1970_v32 = vmul.f32 %v1954_v12, %v11412_v56  ;;  %v1952_v23 = vpop.permute.xlu0 %1951 }
 0x7d3   : > { %v1969_v55 = vmul.f32 %v1952_v23, %v11415_v4 }
 0x7d4   : > { %1993 = vrot.lane.b32.xlu0 %v1970_v32, %s10210_s5 }
 0x7d5   : > { %1991 = vrot.lane.b32.xlu2 %v1969_v55, %s10210_s5 }
 0x81c   : > { %v1980_v48 = vpop.permute.xlu1 %1979 }
 0x81d   : > { %v11422_v27 = vadd.f32 %v1980_v48, %v1923_v35 }
 0x81f   : > { %8928 = vtanh.f32 %v11422_v27  ;;  %v1982_v44 = vpop.permute.xlu2 %1981 }
 0x820   : > { %v11427_v20 = vadd.f32 %v1982_v44, %v1924_v31 }
 0x822   : > { %8930 = vtanh.f32 %v11427_v20 }
 0x824   : > { %v1990_v47 = vpop.permute.xlu1 %1989 }
 0x825   : > { %v8929_v29 = vpop.eup %8928  ;;  %v11432_v54 = vadd.f32 %v1990_v47, %v1928_v40 }
 0x826   : > { %2027 = vrot.lane.b32.xlu0 %v8929_v29, %s10208_s20 }
 0x827   : > { %8932 = vtanh.f32 %v11432_v54  ;;  %v1986_v17 = vpop.permute.xlu2 %1985 }
 0x828   : > { %v8931_v26 = vpop.eup %8930  ;;  %v11438_v6 = vadd.f32 %v1986_v17, %v1926_v8 }
 0x829   : > { %2029 = vrot.lane.b32.xlu1 %v8931_v26, %s10208_s20 }
 0x82a   : > { %8934 = vtanh.f32 %v11438_v6 }
 0x82d   : > { %v8933_v43 = vpop.eup %8932 }
 0x82e   : > { %2037 = vrot.lane.b32.xlu0 %v8933_v43, %s10208_s20  ;;  %v2069_v43 = vld [vmem:[%s10486_s26 + $0x14] sm:$0x1] }
 0x82f   : > { %v1992_v21 = vpop.permute.xlu2 %1991 }
 0x830   : > { %v8935_v19 = vpop.eup %8934  ;;  %v11445_v1 = vadd.f32 %v1992_v21, %v1929_v45  ;;  %v2068_v21 = vld [vmem:[%s10486_s26 + $0xc] sm:$0x1] }
 0x831   : > { %2033 = vrot.lane.b32.xlu1 %v8935_v19, %s10208_s20 }
 0x832   : > { %8936 = vtanh.f32 %v11445_v1 }
 0x836   : > { %v1984_v53 = vpop.permute.xlu0 %1983 }
 0x837   : > { %v11451_v62 = vadd.f32 %v1984_v53, %v1925_v58 }
 0x838   : > { %v8937_v50 = vpop.eup %8936 }
 0x839   : > { %8938 = vtanh.f32 %v11451_v62  ;;  %2039 = vrot.lane.b32.xlu1 %v8937_v50, %s10208_s20 }
 0x83e   : > { %v1988_v14 = vpop.permute.xlu0 %1987 }
 0x83f   : > { %v8939_v22 = vpop.eup %8938  ;;  %v11457_v34 = vadd.f32 %v1988_v14, %v1927_v10  ;;  %v2072_v10 = vld [vmem:[%s10486_s26 + $0x2c] sm:$0x1] }
 0x840   : > { %2031 = vrot.lane.b32.xlu2 %v8939_v22, %s10208_s20 }
 0x841   : > { %8940 = vtanh.f32 %v11457_v34 }
 0x846   : > { %v1994_v13 = vpop.permute.xlu0 %1993 }
 0x847   : > { %v8941_v41 = vpop.eup %8940  ;;  %v11463_v46 = vadd.f32 %v1994_v13, %v1930_v28  ;;  %v2071_v28 = vld [vmem:[%s10486_s26 + $0x24] sm:$0x1] }
 0x848   : > { %2035 = vrot.lane.b32.xlu2 %v8941_v41, %s10208_s20 }
 0x849   : > { %8942 = vtanh.f32 %v11463_v46 }
 0x84f   : > { %v8943_v52 = vpop.eup %8942 }
 0x850   : > { %2041 = vrot.lane.b32.xlu2 %v8943_v52, %s10208_s20  ;;  %v2070_v52 = vld [vmem:[%s10486_s26 + $0x1c] sm:$0x1] }
 0x898   : > { %v2028_v11 = vpop.permute.xlu0 %2027 }
 0x899   : > { %v2051_v25 = vmul.f32 %v2028_v11, %v11323_v36 }
 0x89a   : > { %v2032_v3 = vpop.permute.xlu2 %2031 }
 0x89b   : > { %v11470_v30 = vadd.f32 %v2051_v25, %v11256_v51  ;;  %v2053_v57 = vmul.f32 %v2032_v3, %v11370_v59  ;;  %v2030_v15 = vpop.permute.xlu1 %2029 }
 0x89c   : > { %v2052_v42 = vmul.f32 %v2030_v15, %v11375_v49 }
 0x89d   : > { %v11474_v7 = vadd.f32 %v2053_v57, %v11263_v18  ;;  %v2085_v32 = vrot.slane %v2053_v57, 6 }
 0x89e   : > { %v11478_v63 = vadd.f32 %v2052_v42, %v11266_v9  ;;  %v2083_v12 = vrot.slane %v2052_v42, 7  ;;  %v2074_v42 = vld [vmem:[%s10486_s26 + $0x3c] sm:$0x1] }
 0x8a0   : > { %v2038_v24 = vpop.permute.xlu0 %2037  ;;  %v2084_v9 = vsel %vm898_vm0, %v2083_v12, %v2051_v25  ;;  %v2073_v12 = vld [vmem:[%s10486_s26 + $0x34] sm:$0x1] }
 0x8a1   : > { %v2056_v5 = vmul.f32 %v2038_v24, %v11333_v0 }
 0x8a2   : > { %v2036_v51 = vpop.permute.xlu2 %2035 }
 0x8a3   : > { %v11482_v36 = vadd.f32 %v2056_v5, %v11271_v38  ;;  %v2055_v37 = vmul.f32 %v2036_v51, %v11392_v60  ;;  %v2034_v59 = vpop.permute.xlu1 %2033  ;;  %v2086_v38 = vsel %vm901_vm1, %v2085_v32, %v2084_v9  ;;  %v2091_v44 = vrot.slane %v2056_v5, 3 }
 0x8a4   : > { %v2054_v49 = vmul.f32 %v2034_v59, %v11397_v39 }
 0x8a5   : > { %v11486_v18 = vadd.f32 %v2055_v37, %v11278_v2  ;;  %v2089_v55 = vrot.slane %v2055_v37, 4 }
 0x8a6   : > { %v11491_v23 = vadd.f32 %v2054_v49, %v11282_v16  ;;  %v2087_v0 = vrot.slane %v2054_v49, 5 }
 0x8a8   : > { %v2088_v35 = vsel %vm904_vm2, %v2087_v0, %v2086_v38 }
 0x8a9   : > { %v2090_v16 = vsel %vm907_vm3, %v2089_v55, %v2088_v35 }
 0x8aa   : > { %v2042_v48 = vpop.permute.xlu2 %2041  ;;  %v2092_v8 = vsel %vm910_vm4, %v2091_v44, %v2090_v16 }
 0x8ab   : > { %v2058_v60 = vmul.f32 %v2042_v48, %v11412_v56  ;;  %v2040_v31 = vpop.permute.xlu1 %2039 }
 0x8ac   : > { %v2057_v39 = vmul.f32 %v2040_v31, %v11415_v4  ;;  %v2067_v4 = vld [vmem:[%s10486_s26 + $0x4] sm:$0x1] }
 0x8ad   : > { %v11497_v2 = vadd.f32 %v2058_v60, %v11291_v33  ;;  %v2095_v40 = vrot.slane %v2058_v60, 1 }
 0x8ae   : > { %v11502_v47 = vadd.f32 %v2057_v39, %v11295_v61  ;;  %v2093_v29 = vrot.slane %v2057_v39, 2 }
 0x8b0   : > { %v2094_v56 = vsel %vm913_vm5, %v2093_v29, %v2092_v8 }
 0x8b1   : > { %v2096_v17 = vsel %vm916_vm6, %v2095_v40, %v2094_v56 }
 0x8b2   : > { %2097 = vrot.lane.b32.xlu0 %v2096_v17, %s10210_s5 }
 0x924   : > { %v2098_v33 = vpop.permute.xlu0 %2097 }
 0x925   : > { %8415 = vmatmul.msk.f32.vlgmr.msra.gmra.mxu3 %vm920_vm7, %v2098_v33 }
 0x9a8   : > { %v2118_v26 = vpop.f32.mrf.mxu3 }
 0x9a9   : > { %v2137_v45 = vadd.f32 %v2118_v26, %v2067_v4  ;;  %v2123_v61 = vrot.slane %v2118_v26, 2  ;;  %v2122_v19 = vrot.slane %v2118_v26, 1  ;;  %v2126_v53 = vrot.slane %v2118_v26, 5 }
 0x9aa   : > { %v2125_v14 = vrot.slane %v2118_v26, 4  ;;  %v2124_v13 = vrot.slane %v2118_v26, 3  ;;  %v2128_v15 = vrot.slane %v2118_v26, 7  ;;  %v2127_v24 = vrot.slane %v2118_v26, 6 }
 0x9ab   : > { %8944 = vtanh.f32 %v2137_v45  ;;  %v2139_v58 = vadd.f32 %v2123_v61, %v2069_v43  ;;  %v2138_v50 = vadd.f32 %v2122_v19, %v2068_v21  ;;  %v2142_v22 = vadd.f32 %v2126_v53, %v2072_v10 }
 0x9ac   : > { %v2141_v11 = vadd.f32 %v2125_v14, %v2071_v28  ;;  %v2140_v3 = vadd.f32 %v2124_v13, %v2070_v52  ;;  %v2144_v51 = vadd.f32 %v2128_v15, %v2074_v42  ;;  %v2143_v59 = vadd.f32 %v2127_v24, %v2073_v12 }
 0x9ad   : > { %8946 = vtanh.f32 %v2139_v58  ;;  %v8418_v0 = vmul.f32 -1.442695, %v2139_v58  ;;  %v8416_v31 = vmul.f32 -1.442695, %v2137_v45  ;;  %v8417_v40 = vmul.f32 -1.442695, %v2138_v50 }
 0x9ae   : > { %8948 = vtanh.f32 %v2138_v50  ;;  %v8420_v55 = vmul.f32 -1.442695, %v2141_v11  ;;  %v8423_v48 = vmul.f32 -1.442695, %v2144_v51  ;;  %v8421_v8 = vmul.f32 -1.442695, %v2142_v22 }
 0x9af   : > { %8950 = vtanh.f32 %v2142_v22  ;;  %v8419_v26 = vmul.f32 -1.442695, %v2140_v3  ;;  %v8422_v22 = vmul.f32 -1.442695, %v2143_v59 }
 0x9b0   : > { %8952 = vtanh.f32 %v2141_v11 }
 0x9b1   : > { %v8945_v41 = vpop.eup %8944  ;;  %8954 = vtanh.f32 %v2140_v3 }
 0x9b2   : > { %2321 = vrot.lane.b32.xlu0 %v8945_v41, %s10208_s20  ;;  %8956 = vtanh.f32 %v2144_v51 }
 0x9b3   : > { %v8947_v25 = vpop.eup %8946  ;;  %8958 = vtanh.f32 %v2143_v59 }
 0x9b4   : > { %2325 = vrot.lane.b32.xlu2 %v8947_v25, %s10208_s20  ;;  %v8949_v57 = vpop.eup %8948  ;;  %8960 = vpow2.f32 %v8418_v0 }
 0x9b5   : > { %2323 = vrot.lane.b32.xlu1 %v8949_v57, %s10208_s20  ;;  %v8951_v5 = vpop.eup %8950  ;;  %8962 = vpow2.f32 %v8420_v55 }
 0x9b6   : > { %v8953_v37 = vpop.eup %8952 }
 0x9b7   : > { %v8955_v32 = vpop.eup %8954 }
 0x9b8   : > { %v8957_v49 = vpop.eup %8956 }
 0x9b9   : > { %v8959_v9 = vpop.eup %8958 }
 0x9ba   : > { %2331 = vrot.lane.b32.xlu0 %v8951_v5, %s10208_s20  ;;  %v8961_v38 = vpop.eup %8960 }
 0x9bb   : > { %v2171_v35 = vadd.f32 1.0, %v8961_v38  ;;  %v8963_v60 = vpop.eup %8962 }
 0x9bc   : > { %2329 = vrot.lane.b32.xlu2 %v8953_v37, %s10208_s20  ;;  %v11525_v39 = vadd.f32 1.0, %v8963_v60 }
 0x9bd   : > { %2327 = vrot.lane.b32.xlu1 %v8955_v32, %s10208_s20  ;;  %8964 = vrcp.f32 %v2171_v35  ;;  %v2218_v10 = vand.u32 2147483648, %v2171_v35  ;;  %vm2212_vm9 = vweird.f32 %v2171_v35  ;;  %v2216_v28 = vand.u32 2147483647, %v2171_v35 }
 0x9be   : > { %8966 = vpow2.f32 %v8423_v48  ;;  %v2248_v51 = vand.u32 2147483648, %v11525_v39  ;;  %vm2242_vm13 = vweird.f32 %v11525_v39  ;;  %v2246_v32 = vand.u32 2147483647, %v11525_v39 }
 0x9bf   : > { %8968 = vpow2.f32 %v8416_v31  ;;  %v2219_v3 = vor.u32 1.1754944e-38, %v2218_v10  ;;  %vm2217_vm11 = vcmp.eq.f32.partialorder %v2216_v28, 8.507059e+37 }
 0x9c0   : > { %8970 = vrcp.f32 %v11525_v39  ;;  %vm2247_vm8 = vcmp.eq.f32.partialorder %v2246_v32, 8.507059e+37 }
 0x9c1   : > { %8972 = vpow2.f32 %v8417_v40 }
 0x9c2   : > { %8974 = vpow2.f32 %v8421_v8 }
 0x9c3   : > { %v8965_v16 = vpop.eup %8964 }
 0x9c4   : > { %2335 = vrot.lane.b32.xlu2 %v8957_v49, %s10208_s20  ;;  %v8967_v44 = vpop.eup %8966  ;;  %v2208_v29 = vmul.f32 %v8965_v16, %v2171_v35  ;;  %vm2213_vm15 = vweird.f32 %v8965_v16  ;;  %v2249_v35 = vor.u32 1.1754944e-38, %v2248_v51 }
 0x9c5   : > { %2333 = vrot.lane.b32.xlu1 %v8959_v9, %s10208_s20  ;;  %v11528_v56 = vadd.f32 1.0, %v8967_v44  ;;  %v8969_v17 = vpop.eup %8968  ;;  %vm2214_vm10 = vmor %vm2212_vm9, %vm2213_vm15 }
 0x9c6   : > { %v2209_v33 = vsub.f32 1.0, %v2208_v29  ;;  %v8971_v4 = vpop.eup %8970  ;;  %v11532_v61 = vadd.f32 1.0, %v8969_v17 }
 0x9c7   : > { %8976 = vrcp.f32 %v11528_v56  ;;  %v2238_v45 = vmul.f32 %v8971_v4, %v11525_v39  ;;  %v8973_v21 = vpop.eup %8972  ;;  %vm2243_vm12 = vweird.f32 %v8971_v4  ;;  %v2293_v40 = vand.u32 2147483648, %v11528_v56 }
 0x9c8   : > { %v2210_v43 = vmul.f32 %v8965_v16, %v2209_v33  ;;  %8978 = vpow2.f32 %v8419_v26  ;;  %v8975_v19 = vpop.eup %8974  ;;  %v11537_v14 = vadd.f32 1.0, %v8973_v21  ;;  %vm2244_vm14 = vmor %vm2242_vm13, %vm2243_vm12  ;;  %vm2287_vm9 = vweird.f32 %v11528_v56 }
 0x9c9   : > { %v2239_v53 = vsub.f32 1.0, %v2238_v45  ;;  %8980 = vrcp.f32 %v11532_v61  ;;  %v11539_v13 = vadd.f32 1.0, %v8975_v19  ;;  %v2291_v33 = vand.u32 2147483647, %v11528_v56 }
 0x9ca   : > { %v2211_v58 = vadd.f32 %v8965_v16, %v2210_v43  ;;  %8982 = vrcp.f32 %v11537_v14  ;;  %v2294_v45 = vor.u32 1.1754944e-38, %v2293_v40  ;;  %vm2182_vm13 = vweird.f32 %v11532_v61 }
 0x9cb   : > { %v2240_v52 = vmul.f32 %v8971_v4, %v2239_v53  ;;  %8984 = vpow2.f32 %v8422_v22  ;;  %vm2292_vm12 = vcmp.eq.f32.partialorder %v2291_v33, 8.507059e+37 }
 0x9cc   : > { %v2215_v41 = vsel %vm2214_vm10, %v8965_v16, %v2211_v58  ;;  %8986 = vrcp.f32 %v11539_v13  ;;  %v2188_v58 = vand.u32 2147483648, %v11532_v61 }
 0x9cd   : > { %v11535_v50 = vpop.eup %8976  ;;  %v11546_v42 = vsel %vm2217_vm11, %v2219_v3, %v2215_v41  ;;  %v2241_v5 = vadd.f32 %v8971_v4, %v2240_v52 }
 0x9ce   : > { %v2283_v11 = vmul.f32 %v11535_v50, %v11528_v56  ;;  %v8979_v25 = vpop.eup %8978  ;;  %vm2288_vm15 = vweird.f32 %v11535_v50 }
 0x9cf   : > { %v11544_v57 = vpop.eup %8980  ;;  %v11553_v59 = vadd.f32 1.0, %v8979_v25  ;;  %v2245_v0 = vsel %vm2244_vm14, %v8971_v4, %v2241_v5  ;;  %vm2289_vm10 = vmor %vm2287_vm9, %vm2288_vm15  ;;  %vm2197_vm9 = vweird.f32 %v11537_v14 }
 0x9d0   : > { %v2284_v12 = vsub.f32 1.0, %v2283_v11  ;;  %v2178_v37 = vmul.f32 %v11544_v57, %v11532_v61  ;;  %v11558_v49 = vpop.eup %8982  ;;  %v11566_v31 = vsel %vm2247_vm8, %v2249_v35, %v2245_v0  ;;  %vm2183_vm11 = vweird.f32 %v11544_v57 }
 0x9d1   : > { %v8985_v9 = vpop.eup %8984  ;;  %8988 = vrcp.f32 %v11553_v59  ;;  %v2193_v60 = vmul.f32 %v11558_v49, %v11537_v14  ;;  %vm2184_vm14 = vmor %vm2182_vm13, %vm2183_vm11  ;;  %v2189_v11 = vor.u32 1.1754944e-38, %v2188_v58  ;;  %vm2198_vm8 = vweird.f32 %v11558_v49 }
 0x9d2   : > { %v2285_v55 = vmul.f32 %v11535_v50, %v2284_v12  ;;  %v11561_v38 = vpop.eup %8986  ;;  %v2179_v48 = vsub.f32 1.0, %v2178_v37  ;;  %v11575_v17 = vadd.f32 1.0, %v8985_v9  ;;  %v2263_v37 = vand.u32 2147483648, %v11539_v13 }
 0x9d3   : > { %v2253_v8 = vmul.f32 %v11561_v38, %v11539_v13  ;;  %v2194_v4 = vsub.f32 1.0, %v2193_v60  ;;  %vm2258_vm11 = vweird.f32 %v11561_v38  ;;  %v2233_v40 = vand.u32 2147483648, %v11553_v59 }
 0x9d4   : > { %v2286_v44 = vadd.f32 %v11535_v50, %v2285_v55  ;;  %v2180_v29 = vmul.f32 %v11544_v57, %v2179_v48  ;;  %8990 = vrcp.f32 %v11575_v17 }
 0x9d5   : > { %v2254_v19 = vsub.f32 1.0, %v2253_v8  ;;  %v2195_v53 = vmul.f32 %v11558_v49, %v2194_v4 }
 0x9d6   : > { %v2290_v43 = vsel %vm2289_vm10, %v11535_v50, %v2286_v44  ;;  %v2181_v21 = vadd.f32 %v11544_v57, %v2180_v29  ;;  %v2186_v50 = vand.u32 2147483647, %v11532_v61  ;;  %vm2199_vm10 = vmor %vm2197_vm9, %vm2198_vm8  ;;  %vm2227_vm9 = vweird.f32 %v11553_v59 }
 0x9d7   : > { %v11580_v26 = vpop.eup %8988  ;;  %v11590_v10 = vsel %vm2292_vm12, %v2294_v45, %v2290_v43  ;;  %v2255_v52 = vmul.f32 %v11561_v38, %v2254_v19  ;;  %v2196_v25 = vadd.f32 %v11558_v49, %v2195_v53  ;;  %vm2257_vm12 = vweird.f32 %v11539_v13 }
 0x9d8   : > { %v2223_v56 = vmul.f32 %v11580_v26, %v11553_v59  ;;  %v2185_v41 = vsel %vm2184_vm14, %v11544_v57, %v2181_v21  ;;  %vm2187_vm15 = vcmp.eq.f32.partialorder %v2186_v50, 8.507059e+37  ;;  %v2201_v57 = vand.u32 2147483647, %v11537_v14  ;;  %vm2259_vm14 = vmor %vm2257_vm12, %vm2258_vm11 }
 0x9d9   : > { %v11601_v5 = vsel %vm2187_vm15, %v2189_v11, %v2185_v41  ;;  %v2256_v51 = vadd.f32 %v11561_v38, %v2255_v52  ;;  %v2200_v32 = vsel %vm2199_vm10, %v11558_v49, %v2196_v25  ;;  %vm2228_vm8 = vweird.f32 %v11580_v26 }
 0x9da   : > { %v2224_v3 = vsub.f32 1.0, %v2223_v56  ;;  %vm2202_vm13 = vcmp.eq.f32.partialorder %v2201_v57, 8.507059e+37  ;;  %vm2229_vm10 = vmor %vm2227_vm9, %vm2228_vm8  ;;  %v2234_v43 = vor.u32 1.1754944e-38, %v2233_v40  ;;  %v2278_v53 = vand.u32 2147483648, %v11575_v17 }
 0x9db   : > { %v2260_v60 = vsel %vm2259_vm14, %v11561_v38, %v2256_v51  ;;  %v2231_v38 = vand.u32 2147483647, %v11553_v59  ;;  %v2276_v59 = vand.u32 2147483647, %v11575_v17  ;;  %v2305_v41 = vmul.f32 %v11601_v5, %v11422_v27 }
 0x9dc   : > { %v2225_v9 = vmul.f32 %v11580_v26, %v2224_v3  ;;  %v2279_v56 = vor.u32 1.1754944e-38, %v2278_v53  ;;  %v2309_v27 = vmul.f32 %v11566_v31, %v11457_v34 }
 0x9dd   : > { %vm2232_vm11 = vcmp.eq.f32.partialorder %v2231_v38, 8.507059e+37  ;;  %vm2277_vm8 = vcmp.eq.f32.partialorder %v2276_v59, 8.507059e+37 }
 0xa0e   : > { %v2326_v15 = vpop.permute.xlu2 %2325 }
 0xa0f   : > { %v2347_v24 = vmul.f32 %v2326_v15, %v11546_v42  ;;  %v8991_v15 = vpop.eup %8990 }
 0xa10   : > { %v2268_v0 = vmul.f32 %v8991_v15, %v11575_v17  ;;  %vm2273_vm12 = vweird.f32 %v8991_v15 }
 0xa11   : > { %2365 = vrot.lane.b32.xlu1 %v2347_v24, %s10210_s5  ;;  %v2203_v24 = vand.u32 2147483648, %v11537_v14  ;;  %v2261_v14 = vand.u32 2147483647, %v11539_v13 }
 0xa12   : > { %v2269_v44 = vsub.f32 1.0, %v2268_v0 }
 0xa13   : > { %v2204_v55 = vor.u32 1.1754944e-38, %v2203_v24  ;;  %vm2262_vm15 = vcmp.eq.f32.partialorder %v2261_v14, 8.507059e+37 }
 0xa14   : > { %v2270_v4 = vmul.f32 %v8991_v15, %v2269_v44 }
 0xa15   : > { %v11615_v48 = vsel %vm2202_vm13, %v2204_v55, %v2200_v32  ;;  %vm2272_vm13 = vweird.f32 %v11575_v17  ;;  %v2307_v17 = vmul.f32 %v11546_v42, %v11451_v62 }
 0xa16   : > { %v2330_v39 = vpop.permute.xlu2 %2329  ;;  %v2271_v58 = vadd.f32 %v8991_v15, %v2270_v4  ;;  %vm2274_vm14 = vmor %vm2272_vm13, %vm2273_vm12  ;;  %v2306_v55 = vmul.f32 %v11615_v48, %v11427_v20 }
 0xa17   : > { %v2349_v16 = vmul.f32 %v2330_v39, %v11566_v31  ;;  %v2264_v39 = vor.u32 1.1754944e-38, %v2263_v37  ;;  %v2312_v37 = vmul.f32 %v11590_v10, %v11463_v46 }
 0xa19   : > { %2369 = vrot.lane.b32.xlu1 %v2349_v16, %s10210_s5  ;;  %v2226_v16 = vadd.f32 %v11580_v26, %v2225_v9  ;;  %v11623_v29 = vsel %vm2262_vm15, %v2264_v39, %v2260_v60 }
 0xa1b   : > { %v2230_v33 = vsel %vm2229_vm10, %v11580_v26, %v2226_v16  ;;  %v2275_v26 = vsel %vm2274_vm14, %v8991_v15, %v2271_v58  ;;  %v2310_v15 = vmul.f32 %v11623_v29, %v11432_v54 }
 0xa1c   : > { %v11630_v45 = vsel %vm2232_vm11, %v2234_v43, %v2230_v33 }
 0xa1d   : > { %v2308_v46 = vmul.f32 %v11630_v45, %v11438_v6 }
 0xa1e   : > { %v2336_v22 = vpop.permute.xlu2 %2335 }
 0xa1f   : > { %v2352_v28 = vmul.f32 %v2336_v22, %v11590_v10  ;;  %v11637_v22 = vsel %vm2277_vm8, %v2279_v56, %v2275_v26 }
 0xa20   : > { %v2311_v20 = vmul.f32 %v11637_v22, %v11445_v1 }
 0xa21   : > { %2375 = vrot.lane.b32.xlu1 %v2352_v28, %s10210_s5 }
 0xa24   : > { %v2322_v61 = vpop.permute.xlu0 %2321 }
 0xa25   : > { %v2345_v12 = vmul.f32 %v2322_v61, %v11601_v5 }
 0xa27   : > { %2361 = vrot.lane.b32.xlu2 %v2345_v12, %s10210_s5  ;;  %v2324_v35 = vpop.permute.xlu1 %2323 }
 0xa28   : > { %v2346_v49 = vmul.f32 %v2324_v35, %v11615_v48 }
 0xa2a   : > { %2363 = vrot.lane.b32.xlu0 %v2346_v49, %s10210_s5 }
 0xa2c   : > { %v2332_v13 = vpop.permute.xlu0 %2331 }
 0xa2d   : > { %v2350_v8 = vmul.f32 %v2332_v13, %v11623_v29 }
 0xa2f   : > { %2371 = vrot.lane.b32.xlu2 %v2350_v8, %s10210_s5  ;;  %v2328_v21 = vpop.permute.xlu1 %2327 }
 0xa30   : > { %v2348_v19 = vmul.f32 %v2328_v21, %v11630_v45 }
 0xa32   : > { %2367 = vrot.lane.b32.xlu0 %v2348_v19, %s10210_s5 }
 0xa37   : > { %v2334_v50 = vpop.permute.xlu1 %2333 }
 0xa38   : > { %v2351_v28 = vmul.f32 %v2334_v50, %v11637_v22 }
 0xa3a   : > { %2373 = vrot.lane.b32.xlu0 %v2351_v28, %s10210_s5 }
 0xa81   : > { %v2362_v52 = vpop.permute.xlu2 %2361 }
 0xa82   : > { %v11643_v11 = vadd.f32 %v2362_v52, %v2305_v41 }
 0xa83   : > { %v2366_v25 = vpop.permute.xlu1 %2365 }
 0xa84   : > { %8992 = vtanh.f32 %v11643_v11  ;;  %v11648_v3 = vadd.f32 %v2366_v25, %v2307_v17 }
 0xa86   : > { %8994 = vtanh.f32 %v11648_v3 }
 0xa89   : > { %v2372_v24 = vpop.permute.xlu2 %2371 }
 0xa8a   : > { %v8993_v61 = vpop.eup %8992  ;;  %v11653_v57 = vadd.f32 %v2372_v24, %v2310_v15 }
 0xa8b   : > { %2409 = vrot.lane.b32.xlu1 %v8993_v61, %s10208_s20  ;;  %v2370_v62 = vpop.permute.xlu1 %2369 }
 0xa8c   : > { %8996 = vtanh.f32 %v11653_v57  ;;  %v8995_v12 = vpop.eup %8994  ;;  %v11659_v51 = vadd.f32 %v2370_v62, %v2309_v27 }
 0xa8d   : > { %2413 = vrot.lane.b32.xlu0 %v8995_v12, %s10208_s20 }
 0xa8e   : > { %8998 = vtanh.f32 %v11659_v51 }
 0xa92   : > { %v8997_v54 = vpop.eup %8996 }
 0xa93   : > { %2419 = vrot.lane.b32.xlu1 %v8997_v54, %s10208_s20  ;;  %v2376_v32 = vpop.permute.xlu1 %2375  ;;  %v2451_v54 = vld [vmem:[%s10486_s26 + $0x15] sm:$0x1] }
 0xa94   : > { %v8999_v9 = vpop.eup %8998  ;;  %v11666_v0 = vadd.f32 %v2376_v32, %v2312_v37  ;;  %v2450_v32 = vld [vmem:[%s10486_s26 + $0xd] sm:$0x1] }
 0xa95   : > { %2417 = vrot.lane.b32.xlu0 %v8999_v9, %s10208_s20 }
 0xa96   : > { %9000 = vtanh.f32 %v11666_v0 }
 0xa9c   : > { %v9001_v34 = vpop.eup %9000  ;;  %v2364_v14 = vpop.permute.xlu0 %2363 }
 0xa9d   : > { %2423 = vrot.lane.b32.xlu0 %v9001_v34, %s10208_s20  ;;  %v11673_v35 = vadd.f32 %v2364_v14, %v2306_v55 }
 0xa9f   : > { %9002 = vtanh.f32 %v11673_v35 }
 0xaa4   : > { %v2368_v60 = vpop.permute.xlu0 %2367 }
 0xaa5   : > { %v9003_v39 = vpop.eup %9002  ;;  %v11678_v49 = vadd.f32 %v2368_v60, %v2308_v46  ;;  %v2454_v46 = vld [vmem:[%s10486_s26 + $0x2d] sm:$0x1] }
 0xaa6   : > { %2411 = vrot.lane.b32.xlu2 %v9003_v39, %s10208_s20 }
 0xaa7   : > { %9004 = vtanh.f32 %v11678_v49 }
 0xaac   : > { %v2374_v16 = vpop.permute.xlu0 %2373 }
 0xaad   : > { %v9005_v44 = vpop.eup %9004  ;;  %v11684_v40 = vadd.f32 %v2374_v16, %v2311_v20  ;;  %v2453_v20 = vld [vmem:[%s10486_s26 + $0x25] sm:$0x1] }
 0xaae   : > { %2415 = vrot.lane.b32.xlu2 %v9005_v44, %s10208_s20 }
 0xaaf   : > { %9006 = vtanh.f32 %v11684_v40 }
 0xab5   : > { %v9007_v6 = vpop.eup %9006 }
 0xab6   : > { %2421 = vrot.lane.b32.xlu2 %v9007_v6, %s10208_s20  ;;  %v2452_v6 = vld [vmem:[%s10486_s26 + $0x1d] sm:$0x1] }
 0xafd   : > { %v2410_v13 = vpop.permute.xlu1 %2409 }
 0xafe   : > { %v2433_v38 = vmul.f32 %v2410_v13, %v11601_v5 }
 0xaff   : > { %v2414_v33 = vpop.permute.xlu0 %2413 }
 0xb00   : > { %v11691_v8 = vadd.f32 %v2433_v38, %v11470_v30  ;;  %v2435_v1 = vmul.f32 %v2414_v33, %v11546_v42  ;;  %v2412_v4 = vpop.permute.xlu2 %2411 }
 0xb01   : > { %v2434_v21 = vmul.f32 %v2412_v4, %v11615_v48 }
 0xb02   : > { %v11695_v43 = vadd.f32 %v2435_v1, %v11474_v7  ;;  %v2467_v56 = vrot.slane %v2435_v1, 6 }
 0xb03   : > { %v11699_v19 = vadd.f32 %v2434_v21, %v11478_v63  ;;  %v2465_v59 = vrot.slane %v2434_v21, 7  ;;  %v2456_v21 = vld [vmem:[%s10486_s26 + $0x3d] sm:$0x1] }
 0xb05   : > { %v2420_v58 = vpop.permute.xlu1 %2419  ;;  %v2466_v63 = vsel %vm898_vm0, %v2465_v59, %v2433_v38  ;;  %v2455_v59 = vld [vmem:[%s10486_s26 + $0x35] sm:$0x1] }
 0xb06   : > { %v2438_v53 = vmul.f32 %v2420_v58, %v11623_v29 }
 0xb07   : > { %v2418_v30 = vpop.permute.xlu0 %2417 }
 0xb08   : > { %v11703_v5 = vadd.f32 %v2438_v53, %v11482_v36  ;;  %v2437_v26 = vmul.f32 %v2418_v30, %v11566_v31  ;;  %v2416_v42 = vpop.permute.xlu2 %2415  ;;  %v2468_v36 = vsel %vm901_vm1, %v2467_v56, %v2466_v63  ;;  %v2473_v25 = vrot.slane %v2438_v53, 3 }
 0xb09   : > { %v2436_v48 = vmul.f32 %v2416_v42, %v11630_v45 }
 0xb0a   : > { %v11707_v7 = vadd.f32 %v2437_v26, %v11486_v18  ;;  %v2471_v28 = vrot.slane %v2437_v26, 4 }
 0xb0b   : > { %v11712_v50 = vadd.f32 %v2436_v48, %v11491_v23  ;;  %v2469_v29 = vrot.slane %v2436_v48, 5 }
 0xb0d   : > { %v2470_v41 = vsel %vm904_vm2, %v2469_v29, %v2468_v36 }
 0xb0e   : > { %v2472_v23 = vsel %vm907_vm3, %v2471_v28, %v2470_v41 }
 0xb0f   : > { %v2424_v52 = vpop.permute.xlu0 %2423  ;;  %v2474_v27 = vsel %vm910_vm4, %v2473_v25, %v2472_v23 }
 0xb10   : > { %v2440_v31 = vmul.f32 %v2424_v52, %v11590_v10  ;;  %v2422_v17 = vpop.permute.xlu2 %2421 }
 0xb11   : > { %v2439_v45 = vmul.f32 %v2422_v17, %v11637_v22  ;;  %v2449_v22 = vld [vmem:[%s10486_s26 + $0x5] sm:$0x1] }
 0xb12   : > { %v11718_v18 = vadd.f32 %v2440_v31, %v11497_v2  ;;  %v2477_v15 = vrot.slane %v2440_v31, 1 }
 0xb13   : > { %v11723_v24 = vadd.f32 %v2439_v45, %v11502_v47  ;;  %v2475_v61 = vrot.slane %v2439_v45, 2 }
 0xb15   : > { %v2476_v10 = vsel %vm913_vm5, %v2475_v61, %v2474_v27 }
 0xb16   : > { %v2478_v62 = vsel %vm916_vm6, %v2477_v15, %v2476_v10 }
 0xb17   : > { %2479 = vrot.lane.b32.xlu1 %v2478_v62, %s10210_s5 }
 0xb89   : > { %v2480_v2 = vpop.permute.xlu1 %2479 }
 0xb8a   : > { %8424 = vmatmul.msk.f32.vlgmr.msrb.gmra.mxu0 %vm920_vm7, %v2480_v2 }
 0xc07   : > { %v2500_v12 = vpop.f32.mrf.mxu0 }
 0xc08   : > { %v2519_v37 = vadd.f32 %v2500_v12, %v2449_v22  ;;  %v2505_v47 = vrot.slane %v2500_v12, 2  ;;  %v2504_v9 = vrot.slane %v2500_v12, 1  ;;  %v2508_v55 = vrot.slane %v2500_v12, 5 }
 0xc09   : > { %v2507_v60 = vrot.slane %v2500_v12, 4  ;;  %v2506_v16 = vrot.slane %v2500_v12, 3  ;;  %v2510_v4 = vrot.slane %v2500_v12, 7  ;;  %v2509_v58 = vrot.slane %v2500_v12, 6 }
 0xc0a   : > { %9008 = vtanh.f32 %v2519_v37  ;;  %v2521_v34 = vadd.f32 %v2505_v47, %v2451_v54  ;;  %v2520_v14 = vadd.f32 %v2504_v9, %v2450_v32  ;;  %v2524_v39 = vadd.f32 %v2508_v55, %v2454_v46 }
 0xc0b   : > { %v2523_v13 = vadd.f32 %v2507_v60, %v2453_v20  ;;  %v2522_v33 = vadd.f32 %v2506_v16, %v2452_v6  ;;  %v2526_v30 = vadd.f32 %v2510_v4, %v2456_v21  ;;  %v2525_v42 = vadd.f32 %v2509_v58, %v2455_v59 }
 0xc0c   : > { %9010 = vtanh.f32 %v2521_v34  ;;  %v8426_v29 = vmul.f32 -1.442695, %v2520_v14  ;;  %v8425_v17 = vmul.f32 -1.442695, %v2519_v37  ;;  %v8427_v23 = vmul.f32 -1.442695, %v2521_v34 }
 0xc0d   : > { %9012 = vtanh.f32 %v2520_v14  ;;  %v8428_v28 = vmul.f32 -1.442695, %v2522_v33  ;;  %v8431_v52 = vmul.f32 -1.442695, %v2525_v42  ;;  %v8430_v27 = vmul.f32 -1.442695, %v2524_v39 }
 0xc0e   : > { %9014 = vtanh.f32 %v2524_v39  ;;  %v8429_v2 = vmul.f32 -1.442695, %v2523_v13  ;;  %v8432_v55 = vmul.f32 -1.442695, %v2526_v30 }
 0xc0f   : > { %9016 = vtanh.f32 %v2523_v13 }
 0xc10   : > { %v9009_v44 = vpop.eup %9008  ;;  %9018 = vtanh.f32 %v2522_v33 }
 0xc11   : > { %2703 = vrot.lane.b32.xlu1 %v9009_v44, %s10208_s20  ;;  %9020 = vtanh.f32 %v2526_v30 }
 0xc12   : > { %v9011_v38 = vpop.eup %9010  ;;  %9022 = vtanh.f32 %v2525_v42 }
 0xc13   : > { %2707 = vrot.lane.b32.xlu0 %v9011_v38, %s10208_s20  ;;  %v9013_v1 = vpop.eup %9012  ;;  %9024 = vpow2.f32 %v8426_v29 }
 0xc14   : > { %2705 = vrot.lane.b32.xlu2 %v9013_v1, %s10208_s20  ;;  %v9015_v53 = vpop.eup %9014  ;;  %9026 = vpow2.f32 %v8428_v28 }
 0xc15   : > { %v9017_v26 = vpop.eup %9016 }
 0xc16   : > { %v9019_v56 = vpop.eup %9018 }
 0xc17   : > { %v9021_v48 = vpop.eup %9020 }
 0xc18   : > { %v9023_v63 = vpop.eup %9022 }
 0xc19   : > { %2713 = vrot.lane.b32.xlu1 %v9015_v53, %s10208_s20  ;;  %v9025_v36 = vpop.eup %9024 }
 0xc1a   : > { %v2552_v41 = vadd.f32 1.0, %v9025_v36  ;;  %v9027_v31 = vpop.eup %9026 }
 0xc1b   : > { %2711 = vrot.lane.b32.xlu0 %v9017_v26, %s10208_s20  ;;  %v11746_v45 = vadd.f32 1.0, %v9027_v31 }
 0xc1c   : > { %2709 = vrot.lane.b32.xlu2 %v9019_v56, %s10208_s20  ;;  %9028 = vrcp.f32 %v2552_v41  ;;  %v2585_v39 = vand.u32 2147483648, %v2552_v41  ;;  %vm2579_vm9 = vweird.f32 %v2552_v41  ;;  %v2583_v16 = vand.u32 2147483647, %v2552_v41 }
 0xc1d   : > { %9030 = vpow2.f32 %v8431_v52  ;;  %v2615_v56 = vand.u32 2147483648, %v11746_v45  ;;  %vm2609_vm13 = vweird.f32 %v11746_v45 }
 0xc1e   : > { %9032 = vpow2.f32 %v8425_v17  ;;  %v2586_v1 = vor.u32 1.1754944e-38, %v2585_v39  ;;  %vm2584_vm11 = vcmp.eq.f32.partialorder %v2583_v16, 8.507059e+37 }
 0xc1f   : > { %9034 = vrcp.f32 %v11746_v45  ;;  %v2616_v31 = vor.u32 1.1754944e-38, %v2615_v56 }
 0xc20   : > { %9036 = vpow2.f32 %v8427_v23 }
 0xc21   : > { %9038 = vpow2.f32 %v8430_v27 }
 0xc22   : > { %v9029_v25 = vpop.eup %9028 }
 0xc23   : > { %2717 = vrot.lane.b32.xlu0 %v9021_v48, %s10208_s20  ;;  %v9031_v15 = vpop.eup %9030  ;;  %v2575_v61 = vmul.f32 %v9029_v25, %v2552_v41  ;;  %vm2580_vm15 = vweird.f32 %v9029_v25 }
 0xc24   : > { %2715 = vrot.lane.b32.xlu2 %v9023_v63, %s10208_s20  ;;  %v9033_v10 = vpop.eup %9032  ;;  %v11749_v62 = vadd.f32 1.0, %v9031_v15  ;;  %vm2581_vm10 = vmor %vm2579_vm9, %vm2580_vm15  ;;  %v2613_v63 = vand.u32 2147483647, %v11746_v45 }
 0xc25   : > { %v2576_v22 = vsub.f32 1.0, %v2575_v61  ;;  %v9035_v12 = vpop.eup %9034  ;;  %v11751_v37 = vadd.f32 1.0, %v9033_v10 }
 0xc26   : > { %v9037_v54 = vpop.eup %9036  ;;  %9040 = vrcp.f32 %v11749_v62  ;;  %v2605_v32 = vmul.f32 %v9035_v12, %v11746_v45  ;;  %vm2610_vm12 = vweird.f32 %v9035_v12  ;;  %vm2614_vm8 = vcmp.eq.f32.partialorder %v2613_v63, 8.507059e+37 }
 0xc27   : > { %9042 = vpow2.f32 %v8429_v2  ;;  %v2577_v47 = vmul.f32 %v9029_v25, %v2576_v22  ;;  %v11755_v9 = vadd.f32 1.0, %v9037_v54  ;;  %v9039_v34 = vpop.eup %9038  ;;  %vm2611_vm14 = vmor %vm2609_vm13, %vm2610_vm12  ;;  %v2660_v22 = vand.u32 2147483648, %v11749_v62 }
 0xc28   : > { %9044 = vrcp.f32 %v11751_v37  ;;  %v2606_v46 = vsub.f32 1.0, %v2605_v32  ;;  %v11761_v44 = vadd.f32 1.0, %v9039_v34  ;;  %vm2654_vm9 = vweird.f32 %v11749_v62 }
 0xc29   : > { %v2578_v14 = vadd.f32 %v9029_v25, %v2577_v47  ;;  %9046 = vrcp.f32 %v11755_v9  ;;  %vm2564_vm12 = vweird.f32 %v11751_v37  ;;  %v2568_v39 = vand.u32 2147483647, %v11751_v37 }
 0xc2a   : > { %9048 = vpow2.f32 %v8432_v55  ;;  %v2607_v38 = vmul.f32 %v9035_v12, %v2606_v46  ;;  %v2661_v46 = vor.u32 1.1754944e-38, %v2660_v22 }
 0xc2b   : > { %v2582_v13 = vsel %vm2581_vm10, %v9029_v25, %v2578_v14  ;;  %9050 = vrcp.f32 %v11761_v44 }
 0xc2c   : > { %v11758_v60 = vpop.eup %9040  ;;  %v11772_v53 = vsel %vm2584_vm11, %v2586_v1, %v2582_v13  ;;  %v2608_v26 = vadd.f32 %v9035_v12, %v2607_v38 }
 0xc2d   : > { %v9043_v20 = vpop.eup %9042  ;;  %v2650_v33 = vmul.f32 %v11758_v60, %v11749_v62  ;;  %vm2655_vm15 = vweird.f32 %v11758_v60 }
 0xc2e   : > { %v11763_v6 = vpop.eup %9044  ;;  %v11767_v4 = vadd.f32 1.0, %v9043_v20  ;;  %v2612_v41 = vsel %vm2611_vm14, %v9035_v12, %v2608_v26  ;;  %v2658_v12 = vand.u32 2147483647, %v11749_v62  ;;  %vm11807_vm10 = vmor %vm2654_vm9, %vm2655_vm15  ;;  %v2570_v62 = vand.u32 2147483648, %v11751_v37 }
 0xc2f   : > { %v11770_v21 = vpop.eup %9046  ;;  %v2560_v59 = vmul.f32 %v11763_v6, %v11751_v37  ;;  %v2651_v42 = vsub.f32 1.0, %v2650_v33  ;;  %v11791_v15 = vsel %vm2614_vm8, %v2616_v31, %v2612_v41  ;;  %vm2565_vm11 = vweird.f32 %v11763_v6 }
 0xc30   : > { %9052 = vrcp.f32 %v11767_v4  ;;  %v9049_v48 = vpop.eup %9048  ;;  %v2590_v29 = vmul.f32 %v11770_v21, %v11755_v9  ;;  %vm2659_vm13 = vcmp.eq.f32.partialorder %v2658_v12, 8.507059e+37  ;;  %vm11819_vm14 = vmor %vm2564_vm12, %vm2565_vm11  ;;  %vm2595_vm8 = vweird.f32 %v11770_v21 }
 0xc31   : > { %v2561_v28 = vsub.f32 1.0, %v2560_v59  ;;  %v11784_v36 = vpop.eup %9050  ;;  %v2652_v52 = vmul.f32 %v11758_v60, %v2651_v42  ;;  %v11787_v17 = vadd.f32 1.0, %v9049_v48  ;;  %v2600_v37 = vand.u32 2147483648, %v11755_v9 }
 0xc32   : > { %v2591_v23 = vsub.f32 1.0, %v2590_v29  ;;  %v2635_v27 = vmul.f32 %v11784_v36, %v11761_v44  ;;  %vm2594_vm15 = vweird.f32 %v11755_v9  ;;  %v2598_v26 = vand.u32 2147483647, %v11755_v9 }
 0xc33   : > { %v2562_v61 = vmul.f32 %v11763_v6, %v2561_v28  ;;  %v2653_v2 = vadd.f32 %v11758_v60, %v2652_v52  ;;  %9054 = vrcp.f32 %v11787_v17  ;;  %vm2569_vm9 = vcmp.eq.f32.partialorder %v2568_v39, 8.507059e+37 }
 0xc34   : > { %v2592_v54 = vmul.f32 %v11770_v21, %v2591_v23  ;;  %v2636_v55 = vsub.f32 1.0, %v2635_v27  ;;  %v2601_v28 = vor.u32 1.1754944e-38, %v2600_v37  ;;  %vm2640_vm11 = vweird.f32 %v11784_v36 }
 0xc35   : > { %v2563_v34 = vadd.f32 %v11763_v6, %v2562_v61  ;;  %v2657_v14 = vsel %vm11807_vm10, %v11758_v60, %v2653_v2  ;;  %vm2596_vm10 = vmor %vm2594_vm15, %vm2595_vm8  ;;  %vm2599_vm12 = vcmp.eq.f32.partialorder %v2598_v26, 8.507059e+37  ;;  %v2645_v9 = vand.u32 2147483648, %v11761_v44 }
 0xc36   : > { %v11789_v25 = vpop.eup %9052  ;;  %v2593_v16 = vadd.f32 %v11770_v21, %v2592_v54  ;;  %v11827_v60 = vsel %vm2659_vm13, %v2661_v46, %v2657_v14  ;;  %vm2639_vm13 = vweird.f32 %v11761_v44  ;;  %vm2624_vm15 = vweird.f32 %v11767_v4 }
 0xc37   : > { %v2620_v47 = vmul.f32 %v11789_v25, %v11767_v4  ;;  %v2567_v1 = vsel %vm11819_vm14, %v11763_v6, %v2563_v34  ;;  %vm2641_vm14 = vmor %vm2639_vm13, %vm2640_vm11  ;;  %vm2625_vm8 = vweird.f32 %v11789_v25  ;;  %v2646_v2 = vor.u32 1.1754944e-38, %v2645_v9 }
 0xc38   : > { %v2597_v6 = vsel %vm2596_vm10, %v11770_v21, %v2593_v16  ;;  %v2643_v21 = vand.u32 2147483647, %v11761_v44  ;;  %v2628_v22 = vand.u32 2147483647, %v11767_v4  ;;  %vm2626_vm10 = vmor %vm2624_vm15, %vm2625_vm8  ;;  %vm2669_vm13 = vweird.f32 %v11787_v17 }
 0xc39   : > { %v2621_v13 = vsub.f32 1.0, %v2620_v47  ;;  %v11825_v38 = vpop.eup %9054  ;;  %v11848_v31 = vsel %vm2599_vm12, %v2601_v28, %v2597_v6 }
 0xc3a   : > { %v2665_v63 = vmul.f32 %v11825_v38, %v11787_v17  ;;  %vm2629_vm11 = vcmp.eq.f32.partialorder %v2628_v22, 8.507059e+37  ;;  %vm2670_vm12 = vweird.f32 %v11825_v38 }
 0xc3b   : > { %v2622_v48 = vmul.f32 %v11789_v25, %v2621_v13 }
 0xc3c   : > { %v2666_v61 = vsub.f32 1.0, %v2665_v63 }
 0xc3e   : > { %v2667_v47 = vmul.f32 %v11825_v38, %v2666_v61 }
 0xc40   : > { %v2668_v14 = vadd.f32 %v11825_v38, %v2667_v47 }
 0xc6e   : > { %v2706_v58 = vpop.permute.xlu2 %2705 }
 0xc6f   : > { %v2728_v30 = vmul.f32 %v2706_v58, %v11772_v53  ;;  %v2637_v58 = vmul.f32 %v11784_v36, %v2636_v55 }
 0xc71   : > { %2745 = vrot.lane.b32.xlu1 %v2728_v30, %s10210_s5  ;;  %v2571_v30 = vor.u32 1.1754944e-38, %v2570_v62  ;;  %v2638_v41 = vadd.f32 %v11784_v36, %v2637_v58  ;;  %v2675_v62 = vand.u32 2147483648, %v11787_v17 }
 0xc73   : > { %v11838_v56 = vsel %vm2569_vm9, %v2571_v30, %v2567_v1  ;;  %v2642_v27 = vsel %vm2641_vm14, %v11784_v36, %v2638_v41  ;;  %vm2644_vm9 = vcmp.eq.f32.partialorder %v2643_v21, 8.507059e+37  ;;  %vm2671_vm14 = vmor %vm2669_vm13, %vm2670_vm12  ;;  %v2676_v39 = vor.u32 1.1754944e-38, %v2675_v62 }
 0xc74   : > { %v11861_v12 = vsel %vm2644_vm9, %v2646_v2, %v2642_v27  ;;  %v2672_v46 = vsel %vm2671_vm14, %v11825_v38, %v2668_v14 }
 0xc75   : > { %v2692_v61 = vmul.f32 %v11861_v12, %v11653_v57 }
 0xc76   : > { %v2710_v45 = vpop.permute.xlu2 %2709 }
 0xc77   : > { %v2730_v10 = vmul.f32 %v2710_v45, %v11791_v15  ;;  %v2623_v45 = vadd.f32 %v11789_v25, %v2622_v48 }
 0xc79   : > { %2749 = vrot.lane.b32.xlu1 %v2730_v10, %s10210_s5  ;;  %v2630_v10 = vand.u32 2147483648, %v11767_v4  ;;  %v2627_v54 = vsel %vm2626_vm10, %v11789_v25, %v2623_v45  ;;  %v2673_v25 = vand.u32 2147483647, %v11787_v17  ;;  %v2688_v17 = vmul.f32 %v11772_v53, %v11673_v35 }
 0xc7b   : > { %v2631_v32 = vor.u32 1.1754944e-38, %v2630_v10  ;;  %vm2674_vm8 = vcmp.eq.f32.partialorder %v2673_v25, 8.507059e+37 }
 0xc7c   : > { %v11877_v20 = vsel %vm2674_vm8, %v2676_v39, %v2672_v46 }
 0xc7d   : > { %v11866_v34 = vsel %vm2629_vm11, %v2631_v32, %v2627_v54 }
 0xc7e   : > { %v2716_v33 = vpop.permute.xlu2 %2715 }
 0xc7f   : > { %v2733_v59 = vmul.f32 %v2716_v33, %v11827_v60  ;;  %v2689_v33 = vmul.f32 %v11848_v31, %v11648_v3  ;;  %v2690_v3 = vmul.f32 %v11791_v15, %v11678_v49  ;;  %v2693_v49 = vmul.f32 %v11827_v60, %v11684_v40 }
 0xc81   : > { %2755 = vrot.lane.b32.xlu1 %v2733_v59, %s10210_s5  ;;  %v2691_v59 = vmul.f32 %v11866_v34, %v11659_v51  ;;  %v2694_v51 = vmul.f32 %v11877_v20, %v11666_v0  ;;  %v2687_v0 = vmul.f32 %v11838_v56, %v11643_v11 }
 0xc83   : > { %v2704_v42 = vpop.permute.xlu1 %2703 }
 0xc84   : > { %v2727_v29 = vmul.f32 %v2704_v42, %v11838_v56 }
 0xc85   : > { %v2708_v52 = vpop.permute.xlu0 %2707 }
 0xc86   : > { %2743 = vrot.lane.b32.xlu0 %v2727_v29, %s10210_s5  ;;  %v2729_v23 = vmul.f32 %v2708_v52, %v11848_v31 }
 0xc88   : > { %2747 = vrot.lane.b32.xlu2 %v2729_v23, %s10210_s5 }
 0xc8b   : > { %v2714_v44 = vpop.permute.xlu1 %2713 }
 0xc8c   : > { %v2732_v36 = vmul.f32 %v2714_v44, %v11861_v12 }
 0xc8d   : > { %v2712_v55 = vpop.permute.xlu0 %2711 }
 0xc8e   : > { %2753 = vrot.lane.b32.xlu0 %v2732_v36, %s10210_s5  ;;  %v2731_v4 = vmul.f32 %v2712_v55, %v11866_v34 }
 0xc90   : > { %2751 = vrot.lane.b32.xlu2 %v2731_v4, %s10210_s5 }
 0xc95   : > { %v2718_v16 = vpop.permute.xlu0 %2717 }
 0xc96   : > { %v2734_v13 = vmul.f32 %v2718_v16, %v11877_v20 }
 0xc98   : > { %2757 = vrot.lane.b32.xlu2 %v2734_v13, %s10210_s5 }
 0xce2   : > { %v2748_v1 = vpop.permute.xlu2 %2747 }
 0xce3   : > { %v11883_v37 = vadd.f32 %v2748_v1, %v2689_v33  ;;  %v2746_v58 = vpop.permute.xlu1 %2745 }
 0xce4   : > { %v11888_v38 = vadd.f32 %v2746_v58, %v2688_v17 }
 0xce5   : > { %9056 = vtanh.f32 %v11883_v37 }
 0xce6   : > { %9058 = vtanh.f32 %v11888_v38 }
 0xcea   : > { %v2752_v30 = vpop.permute.xlu2 %2751 }
 0xceb   : > { %v9057_v26 = vpop.eup %9056  ;;  %v11893_v42 = vadd.f32 %v2752_v30, %v2691_v59  ;;  %v2750_v6 = vpop.permute.xlu1 %2749 }
 0xcec   : > { %2795 = vrot.lane.b32.xlu1 %v9057_v26, %s10208_s20  ;;  %v9059_v35 = vpop.eup %9058  ;;  %v11899_v48 = vadd.f32 %v2750_v6, %v2690_v3 }
 0xced   : > { %9060 = vtanh.f32 %v11893_v42  ;;  %2793 = vrot.lane.b32.xlu0 %v9059_v35, %s10208_s20  ;;  %v2832_v35 = vld [vmem:[%s10486_s26 + $0xe] sm:$0x1] }
 0xcee   : > { %9062 = vtanh.f32 %v11899_v48 }
 0xcf2   : > { %v2758_v63 = vpop.permute.xlu2 %2757 }
 0xcf3   : > { %v9061_v29 = vpop.eup %9060  ;;  %v11905_v28 = vadd.f32 %v2758_v63, %v2694_v51  ;;  %v2756_v41 = vpop.permute.xlu1 %2755  ;;  %v2833_v51 = vld [vmem:[%s10486_s26 + $0x16] sm:$0x1] }
 0xcf4   : > { %2799 = vrot.lane.b32.xlu1 %v9061_v29, %s10208_s20  ;;  %v9063_v9 = vpop.eup %9062  ;;  %v11911_v52 = vadd.f32 %v2756_v41, %v2693_v49 }
 0xcf5   : > { %9064 = vtanh.f32 %v11905_v28  ;;  %2797 = vrot.lane.b32.xlu0 %v9063_v9, %s10208_s20 }
 0xcf6   : > { %9066 = vtanh.f32 %v11911_v52 }
 0xcf8   : > { %v2744_v21 = vpop.permute.xlu0 %2743 }
 0xcf9   : > { %v11917_v23 = vadd.f32 %v2744_v21, %v2687_v0  ;;  %v2836_v21 = vld [vmem:[%s10486_s26 + $0x2e] sm:$0x1] }
 0xcfb   : > { %9068 = vtanh.f32 %v11917_v23  ;;  %v9065_v40 = vpop.eup %9064 }
 0xcfc   : > { %2805 = vrot.lane.b32.xlu1 %v9065_v40, %s10208_s20  ;;  %v9067_v45 = vpop.eup %9066 }
 0xcfd   : > { %2803 = vrot.lane.b32.xlu0 %v9067_v45, %s10208_s20  ;;  %v2834_v45 = vld [vmem:[%s10486_s26 + $0x1e] sm:$0x1] }
 0xd00   : > { %v2754_v27 = vpop.permute.xlu0 %2753 }
 0xd01   : > { %v9069_v10 = vpop.eup %9068  ;;  %v11924_v2 = vadd.f32 %v2754_v27, %v2692_v61  ;;  %v2835_v27 = vld [vmem:[%s10486_s26 + $0x26] sm:$0x1] }
 0xd02   : > { %2791 = vrot.lane.b32.xlu2 %v9069_v10, %s10208_s20 }
 0xd03   : > { %9070 = vtanh.f32 %v11924_v2 }
 0xd09   : > { %v9071_v11 = vpop.eup %9070 }
 0xd0a   : > { %2801 = vrot.lane.b32.xlu2 %v9071_v11, %s10208_s20 }
 0xd5c   : > { %v2792_v22 = vpop.permute.xlu2 %2791 }
 0xd5d   : > { %v2815_v44 = vmul.f32 %v2792_v22, %v11838_v56 }
 0xd5e   : > { %v2796_v47 = vpop.permute.xlu1 %2795 }
 0xd5f   : > { %v11931_v54 = vadd.f32 %v2815_v44, %v11691_v8  ;;  %v2817_v57 = vmul.f32 %v2796_v47, %v11848_v31  ;;  %v2794_v36 = vpop.permute.xlu0 %2793 }
 0xd60   : > { %v2816_v55 = vmul.f32 %v2794_v36, %v11772_v53 }
 0xd61   : > { %v11935_v32 = vadd.f32 %v2817_v57, %v11695_v43  ;;  %v2849_v39 = vrot.slane %v2817_v57, 6 }
 0xd62   : > { %v11939_v4 = vadd.f32 %v2816_v55, %v11699_v19  ;;  %v2847_v25 = vrot.slane %v2816_v55, 7  ;;  %v2837_v55 = vld [vmem:[%s10486_s26 + $0x36] sm:$0x1] }
 0xd64   : > { %v2802_v14 = vpop.permute.xlu2 %2801  ;;  %v2848_v19 = vsel %vm898_vm0, %v2847_v25, %v2815_v44 }
 0xd65   : > { %v2820_v62 = vmul.f32 %v2802_v14, %v11861_v12 }
 0xd66   : > { %v2800_v8 = vpop.permute.xlu1 %2799 }
 0xd67   : > { %v11943_v56 = vadd.f32 %v2820_v62, %v11703_v5  ;;  %v2819_v46 = vmul.f32 %v2800_v8, %v11866_v34  ;;  %v2798_v31 = vpop.permute.xlu0 %2797  ;;  %v2850_v5 = vsel %vm901_vm1, %v2849_v39, %v2848_v19  ;;  %v2855_v58 = vrot.slane %v2820_v62, 3  ;;  %v2838_v62 = vld [vmem:[%s10486_s26 + $0x3e] sm:$0x1] }
 0xd68   : > { %v2818_v53 = vmul.f32 %v2798_v31, %v11791_v15 }
 0xd69   : > { %v11947_v43 = vadd.f32 %v2819_v46, %v11707_v7  ;;  %v2853_v13 = vrot.slane %v2819_v46, 4 }
 0xd6a   : > { %v11952_v16 = vadd.f32 %v2818_v53, %v11712_v50  ;;  %v2851_v12 = vrot.slane %v2818_v53, 5 }
 0xd6c   : > { %v2852_v33 = vsel %vm904_vm2, %v2851_v12, %v2850_v5 }
 0xd6d   : > { %v2854_v50 = vsel %vm907_vm3, %v2853_v13, %v2852_v33 }
 0xd6e   : > { %v2806_v1 = vpop.permute.xlu1 %2805  ;;  %v2856_v3 = vsel %vm910_vm4, %v2855_v58, %v2854_v50 }
 0xd6f   : > { %v2822_v34 = vmul.f32 %v2806_v1, %v11877_v20  ;;  %v2804_v7 = vpop.permute.xlu0 %2803 }
 0xd70   : > { %v2821_v17 = vmul.f32 %v2804_v7, %v11827_v60  ;;  %v2831_v60 = vld [vmem:[%s10486_s26 + $0x6] sm:$0x1] }
 0xd71   : > { %v11958_v15 = vadd.f32 %v2822_v34, %v11718_v18  ;;  %v2859_v59 = vrot.slane %v2822_v34, 1 }
 0xd72   : > { %v11963_v30 = vadd.f32 %v2821_v17, %v11723_v24  ;;  %v2857_v26 = vrot.slane %v2821_v17, 2 }
 0xd74   : > { %v2858_v20 = vsel %vm913_vm5, %v2857_v26, %v2856_v3 }
 0xd75   : > { %v2860_v6 = vsel %vm916_vm6, %v2859_v59, %v2858_v20 }
 0xd76   : > { %2861 = vrot.lane.b32.xlu2 %v2860_v6, %s10210_s5 }
 0xdd0   : > { %v2862_v18 = vpop.permute.xlu2 %2861 }
 0xdd1   : > { %8433 = vmatmul.msk.f32.vlgmr.msrb.gmra.mxu1 %vm920_vm7, %v2862_v18 }
 0xe4e   : > { %v2882_v24 = vpop.f32.mrf.mxu1 }
 0xe4f   : > { %v2886_v63 = vrot.slane %v2882_v24, 1  ;;  %v2887_v29 = vrot.slane %v2882_v24, 2  ;;  %v2901_v49 = vadd.f32 %v2882_v24, %v2831_v60  ;;  %v2890_v0 = vrot.slane %v2882_v24, 5 }
 0xe50   : > { %v2888_v40 = vrot.slane %v2882_v24, 3  ;;  %v2889_v61 = vrot.slane %v2882_v24, 4  ;;  %v2891_v36 = vrot.slane %v2882_v24, 6  ;;  %v2892_v14 = vrot.slane %v2882_v24, 7 }
 0xe51   : > { %v2902_v41 = vadd.f32 %v2886_v63, %v2832_v35  ;;  %v2903_v9 = vadd.f32 %v2887_v29, %v2833_v51  ;;  %9072 = vtanh.f32 %v2901_v49  ;;  %v2906_v10 = vadd.f32 %v2890_v0, %v2836_v21 }
 0xe52   : > { %v2904_v11 = vadd.f32 %v2888_v40, %v2834_v45  ;;  %v2905_v44 = vadd.f32 %v2889_v61, %v2835_v27  ;;  %v2907_v25 = vadd.f32 %v2891_v36, %v2837_v55  ;;  %v2908_v46 = vadd.f32 %v2892_v14, %v2838_v62 }
 0xe53   : > { %9074 = vtanh.f32 %v2902_v41  ;;  %v8434_v12 = vmul.f32 -1.442695, %v2901_v49  ;;  %v8439_v13 = vmul.f32 -1.442695, %v2906_v10  ;;  %v8435_v17 = vmul.f32 -1.442695, %v2902_v41 }
 0xe54   : > { %9076 = vtanh.f32 %v2903_v9  ;;  %v8436_v58 = vmul.f32 -1.442695, %v2903_v9  ;;  %v8438_v3 = vmul.f32 -1.442695, %v2905_v44  ;;  %v8437_v20 = vmul.f32 -1.442695, %v2904_v11 }
 0xe55   : > { %9078 = vtanh.f32 %v2906_v10  ;;  %v8441_v9 = vmul.f32 -1.442695, %v2908_v46  ;;  %v8440_v0 = vmul.f32 -1.442695, %v2907_v25 }
 0xe56   : > { %9080 = vtanh.f32 %v2904_v11 }
 0xe57   : > { %v9073_v22 = vpop.eup %9072  ;;  %9082 = vtanh.f32 %v2905_v44 }
 0xe58   : > { %3085 = vrot.lane.b32.xlu2 %v9073_v22, %s10208_s20  ;;  %9084 = vtanh.f32 %v2907_v25 }
 0xe59   : > { %v9075_v47 = vpop.eup %9074  ;;  %9086 = vtanh.f32 %v2908_v46 }
 0xe5a   : > { %v9077_v57 = vpop.eup %9076  ;;  %3087 = vrot.lane.b32.xlu0 %v9075_v47, %s10208_s20  ;;  %9088 = vpow2.f32 %v8434_v12 }
 0xe5b   : > { %3089 = vrot.lane.b32.xlu1 %v9077_v57, %s10208_s20  ;;  %v9079_v8 = vpop.eup %9078  ;;  %9090 = vpow2.f32 %v8439_v13 }
 0xe5c   : > { %v9081_v31 = vpop.eup %9080 }
 0xe5d   : > { %v9083_v39 = vpop.eup %9082 }
 0xe5e   : > { %v9085_v53 = vpop.eup %9084 }
 0xe5f   : > { %v9087_v19 = vpop.eup %9086 }
 0xe60   : > { %3095 = vrot.lane.b32.xlu2 %v9079_v8, %s10208_s20  ;;  %v9089_v5 = vpop.eup %9088 }
 0xe61   : > { %v2933_v33 = vadd.f32 1.0, %v9089_v5  ;;  %v9091_v1 = vpop.eup %9090 }
 0xe62   : > { %3091 = vrot.lane.b32.xlu0 %v9081_v31, %s10208_s20  ;;  %v2938_v34 = vadd.f32 1.0, %v9091_v1 }
 0xe63   : > { %3093 = vrot.lane.b32.xlu1 %v9083_v39, %s10208_s20  ;;  %9092 = vrcp.f32 %v2933_v33  ;;  %v2952_v29 = vand.u32 2147483648, %v2933_v33  ;;  %vm2946_vm9 = vweird.f32 %v2933_v33  ;;  %v2950_v41 = vand.u32 2147483647, %v2933_v33 }
 0xe64   : > { %9094 = vrcp.f32 %v2938_v34  ;;  %v3027_v57 = vand.u32 2147483648, %v2938_v34  ;;  %vm3021_vm13 = vweird.f32 %v2938_v34  ;;  %v3025_v14 = vand.u32 2147483647, %v2938_v34 }
 0xe65   : > { %9096 = vpow2.f32 %v8435_v17  ;;  %v2953_v27 = vor.u32 1.1754944e-38, %v2952_v29  ;;  %vm2951_vm11 = vcmp.eq.f32.partialorder %v2950_v41, 8.507059e+37 }
 0xe66   : > { %9098 = vpow2.f32 %v8436_v58  ;;  %v3028_v31 = vor.u32 1.1754944e-38, %v3027_v57  ;;  %vm3026_vm8 = vcmp.eq.f32.partialorder %v3025_v14, 8.507059e+37 }
 0xe67   : > { %9100 = vpow2.f32 %v8438_v3 }
 0xe68   : > { %9102 = vpow2.f32 %v8437_v20 }
 0xe69   : > { %v9093_v7 = vpop.eup %9092 }
 0xe6a   : > { %3097 = vrot.lane.b32.xlu0 %v9085_v53, %s10208_s20  ;;  %v2942_v50 = vmul.f32 %v9093_v7, %v2933_v33  ;;  %v9095_v26 = vpop.eup %9094  ;;  %vm2947_vm15 = vweird.f32 %v9093_v7 }
 0xe6b   : > { %3099 = vrot.lane.b32.xlu1 %v9087_v19, %s10208_s20  ;;  %v3017_v18 = vmul.f32 %v9095_v26, %v2938_v34  ;;  %v9097_v60 = vpop.eup %9096  ;;  %vm2948_vm10 = vmor %vm2946_vm9, %vm2947_vm15  ;;  %vm3022_vm12 = vweird.f32 %v9095_v26 }
 0xe6c   : > { %v2943_v59 = vsub.f32 1.0, %v2942_v50  ;;  %v9099_v35 = vpop.eup %9098  ;;  %v11986_v63 = vadd.f32 1.0, %v9097_v60  ;;  %vm3023_vm14 = vmor %vm3021_vm13, %vm3022_vm12 }
 0xe6d   : > { %v3018_v24 = vsub.f32 1.0, %v3017_v18  ;;  %v11988_v49 = vadd.f32 1.0, %v9099_v35  ;;  %v9101_v21 = vpop.eup %9100 }
 0xe6e   : > { %v2944_v6 = vmul.f32 %v9093_v7, %v2943_v59  ;;  %9104 = vrcp.f32 %v11986_v63  ;;  %v9103_v61 = vpop.eup %9102  ;;  %v11997_v36 = vadd.f32 1.0, %v9101_v21  ;;  %v2967_v60 = vand.u32 2147483648, %v11986_v63 }
 0xe6f   : > { %v3019_v45 = vmul.f32 %v9095_v26, %v3018_v24  ;;  %9106 = vrcp.f32 %v11988_v49  ;;  %v11995_v47 = vadd.f32 1.0, %v9103_v61  ;;  %v2982_v24 = vand.u32 2147483648, %v11988_v49 }
 0xe70   : > { %v2945_v51 = vadd.f32 %v9093_v7, %v2944_v6  ;;  %9108 = vpow2.f32 %v8441_v9  ;;  %v2965_v29 = vand.u32 2147483647, %v11986_v63  ;;  %v2980_v41 = vand.u32 2147483647, %v11988_v49 }
 0xe71   : > { %9110 = vpow2.f32 %v8440_v0  ;;  %v3020_v44 = vadd.f32 %v9095_v26, %v3019_v45  ;;  %v2968_v61 = vor.u32 1.1754944e-38, %v2967_v60 }
 0xe72   : > { %v2949_v40 = vsel %vm2948_vm10, %v9093_v7, %v2945_v51  ;;  %9112 = vrcp.f32 %v11995_v47  ;;  %vm2961_vm10 = vweird.f32 %v11986_v63 }
 0xe73   : > { %v11992_v11 = vsel %vm2951_vm11, %v2953_v27, %v2949_v40  ;;  %v3024_v8 = vsel %vm3023_vm14, %v9095_v26, %v3020_v44  ;;  %9114 = vrcp.f32 %v11997_v36  ;;  %vm2976_vm11 = vweird.f32 %v11988_v49 }
 0xe74   : > { %v9105_v55 = vpop.eup %9104  ;;  %v12004_v12 = vsel %vm3026_vm8, %v3028_v31, %v3024_v8  ;;  %v2983_v27 = vor.u32 1.1754944e-38, %v2982_v24  ;;  %vm2966_vm14 = vcmp.eq.f32.partialorder %v2965_v29, 8.507059e+37  ;;  %vm2981_vm8 = vcmp.eq.f32.partialorder %v2980_v41, 8.507059e+37 }
 0xe75   : > { %v9107_v62 = vpop.eup %9106  ;;  %v2957_v39 = vmul.f32 %v9105_v55, %v11986_v63  ;;  %vm2962_vm15 = vweird.f32 %v9105_v55  ;;  %v2997_v44 = vand.u32 2147483648, %v11995_v47 }
 0xe76   : > { %v9109_v25 = vpop.eup %9108  ;;  %v2972_v53 = vmul.f32 %v9107_v62, %v11988_v49  ;;  %vm2977_vm9 = vweird.f32 %v9107_v62  ;;  %vm2963_vm12 = vmor %vm2961_vm10, %vm2962_vm15  ;;  %vm2991_vm10 = vweird.f32 %v11995_v47 }
 0xe77   : > { %v9111_v46 = vpop.eup %9110  ;;  %v2958_v33 = vsub.f32 1.0, %v2957_v39  ;;  %v12009_v1 = vadd.f32 1.0, %v9109_v25  ;;  %vm12032_vm13 = vmor %vm2976_vm11, %vm2977_vm9  ;;  %v3012_v39 = vand.u32 2147483648, %v11997_v36  ;;  %vm3006_vm11 = vweird.f32 %v11997_v36 }
 0xe78   : > { %v12007_v5 = vadd.f32 1.0, %v9111_v46  ;;  %v12011_v34 = vpop.eup %9112  ;;  %v2973_v7 = vsub.f32 1.0, %v2972_v53  ;;  %v2995_v53 = vand.u32 2147483647, %v11995_v47 }
 0xe79   : > { %v12014_v17 = vpop.eup %9114  ;;  %v2959_v50 = vmul.f32 %v9105_v55, %v2958_v33  ;;  %v2987_v58 = vmul.f32 %v12011_v34, %v11995_v47  ;;  %vm2992_vm15 = vweird.f32 %v12011_v34  ;;  %v3013_v47 = vor.u32 1.1754944e-38, %v3012_v39 }
 0xe7a   : > { %9116 = vrcp.f32 %v12007_v5  ;;  %v2974_v59 = vmul.f32 %v9107_v62, %v2973_v7  ;;  %v3002_v26 = vmul.f32 %v12014_v17, %v11997_v36  ;;  %vm3007_vm9 = vweird.f32 %v12014_v17 }
 0xe7b   : > { %9118 = vrcp.f32 %v12009_v1  ;;  %v2960_v3 = vadd.f32 %v9105_v55, %v2959_v50  ;;  %v2988_v20 = vsub.f32 1.0, %v2987_v58  ;;  %v2998_v50 = vor.u32 1.1754944e-38, %v2997_v44 }
 0xe7c   : > { %v2975_v18 = vadd.f32 %v9107_v62, %v2974_v59  ;;  %v3003_v35 = vsub.f32 1.0, %v3002_v26  ;;  %v3042_v60 = vand.u32 2147483648, %v12007_v5  ;;  %v3040_v24 = vand.u32 2147483647, %v12007_v5 }
 0xe7d   : > { %v2964_v0 = vsel %vm2963_vm12, %v9105_v55, %v2960_v3  ;;  %v2989_v21 = vmul.f32 %v12011_v34, %v2988_v20  ;;  %vm2993_vm12 = vmor %vm2991_vm10, %vm2992_vm15  ;;  %vm3036_vm10 = vweird.f32 %v12007_v5  ;;  %v3055_v29 = vand.u32 2147483647, %v12009_v1 }
 0xe7e   : > { %v2979_v45 = vsel %vm12032_vm13, %v9107_v62, %v2975_v18  ;;  %v3004_v63 = vmul.f32 %v12014_v17, %v3003_v35  ;;  %vm3008_vm13 = vmor %vm3006_vm11, %vm3007_vm9  ;;  %v3057_v35 = vand.u32 2147483648, %v12009_v1  ;;  %vm3051_vm11 = vweird.f32 %v12009_v1 }
 0xe7f   : > { %v12048_v55 = vsel %vm2981_vm8, %v2983_v27, %v2979_v45  ;;  %v2990_v62 = vadd.f32 %v12011_v34, %v2989_v21 }
 0xe80   : > { %v12022_v6 = vpop.eup %9116  ;;  %v3005_v46 = vadd.f32 %v12014_v17, %v3004_v63  ;;  %v3058_v21 = vor.u32 1.1754944e-38, %v3057_v35 }
 0xe81   : > { %v12025_v51 = vpop.eup %9118  ;;  %v3032_v40 = vmul.f32 %v12022_v6, %v12007_v5  ;;  %vm3037_vm15 = vweird.f32 %v12022_v6 }
 0xe82   : > { %v3047_v49 = vmul.f32 %v12025_v51, %v12009_v1  ;;  %v3009_v7 = vsel %vm3008_vm13, %v12014_v17, %v3005_v46  ;;  %vm3052_vm9 = vweird.f32 %v12025_v51 }
 0xe83   : > { %v3033_v25 = vsub.f32 1.0, %v3032_v40  ;;  %vm3053_vm13 = vmor %vm3051_vm11, %vm3052_vm9 }
 0xe84   : > { %v3048_v31 = vsub.f32 1.0, %v3047_v49 }
 0xe85   : > { %v3034_v33 = vmul.f32 %v12022_v6, %v3033_v25 }
 0xe86   : > { %v3049_v58 = vmul.f32 %v12025_v51, %v3048_v31 }
 0xe88   : > { %v3050_v18 = vadd.f32 %v12025_v51, %v3049_v58 }
 0xe8a   : > { %v3054_v9 = vsel %vm3053_vm13, %v12025_v51, %v3050_v18 }
 0xeb2   : > { %v3086_v10 = vpop.permute.xlu2 %3085 }
 0xeb3   : > { %v3109_v22 = vmul.f32 %v3086_v10, %v11992_v11 }
 0xeb5   : > { %3125 = vrot.lane.b32.xlu1 %v3109_v22, %s10210_s5  ;;  %v12044_v22 = vsel %vm2966_vm14, %v2968_v61, %v2964_v0  ;;  %vm2996_vm14 = vcmp.eq.f32.partialorder %v2995_v53, 8.507059e+37  ;;  %v3043_v0 = vor.u32 1.1754944e-38, %v3042_v60 }
 0xeb6   : > { %v3070_v49 = vmul.f32 %v12044_v22, %v11888_v38 }
 0xeba   : > { %v3096_v19 = vpop.permute.xlu2 %3095 }
 0xebb   : > { %v3114_v13 = vmul.f32 %v3096_v19, %v12004_v12  ;;  %v3010_v19 = vand.u32 2147483647, %v11997_v36 }
 0xebd   : > { %3135 = vrot.lane.b32.xlu1 %v3114_v13, %s10210_s5  ;;  %v2994_v13 = vsel %vm2993_vm12, %v12011_v34, %v2990_v62  ;;  %vm3011_vm8 = vcmp.eq.f32.partialorder %v3010_v19, 8.507059e+37  ;;  %v3035_v34 = vadd.f32 %v12022_v6, %v3034_v33  ;;  %vm3038_vm12 = vmor %vm3036_vm10, %vm3037_vm15  ;;  %v3071_v19 = vmul.f32 %v12048_v55, %v11883_v37 }
 0xebe   : > { %v12068_v59 = vsel %vm2996_vm14, %v2998_v50, %v2994_v13  ;;  %v12070_v36 = vsel %vm3011_vm8, %v3013_v47, %v3009_v7  ;;  %vm3041_vm14 = vcmp.eq.f32.partialorder %v3040_v24, 8.507059e+37  ;;  %vm3056_vm8 = vcmp.eq.f32.partialorder %v3055_v29, 8.507059e+37 }
 0xebf   : > { %v3039_v41 = vsel %vm3038_vm12, %v12022_v6, %v3035_v34  ;;  %v12090_v5 = vsel %vm3056_vm8, %v3058_v21, %v3054_v9  ;;  %v3069_v6 = vmul.f32 %v11992_v11, %v11917_v23  ;;  %v3072_v23 = vmul.f32 %v12068_v59, %v11899_v48 }
 0xec0   : > { %v12088_v40 = vsel %vm3041_vm14, %v3043_v0, %v3039_v41  ;;  %v3076_v37 = vmul.f32 %v12090_v5, %v11905_v28 }
 0xecc   : > { %v3088_v10 = vpop.permute.xlu0 %3087 }
 0xecd   : > { %v3090_v57 = vpop.permute.xlu1 %3089  ;;  %v3110_v14 = vmul.f32 %v3088_v10, %v12044_v22 }
 0xece   : > { %v3111_v8 = vmul.f32 %v3090_v57, %v12048_v55  ;;  %v3074_v57 = vmul.f32 %v12004_v12, %v11924_v2  ;;  %v3075_v2 = vmul.f32 %v12088_v40, %v11911_v52  ;;  %v3073_v52 = vmul.f32 %v12070_v36, %v11893_v42 }
 0xecf   : > { %3127 = vrot.lane.b32.xlu2 %v3110_v14, %s10210_s5 }
 0xed0   : > { %3129 = vrot.lane.b32.xlu0 %v3111_v8, %s10210_s5 }
 0xed4   : > { %v3092_v26 = vpop.permute.xlu0 %3091 }
 0xed5   : > { %v3094_v3 = vpop.permute.xlu1 %3093  ;;  %v3112_v20 = vmul.f32 %v3092_v26, %v12068_v59 }
 0xed6   : > { %v3113_v17 = vmul.f32 %v3094_v3, %v12070_v36 }
 0xed7   : > { %3131 = vrot.lane.b32.xlu2 %v3112_v20, %s10210_s5 }
 0xed8   : > { %3133 = vrot.lane.b32.xlu0 %v3113_v17, %s10210_s5 }
 0xedc   : > { %v3098_v45 = vpop.permute.xlu0 %3097 }
 0xedd   : > { %v3100_v61 = vpop.permute.xlu1 %3099  ;;  %v3115_v63 = vmul.f32 %v3098_v45, %v12088_v40 }
 0xede   : > { %v3116_v1 = vmul.f32 %v3100_v61, %v12090_v5 }
 0xedf   : > { %3137 = vrot.lane.b32.xlu2 %v3115_v63, %s10210_s5 }
 0xee0   : > { %3139 = vrot.lane.b32.xlu0 %v3116_v1, %s10210_s5 }
 0xf27   : > { %v3126_v51 = vpop.permute.xlu1 %3125 }
 0xf28   : > { %v12100_v27 = vadd.f32 %v3126_v51, %v3069_v6 }
 0xf29   : > { %v3128_v10 = vpop.permute.xlu2 %3127 }
 0xf2a   : > { %v12102_v44 = vadd.f32 %v3128_v10, %v3070_v49  ;;  %9120 = vtanh.f32 %v12100_v27 }
 0xf2c   : > { %9122 = vtanh.f32 %v12102_v44 }
 0xf2f   : > { %v3136_v14 = vpop.permute.xlu1 %3135 }
 0xf30   : > { %v9121_v62 = vpop.eup %9120  ;;  %v12110_v25 = vadd.f32 %v3136_v14, %v3074_v57 }
 0xf31   : > { %v3132_v38 = vpop.permute.xlu2 %3131  ;;  %3173 = vrot.lane.b32.xlu0 %v9121_v62, %s10208_s20 }
 0xf32   : > { %v9123_v8 = vpop.eup %9122  ;;  %v12113_v46 = vadd.f32 %v3132_v38, %v3072_v23  ;;  %9124 = vtanh.f32 %v12110_v25 }
 0xf33   : > { %3175 = vrot.lane.b32.xlu1 %v9123_v8, %s10208_s20 }
 0xf34   : > { %9126 = vtanh.f32 %v12113_v46 }
 0xf38   : > { %v9125_v31 = vpop.eup %9124 }
 0xf39   : > { %v3138_v48 = vpop.permute.xlu2 %3137  ;;  %3183 = vrot.lane.b32.xlu0 %v9125_v31, %s10208_s20 }
 0xf3a   : > { %v9127_v39 = vpop.eup %9126  ;;  %v12121_v53 = vadd.f32 %v3138_v48, %v3075_v2  ;;  %v3215_v2 = vld [vmem:[%s10486_s26 + $0x17] sm:$0x1] }
 0xf3b   : > { %3179 = vrot.lane.b32.xlu1 %v9127_v39, %s10208_s20 }
 0xf3c   : > { %9128 = vtanh.f32 %v12121_v53 }
 0xf42   : > { %v9129_v13 = vpop.eup %9128  ;;  %v3130_v33 = vpop.permute.xlu0 %3129 }
 0xf43   : > { %v12127_v7 = vadd.f32 %v3130_v33, %v3071_v19  ;;  %3185 = vrot.lane.b32.xlu1 %v9129_v13, %s10208_s20 }
 0xf45   : > { %9130 = vtanh.f32 %v12127_v7 }
 0xf4a   : > { %v3134_v50 = vpop.permute.xlu0 %3133 }
 0xf4b   : > { %v9131_v58 = vpop.eup %9130  ;;  %v12133_v47 = vadd.f32 %v3134_v50, %v3073_v52  ;;  %v3218_v52 = vld [vmem:[%s10486_s26 + $0x2f] sm:$0x1] }
 0xf4c   : > { %3177 = vrot.lane.b32.xlu2 %v9131_v58, %s10208_s20  ;;  %v3216_v58 = vld [vmem:[%s10486_s26 + $0x1f] sm:$0x1] }
 0xf4d   : > { %9132 = vtanh.f32 %v12133_v47 }
 0xf52   : > { %v3140_v26 = vpop.permute.xlu0 %3139 }
 0xf53   : > { %v9133_v3 = vpop.eup %9132  ;;  %v12139_v20 = vadd.f32 %v3140_v26, %v3076_v37  ;;  %v3217_v26 = vld [vmem:[%s10486_s26 + $0x27] sm:$0x1] }
 0xf54   : > { %3181 = vrot.lane.b32.xlu2 %v9133_v3, %s10208_s20 }
 0xf55   : > { %9134 = vtanh.f32 %v12139_v20 }
 0xf5b   : > { %v9135_v42 = vpop.eup %9134 }
 0xf5c   : > { %3187 = vrot.lane.b32.xlu2 %v9135_v42, %s10208_s20 }
 0xfa3   : > { %v3174_v34 = vpop.permute.xlu0 %3173 }
 0xfa4   : > { %v3197_v17 = vmul.f32 %v3174_v34, %v11992_v11 }
 0xfa5   : > { %v3176_v18 = vpop.permute.xlu1 %3175 }
 0xfa6   : > { %v3178_v60 = vpop.permute.xlu2 %3177  ;;  %v3198_v35 = vmul.f32 %v3176_v18, %v12044_v22  ;;  %v12147_v28 = vadd.f32 %v3197_v17, %v11931_v54 }
 0xfa7   : > { %v3199_v24 = vmul.f32 %v3178_v60, %v12048_v55 }
 0xfa8   : > { %v12151_v29 = vadd.f32 %v3198_v35, %v11939_v4  ;;  %v3229_v9 = vrot.slane %v3198_v35, 7 }
 0xfa9   : > { %v12154_v41 = vadd.f32 %v3199_v24, %v11935_v32  ;;  %v3231_v45 = vrot.slane %v3199_v24, 6  ;;  %v3219_v24 = vld [vmem:[%s10486_s26 + $0x37] sm:$0x1] }
 0xfaa   : > { %v3230_v54 = vsel %vm898_vm0, %v3229_v9, %v3197_v17 }
 0xfab   : > { %v3184_v0 = vpop.permute.xlu0 %3183  ;;  %v3232_v6 = vsel %vm901_vm1, %v3231_v45, %v3230_v54 }
 0xfac   : > { %v3202_v21 = vmul.f32 %v3184_v0, %v12004_v12  ;;  %v3220_v0 = vld [vmem:[%s10486_s26 + $0x3f] sm:$0x1] }
 0xfad   : > { %v3180_v11 = vpop.permute.xlu1 %3179 }
 0xfae   : > { %v3182_v61 = vpop.permute.xlu2 %3181  ;;  %v3200_v22 = vmul.f32 %v3180_v11, %v12068_v59  ;;  %v12160_v63 = vadd.f32 %v3202_v21, %v11943_v56 }
 0xfaf   : > { %v3201_v4 = vmul.f32 %v3182_v61, %v12070_v36 }
 0xfb0   : > { %v12164_v55 = vadd.f32 %v3200_v22, %v11952_v16  ;;  %v3233_v32 = vrot.slane %v3200_v22, 5  ;;  %v3237_v16 = vrot.slane %v3202_v21, 3 }
 0xfb1   : > { %v12167_v1 = vadd.f32 %v3201_v4, %v11947_v43  ;;  %v3235_v12 = vrot.slane %v3201_v4, 4 }
 0xfb2   : > { %v3234_v51 = vsel %vm904_vm2, %v3233_v32, %v3232_v6 }
 0xfb3   : > { %v3236_v36 = vsel %vm907_vm3, %v3235_v12, %v3234_v51 }
 0xfb4   : > { %v3238_v62 = vsel %vm910_vm4, %v3237_v16, %v3236_v36 }
 0xfb5   : > { %v3186_v59 = vpop.permute.xlu1 %3185 }
 0xfb6   : > { %v3188_v49 = vpop.permute.xlu2 %3187  ;;  %v3203_v56 = vmul.f32 %v3186_v59, %v12088_v40 }
 0xfb7   : > { %v3204_v10 = vmul.f32 %v3188_v49, %v12090_v5  ;;  %v3214_v5 = vld [vmem:[%s10486_s26 + $0xf] sm:$0x1] }
 0xfb8   : > { %v12175_v43 = vadd.f32 %v3203_v56, %v11963_v30  ;;  %v3239_v57 = vrot.slane %v3203_v56, 2  ;;  %v3213_v30 = vld [vmem:[%s10486_s26 + $0x7] sm:$0x1] }
 0xfb9   : > { %v12178_v14 = vadd.f32 %v3204_v10, %v11958_v15  ;;  %v3241_v23 = vrot.slane %v3204_v10, 1 }
 0xfba   : > { %v3240_v38 = vsel %vm913_vm5, %v3239_v57, %v3238_v62 }
 0xfbb   : > { %v3242_v40 = vsel %vm916_vm6, %v3241_v23, %v3240_v38 }
 0xfbc   : > { %3243 = vrot.lane.b32.xlu0 %v3242_v40, %s10210_s5 }
0x102e   : > { %v3244_v8 = vpop.permute.xlu0 %3243 }
0x102f   : > { %8442 = vmatmul.msk.f32.vlgmr.msrb.gmra.mxu2 %vm920_vm7, %v3244_v8 }
0x10b2   : > { %v3264_v15 = vpop.f32.mrf.mxu2 }
0x10b3   : > { %v3268_v31 = vrot.slane %v3264_v15, 1  ;;  %v3269_v48 = vrot.slane %v3264_v15, 2  ;;  %v3283_v39 = vadd.f32 %v3264_v15, %v3213_v30  ;;  %v3272_v33 = vrot.slane %v3264_v15, 5 }
0x10b4   : > { %v3270_v50 = vrot.slane %v3264_v15, 3  ;;  %v3271_v37 = vrot.slane %v3264_v15, 4  ;;  %v3273_v35 = vrot.slane %v3264_v15, 6  ;;  %v3274_v9 = vrot.slane %v3264_v15, 7 }
0x10b5   : > { %v3284_v19 = vadd.f32 %v3268_v31, %v3214_v5  ;;  %v3285_v13 = vadd.f32 %v3269_v48, %v3215_v2  ;;  %9136 = vtanh.f32 %v3283_v39  ;;  %v3288_v3 = vadd.f32 %v3272_v33, %v3218_v52 }
0x10b6   : > { %v3286_v42 = vadd.f32 %v3270_v50, %v3216_v58  ;;  %v3287_v17 = vadd.f32 %v3271_v37, %v3217_v26  ;;  %v3289_v21 = vadd.f32 %v3273_v35, %v3219_v24  ;;  %v3290_v45 = vadd.f32 %v3274_v9, %v3220_v0 }
0x10b7   : > { %9138 = vtanh.f32 %v3284_v19  ;;  %v8445_v32 = vmul.f32 -1.442695, %v3285_v13  ;;  %v8443_v36 = vmul.f32 -1.442695, %v3283_v39  ;;  %v8444_v10 = vmul.f32 -1.442695, %v3284_v19 }
0x10b8   : > { %9140 = vtanh.f32 %v3285_v13  ;;  %v8447_v12 = vmul.f32 -1.442695, %v3287_v17  ;;  %v8450_v59 = vmul.f32 -1.442695, %v3290_v45  ;;  %v8448_v40 = vmul.f32 -1.442695, %v3288_v3 }
0x10b9   : > { %9142 = vtanh.f32 %v3288_v3  ;;  %v8446_v30 = vmul.f32 -1.442695, %v3286_v42  ;;  %v8449_v50 = vmul.f32 -1.442695, %v3289_v21 }
0x10ba   : > { %9144 = vtanh.f32 %v3286_v42 }
0x10bb   : > { %v9137_v34 = vpop.eup %9136  ;;  %9146 = vtanh.f32 %v3287_v17 }
0x10bc   : > { %3467 = vrot.lane.b32.xlu0 %v9137_v34, %s10208_s20  ;;  %9148 = vtanh.f32 %v3289_v21 }
0x10bd   : > { %v9139_v18 = vpop.eup %9138  ;;  %9150 = vtanh.f32 %v3290_v45 }
0x10be   : > { %v9141_v60 = vpop.eup %9140  ;;  %3469 = vrot.lane.b32.xlu1 %v9139_v18, %s10208_s20  ;;  %9152 = vpow2.f32 %v8445_v32 }
0x10bf   : > { %3471 = vrot.lane.b32.xlu2 %v9141_v60, %s10208_s20  ;;  %v9143_v11 = vpop.eup %9142  ;;  %9154 = vpow2.f32 %v8447_v12 }
0x10c0   : > { %v9145_v61 = vpop.eup %9144 }
0x10c1   : > { %v9147_v22 = vpop.eup %9146 }
0x10c2   : > { %v9149_v54 = vpop.eup %9148 }
0x10c3   : > { %v9151_v4 = vpop.eup %9150 }
0x10c4   : > { %3477 = vrot.lane.b32.xlu0 %v9143_v11, %s10208_s20  ;;  %v9153_v6 = vpop.eup %9152 }
0x10c5   : > { %v3317_v51 = vadd.f32 1.0, %v9153_v6  ;;  %v9155_v49 = vpop.eup %9154 }
0x10c6   : > { %3473 = vrot.lane.b32.xlu1 %v9145_v61, %s10208_s20  ;;  %v12201_v56 = vadd.f32 1.0, %v9155_v49 }
0x10c7   : > { %3475 = vrot.lane.b32.xlu2 %v9147_v22, %s10208_s20  ;;  %9156 = vrcp.f32 %v3317_v51  ;;  %v3364_v52 = vand.u32 2147483648, %v3317_v51  ;;  %vm3358_vm9 = vweird.f32 %v3317_v51  ;;  %v3362_v37 = vand.u32 2147483647, %v3317_v51 }
0x10c8   : > { %9158 = vpow2.f32 %v8450_v59  ;;  %v3394_v61 = vand.u32 2147483648, %v12201_v56  ;;  %vm3388_vm13 = vweird.f32 %v12201_v56  ;;  %v3392_v22 = vand.u32 2147483647, %v12201_v56 }
0x10c9   : > { %9160 = vrcp.f32 %v12201_v56  ;;  %v3365_v17 = vor.u32 1.1754944e-38, %v3364_v52  ;;  %vm3363_vm11 = vcmp.eq.f32.partialorder %v3362_v37, 8.507059e+37 }
0x10ca   : > { %9162 = vpow2.f32 %v8443_v36  ;;  %vm3393_vm8 = vcmp.eq.f32.partialorder %v3392_v22, 8.507059e+37 }
0x10cb   : > { %9164 = vpow2.f32 %v8444_v10 }
0x10cd   : > { %v9157_v16 = vpop.eup %9156 }
0x10ce   : > { %3479 = vrot.lane.b32.xlu1 %v9149_v54, %s10208_s20  ;;  %v9159_v57 = vpop.eup %9158  ;;  %v3354_v23 = vmul.f32 %v9157_v16, %v3317_v51  ;;  %vm3359_vm15 = vweird.f32 %v9157_v16  ;;  %v3395_v51 = vor.u32 1.1754944e-38, %v3394_v61 }
0x10cf   : > { %3481 = vrot.lane.b32.xlu2 %v9151_v4, %s10208_s20  ;;  %v12204_v62 = vadd.f32 1.0, %v9159_v57  ;;  %v9161_v8 = vpop.eup %9160  ;;  %vm3360_vm10 = vmor %vm3358_vm9, %vm3359_vm15 }
0x10d0   : > { %v3355_v38 = vsub.f32 1.0, %v3354_v23  ;;  %v9163_v5 = vpop.eup %9162  ;;  %v3384_v31 = vmul.f32 %v9161_v8, %v12201_v56  ;;  %vm3389_vm12 = vweird.f32 %v9161_v8 }
0x10d1   : > { %v9165_v2 = vpop.eup %9164  ;;  %9166 = vrcp.f32 %v12204_v62  ;;  %v12208_v48 = vadd.f32 1.0, %v9163_v5  ;;  %vm3390_vm14 = vmor %vm3388_vm13, %vm3389_vm12  ;;  %vm3433_vm9 = vweird.f32 %v12204_v62 }
0x10d2   : > { %v3356_v15 = vmul.f32 %v9157_v16, %v3355_v38  ;;  %9168 = vpow2.f32 %v8448_v40  ;;  %v12210_v39 = vadd.f32 1.0, %v9165_v2  ;;  %v3385_v13 = vsub.f32 1.0, %v3384_v31 }
0x10d3   : > { %9170 = vpow2.f32 %v8446_v30  ;;  %v3439_v40 = vand.u32 2147483648, %v12204_v62 }
0x10d4   : > { %v3357_v19 = vadd.f32 %v9157_v16, %v3356_v15  ;;  %9172 = vrcp.f32 %v12208_v48  ;;  %v3386_v42 = vmul.f32 %v9161_v8, %v3385_v13  ;;  %v3334_v13 = vand.u32 2147483648, %v12208_v48 }
0x10d5   : > { %9174 = vrcp.f32 %v12210_v39 }
0x10d6   : > { %v3361_v3 = vsel %vm3360_vm10, %v9157_v16, %v3357_v19  ;;  %9176 = vpow2.f32 %v8449_v50  ;;  %v3387_v11 = vadd.f32 %v9161_v8, %v3386_v42  ;;  %v3440_v19 = vor.u32 1.1754944e-38, %v3439_v40 }
0x10d7   : > { %v12212_v33 = vpop.eup %9166  ;;  %v12224_v9 = vsel %vm3363_vm11, %v3365_v17, %v3361_v3  ;;  %v3332_v42 = vand.u32 2147483647, %v12208_v48  ;;  %v3347_v17 = vand.u32 2147483647, %v12210_v39 }
0x10d8   : > { %v9169_v58 = vpop.eup %9168  ;;  %v3429_v34 = vmul.f32 %v12212_v33, %v12204_v62  ;;  %v3391_v12 = vsel %vm3390_vm14, %v9161_v8, %v3387_v11  ;;  %vm3434_vm15 = vweird.f32 %v12212_v33  ;;  %v3437_v8 = vand.u32 2147483647, %v12204_v62 }
0x10d9   : > { %v9171_v26 = vpop.eup %9170  ;;  %v12218_v18 = vadd.f32 1.0, %v9169_v58  ;;  %v12244_v56 = vsel %vm3393_vm8, %v3395_v51, %v3391_v12  ;;  %vm3435_vm10 = vmor %vm3433_vm9, %vm3434_vm15  ;;  %vm3328_vm14 = vweird.f32 %v12208_v48  ;;  %vm3343_vm15 = vweird.f32 %v12210_v39 }
0x10da   : > { %v12220_v60 = vadd.f32 1.0, %v9171_v26  ;;  %v12222_v35 = vpop.eup %9172  ;;  %v3430_v45 = vsub.f32 1.0, %v3429_v34  ;;  %vm3438_vm11 = vcmp.eq.f32.partialorder %v3437_v8, 8.507059e+37  ;;  %v3349_v34 = vand.u32 2147483648, %v12210_v39 }
0x10db   : > { %v12226_v0 = vpop.eup %9174  ;;  %9178 = vrcp.f32 %v12218_v18  ;;  %v3324_v54 = vmul.f32 %v12222_v35, %v12208_v48  ;;  %vm3329_vm12 = vweird.f32 %v12222_v35  ;;  %v3335_v11 = vor.u32 1.1754944e-38, %v3334_v13 }
0x10dc   : > { %9180 = vrcp.f32 %v12220_v60  ;;  %v9177_v4 = vpop.eup %9176  ;;  %v3339_v32 = vmul.f32 %v12226_v0, %v12210_v39  ;;  %v3431_v6 = vmul.f32 %v12212_v33, %v3430_v45  ;;  %vm3344_vm13 = vweird.f32 %v12226_v0  ;;  %vm3330_vm8 = vmor %vm3328_vm14, %vm3329_vm12 }
0x10dd   : > { %v3325_v59 = vsub.f32 1.0, %v3324_v54  ;;  %v12240_v49 = vadd.f32 1.0, %v9177_v4  ;;  %vm3345_vm9 = vmor %vm3343_vm15, %vm3344_vm13  ;;  %v3350_v22 = vor.u32 1.1754944e-38, %v3349_v34  ;;  %v3409_v39 = vand.u32 2147483648, %v12218_v18 }
0x10de   : > { %v3340_v10 = vsub.f32 1.0, %v3339_v32  ;;  %v3432_v38 = vadd.f32 %v12212_v33, %v3431_v6  ;;  %vm3403_vm14 = vweird.f32 %v12218_v18  ;;  %vm3373_vm15 = vweird.f32 %v12220_v60 }
0x10df   : > { %v3326_v30 = vmul.f32 %v12222_v35, %v3325_v59  ;;  %9182 = vrcp.f32 %v12240_v49  ;;  %v3410_v40 = vor.u32 1.1754944e-38, %v3409_v39  ;;  %v3422_v13 = vand.u32 2147483647, %v12240_v49 }
0x10e0   : > { %v3341_v2 = vmul.f32 %v12226_v0, %v3340_v10  ;;  %v3436_v31 = vsel %vm3435_vm10, %v12212_v33, %v3432_v38  ;;  %vm3333_vm10 = vcmp.eq.f32.partialorder %v3332_v42, 8.507059e+37  ;;  %v3379_v10 = vand.u32 2147483648, %v12220_v60 }
0x10e1   : > { %v12242_v36 = vpop.eup %9178  ;;  %v3327_v62 = vadd.f32 %v12222_v35, %v3326_v30  ;;  %v12266_v50 = vsel %vm3438_vm11, %v3440_v19, %v3436_v31  ;;  %vm3348_vm11 = vcmp.eq.f32.partialorder %v3347_v17, 8.507059e+37 }
0x10e2   : > { %v12246_v57 = vpop.eup %9180  ;;  %v3399_v5 = vmul.f32 %v12242_v36, %v12218_v18  ;;  %v3342_v37 = vadd.f32 %v12226_v0, %v3341_v2  ;;  %vm3404_vm12 = vweird.f32 %v12242_v36 }
0x10e3   : > { %v3369_v15 = vmul.f32 %v12246_v57, %v12220_v60  ;;  %vm3374_vm13 = vweird.f32 %v12246_v57 }
0x10e4   : > { %v3400_v52 = vsub.f32 1.0, %v3399_v5  ;;  %v3346_v45 = vsel %vm3345_vm9, %v12226_v0, %v3342_v37  ;;  %vm3375_vm9 = vmor %vm3373_vm15, %vm3374_vm13  ;;  %v3380_v5 = vor.u32 1.1754944e-38, %v3379_v10  ;;  %vm3418_vm13 = vweird.f32 %v12240_v49 }
0x10e5   : > { %v3370_v26 = vsub.f32 1.0, %v3369_v15  ;;  %v12270_v3 = vpop.eup %9182  ;;  %v12289_v12 = vsel %vm3348_vm11, %v3350_v22, %v3346_v45 }
0x10e6   : > { %v3414_v48 = vmul.f32 %v12270_v3, %v12240_v49 }
0x10e7   : > { %v3371_v61 = vmul.f32 %v12246_v57, %v3370_v26 }
0x10e8   : > { %v3415_v59 = vsub.f32 1.0, %v3414_v48 }
0x10e9   : > { %v3372_v51 = vadd.f32 %v12246_v57, %v3371_v61  ;;  %v3455_v61 = vmul.f32 %v12244_v56, %v12133_v47  ;;  %v3452_v47 = vmul.f32 %v12289_v12, %v12102_v44 }
0x10ea   : > { %v3416_v30 = vmul.f32 %v12270_v3, %v3415_v59 }
0x10eb   : > { %v3376_v8 = vsel %vm3375_vm9, %v12246_v57, %v3372_v51  ;;  %v3424_v57 = vand.u32 2147483648, %v12240_v49  ;;  %v3453_v49 = vmul.f32 %v12224_v9, %v12127_v7 }
0x1119   : > { %v3472_v24 = vpop.permute.xlu2 %3471 }
0x111a   : > { %v3493_v21 = vmul.f32 %v3472_v24, %v12224_v9  ;;  %v3331_v24 = vsel %vm3330_vm8, %v12222_v35, %v3327_v62  ;;  %vm3405_vm8 = vmor %vm3403_vm14, %vm3404_vm12  ;;  %vm3419_vm12 = vweird.f32 %v12270_v3 }
0x111b   : > { %v12285_v4 = vsel %vm3333_vm10, %v3335_v11, %v3331_v24  ;;  %vm3420_vm14 = vmor %vm3418_vm13, %vm3419_vm12 }
0x111c   : > { %3511 = vrot.lane.b32.xlu1 %v3493_v21, %s10210_s5  ;;  %v3401_v21 = vmul.f32 %v12242_v36, %v3400_v52  ;;  %v3425_v52 = vor.u32 1.1754944e-38, %v3424_v57 }
0x111e   : > { %v3402_v0 = vadd.f32 %v12242_v36, %v3401_v21 }
0x1120   : > { %v3406_v38 = vsel %vm3405_vm8, %v12242_v36, %v3402_v0  ;;  %v3417_v36 = vadd.f32 %v12270_v3, %v3416_v30  ;;  %vm3423_vm8 = vcmp.eq.f32.partialorder %v3422_v13, 8.507059e+37 }
0x1121   : > { %v3476_v16 = vpop.permute.xlu2 %3475 }
0x1122   : > { %v3495_v23 = vmul.f32 %v3476_v16, %v12244_v56  ;;  %v3407_v16 = vand.u32 2147483647, %v12218_v18  ;;  %v3421_v62 = vsel %vm3420_vm14, %v12270_v3, %v3417_v36 }
0x1124   : > { %3515 = vrot.lane.b32.xlu1 %v3495_v23, %s10210_s5  ;;  %v3377_v23 = vand.u32 2147483647, %v12220_v60  ;;  %vm3408_vm10 = vcmp.eq.f32.partialorder %v3407_v16, 8.507059e+37 }
0x1125   : > { %v12306_v2 = vsel %vm3408_vm10, %v3410_v40, %v3406_v38 }
0x1126   : > { %vm3378_vm11 = vcmp.eq.f32.partialorder %v3377_v23, 8.507059e+37  ;;  %v3456_v24 = vmul.f32 %v12306_v2, %v12110_v25 }
0x1127   : > { %v12309_v31 = vsel %vm3378_vm11, %v3380_v5, %v3376_v8 }
0x1128   : > { %v3454_v10 = vmul.f32 %v12309_v31, %v12113_v46 }
0x1129   : > { %v3482_v58 = vpop.permute.xlu2 %3481 }
0x112a   : > { %v3498_v33 = vmul.f32 %v3482_v58, %v12266_v50  ;;  %v12320_v58 = vsel %vm3423_vm8, %v3425_v52, %v3421_v62 }
0x112c   : > { %3521 = vrot.lane.b32.xlu1 %v3498_v33, %s10210_s5  ;;  %v3451_v33 = vmul.f32 %v12285_v4, %v12100_v27 }
0x112e   : > { %v3468_v54 = vpop.permute.xlu0 %3467 }
0x112f   : > { %v3491_v35 = vmul.f32 %v3468_v54, %v12285_v4  ;;  %v3458_v54 = vmul.f32 %v12266_v50, %v12139_v20 }
0x1130   : > { %v3470_v32 = vpop.permute.xlu1 %3469 }
0x1131   : > { %v3492_v6 = vmul.f32 %v3470_v32, %v12289_v12  ;;  %3507 = vrot.lane.b32.xlu2 %v3491_v35, %s10210_s5 }
0x1133   : > { %3509 = vrot.lane.b32.xlu0 %v3492_v6, %s10210_s5 }
0x1136   : > { %v3478_v18 = vpop.permute.xlu0 %3477 }
0x1137   : > { %v3496_v15 = vmul.f32 %v3478_v18, %v12306_v2 }
0x1138   : > { %v3474_v19 = vpop.permute.xlu1 %3473 }
0x1139   : > { %v3494_v60 = vmul.f32 %v3474_v19, %v12309_v31  ;;  %3517 = vrot.lane.b32.xlu2 %v3496_v15, %s10210_s5  ;;  %v3457_v15 = vmul.f32 %v12320_v58, %v12121_v53  ;;  %v3597_v53 = vld [vmem:[#allocation11 + $0x10] sm:$0xff] }
0x113b   : > { %3513 = vrot.lane.b32.xlu0 %v3494_v60, %s10210_s5 }
0x1140   : > { %v3480_v37 = vpop.permute.xlu1 %3479 }
0x1141   : > { %v3497_v26 = vmul.f32 %v3480_v37, %v12320_v58 }
0x1143   : > { %3519 = vrot.lane.b32.xlu0 %v3497_v26, %s10210_s5  ;;  %v3598_v26 = vld [vmem:[#allocation11 + $0x18] sm:$0xff] }
0x1144   : > { %3641 = vmatpush.msrb.mxu3 %v3598_v26  ;;  %3770 = vmatpush.msra.mxu0 %v3598_v26 }
0x1145   : > { %3876 = vmatpush.msra.mxu1 %v3598_v26  ;;  %3982 = vmatpush.msra.mxu2 %v3598_v26 }
0x1146   : > { %3642 = vmatpush.msrb.mxu3 %v3597_v53  ;;  %3771 = vmatpush.msra.mxu0 %v3597_v53 }
0x1147   : > { %3877 = vmatpush.msra.mxu1 %v3597_v53  ;;  %3983 = vmatpush.msra.mxu2 %v3597_v53 }
0x118b   : > { %v3508_v42 = vpop.permute.xlu2 %3507 }
0x118c   : > { %v3531_v34 = vadd.f32 %v3508_v42, %v3451_v33  ;;  %v3596_v33 = vld [vmem:[#allocation11 + $0x8] sm:$0xff]  ;;  %v3595_v42 = vld [vmem:[#allocation11] sm:$0xff] }
0x118d   : > { %3643 = vmatpush.msrb.mxu3 %v3596_v33  ;;  %3772 = vmatpush.msra.mxu0 %v3596_v33 }
0x118e   : > { %v3512_v17 = vpop.permute.xlu1 %3511  ;;  %9184 = vtanh.f32 %v3531_v34  ;;  %3878 = vmatpush.msra.mxu1 %v3596_v33  ;;  %3984 = vmatpush.msra.mxu2 %v3596_v33 }
0x118f   : > { %v3533_v3 = vadd.f32 %v3512_v17, %v3453_v49  ;;  %3644 = vmatpush.msrb.mxu3 %v3595_v42  ;;  %3773 = vmatpush.msra.mxu0 %v3595_v42 }
0x1190   : > { %3879 = vmatpush.msra.mxu1 %v3595_v42  ;;  %3985 = vmatpush.msra.mxu2 %v3595_v42 }
0x1191   : > { %9186 = vtanh.f32 %v3533_v3  ;;  %v3679_v59 = vrot.slane %v3533_v3, 6  ;;  %4088 = vmatpush.msra.mxu3 %v3598_v26  ;;  %4194 = vmatpush.msrb.mxu0 %v3598_v26 }
0x1192   : > { %4300 = vmatpush.msrb.mxu1 %v3598_v26  ;;  %4406 = vmatpush.msrb.mxu2 %v3598_v26 }
0x1193   : > { %v3518_v21 = vpop.permute.xlu2 %3517  ;;  %4089 = vmatpush.msra.mxu3 %v3597_v53  ;;  %4195 = vmatpush.msrb.mxu0 %v3597_v53 }
0x1194   : > { %v9185_v11 = vpop.eup %9184  ;;  %v3536_v45 = vadd.f32 %v3518_v21, %v3456_v24  ;;  %4301 = vmatpush.msrb.mxu1 %v3597_v53  ;;  %4407 = vmatpush.msrb.mxu2 %v3597_v53 }
0x1195   : > { %3555 = vrot.lane.b32.xlu1 %v9185_v11, %s10208_s20  ;;  %4090 = vmatpush.msra.mxu3 %v3596_v33 }
0x1196   : > { %v3516_v27 = vpop.permute.xlu1 %3515  ;;  %9188 = vtanh.f32 %v3536_v45  ;;  %v3685_v30 = vrot.slane %v3536_v45, 3  ;;  %4196 = vmatpush.msrb.mxu0 %v3596_v33  ;;  %4302 = vmatpush.msrb.mxu1 %v3596_v33 }
0x1197   : > { %v9187_v48 = vpop.eup %9186  ;;  %v3535_v22 = vadd.f32 %v3516_v27, %v3455_v61  ;;  %4408 = vmatpush.msrb.mxu2 %v3596_v33  ;;  %4091 = vmatpush.msra.mxu3 %v3595_v42 }
0x1198   : > { %3559 = vrot.lane.b32.xlu0 %v9187_v48, %s10208_s20  ;;  %4197 = vmatpush.msrb.mxu0 %v3595_v42 }
0x1199   : > { %9190 = vtanh.f32 %v3535_v22  ;;  %v3683_v8 = vrot.slane %v3535_v22, 4  ;;  %4303 = vmatpush.msrb.mxu1 %v3595_v42  ;;  %4409 = vmatpush.msrb.mxu2 %v3595_v42 }
0x119c   : > { %v9189_v7 = vpop.eup %9188 }
0x119d   : > { %3565 = vrot.lane.b32.xlu1 %v9189_v7, %s10208_s20 }
0x119e   : > { %v3522_v25 = vpop.permute.xlu1 %3521 }
0x119f   : > { %v9191_v39 = vpop.eup %9190  ;;  %v3538_v35 = vadd.f32 %v3522_v25, %v3458_v54 }
0x11a0   : > { %3563 = vrot.lane.b32.xlu0 %v9191_v39, %s10208_s20 }
0x11a1   : > { %9192 = vtanh.f32 %v3538_v35  ;;  %v3689_v13 = vrot.slane %v3538_v35, 1 }
0x11a5   : > { %v3510_v32 = vpop.permute.xlu0 %3509 }
0x11a6   : > { %v3532_v0 = vadd.f32 %v3510_v32, %v3452_v47 }
0x11a7   : > { %v9193_v6 = vpop.eup %9192 }
0x11a8   : > { %9194 = vtanh.f32 %v3532_v0  ;;  %v3677_v51 = vrot.slane %v3532_v0, 7  ;;  %3569 = vrot.lane.b32.xlu0 %v9193_v6, %s10208_s20 }
0x11aa   : > { %v3678_v20 = vsel %vm898_vm0, %v3677_v51, %v3531_v34 }
0x11ab   : > { %v3680_v16 = vsel %vm901_vm1, %v3679_v59, %v3678_v20 }
0x11ad   : > { %v3514_v23 = vpop.permute.xlu0 %3513 }
0x11ae   : > { %v9195_v38 = vpop.eup %9194  ;;  %v3534_v40 = vadd.f32 %v3514_v23, %v3454_v10 }
0x11af   : > { %3557 = vrot.lane.b32.xlu2 %v9195_v38, %s10208_s20 }
0x11b0   : > { %9196 = vtanh.f32 %v3534_v40  ;;  %v3681_v44 = vrot.slane %v3534_v40, 5 }
0x11b2   : > { %v3682_v5 = vsel %vm904_vm2, %v3681_v44, %v3680_v16 }
0x11b3   : > { %v3684_v18 = vsel %vm907_vm3, %v3683_v8, %v3682_v5 }
0x11b4   : > { %v3686_v19 = vsel %vm910_vm4, %v3685_v30, %v3684_v18 }
0x11b5   : > { %v3520_v60 = vpop.permute.xlu0 %3519 }
0x11b6   : > { %v9197_v46 = vpop.eup %9196  ;;  %v3537_v36 = vadd.f32 %v3520_v60, %v3457_v15 }
0x11b7   : > { %3561 = vrot.lane.b32.xlu2 %v9197_v46, %s10208_s20 }
0x11b8   : > { %9198 = vtanh.f32 %v3537_v36  ;;  %v3687_v57 = vrot.slane %v3537_v36, 2 }
0x11ba   : > { %v3688_v62 = vsel %vm913_vm5, %v3687_v57, %v3686_v19 }
0x11bb   : > { %v12354_v52 = vsel %vm916_vm6, %v3689_v13, %v3688_v62 }
0x11be   : > { %v9199_v37 = vpop.eup %9198 }
0x11bf   : > { %3567 = vrot.lane.b32.xlu2 %v9199_v37, %s10208_s20 }
0x1207   : > { %v3556_v34 = vpop.permute.xlu1 %3555 }
0x1208   : > { %v3579_v49 = vmul.f32 %v3556_v34, %v12285_v4 }
0x1209   : > { %v3558_v17 = vpop.permute.xlu2 %3557 }
0x120a   : > { %v3560_v3 = vpop.permute.xlu0 %3559  ;;  %v3580_v24 = vmul.f32 %v3558_v17, %v12289_v12  ;;  %v12360_v21 = vadd.f32 %v3579_v49, %v12147_v28 }
0x120b   : > { %v3581_v11 = vmul.f32 %v3560_v3, %v12224_v9 }
0x120c   : > { %v12364_v45 = vadd.f32 %v3580_v24, %v12151_v29  ;;  %v3611_v12 = vrot.slane %v3580_v24, 7 }
0x120d   : > { %v12367_v4 = vadd.f32 %v3581_v11, %v12154_v41  ;;  %v3613_v29 = vrot.slane %v3581_v11, 6 }
0x120e   : > { %v3612_v41 = vsel %vm898_vm0, %v3611_v12, %v3579_v49 }
0x120f   : > { %v3566_v28 = vpop.permute.xlu1 %3565  ;;  %v3614_v35 = vsel %vm901_vm1, %v3613_v29, %v3612_v41 }
0x1210   : > { %v3584_v9 = vmul.f32 %v3566_v28, %v12306_v2 }
0x1211   : > { %v3562_v61 = vpop.permute.xlu2 %3561 }
0x1212   : > { %v3564_v27 = vpop.permute.xlu0 %3563  ;;  %v3582_v48 = vmul.f32 %v3562_v61, %v12309_v31  ;;  %v12373_v22 = vadd.f32 %v3584_v9, %v12160_v63  ;;  %v3619_v6 = vrot.slane %v3584_v9, 3 }
0x1213   : > { %v3583_v7 = vmul.f32 %v3564_v27, %v12244_v56 }
0x1214   : > { %v12377_v54 = vadd.f32 %v3582_v48, %v12164_v55  ;;  %v3615_v25 = vrot.slane %v3582_v48, 5 }
0x1215   : > { %v12380_v39 = vadd.f32 %v3583_v7, %v12167_v1  ;;  %v3617_v2 = vrot.slane %v3583_v7, 4 }
0x1216   : > { %v3616_v47 = vsel %vm904_vm2, %v3615_v25, %v3614_v35 }
0x1217   : > { %v3618_v63 = vsel %vm907_vm3, %v3617_v2, %v3616_v47 }
0x1218   : > { %v3620_v20 = vsel %vm910_vm4, %v3619_v6, %v3618_v63 }
0x1219   : > { %v3568_v31 = vpop.permute.xlu2 %3567 }
0x121a   : > { %v3570_v32 = vpop.permute.xlu0 %3569  ;;  %v3585_v0 = vmul.f32 %v3568_v31, %v12320_v58 }
0x121b   : > { %v3586_v56 = vmul.f32 %v3570_v32, %v12266_v50 }
0x121c   : > { %v12388_v55 = vadd.f32 %v3585_v0, %v12175_v43  ;;  %v3621_v51 = vrot.slane %v3585_v0, 2  ;;  %v12401_v43 = vld [vmem:[%s14898_s6] ss:$0 sm:$0xff] }
0x121d   : > { %v12391_v1 = vadd.f32 %v3586_v56, %v12178_v14  ;;  %v3623_v59 = vrot.slane %v3586_v56, 1 }
0x121e   : > { %v3622_v16 = vsel %vm913_vm5, %v3621_v51, %v3620_v20 }
0x121f   : > { %v3624_v10 = vsel %vm916_vm6, %v3623_v59, %v3622_v16 }
0x1220   : > { %3625 = vrot.lane.b32.xlu1 %v3624_v10, %s10210_s5 }
0x1292   : > { %v3626_v58 = vpop.permute.xlu1 %3625 }
0x1293   : > { %8451 = vmatmul.msk.f32.vlgmr.msrb.gmra.mxu3 %vm920_vm7, %v3626_v58 }
0x1316   : > { %v3646_v50 = vpop.f32.mrf.mxu3 }
0x1317   : > { %v3647_v14 = vadd.f32 %v12401_v43, %v3646_v50 }
0x1319   : > { %9200 = vtanh.f32 %v3647_v14  ;;  %v8452_v38 = vmul.f32 -1.442695, %v3647_v14 }
0x131b   : > { %9202 = vpow2.f32 %v8452_v38 }
0x131f   : > { %v9201_v23 = vpop.eup %9200 }
0x1320   : > { %3694 = vrot.lane.b32.xlu2 %v9201_v23, %s10208_s20 }
0x1321   : > { %v9203_v40 = vpop.eup %9202 }
0x1322   : > { %v3652_v44 = vadd.f32 1.0, %v9203_v40 }
0x1324   : > { %9204 = vrcp.f32 %v3652_v44  ;;  %v3664_v19 = vand.u32 2147483648, %v3652_v44  ;;  %vm3658_vm9 = vweird.f32 %v3652_v44  ;;  %v3662_v60 = vand.u32 2147483647, %v3652_v44 }
0x1326   : > { %v3665_v36 = vor.u32 1.1754944e-38, %v3664_v19  ;;  %vm3663_vm11 = vcmp.eq.f32.partialorder %v3662_v60, 8.507059e+37 }
0x132a   : > { %v9205_v8 = vpop.eup %9204 }
0x132b   : > { %v3654_v30 = vmul.f32 %v9205_v8, %v3652_v44  ;;  %vm3659_vm15 = vweird.f32 %v9205_v8 }
0x132c   : > { %vm3660_vm10 = vmor %vm3658_vm9, %vm3659_vm15 }
0x132d   : > { %v3655_v5 = vsub.f32 1.0, %v3654_v30 }
0x132f   : > { %v3656_v18 = vmul.f32 %v9205_v8, %v3655_v5 }
0x1331   : > { %v3657_v15 = vadd.f32 %v9205_v8, %v3656_v18 }
0x1333   : > { %v3661_v46 = vsel %vm3660_vm10, %v9205_v8, %v3657_v15 }
0x1334   : > { %v3666_v13 = vsel %vm3663_vm11, %v3665_v36, %v3661_v46 }
0x1335   : > { %v3692_v37 = vmul.f32 %v12354_v52, %v3666_v13 }
0x137a   : > { %v3695_v57 = vpop.permute.xlu2 %3694 }
0x137b   : > { %v3697_v62 = vmul.f32 %v3695_v57, %v3666_v13 }
0x137d   : > { %3699 = vrot.lane.b32.xlu0 %v3697_v62, %s10210_s5 }
0x13ef   : > { %v3700_v26 = vpop.permute.xlu0 %3699 }
0x13f0   : > { %v3702_v53 = vadd.f32 %v3700_v26, %v3692_v37  ;;  %v4495_v37 = vld [vmem:[%s10492_s15] sm:$0x1] }
0x13f2   : > { %9206 = vtanh.f32 %v3702_v53 }
0x13f8   : > { %v9207_v33 = vpop.eup %9206 }
0x13f9   : > { %3705 = vrot.lane.b32.xlu1 %v9207_v33, %s10208_s20 }
0x146b   : > { %v3706_v42 = vpop.permute.xlu1 %3705 }
0x146c   : > { %v12408_v34 = vmul.f32 %v3706_v42, %v3666_v13  ;;  %v4496_v13 = vld [vmem:[%s10492_s15 + $0x8] sm:$0x1] }
0x146e   : > { %3754 = vrot.lane.b32.xlu2 %v12408_v34, %s10210_s5 }
0x14c8   : > { %v3755_v49 = vpop.permute.xlu2 %3754 }
0x14c9   : > { %8453 = vmatmul.msk.f32.vlgmr.msra.gmra.mxu0 %vm920_vm7, %v3755_v49  ;;  %v8468_v49 = vmul.f32 -1.442695, %v4496_v13 }
0x1546   : > { %v3775_v17 = vpop.f32.mrf.mxu0 }
0x1547   : > { %v3776_v3 = vadd.f32 %v12401_v43, %v3775_v17 }
0x1549   : > { %9208 = vtanh.f32 %v3776_v3  ;;  %v8454_v24 = vmul.f32 -1.442695, %v3776_v3  ;;  %v8467_v3 = vmul.f32 -1.442695, %v4495_v37 }
0x154b   : > { %9210 = vpow2.f32 %v8454_v24 }
0x154f   : > { %v9209_v52 = vpop.eup %9208 }
0x1550   : > { %3800 = vrot.lane.b32.xlu0 %v9209_v52, %s10208_s20 }
0x1551   : > { %v9211_v11 = vpop.eup %9210 }
0x1552   : > { %v3781_v12 = vadd.f32 1.0, %v9211_v11 }
0x1554   : > { %9212 = vrcp.f32 %v3781_v12  ;;  %v3793_v48 = vand.u32 2147483648, %v3781_v12  ;;  %vm3787_vm13 = vweird.f32 %v3781_v12  ;;  %v3791_v41 = vand.u32 2147483647, %v3781_v12 }
0x1556   : > { %v3794_v25 = vor.u32 1.1754944e-38, %v3793_v48  ;;  %vm3792_vm8 = vcmp.eq.f32.partialorder %v3791_v41, 8.507059e+37 }
0x155a   : > { %v9213_v28 = vpop.eup %9212 }
0x155b   : > { %v3783_v9 = vmul.f32 %v9213_v28, %v3781_v12  ;;  %vm3788_vm12 = vweird.f32 %v9213_v28 }
0x155c   : > { %vm3789_vm14 = vmor %vm3787_vm13, %vm3788_vm12 }
0x155d   : > { %v3784_v61 = vsub.f32 1.0, %v3783_v9 }
0x155f   : > { %v3785_v29 = vmul.f32 %v9213_v28, %v3784_v61 }
0x1561   : > { %v3786_v27 = vadd.f32 %v9213_v28, %v3785_v29 }
0x1563   : > { %v3790_v7 = vsel %vm3789_vm14, %v9213_v28, %v3786_v27 }
0x1564   : > { %v3795_v35 = vsel %vm3792_vm8, %v3794_v25, %v3790_v7 }
0x1565   : > { %v3798_v31 = vmul.f32 %v3795_v35, %v3702_v53  ;;  %v4500_v53 = vld [vmem:[%s10492_s15 + $0x28] sm:$0x1] }
0x1566   : > { %v8472_v11 = vmul.f32 -1.442695, %v4500_v53 }
0x15c2   : > { %v3801_v2 = vpop.permute.xlu0 %3800 }
0x15c3   : > { %v3803_v47 = vmul.f32 %v3801_v2, %v3795_v35 }
0x15c5   : > { %3805 = vrot.lane.b32.xlu1 %v3803_v47, %s10210_s5 }
0x1637   : > { %v3806_v32 = vpop.permute.xlu1 %3805 }
0x1638   : > { %v3808_v0 = vadd.f32 %v3806_v32, %v3798_v31 }
0x163a   : > { %9214 = vtanh.f32 %v3808_v0 }
0x1640   : > { %v9215_v63 = vpop.eup %9214 }
0x1641   : > { %3811 = vrot.lane.b32.xlu2 %v9215_v63, %s10208_s20 }
0x169b   : > { %v3812_v6 = vpop.permute.xlu2 %3811 }
0x169c   : > { %v12417_v56 = vmul.f32 %v3812_v6, %v3795_v35 }
0x169e   : > { %3860 = vrot.lane.b32.xlu0 %v12417_v56, %s10210_s5 }
0x1710   : > { %v3861_v51 = vpop.permute.xlu0 %3860 }
0x1711   : > { %8455 = vmatmul.msk.f32.vlgmr.msra.gmra.mxu1 %vm920_vm7, %v3861_v51 }
0x178e   : > { %v3881_v59 = vpop.f32.mrf.mxu1 }
0x178f   : > { %v3882_v20 = vadd.f32 %v12401_v43, %v3881_v59 }
0x1791   : > { %9216 = vtanh.f32 %v3882_v20  ;;  %v8456_v10 = vmul.f32 -1.442695, %v3882_v20 }
0x1793   : > { %9218 = vpow2.f32 %v8456_v10 }
0x1797   : > { %v9217_v16 = vpop.eup %9216 }
0x1798   : > { %3906 = vrot.lane.b32.xlu1 %v9217_v16, %s10208_s20 }
0x1799   : > { %v9219_v58 = vpop.eup %9218 }
0x179a   : > { %v3887_v50 = vadd.f32 1.0, %v9219_v58 }
0x179c   : > { %9220 = vrcp.f32 %v3887_v50  ;;  %v3899_v8 = vand.u32 2147483648, %v3887_v50  ;;  %vm3893_vm9 = vweird.f32 %v3887_v50  ;;  %v3897_v30 = vand.u32 2147483647, %v3887_v50 }
0x179e   : > { %v3900_v18 = vor.u32 1.1754944e-38, %v3899_v8  ;;  %vm3898_vm11 = vcmp.eq.f32.partialorder %v3897_v30, 8.507059e+37 }
0x17a2   : > { %v9221_v14 = vpop.eup %9220 }
0x17a3   : > { %v3889_v23 = vmul.f32 %v9221_v14, %v3887_v50  ;;  %vm3894_vm15 = vweird.f32 %v9221_v14 }
0x17a4   : > { %vm3895_vm10 = vmor %vm3893_vm9, %vm3894_vm15 }
0x17a5   : > { %v3890_v38 = vsub.f32 1.0, %v3889_v23 }
0x17a7   : > { %v3891_v40 = vmul.f32 %v9221_v14, %v3890_v38 }
0x17a9   : > { %v3892_v44 = vadd.f32 %v9221_v14, %v3891_v40 }
0x17ab   : > { %v3896_v5 = vsel %vm3895_vm10, %v9221_v14, %v3892_v44 }
0x17ac   : > { %v3901_v19 = vsel %vm3898_vm11, %v3900_v18, %v3896_v5 }
0x17ad   : > { %v3904_v46 = vmul.f32 %v3901_v19, %v3808_v0 }
0x180a   : > { %v3907_v15 = vpop.permute.xlu1 %3906 }
0x180b   : > { %v3909_v60 = vmul.f32 %v3907_v15, %v3901_v19 }
0x180d   : > { %3911 = vrot.lane.b32.xlu2 %v3909_v60, %s10210_s5 }
0x1867   : > { %v3912_v36 = vpop.permute.xlu2 %3911 }
0x1868   : > { %v12425_v57 = vadd.f32 %v3912_v36, %v3904_v46 }
0x186a   : > { %9222 = vtanh.f32 %v12425_v57 }
0x186b   : > { %9224 = vtanh.f32 %v4496_v13 }
0x186c   : > { %9226 = vtanh.f32 %v4495_v37 }
0x186d   : > { %9228 = vtanh.f32 %v4500_v53 }
0x186e   : > { %9230 = vpow2.f32 %v8468_v49 }
0x186f   : > { %9232 = vpow2.f32 %v8467_v3 }
0x1870   : > { %v9223_v62 = vpop.eup %9222 }
0x1871   : > { %3917 = vrot.lane.b32.xlu0 %v9223_v62, %s10208_s20  ;;  %v9225_v26 = vpop.eup %9224 }
0x1872   : > { %v9227_v33 = vpop.eup %9226 }
0x1873   : > { %v9229_v42 = vpop.eup %9228 }
0x1874   : > { %v9231_v17 = vpop.eup %9230 }
0x1875   : > { %v4528_v52 = vadd.f32 1.0, %v9231_v17  ;;  %v9233_v24 = vpop.eup %9232 }
0x1876   : > { %v4527_v28 = vadd.f32 1.0, %v9233_v24 }
0x1877   : > { %9234 = vrcp.f32 %v4528_v52  ;;  %vm4555_vm12 = vweird.f32 %v4528_v52  ;;  %v4561_v25 = vand.u32 2147483648, %v4528_v52  ;;  %v4559_v35 = vand.u32 2147483647, %v4528_v52 }
0x1878   : > { %9236 = vpow2.f32 %v8472_v11  ;;  %vm4540_vm15 = vweird.f32 %v4527_v28  ;;  %v4546_v16 = vand.u32 2147483648, %v4527_v28  ;;  %v4544_v58 = vand.u32 2147483647, %v4527_v28 }
0x1879   : > { %4673 = vrot.lane.b32.xlu0 %v9225_v26, %s10208_s20  ;;  %9238 = vrcp.f32 %v4527_v28  ;;  %v4562_v0 = vor.u32 1.1754944e-38, %v4561_v25  ;;  %vm4560_vm8 = vcmp.eq.f32.partialorder %v4559_v35, 8.507059e+37 }
0x187a   : > { %v4547_v38 = vor.u32 1.1754944e-38, %v4546_v16  ;;  %vm4545_vm11 = vcmp.eq.f32.partialorder %v4544_v58, 8.507059e+37 }
0x187d   : > { %v9235_v12 = vpop.eup %9234 }
0x187e   : > { %v4551_v9 = vmul.f32 %v9235_v12, %v4528_v52  ;;  %v9237_v29 = vpop.eup %9236  ;;  %vm4556_vm13 = vweird.f32 %v9235_v12 }
0x187f   : > { %v9239_v48 = vpop.eup %9238  ;;  %v4532_v41 = vadd.f32 1.0, %v9237_v29  ;;  %vm4557_vm14 = vmor %vm4555_vm12, %vm4556_vm13 }
0x1880   : > { %v4552_v61 = vsub.f32 1.0, %v4551_v9  ;;  %v4536_v7 = vmul.f32 %v9239_v48, %v4527_v28  ;;  %vm4541_vm9 = vweird.f32 %v9239_v48 }
0x1881   : > { %4671 = vrot.lane.b32.xlu0 %v9227_v33, %s10208_s20  ;;  %9240 = vrcp.f32 %v4532_v41  ;;  %vm4542_vm10 = vmor %vm4540_vm15, %vm4541_vm9  ;;  %vm4615_vm12 = vweird.f32 %v4532_v41  ;;  %v4621_v30 = vand.u32 2147483648, %v4532_v41  ;;  %v4619_v18 = vand.u32 2147483647, %v4532_v41 }
0x1882   : > { %v4553_v27 = vmul.f32 %v9235_v12, %v4552_v61  ;;  %v4537_v47 = vsub.f32 1.0, %v4536_v7 }
0x1883   : > { %v4622_v46 = vor.u32 1.1754944e-38, %v4621_v30 }
0x1884   : > { %v4554_v2 = vadd.f32 %v9235_v12, %v4553_v27  ;;  %v4538_v6 = vmul.f32 %v9239_v48, %v4537_v47 }
0x1886   : > { %v4558_v63 = vsel %vm4557_vm14, %v9235_v12, %v4554_v2  ;;  %v4539_v10 = vadd.f32 %v9239_v48, %v4538_v6 }
0x1887   : > { %v9241_v51 = vpop.eup %9240  ;;  %v4563_v20 = vsel %vm4560_vm8, %v4562_v0, %v4558_v63  ;;  %vm4620_vm8 = vcmp.eq.f32.partialorder %v4619_v18, 8.507059e+37 }
0x1888   : > { %v4611_v59 = vmul.f32 %v9241_v51, %v4532_v41  ;;  %v4543_v40 = vsel %vm4542_vm10, %v9239_v48, %v4539_v10  ;;  %vm4616_vm13 = vweird.f32 %v9241_v51  ;;  %v4499_v41 = vld [vmem:[%s10492_s15 + $0x20] sm:$0x1] }
0x1889   : > { %4681 = vrot.lane.b32.xlu0 %v9229_v42, %s10208_s20  ;;  %v4548_v8 = vsel %vm4545_vm11, %v4547_v38, %v4543_v40  ;;  %vm4617_vm14 = vmor %vm4615_vm12, %vm4616_vm13  ;;  %v4498_v42 = vld [vmem:[%s10492_s15 + $0x18] sm:$0x1] }
0x188a   : > { %v4612_v50 = vsub.f32 1.0, %v4611_v59  ;;  %v8470_v63 = vmul.f32 -1.442695, %v4498_v42 }
0x188c   : > { %v4613_v44 = vmul.f32 %v9241_v51, %v4612_v50 }
0x188e   : > { %v4614_v5 = vadd.f32 %v9241_v51, %v4613_v44 }
0x1890   : > { %v4618_v36 = vsel %vm4617_vm14, %v9241_v51, %v4614_v5  ;;  %v8471_v51 = vmul.f32 -1.442695, %v4499_v41 }
0x1891   : > { %v4623_v13 = vsel %vm4620_vm8, %v4622_v46, %v4618_v36 }
0x18e3   : > { %v3918_v31 = vpop.permute.xlu0 %3917 }
0x18e4   : > { %v12435_v32 = vmul.f32 %v3918_v31, %v3901_v19 }
0x18e6   : > { %3966 = vrot.lane.b32.xlu1 %v12435_v32, %s10210_s5 }
0x18eb   : > { %v4674_v14 = vpop.permute.xlu0 %4673 }
0x18ec   : > { %v12439_v23 = vmul.f32 %v4674_v14, %v4563_v20 }
0x18ee   : > { %9242 = vtanh.f32 %v12439_v23 }
0x18f3   : > { %v4672_v15 = vpop.permute.xlu0 %4671 }
0x18f4   : > { %v9243_v19 = vpop.eup %9242  ;;  %v12442_v60 = vmul.f32 %v4672_v15, %v4548_v8 }
0x18f5   : > { %4721 = vrot.lane.b32.xlu0 %v9243_v19, %s10209_s18 }
0x18f6   : > { %9244 = vtanh.f32 %v12442_v60 }
0x18fb   : > { %v4682_v62 = vpop.permute.xlu0 %4681 }
0x18fc   : > { %v9245_v37 = vpop.eup %9244  ;;  %v12446_v26 = vmul.f32 %v4682_v62, %v4623_v13 }
0x18fd   : > { %4719 = vrot.lane.b32.xlu0 %v9245_v37, %s10209_s18 }
0x18fe   : > { %9246 = vtanh.f32 %v12446_v26 }
0x18ff   : > { %9248 = vtanh.f32 %v4498_v42 }
0x1904   : > { %v9247_v53 = vpop.eup %9246 }
0x1905   : > { %4729 = vrot.lane.b32.xlu0 %v9247_v53, %s10209_s18  ;;  %v9249_v49 = vpop.eup %9248 }
0x1906   : > { %4677 = vrot.lane.b32.xlu1 %v9249_v49, %s10208_s20 }
0x1958   : > { %v3967_v33 = vpop.permute.xlu1 %3966 }
0x1959   : > { %8457 = vmatmul.msk.f32.vlgmr.msra.gmra.mxu2 %vm920_vm7, %v3967_v33 }
0x1967   : > { %v4722_v17 = vpop.permute.xlu0 %4721 }
0x1968   : > { %v12454_v3 = vmul.f32 %v4722_v17, %v4563_v20 }
0x196a   : > { %v12458_v52 = vadd.f32 %v12454_v3, %v12364_v45  ;;  %v4497_v45 = vld [vmem:[%s10492_s15 + $0x10] sm:$0x1] }
0x196b   : > { %v8469_v31 = vmul.f32 -1.442695, %v4497_v45 }
0x196f   : > { %v4720_v24 = vpop.permute.xlu0 %4719 }
0x1970   : > { %v12460_v11 = vmul.f32 %v4720_v24, %v4548_v8 }
0x1972   : > { %v12464_v12 = vadd.f32 %v12460_v11, %v12360_v21  ;;  %v4502_v21 = vld [vmem:[%s10492_s15 + $0x38] sm:$0x1] }
0x1973   : > { %v8474_v50 = vmul.f32 -1.442695, %v4502_v21 }
0x1977   : > { %v4730_v28 = vpop.permute.xlu0 %4729 }
0x1978   : > { %v12466_v9 = vmul.f32 %v4730_v28, %v4623_v13 }
0x197a   : > { %v12470_v61 = vadd.f32 %v12466_v9, %v12373_v22 }
0x19dc   : > { %v3987_v29 = vpop.f32.mrf.mxu2 }
0x19dd   : > { %v3988_v27 = vadd.f32 %v12401_v43, %v3987_v29 }
0x19df   : > { %9250 = vtanh.f32 %v3988_v27  ;;  %v8458_v2 = vmul.f32 -1.442695, %v3988_v27 }
0x19e0   : > { %9252 = vtanh.f32 %v4497_v45 }
0x19e1   : > { %9254 = vtanh.f32 %v4499_v41 }
0x19e2   : > { %9256 = vtanh.f32 %v4502_v21 }
0x19e3   : > { %9258 = vpow2.f32 %v8458_v2 }
0x19e5   : > { %v9251_v48 = vpop.eup %9250 }
0x19e6   : > { %4012 = vrot.lane.b32.xlu2 %v9251_v48, %s10208_s20  ;;  %v9253_v7 = vpop.eup %9252  ;;  %v12496_v48 = vld [vmem:[%s10492_s15 + $0x30] sm:$0x1] }
0x19e7   : > { %v9255_v25 = vpop.eup %9254 }
0x19e8   : > { %v9257_v22 = vpop.eup %9256 }
0x19e9   : > { %v9259_v35 = vpop.eup %9258 }
0x19ea   : > { %v3993_v47 = vadd.f32 1.0, %v9259_v35 }
0x19ec   : > { %9260 = vrcp.f32 %v3993_v47  ;;  %v4003_v30 = vand.u32 2147483647, %v3993_v47  ;;  %v4005_v15 = vand.u32 2147483648, %v3993_v47  ;;  %vm3999_vm9 = vweird.f32 %v3993_v47 }
0x19ed   : > { %9262 = vpow2.f32 %v8469_v31 }
0x19ee   : > { %4675 = vrot.lane.b32.xlu2 %v9253_v7, %s10208_s20  ;;  %9264 = vpow2.f32 %v8470_v63  ;;  %vm12487_vm11 = vcmp.eq.f32.partialorder %v4003_v30, 8.507059e+37  ;;  %v4006_v53 = vor.u32 1.1754944e-38, %v4005_v15 }
0x19f2   : > { %v9261_v0 = vpop.eup %9260 }
0x19f3   : > { %v9263_v6 = vpop.eup %9262  ;;  %v3995_v59 = vmul.f32 %v9261_v0, %v3993_v47  ;;  %vm4000_vm15 = vweird.f32 %v9261_v0 }
0x19f4   : > { %v4529_v20 = vadd.f32 1.0, %v9263_v6  ;;  %v9265_v10 = vpop.eup %9264  ;;  %vm12483_vm10 = vmor %vm3999_vm9, %vm4000_vm15  ;;  %v4678_v6 = vpop.permute.xlu1 %4677 }
0x19f5   : > { %v3996_v16 = vsub.f32 1.0, %v3995_v59  ;;  %v4530_v58 = vadd.f32 1.0, %v9265_v10 }
0x19f6   : > { %4679 = vrot.lane.b32.xlu2 %v9255_v25, %s10208_s20  ;;  %9266 = vrcp.f32 %v4529_v20  ;;  %vm4570_vm12 = vweird.f32 %v4529_v20  ;;  %v4576_v42 = vand.u32 2147483648, %v4529_v20  ;;  %v4574_v45 = vand.u32 2147483647, %v4529_v20 }
0x19f7   : > { %9268 = vpow2.f32 %v8471_v51  ;;  %v3997_v38 = vmul.f32 %v9261_v0, %v3996_v16  ;;  %v4591_v49 = vand.u32 2147483648, %v4530_v58  ;;  %vm4585_vm14 = vweird.f32 %v4530_v58 }
0x19f8   : > { %9270 = vrcp.f32 %v4530_v58  ;;  %v4589_v29 = vand.u32 2147483647, %v4530_v58  ;;  %v4577_v31 = vor.u32 1.1754944e-38, %v4576_v42 }
0x19f9   : > { %9272 = vpow2.f32 %v8474_v50  ;;  %v3998_v18 = vadd.f32 %v9261_v0, %v3997_v38  ;;  %v4592_v35 = vor.u32 1.1754944e-38, %v4591_v49 }
0x19fb   : > { %v4002_v37 = vsel %vm12483_vm10, %v9261_v0, %v3998_v18  ;;  %vm4590_vm10 = vcmp.eq.f32.partialorder %v4589_v29, 8.507059e+37 }
0x19fc   : > { %v9267_v14 = vpop.eup %9266  ;;  %v12502_v21 = vsel %vm12487_vm11, %v4006_v53, %v4002_v37  ;;  %vm4575_vm11 = vcmp.eq.f32.partialorder %v4574_v45, 8.507059e+37 }
0x19fd   : > { %v9269_v40 = vpop.eup %9268  ;;  %v4566_v44 = vmul.f32 %v9267_v14, %v4529_v20  ;;  %vm4571_vm13 = vweird.f32 %v9267_v14 }
0x19fe   : > { %4685 = vrot.lane.b32.xlu2 %v9257_v22, %s10208_s20  ;;  %v12480_v8 = vadd.f32 1.0, %v9269_v40  ;;  %v9271_v19 = vpop.eup %9270  ;;  %vm12506_vm15 = vmor %vm4570_vm12, %vm4571_vm13 }
0x19ff   : > { %v4567_v5 = vsub.f32 1.0, %v4566_v44  ;;  %v9273_v62 = vpop.eup %9272  ;;  %v4581_v33 = vmul.f32 %v9271_v19, %v4530_v58  ;;  %vm4586_vm8 = vweird.f32 %v9271_v19 }
0x1a00   : > { %9274 = vrcp.f32 %v12480_v8  ;;  %v12493_v17 = vadd.f32 1.0, %v9273_v62  ;;  %vm4587_vm9 = vmor %vm4585_vm14, %vm4586_vm8  ;;  %vm4600_vm12 = vweird.f32 %v12480_v8  ;;  %v4606_v50 = vand.u32 2147483648, %v12480_v8 }
0x1a01   : > { %v4568_v13 = vmul.f32 %v9267_v14, %v4567_v5  ;;  %v4582_v28 = vsub.f32 1.0, %v4581_v33 }
0x1a02   : > { %9276 = vrcp.f32 %v12493_v17  ;;  %v4607_v15 = vor.u32 1.1754944e-38, %v4606_v50  ;;  %v4651_v36 = vand.u32 2147483648, %v12493_v17  ;;  %v4649_v62 = vand.u32 2147483647, %v12493_v17 }
0x1a03   : > { %v4569_v27 = vadd.f32 %v9267_v14, %v4568_v13  ;;  %v4583_v22 = vmul.f32 %v9271_v19, %v4582_v28  ;;  %9278 = vtanh.f32 %v12496_v48 }
0x1a04   : > { %v4652_v49 = vor.u32 1.1754944e-38, %v4651_v36 }
0x1a05   : > { %v4584_v0 = vadd.f32 %v9271_v19, %v4583_v22  ;;  %v4573_v63 = vsel %vm12506_vm15, %v9267_v14, %v4569_v27  ;;  %v4604_v14 = vand.u32 2147483647, %v12480_v8  ;;  %vm4645_vm15 = vweird.f32 %v12493_v17 }
0x1a06   : > { %v9275_v24 = vpop.eup %9274  ;;  %v4578_v10 = vsel %vm4575_vm11, %v4577_v31, %v4573_v63  ;;  %vm4650_vm11 = vcmp.eq.f32.partialorder %v4649_v62, 8.507059e+37  ;;  %v4775_v62 = vrot.slane %v12454_v3, 7 }
0x1a07   : > { %v4596_v41 = vmul.f32 %v9275_v24, %v12480_v8  ;;  %v4588_v59 = vsel %vm4587_vm9, %v9271_v19, %v4584_v0  ;;  %vm4601_vm13 = vweird.f32 %v9275_v24  ;;  %vm4605_vm8 = vcmp.eq.f32.partialorder %v4604_v14, 8.507059e+37 }
0x1a08   : > { %v9277_v20 = vpop.eup %9276  ;;  %v12515_v16 = vsel %vm4590_vm10, %v4592_v35, %v4588_v59  ;;  %vm4602_vm14 = vmor %vm4600_vm12, %vm4601_vm13 }
0x1a09   : > { %v4597_v47 = vsub.f32 1.0, %v4596_v41  ;;  %v12519_v58 = vmul.f32 %v4678_v6, %v12515_v16  ;;  %v4641_v38 = vmul.f32 %v9277_v20, %v12493_v17  ;;  %v9279_v44 = vpop.eup %9278  ;;  %vm4646_vm9 = vweird.f32 %v9277_v20 }
0x1a0a   : > { %vm4647_vm10 = vmor %vm4645_vm15, %vm4646_vm9  ;;  %v8473_v41 = vmul.f32 -1.442695, %v12496_v48 }
0x1a0b   : > { %v4598_v51 = vmul.f32 %v9275_v24, %v4597_v47  ;;  %v4642_v5 = vsub.f32 1.0, %v4641_v38  ;;  %9280 = vtanh.f32 %v12519_v58 }
0x1a0d   : > { %v4599_v40 = vadd.f32 %v9275_v24, %v4598_v51  ;;  %v4643_v46 = vmul.f32 %v9277_v20, %v4642_v5  ;;  %v4010_v51 = vmul.f32 %v12502_v21, %v12425_v57 }
0x1a0f   : > { %v4603_v19 = vsel %vm4602_vm14, %v9275_v24, %v4599_v40  ;;  %v4644_v13 = vadd.f32 %v9277_v20, %v4643_v46 }
0x1a10   : > { %v4608_v8 = vsel %vm4605_vm8, %v4607_v15, %v4603_v19 }
0x1a11   : > { %v9281_v37 = vpop.eup %9280  ;;  %v4648_v24 = vsel %vm4647_vm10, %v9277_v20, %v4644_v13 }
0x1a12   : > { %v4653_v28 = vsel %vm4650_vm11, %v4652_v49, %v4648_v24 }
0x1a40   : > { %v4013_v7 = vpop.permute.xlu2 %4012 }
0x1a41   : > { %v4015_v2 = vmul.f32 %v4013_v7, %v12502_v21 }
0x1a43   : > { %4017 = vrot.lane.b32.xlu1 %v4015_v2, %s10210_s5 }
0x1a48   : > { %v4676_v30 = vpop.permute.xlu2 %4675 }
0x1a49   : > { %v12524_v18 = vmul.f32 %v4676_v30, %v4578_v10 }
0x1a4b   : > { %9282 = vtanh.f32 %v12524_v18  ;;  %4683 = vrot.lane.b32.xlu1 %v9279_v44, %s10208_s20 }
0x1a50   : > { %v4680_v53 = vpop.permute.xlu2 %4679 }
0x1a51   : > { %v9283_v33 = vpop.eup %9282  ;;  %v12532_v42 = vmul.f32 %v4680_v53, %v4608_v8 }
0x1a52   : > { %4723 = vrot.lane.b32.xlu2 %v9283_v33, %s10209_s18 }
0x1a53   : > { %9284 = vtanh.f32 %v12532_v42  ;;  %4725 = vrot.lane.b32.xlu1 %v9281_v37, %s10209_s18 }
0x1a58   : > { %v4686_v29 = vpop.permute.xlu2 %4685 }
0x1a59   : > { %v9285_v27 = vpop.eup %9284  ;;  %v12537_v45 = vmul.f32 %v4686_v29, %v4653_v28 }
0x1a5a   : > { %4727 = vrot.lane.b32.xlu2 %v9285_v27, %s10209_s18 }
0x1a5b   : > { %9286 = vtanh.f32 %v12537_v45 }
0x1a5c   : > { %9288 = vpow2.f32 %v8473_v41 }
0x1a61   : > { %v9287_v17 = vpop.eup %9286 }
0x1a62   : > { %4733 = vrot.lane.b32.xlu2 %v9287_v17, %s10209_s18  ;;  %v9289_v7 = vpop.eup %9288 }
0x1a63   : > { %v4533_v25 = vadd.f32 1.0, %v9289_v7 }
0x1a65   : > { %9290 = vrcp.f32 %v4533_v25  ;;  %vm4630_vm12 = vweird.f32 %v4533_v25  ;;  %v4636_v63 = vand.u32 2147483648, %v4533_v25  ;;  %v4634_v59 = vand.u32 2147483647, %v4533_v25 }
0x1a67   : > { %v4637_v40 = vor.u32 1.1754944e-38, %v4636_v63  ;;  %vm4635_vm8 = vcmp.eq.f32.partialorder %v4634_v59, 8.507059e+37 }
0x1a6b   : > { %v9291_v35 = vpop.eup %9290 }
0x1a6c   : > { %v4626_v31 = vmul.f32 %v9291_v35, %v4533_v25  ;;  %vm4631_vm13 = vweird.f32 %v9291_v35 }
0x1a6d   : > { %vm4632_vm14 = vmor %vm4630_vm12, %vm4631_vm13 }
0x1a6e   : > { %v4627_v0 = vsub.f32 1.0, %v4626_v31 }
0x1a70   : > { %v4628_v48 = vmul.f32 %v9291_v35, %v4627_v0 }
0x1aac   : > { %v4724_v22 = vpop.permute.xlu2 %4723 }
0x1aad   : > { %v4745_v2 = vmul.f32 %v4724_v22, %v4578_v10  ;;  %v4629_v10 = vadd.f32 %v9291_v35, %v4628_v48  ;;  %v12585_v22 = vld [vmem:[#allocation10 + $0x18] sm:$0xff]  ;;  %v4761_v48 = vld [vmem:[%s10492_s15 + $0x11] sm:$0x1] }
0x1aae   : > { %4805 = vmatpush.msrb.mxu3 %v12585_v22  ;;  %5219 = vmatpush.msra.mxu0 %v12585_v22 }
0x1aaf   : > { %v12544_v47 = vadd.f32 %v4745_v2, %v12367_v4  ;;  %v4633_v14 = vsel %vm4632_vm14, %v9291_v35, %v4629_v10  ;;  %v4777_v37 = vrot.slane %v4745_v2, 6  ;;  %v12591_v2 = vld [vmem:[#allocation10 + $0x8] sm:$0xff]  ;;  %5601 = vmatpush.msra.mxu1 %v12585_v22  ;;  %5983 = vmatpush.msra.mxu2 %v12585_v22 }
0x1ab0   : > { %v4638_v44 = vsel %vm4635_vm8, %v4637_v40, %v4633_v14 }
0x1ab4   : > { %v4728_v6 = vpop.permute.xlu2 %4727 }
0x1ab5   : > { %v4747_v20 = vmul.f32 %v4728_v6, %v4608_v8  ;;  %v4018_v50 = vpop.permute.xlu1 %4017 }
0x1ab6   : > { %v12548_v38 = vadd.f32 %v4018_v50, %v4010_v51  ;;  %v4759_v51 = vld [vmem:[%s10492_s15 + $0x1] sm:$0x1] }
0x1ab7   : > { %v12551_v4 = vadd.f32 %v4747_v20, %v12380_v39 }
0x1ab8   : > { %9292 = vtanh.f32 %v12548_v38 }
0x1abc   : > { %v4734_v30 = vpop.permute.xlu2 %4733 }
0x1abd   : > { %v4750_v5 = vmul.f32 %v4734_v30, %v4653_v28  ;;  %v4684_v57 = vpop.permute.xlu1 %4683  ;;  %v4783_v28 = vrot.slane %v12466_v9, 3  ;;  %v12587_v9 = vld [vmem:[#allocation10 + $0x10] sm:$0xff]  ;;  %v4760_v30 = vld [vmem:[%s10492_s15 + $0x9] sm:$0x1] }
0x1abe   : > { %v9293_v15 = vpop.eup %9292  ;;  %v12554_v19 = vmul.f32 %v4684_v57, %v4638_v44  ;;  %4806 = vmatpush.msrb.mxu3 %v12587_v9  ;;  %5220 = vmatpush.msra.mxu0 %v12587_v9  ;;  %v4763_v57 = vld [vmem:[%s10492_s15 + $0x21] sm:$0x1] }
0x1abf   : > { %v12557_v46 = vadd.f32 %v4750_v5, %v12391_v1  ;;  %4023 = vrot.lane.b32.xlu1 %v9293_v15, %s10208_s20  ;;  %v4776_v1 = vsel %vm898_vm0, %v4775_v62, %v12460_v11  ;;  %v4787_v11 = vrot.slane %v4750_v5, 1  ;;  %5602 = vmatpush.msra.mxu1 %v12587_v9 }
0x1ac0   : > { %9294 = vtanh.f32 %v12554_v19  ;;  %v4778_v24 = vsel %vm901_vm1, %v4777_v37, %v4776_v1  ;;  %5984 = vmatpush.msra.mxu2 %v12587_v9  ;;  %4807 = vmatpush.msrb.mxu3 %v12591_v2 }
0x1ac1   : > { %5221 = vmatpush.msra.mxu0 %v12591_v2  ;;  %5603 = vmatpush.msra.mxu1 %v12591_v2 }
0x1ac2   : > { %5985 = vmatpush.msra.mxu2 %v12591_v2 }
0x1ac5   : > { %v4726_v39 = vpop.permute.xlu1 %4725 }
0x1ac6   : > { %v9295_v8 = vpop.eup %9294  ;;  %v4746_v36 = vmul.f32 %v4726_v39, %v12515_v16  ;;  %v4781_v16 = vrot.slane %v4747_v20, 4  ;;  %v4762_v20 = vld [vmem:[%s10492_s15 + $0x19] sm:$0x1]  ;;  %v4765_v39 = vld [vmem:[%s10492_s15 + $0x31] sm:$0x1] }
0x1ac7   : > { %4731 = vrot.lane.b32.xlu1 %v9295_v8, %s10209_s18 }
0x1ac8   : > { %v12564_v13 = vadd.f32 %v4746_v36, %v12377_v54  ;;  %v4779_v49 = vrot.slane %v4746_v36, 5 }
0x1aca   : > { %v4780_v54 = vsel %vm904_vm2, %v4779_v49, %v4778_v24  ;;  %v4764_v24 = vld [vmem:[%s10492_s15 + $0x29] sm:$0x1] }
0x1acb   : > { %v4782_v27 = vsel %vm907_vm3, %v4781_v16, %v4780_v54  ;;  %v4766_v54 = vld [vmem:[%s10492_s15 + $0x39] sm:$0x1] }
0x1acc   : > { %v4784_v41 = vsel %vm910_vm4, %v4783_v28, %v4782_v27 }
0x1b31   : > { %v4024_v53 = vpop.permute.xlu1 %4023 }
0x1b32   : > { %v12570_v33 = vmul.f32 %v4024_v53, %v12502_v21 }
0x1b34   : > { %4072 = vrot.lane.b32.xlu0 %v12570_v33, %s10210_s5 }
0x1b39   : > { %v4732_v3 = vpop.permute.xlu1 %4731 }
0x1b3a   : > { %v4749_v29 = vmul.f32 %v4732_v3, %v4638_v44 }
0x1b3c   : > { %v12579_v17 = vadd.f32 %v4749_v29, %v12388_v55  ;;  %v4785_v21 = vrot.slane %v4749_v29, 2  ;;  %v12597_v55 = vld [vmem:[#allocation10] sm:$0xff] }
0x1b3d   : > { %4808 = vmatpush.msrb.mxu3 %v12597_v55  ;;  %5222 = vmatpush.msra.mxu0 %v12597_v55 }
0x1b3e   : > { %v4786_v7 = vsel %vm913_vm5, %v4785_v21, %v4784_v41  ;;  %5604 = vmatpush.msra.mxu1 %v12597_v55  ;;  %5986 = vmatpush.msra.mxu2 %v12597_v55 }
0x1b3f   : > { %v4788_v25 = vsel %vm916_vm6, %v4787_v11, %v4786_v7 }
0x1b40   : > { %4789 = vrot.lane.b32.xlu1 %v4788_v25, %s10210_s5 }
0x1ba6   : > { %v4073_v35 = vpop.permute.xlu0 %4072 }
0x1ba7   : > { %8459 = vmatmul.msk.f32.vlgmr.msra.gmra.mxu3 %vm920_vm7, %v4073_v35 }
0x1ba8   : > { %6365 = vmatpush.msra.mxu3 %v12585_v22 }
0x1baa   : > { %6366 = vmatpush.msra.mxu3 %v12587_v9 }
0x1bac   : > { %6367 = vmatpush.msra.mxu3 %v12591_v2 }
0x1bae   : > { %6368 = vmatpush.msra.mxu3 %v12597_v55 }
0x1bb2   : > { %v4790_v31 = vpop.permute.xlu1 %4789 }
0x1bb3   : > { %8475 = vmatmul.msk.f32.vlgmr.msrb.gmra.mxu3 %vm920_vm7, %v4790_v31 }
0x1c2a   : > { %v4093_v0 = vpop.f32.mrf.mxu3 }
0x1c2b   : > { %v12616_v63 = vadd.f32 %v12401_v43, %v4093_v0 }
0x1c2d   : > { %9296 = vtanh.f32 %v12616_v63 }
0x1c33   : > { %v9297_v6 = vpop.eup %9296 }
0x1c34   : > { %4118 = vrot.lane.b32.xlu0 %v9297_v6, %s10208_s20 }
0x1c36   : > { %v4810_v59 = vpop.f32.mrf.mxu3 }
0x1c37   : > { %v4815_v50 = vrot.slane %v4810_v59, 2  ;;  %v4816_v10 = vrot.slane %v4810_v59, 3  ;;  %v4829_v40 = vadd.f32 %v4810_v59, %v4759_v51  ;;  %v4814_v43 = vrot.slane %v4810_v59, 1 }
0x1c38   : > { %v4817_v5 = vrot.slane %v4810_v59, 4  ;;  %v4819_v15 = vrot.slane %v4810_v59, 6  ;;  %v4818_v53 = vrot.slane %v4810_v59, 5  ;;  %v4820_v16 = vrot.slane %v4810_v59, 7 }
0x1c39   : > { %v12623_v14 = vadd.f32 %v4815_v50, %v4761_v48  ;;  %v12625_v44 = vadd.f32 %v4816_v10, %v4762_v20  ;;  %9298 = vtanh.f32 %v4829_v40  ;;  %v4830_v8 = vadd.f32 %v4814_v43, %v4760_v30 }
0x1c3a   : > { %v12632_v62 = vadd.f32 %v4817_v5, %v4763_v57  ;;  %v12634_v37 = vadd.f32 %v4819_v15, %v4765_v39  ;;  %v4834_v28 = vadd.f32 %v4818_v53, %v4764_v24  ;;  %v12643_v29 = vadd.f32 %v4820_v16, %v4766_v54 }
0x1c3b   : > { %9300 = vtanh.f32 %v12623_v14  ;;  %v8478_v0 = vmul.f32 -1.442695, %v12623_v14  ;;  %v8479_v20 = vmul.f32 -1.442695, %v12625_v44 }
0x1c3c   : > { %9302 = vtanh.f32 %v12625_v44  ;;  %v8481_v25 = vmul.f32 -1.442695, %v4834_v28 }
0x1c3d   : > { %9304 = vtanh.f32 %v4830_v8 }
0x1c3e   : > { %9306 = vtanh.f32 %v12632_v62 }
0x1c3f   : > { %v9299_v36 = vpop.eup %9298  ;;  %9308 = vtanh.f32 %v12634_v37 }
0x1c40   : > { %5045 = vrot.lane.b32.xlu2 %v9299_v36, %s10208_s20  ;;  %9310 = vtanh.f32 %v4834_v28 }
0x1c41   : > { %v9301_v1 = vpop.eup %9300  ;;  %9312 = vtanh.f32 %v12643_v29 }
0x1c42   : > { %v9303_v49 = vpop.eup %9302  ;;  %5049 = vrot.lane.b32.xlu1 %v9301_v1, %s10208_s20 }
0x1c43   : > { %5051 = vrot.lane.b32.xlu0 %v9303_v49, %s10208_s20  ;;  %v9305_v3 = vpop.eup %9304 }
0x1c44   : > { %v9307_v27 = vpop.eup %9306 }
0x1c45   : > { %v9309_v11 = vpop.eup %9308 }
0x1c46   : > { %v9311_v21 = vpop.eup %9310 }
0x1c47   : > { %v9313_v41 = vpop.eup %9312 }
0x1c48   : > { %5047 = vrot.lane.b32.xlu2 %v9305_v3, %s10208_s20 }
0x1c4a   : > { %5053 = vrot.lane.b32.xlu1 %v9307_v27, %s10208_s20 }
0x1c4b   : > { %5057 = vrot.lane.b32.xlu0 %v9309_v11, %s10208_s20 }
0x1c50   : > { %5055 = vrot.lane.b32.xlu2 %v9311_v21, %s10208_s20 }
0x1c52   : > { %5059 = vrot.lane.b32.xlu1 %v9313_v41, %s10208_s20 }
0x1c53   : > { %5009 = vrot.lane.b32.xlu0 %v12524_v18, %s10210_s5  ;;  %v8476_v18 = vmul.f32 -1.442695, %v4829_v40  ;;  %v8480_v40 = vmul.f32 -1.442695, %v12632_v62  ;;  %v8483_v62 = vmul.f32 -1.442695, %v12643_v29 }
0x1c55   : > { %9314 = vpow2.f32 %v8476_v18 }
0x1c58   : > { %5007 = vrot.lane.b32.xlu2 %v12439_v23, %s10210_s5  ;;  %v8477_v23 = vmul.f32 -1.442695, %v4830_v8  ;;  %v8482_v8 = vmul.f32 -1.442695, %v12634_v37 }
0x1c5a   : > { %5005 = vrot.lane.b32.xlu1 %v12442_v60, %s10210_s5  ;;  %v8460_v60 = vmul.f32 -1.442695, %v12616_v63  ;;  %9316 = vpow2.f32 %v8477_v23 }
0x1c5b   : > { %5019 = vrot.lane.b32.xlu0 %v12537_v45, %s10210_s5  ;;  %v9315_v7 = vpop.eup %9314 }
0x1c5c   : > { %v4861_v45 = vadd.f32 1.0, %v9315_v7  ;;  %9318 = vpow2.f32 %v8460_v60 }
0x1c5e   : > { %9320 = vrcp.f32 %v4861_v45  ;;  %v4880_v57 = vand.u32 2147483648, %v4861_v45  ;;  %vm4874_vm9 = vweird.f32 %v4861_v45  ;;  %v4878_v44 = vand.u32 2147483647, %v4861_v45 }
0x1c5f   : > { %9322 = vpow2.f32 %v8481_v25 }
0x1c60   : > { %5011 = vrot.lane.b32.xlu2 %v12519_v58, %s10210_s5  ;;  %v9317_v58 = vpop.eup %9316  ;;  %v4881_v24 = vor.u32 1.1754944e-38, %v4880_v57  ;;  %vm4879_vm11 = vcmp.eq.f32.partialorder %v4878_v44, 8.507059e+37 }
0x1c62   : > { %5015 = vrot.lane.b32.xlu1 %v12446_v26, %s10210_s5  ;;  %v9319_v35 = vpop.eup %9318  ;;  %v12668_v26 = vadd.f32 1.0, %v9317_v58 }
0x1c63   : > { %v12670_v31 = vadd.f32 1.0, %v9319_v35 }
0x1c64   : > { %9324 = vrcp.f32 %v12668_v26  ;;  %v4895_v21 = vand.u32 2147483648, %v12668_v26  ;;  %vm4889_vm14 = vweird.f32 %v12668_v26  ;;  %v4893_v18 = vand.u32 2147483647, %v12668_v26 }
0x1c65   : > { %9326 = vrcp.f32 %v12670_v31  ;;  %v4111_v58 = vand.u32 2147483648, %v12670_v31 }
0x1c66   : > { %9328 = vpow2.f32 %v8478_v0 }
0x1c68   : > { %5013 = vrot.lane.b32.xlu2 %v12532_v42, %s10210_s5  ;;  %v9321_v42 = vpop.eup %9320 }
0x1c69   : > { %v9323_v63 = vpop.eup %9322  ;;  %vm4875_vm15 = vweird.f32 %v9321_v42 }
0x1c6a   : > { %5017 = vrot.lane.b32.xlu1 %v12554_v19, %s10210_s5  ;;  %v4870_v19 = vmul.f32 %v9321_v42, %v4861_v45  ;;  %v12675_v51 = vpop.eup %9324  ;;  %v12677_v48 = vadd.f32 1.0, %v9323_v63  ;;  %vm4876_vm10 = vmor %vm4874_vm9, %vm4875_vm15  ;;  %vm4105_vm15 = vweird.f32 %v12670_v31 }
0x1c6b   : > { %v12679_v59 = vpop.eup %9326  ;;  %v4885_v10 = vmul.f32 %v12675_v51, %v12668_v26  ;;  %vm4890_vm12 = vweird.f32 %v12675_v51  ;;  %v4109_v26 = vand.u32 2147483647, %v12670_v31 }
0x1c6c   : > { %v4871_v6 = vsub.f32 1.0, %v4870_v19  ;;  %9330 = vrcp.f32 %v12677_v48  ;;  %v9329_v14 = vpop.eup %9328  ;;  %v4101_v43 = vmul.f32 %v12679_v59, %v12670_v31  ;;  %vm4106_vm13 = vweird.f32 %v12679_v59  ;;  %vm12716_vm8 = vmor %vm4889_vm14, %vm4890_vm12 }
0x1c6d   : > { %9332 = vpow2.f32 %v8479_v20  ;;  %v4886_v5 = vsub.f32 1.0, %v4885_v10  ;;  %v12688_v15 = vadd.f32 1.0, %v9329_v14  ;;  %v4896_v19 = vor.u32 1.1754944e-38, %v4895_v21  ;;  %vm4107_vm9 = vmor %vm4105_vm15, %vm4106_vm13 }
0x1c6e   : > { %v4872_v50 = vmul.f32 %v9321_v42, %v4871_v6  ;;  %9334 = vpow2.f32 %v8480_v40  ;;  %v4102_v39 = vsub.f32 1.0, %v4101_v43  ;;  %v4112_v31 = vor.u32 1.1754944e-38, %v4111_v58 }
0x1c6f   : > { %v4887_v53 = vmul.f32 %v12675_v51, %v4886_v5  ;;  %9336 = vrcp.f32 %v12688_v15  ;;  %vm4949_vm13 = vweird.f32 %v12677_v48  ;;  %v4910_v21 = vand.u32 2147483648, %v12688_v15 }
0x1c70   : > { %v4873_v30 = vadd.f32 %v9321_v42, %v4872_v50  ;;  %v4103_v54 = vmul.f32 %v12679_v59, %v4102_v39  ;;  %9338 = vpow2.f32 %v8482_v8  ;;  %v4955_v39 = vand.u32 2147483648, %v12677_v48 }
0x1c71   : > { %9340 = vpow2.f32 %v8483_v62  ;;  %v4888_v27 = vadd.f32 %v12675_v51, %v4887_v53  ;;  %v4953_v8 = vand.u32 2147483647, %v12677_v48 }
0x1c72   : > { %v12691_v36 = vpop.eup %9330  ;;  %v4877_v1 = vsel %vm4876_vm10, %v9321_v42, %v4873_v30  ;;  %v4104_v23 = vadd.f32 %v12679_v59, %v4103_v54  ;;  %vm4894_vm10 = vcmp.eq.f32.partialorder %v4893_v18, 8.507059e+37  ;;  %v4908_v18 = vand.u32 2147483647, %v12688_v15 }
0x1c73   : > { %v9333_v49 = vpop.eup %9332  ;;  %v4945_v28 = vmul.f32 %v12691_v36, %v12677_v48  ;;  %v12699_v3 = vsel %vm4879_vm11, %v4881_v24, %v4877_v1  ;;  %v4892_v35 = vsel %vm12716_vm8, %v12675_v51, %v4888_v27  ;;  %vm4110_vm11 = vcmp.eq.f32.partialorder %v4109_v26, 8.507059e+37 }
0x1c74   : > { %v9335_v16 = vpop.eup %9334  ;;  %v12704_v11 = vadd.f32 1.0, %v9333_v49  ;;  %v4108_v0 = vsel %vm4107_vm9, %v12679_v59, %v4104_v23  ;;  %v12734_v20 = vsel %vm4894_vm10, %v4896_v19, %v4892_v35  ;;  %vm4950_vm12 = vweird.f32 %v12691_v36 }
0x1c75   : > { %v12708_v41 = vadd.f32 1.0, %v9335_v16  ;;  %v4946_v7 = vsub.f32 1.0, %v4945_v28  ;;  %v12714_v60 = vpop.eup %9336  ;;  %v12739_v14 = vsel %vm4110_vm11, %v4112_v31, %v4108_v0  ;;  %vm4951_vm14 = vmor %vm4949_vm13, %vm4950_vm12  ;;  %v4956_v24 = vor.u32 1.1754944e-38, %v4955_v39 }
0x1c76   : > { %v9339_v25 = vpop.eup %9338  ;;  %9342 = vrcp.f32 %v12704_v11  ;;  %v4900_v6 = vmul.f32 %v12714_v60, %v12688_v15  ;;  %vm4954_vm8 = vcmp.eq.f32.partialorder %v4953_v8, 8.507059e+37  ;;  %vm4905_vm15 = vweird.f32 %v12714_v60 }
0x1c77   : > { %v9341_v42 = vpop.eup %9340  ;;  %9344 = vrcp.f32 %v12708_v41  ;;  %v4947_v63 = vmul.f32 %v12691_v36, %v4946_v7  ;;  %v12737_v10 = vadd.f32 1.0, %v9339_v25  ;;  %vm4904_vm9 = vweird.f32 %v12688_v15 }
0x1c78   : > { %v12741_v43 = vadd.f32 1.0, %v9341_v42  ;;  %v4901_v57 = vsub.f32 1.0, %v4900_v6  ;;  %vm4906_vm10 = vmor %vm4904_vm9, %vm4905_vm15  ;;  %v4911_v35 = vor.u32 1.1754944e-38, %v4910_v21  ;;  %vm4909_vm11 = vcmp.eq.f32.partialorder %v4908_v18, 8.507059e+37 }
0x1c79   : > { %v4948_v5 = vadd.f32 %v12691_v36, %v4947_v63  ;;  %9346 = vrcp.f32 %v12737_v10  ;;  %v4925_v6 = vand.u32 2147483648, %v12704_v11  ;;  %vm4934_vm15 = vweird.f32 %v12708_v41 }
0x1c7a   : > { %9348 = vrcp.f32 %v12741_v43  ;;  %v4902_v53 = vmul.f32 %v12714_v60, %v4901_v57 }
0x1c7b   : > { %v4952_v1 = vsel %vm4951_vm14, %v12691_v36, %v4948_v5  ;;  %vm4919_vm14 = vweird.f32 %v12704_v11 }
0x1c7c   : > { %v12743_v59 = vpop.eup %9342  ;;  %v12763_v54 = vsel %vm4954_vm8, %v4956_v24, %v4952_v1 }
0x1c7d   : > { %v12749_v44 = vpop.eup %9344  ;;  %v4915_v62 = vmul.f32 %v12743_v59, %v12704_v11  ;;  %vm4920_vm12 = vweird.f32 %v12743_v59 }
0x1c7e   : > { %v4930_v49 = vmul.f32 %v12749_v44, %v12708_v41  ;;  %vm4935_vm13 = vweird.f32 %v12749_v44  ;;  %vm12793_vm8 = vmor %vm4919_vm14, %vm4920_vm12  ;;  %vm4964_vm14 = vweird.f32 %v12737_v10 }
0x1c7f   : > { %v4916_v48 = vsub.f32 1.0, %v4915_v62  ;;  %v12765_v28 = vpop.eup %9346  ;;  %vm4936_vm9 = vmor %vm4934_vm15, %vm4935_vm13  ;;  %v4926_v62 = vor.u32 1.1754944e-38, %v4925_v6  ;;  %vm4979_vm15 = vweird.f32 %v12741_v43 }
0x1c80   : > { %v4931_v36 = vsub.f32 1.0, %v4930_v49  ;;  %v12770_v27 = vpop.eup %9348  ;;  %v4960_v58 = vmul.f32 %v12765_v28, %v12737_v10  ;;  %vm4965_vm12 = vweird.f32 %v12765_v28 }
0x1c81   : > { %v4917_v23 = vmul.f32 %v12743_v59, %v4916_v48  ;;  %v4975_v25 = vmul.f32 %v12770_v27, %v12741_v43  ;;  %vm4980_vm13 = vweird.f32 %v12770_v27  ;;  %v4985_v48 = vand.u32 2147483648, %v12741_v43 }
0x1c82   : > { %v4932_v45 = vmul.f32 %v12749_v44, %v4931_v36  ;;  %v4961_v0 = vsub.f32 1.0, %v4960_v58 }
0x1c83   : > { %v4918_v15 = vadd.f32 %v12743_v59, %v4917_v23  ;;  %v4976_v63 = vsub.f32 1.0, %v4975_v25 }
0x1c84   : > { %v4933_v19 = vadd.f32 %v12749_v44, %v4932_v45  ;;  %v4962_v39 = vmul.f32 %v12765_v28, %v4961_v0 }
0x1c85   : > { %v4922_v5 = vsel %vm12793_vm8, %v12743_v59, %v4918_v15  ;;  %v4977_v8 = vmul.f32 %v12770_v27, %v4976_v63  ;;  %vm4966_vm8 = vmor %vm4964_vm14, %vm4965_vm12 }
0x1c86   : > { %v4937_v57 = vsel %vm4936_vm9, %v12749_v44, %v4933_v19  ;;  %v4963_v49 = vadd.f32 %v12765_v28, %v4962_v39  ;;  %vm4981_vm9 = vmor %vm4979_vm15, %vm4980_vm13 }
0x1c87   : > { %v4978_v24 = vadd.f32 %v12770_v27, %v4977_v8 }
0x1c88   : > { %v4967_v36 = vsel %vm4966_vm8, %v12765_v28, %v4963_v49 }
0x1c89   : > { %v4982_v21 = vsel %vm4981_vm9, %v12770_v27, %v4978_v24 }
0x1c9a   : > { %v5046_v37 = vpop.permute.xlu2 %5045 }
0x1c9b   : > { %v5069_v29 = vmul.f32 %v5046_v37, %v12699_v3 }
0x1c9d   : > { %5085 = vrot.lane.b32.xlu2 %v5069_v29, %s10210_s5  ;;  %v4903_v29 = vadd.f32 %v12714_v60, %v4902_v53 }
0x1c9f   : > { %v4907_v7 = vsel %vm4906_vm10, %v12714_v60, %v4903_v29  ;;  %v4983_v29 = vand.u32 2147483647, %v12741_v43 }
0x1ca0   : > { %v12783_v42 = vsel %vm4909_vm11, %v4911_v35, %v4907_v7  ;;  %v4986_v7 = vor.u32 1.1754944e-38, %v4985_v48 }
0x1ca2   : > { %v5048_v51 = vpop.permute.xlu2 %5047 }
0x1ca3   : > { %v5070_v50 = vmul.f32 %v5048_v51, %v12734_v20  ;;  %v4940_v51 = vand.u32 2147483648, %v12708_v41 }
0x1ca5   : > { %5087 = vrot.lane.b32.xlu0 %v5070_v50, %s10210_s5  ;;  %v4923_v50 = vand.u32 2147483647, %v12704_v11  ;;  %v4941_v11 = vor.u32 1.1754944e-38, %v4940_v51 }
0x1ca6   : > { %v4119_v40 = vpop.permute.xlu0 %4118 }
0x1ca7   : > { %v4121_v30 = vmul.f32 %v4119_v40, %v12739_v14  ;;  %v4938_v40 = vand.u32 2147483647, %v12708_v41  ;;  %vm4924_vm10 = vcmp.eq.f32.partialorder %v4923_v50, 8.507059e+37 }
0x1ca8   : > { %v12807_v1 = vsel %vm4924_vm10, %v4926_v62, %v4922_v5  ;;  %v4116_v5 = vmul.f32 %v12739_v14, %v12548_v38 }
0x1ca9   : > { %4123 = vrot.lane.b32.xlu1 %v4121_v30, %s10210_s5  ;;  %vm4939_vm11 = vcmp.eq.f32.partialorder %v4938_v40, 8.507059e+37 }
0x1caa   : > { %v5056_v16 = vpop.permute.xlu2 %5055  ;;  %v12809_v53 = vsel %vm4939_vm11, %v4941_v11, %v4937_v57  ;;  %vm4984_vm11 = vcmp.eq.f32.partialorder %v4983_v29, 8.507059e+37 }
0x1cab   : > { %v5074_v37 = vmul.f32 %v5056_v16, %v12763_v54  ;;  %v4970_v16 = vand.u32 2147483648, %v12737_v10 }
0x1cad   : > { %v4971_v18 = vor.u32 1.1754944e-38, %v4970_v16 }
0x1cb1   : > { %5095 = vrot.lane.b32.xlu1 %v5074_v37, %s10210_s5  ;;  %v4968_v37 = vand.u32 2147483647, %v12737_v10  ;;  %v12829_v10 = vsel %vm4984_vm11, %v4986_v7, %v4982_v21 }
0x1cb2   : > { %v5008_v43 = vpop.permute.xlu2 %5007 }
0x1cb3   : > { %vm4969_vm10 = vcmp.eq.f32.partialorder %v4968_v37, 8.507059e+37  ;;  %v5030_v50 = vmul.f32 %v5008_v43, %v12734_v20 }
0x1cb4   : > { %v5050_v26 = vpop.permute.xlu1 %5049  ;;  %v12827_v45 = vsel %vm4969_vm10, %v4971_v18, %v4967_v36 }
0x1cb5   : > { %v5071_v60 = vmul.f32 %v5050_v26, %v12783_v42  ;;  %v5052_v30 = vpop.permute.xlu0 %5051 }
0x1cb6   : > { %v5072_v59 = vmul.f32 %v5052_v30, %v12807_v1 }
0x1cb7   : > { %5089 = vrot.lane.b32.xlu0 %v5071_v60, %s10210_s5 }
0x1cba   : > { %v5012_v28 = vpop.permute.xlu2 %5011 }
0x1cbb   : > { %v5032_v29 = vmul.f32 %v5012_v28, %v12807_v1 }
0x1cbc   : > { %v5054_v41 = vpop.permute.xlu1 %5053 }
0x1cbd   : > { %v5073_v44 = vmul.f32 %v5054_v41, %v12809_v53  ;;  %v5058_v23 = vpop.permute.xlu0 %5057 }
0x1cbe   : > { %v5075_v25 = vmul.f32 %v5058_v23, %v12827_v45 }
0x1cbf   : > { %5093 = vrot.lane.b32.xlu2 %v5073_v44, %s10210_s5  ;;  %5091 = vrot.lane.b32.xlu0 %v5072_v59, %s10210_s5 }
0x1cc2   : > { %v5014_v27 = vpop.permute.xlu2 %5013 }
0x1cc3   : > { %v5033_v48 = vmul.f32 %v5014_v27, %v12809_v53 }
0x1cc4   : > { %v5060_v58 = vpop.permute.xlu1 %5059 }
0x1cc5   : > { %v5076_v35 = vmul.f32 %v5060_v58, %v12829_v10  ;;  %v5010_v63 = vpop.permute.xlu0 %5009 }
0x1cc6   : > { %v5031_v38 = vmul.f32 %v5010_v63, %v12783_v42 }
0x1cc7   : > { %5099 = vrot.lane.b32.xlu0 %v5076_v35, %s10210_s5  ;;  %5097 = vrot.lane.b32.xlu2 %v5075_v25, %s10210_s5 }
0x1ccc   : > { %v5006_v26 = vpop.permute.xlu1 %5005 }
0x1ccd   : > { %v5029_v15 = vmul.f32 %v5006_v26, %v12699_v3  ;;  %v5020_v51 = vpop.permute.xlu0 %5019 }
0x1cce   : > { %v5036_v25 = vmul.f32 %v5020_v51, %v12829_v10 }
0x1cd4   : > { %v5016_v6 = vpop.permute.xlu1 %5015 }
0x1cd5   : > { %v5034_v62 = vmul.f32 %v5016_v6, %v12763_v54 }
0x1cdc   : > { %v5018_v31 = vpop.permute.xlu1 %5017 }
0x1cdd   : > { %v5035_v7 = vmul.f32 %v5018_v31, %v12827_v45 }
0x1cf7   : > { %v5086_v60 = vpop.permute.xlu2 %5085 }
0x1cf8   : > { %v12836_v19 = vadd.f32 %v5086_v60, %v5029_v15 }
0x1cfa   : > { %9350 = vtanh.f32 %v12836_v19 }
0x1d00   : > { %v9351_v0 = vpop.eup %9350 }
0x1d01   : > { %5133 = vrot.lane.b32.xlu1 %v9351_v0, %s10208_s20 }
0x1d17   : > { %v5088_v40 = vpop.permute.xlu0 %5087 }
0x1d18   : > { %v12841_v30 = vadd.f32 %v5088_v40, %v5030_v50 }
0x1d19   : > { %v5094_v49 = vpop.permute.xlu2 %5093 }
0x1d1a   : > { %9352 = vtanh.f32 %v12841_v30  ;;  %v12861_v37 = vadd.f32 %v5094_v49, %v5033_v48 }
0x1d1b   : > { %v4124_v57 = vpop.permute.xlu1 %4123 }
0x1d1c   : > { %v12846_v39 = vadd.f32 %v4124_v57, %v4116_v5 }
0x1d1e   : > { %9354 = vtanh.f32 %v12846_v39 }
0x1d20   : > { %v9353_v8 = vpop.eup %9352 }
0x1d21   : > { %5135 = vrot.lane.b32.xlu1 %v9353_v8, %s10208_s20  ;;  %v5098_v23 = vpop.permute.xlu2 %5097 }
0x1d22   : > { %v12870_v58 = vadd.f32 %v5098_v23, %v5035_v7 }
0x1d23   : > { %v5096_v11 = vpop.permute.xlu1 %5095 }
0x1d24   : > { %v12851_v41 = vadd.f32 %v5096_v11, %v5034_v62  ;;  %v9355_v59 = vpop.eup %9354 }
0x1d25   : > { %4129 = vrot.lane.b32.xlu2 %v9355_v59, %s10208_s20 }
0x1d26   : > { %9356 = vtanh.f32 %v12851_v41 }
0x1d29   : > { %v5090_v44 = vpop.permute.xlu0 %5089 }
0x1d2a   : > { %v12856_v24 = vadd.f32 %v5090_v44, %v5031_v38 }
0x1d2c   : > { %v9357_v16 = vpop.eup %9356  ;;  %9358 = vtanh.f32 %v12856_v24 }
0x1d2d   : > { %5143 = vrot.lane.b32.xlu1 %v9357_v16, %s10208_s20  ;;  %9360 = vtanh.f32 %v12861_v37 }
0x1d31   : > { %v5092_v36 = vpop.permute.xlu0 %5091 }
0x1d32   : > { %v9359_v21 = vpop.eup %9358  ;;  %v12864_v18 = vadd.f32 %v5092_v36, %v5032_v29 }
0x1d33   : > { %5137 = vrot.lane.b32.xlu0 %v9359_v21, %s10208_s20  ;;  %v9361_v35 = vpop.eup %9360 }
0x1d34   : > { %9362 = vtanh.f32 %v12864_v18 }
0x1d35   : > { %9364 = vtanh.f32 %v12870_v58 }
0x1d39   : > { %v5100_v43 = vpop.permute.xlu0 %5099 }
0x1d3a   : > { %v9363_v28 = vpop.eup %9362  ;;  %v12873_v27 = vadd.f32 %v5100_v43, %v5036_v25  ;;  %v12935_v43 = vld [vmem:[%s14898_s6] ss:$0 sm:$0xff] }
0x1d3b   : > { %5141 = vrot.lane.b32.xlu0 %v9361_v35, %s10208_s20  ;;  %5139 = vrot.lane.b32.xlu2 %v9363_v28, %s10208_s20  ;;  %v9365_v26 = vpop.eup %9364 }
0x1d3c   : > { %9366 = vtanh.f32 %v12873_v27 }
0x1d42   : > { %v9367_v15 = vpop.eup %9366 }
0x1d43   : > { %5147 = vrot.lane.b32.xlu0 %v9367_v15, %s10208_s20  ;;  %5145 = vrot.lane.b32.xlu2 %v9365_v26, %s10208_s20 }
0x1d73   : > { %v5134_v60 = vpop.permute.xlu1 %5133 }
0x1d74   : > { %v5157_v0 = vmul.f32 %v5134_v60, %v12699_v3 }
0x1d76   : > { %v12883_v63 = vadd.f32 %v5157_v0, %v12464_v12 }
0x1d7f   : > { %v4130_v6 = vpop.permute.xlu2 %4129 }
0x1d80   : > { %v12886_v51 = vmul.f32 %v4130_v6, %v12739_v14 }
0x1d82   : > { %4178 = vrot.lane.b32.xlu1 %v12886_v51, %s10210_s5 }
0x1d93   : > { %v5136_v31 = vpop.permute.xlu1 %5135 }
0x1d94   : > { %v5158_v50 = vmul.f32 %v5136_v31, %v12734_v20 }
0x1d95   : > { %v5140_v40 = vpop.permute.xlu2 %5139 }
0x1d96   : > { %v12892_v5 = vadd.f32 %v5158_v50, %v12458_v52  ;;  %v5160_v57 = vmul.f32 %v5140_v40, %v12807_v1  ;;  %v5174_v40 = vld [vmem:[%s10492_s15 + $0xa] sm:$0x1] }
0x1d98   : > { %v12896_v3 = vadd.f32 %v5160_v57, %v12564_v13  ;;  %v5189_v13 = vrot.slane %v5158_v50, 7 }
0x1d9d   : > { %v5146_v12 = vpop.permute.xlu2 %5145 }
0x1d9e   : > { %v5163_v8 = vmul.f32 %v5146_v12, %v12827_v45  ;;  %v5190_v45 = vsel %vm898_vm0, %v5189_v13, %v5157_v0  ;;  %v5177_v12 = vld [vmem:[%s10492_s15 + $0x22] sm:$0x1] }
0x1d9f   : > { %v5144_v14 = vpop.permute.xlu1 %5143 }
0x1da0   : > { %v5162_v62 = vmul.f32 %v5144_v14, %v12763_v54  ;;  %v12901_v11 = vadd.f32 %v5163_v8, %v12579_v17  ;;  %v5193_v17 = vrot.slane %v5160_v57, 5  ;;  %v5199_v23 = vrot.slane %v5163_v8, 2  ;;  %v5179_v14 = vld [vmem:[%s10492_s15 + $0x32] sm:$0x1] }
0x1da2   : > { %v12904_v20 = vadd.f32 %v5162_v62, %v12470_v61 }
0x1da5   : > { %v5138_v59 = vpop.permute.xlu0 %5137 }
0x1da6   : > { %v5159_v52 = vmul.f32 %v5138_v59, %v12783_v42 }
0x1da8   : > { %v12908_v1 = vadd.f32 %v5159_v52, %v12544_v47  ;;  %v5191_v38 = vrot.slane %v5159_v52, 6  ;;  %v5197_v47 = vrot.slane %v5162_v62, 3 }
0x1daa   : > { %v5192_v54 = vsel %vm901_vm1, %v5191_v38, %v5190_v45 }
0x1dab   : > { %v5194_v48 = vsel %vm904_vm2, %v5193_v17, %v5192_v54  ;;  %v5180_v17 = vld [vmem:[%s10492_s15 + $0x3a] sm:$0x1] }
0x1dad   : > { %v5142_v44 = vpop.permute.xlu0 %5141 }
0x1dae   : > { %v5161_v49 = vmul.f32 %v5142_v44, %v12809_v53 }
0x1db0   : > { %v12914_v16 = vadd.f32 %v5161_v49, %v12551_v4  ;;  %v5195_v61 = vrot.slane %v5161_v49, 4  ;;  %v5178_v49 = vld [vmem:[%s10492_s15 + $0x2a] sm:$0x1] }
0x1db2   : > { %v5196_v42 = vsel %vm907_vm3, %v5195_v61, %v5194_v48 }
0x1db3   : > { %v5198_v21 = vsel %vm910_vm4, %v5197_v47, %v5196_v42 }
0x1db4   : > { %v5200_v25 = vsel %vm913_vm5, %v5199_v23, %v5198_v21 }
0x1db5   : > { %v5148_v29 = vpop.permute.xlu0 %5147 }
0x1db6   : > { %v5164_v36 = vmul.f32 %v5148_v29, %v12829_v10 }
0x1db8   : > { %v12921_v53 = vadd.f32 %v5164_v36, %v12557_v46  ;;  %v5201_v7 = vrot.slane %v5164_v36, 1 }
0x1dba   : > { %v5202_v4 = vsel %vm916_vm6, %v5201_v7, %v5200_v25 }
0x1dbb   : > { %5203 = vrot.lane.b32.xlu2 %v5202_v4, %s10210_s5 }
0x1df4   : > { %v4179_v35 = vpop.permute.xlu1 %4178 }
0x1df5   : > { %8461 = vmatmul.msk.f32.vlgmr.msrb.gmra.mxu0 %vm920_vm7, %v4179_v35 }
0x1df6   : > { %6747 = vmatpush.msrb.mxu0 %v12585_v22 }
0x1df8   : > { %6748 = vmatpush.msrb.mxu0 %v12587_v9  ;;  %v5173_v9 = vld [vmem:[%s10492_s15 + $0x2] sm:$0x1] }
0x1dfa   : > { %6749 = vmatpush.msrb.mxu0 %v12591_v2  ;;  %v5175_v2 = vld [vmem:[%s10492_s15 + $0x12] sm:$0x1] }
0x1dfc   : > { %6750 = vmatpush.msrb.mxu0 %v12597_v55  ;;  %v5176_v55 = vld [vmem:[%s10492_s15 + $0x1a] sm:$0x1] }
0x1e15   : > { %v5204_v46 = vpop.permute.xlu2 %5203 }
0x1e16   : > { %8484 = vmatmul.msk.f32.vlgmr.msra.gmra.mxu0 %vm920_vm7, %v5204_v46 }
0x1e72   : > { %v4199_v10 = vpop.f32.mrf.mxu0 }
0x1e73   : > { %v4200_v28 = vadd.f32 %v12935_v43, %v4199_v10 }
0x1e75   : > { %9368 = vtanh.f32 %v4200_v28  ;;  %v8462_v23 = vmul.f32 -1.442695, %v4200_v28 }
0x1e7b   : > { %v9369_v22 = vpop.eup %9368 }
0x1e7c   : > { %4224 = vrot.lane.b32.xlu1 %v9369_v22, %s10208_s20 }
0x1e93   : > { %v5224_v26 = vpop.f32.mrf.mxu0 }
0x1e94   : > { %v5229_v15 = vrot.slane %v5224_v26, 2  ;;  %v5230_v60 = vrot.slane %v5224_v26, 3  ;;  %v5243_v0 = vadd.f32 %v5224_v26, %v5173_v9  ;;  %v5228_v50 = vrot.slane %v5224_v26, 1 }
0x1e95   : > { %v5231_v57 = vrot.slane %v5224_v26, 4  ;;  %v5233_v8 = vrot.slane %v5224_v26, 6  ;;  %v5232_v44 = vrot.slane %v5224_v26, 5  ;;  %v5234_v54 = vrot.slane %v5224_v26, 7 }
0x1e96   : > { %v5245_v6 = vadd.f32 %v5229_v15, %v5175_v2  ;;  %v12942_v31 = vadd.f32 %v5230_v60, %v5176_v55  ;;  %9370 = vtanh.f32 %v5243_v0  ;;  %v12948_v62 = vadd.f32 %v5228_v50, %v5174_v40 }
0x1e97   : > { %v5247_v52 = vadd.f32 %v5231_v57, %v5177_v12  ;;  %v12950_v13 = vadd.f32 %v5233_v8, %v5179_v14  ;;  %v12959_v61 = vadd.f32 %v5232_v44, %v5178_v49  ;;  %v5250_v42 = vadd.f32 %v5234_v54, %v5180_v17 }
0x1e98   : > { %9372 = vtanh.f32 %v5245_v6  ;;  %v8487_v4 = vmul.f32 -1.442695, %v5245_v6  ;;  %v8485_v28 = vmul.f32 -1.442695, %v5243_v0  ;;  %v8488_v6 = vmul.f32 -1.442695, %v12942_v31 }
0x1e99   : > { %9374 = vtanh.f32 %v12942_v31  ;;  %v8489_v35 = vmul.f32 -1.442695, %v5247_v52  ;;  %v8492_v2 = vmul.f32 -1.442695, %v5250_v42  ;;  %v8486_v44 = vmul.f32 -1.442695, %v12948_v62 }
0x1e9a   : > { %9376 = vtanh.f32 %v12948_v62 }
0x1e9b   : > { %9378 = vtanh.f32 %v5247_v52 }
0x1e9c   : > { %v9371_v59 = vpop.eup %9370  ;;  %9380 = vtanh.f32 %v12950_v13 }
0x1e9d   : > { %5427 = vrot.lane.b32.xlu0 %v9371_v59, %s10208_s20  ;;  %9382 = vtanh.f32 %v12959_v61 }
0x1e9e   : > { %v9373_v38 = vpop.eup %9372  ;;  %9384 = vtanh.f32 %v5250_v42 }
0x1e9f   : > { %v9375_v45 = vpop.eup %9374  ;;  %5431 = vrot.lane.b32.xlu2 %v9373_v38, %s10208_s20  ;;  %9386 = vpow2.f32 %v8462_v23 }
0x1ea0   : > { %5433 = vrot.lane.b32.xlu1 %v9375_v45, %s10208_s20  ;;  %v9377_v48 = vpop.eup %9376 }
0x1ea1   : > { %v9379_v47 = vpop.eup %9378 }
0x1ea2   : > { %v9381_v29 = vpop.eup %9380 }
0x1ea3   : > { %v9383_v36 = vpop.eup %9382 }
0x1ea4   : > { %v9385_v21 = vpop.eup %9384 }
0x1ea5   : > { %5429 = vrot.lane.b32.xlu0 %v9377_v48, %s10208_s20  ;;  %v9387_v7 = vpop.eup %9386  ;;  %v8491_v48 = vmul.f32 -1.442695, %v12950_v13 }
0x1ea6   : > { %v4205_v25 = vadd.f32 1.0, %v9387_v7 }
0x1ea7   : > { %5435 = vrot.lane.b32.xlu2 %v9379_v47, %s10208_s20 }
0x1ea8   : > { %5439 = vrot.lane.b32.xlu1 %v9381_v29, %s10208_s20  ;;  %9388 = vrcp.f32 %v4205_v25  ;;  %v4217_v12 = vand.u32 2147483648, %v4205_v25  ;;  %vm4211_vm13 = vweird.f32 %v4205_v25  ;;  %v4215_v14 = vand.u32 2147483647, %v4205_v25 }
0x1ea9   : > { %9390 = vpow2.f32 %v8487_v4 }
0x1eaa   : > { %9392 = vpow2.f32 %v8489_v35  ;;  %v4218_v38 = vor.u32 1.1754944e-38, %v4217_v12  ;;  %vm4216_vm8 = vcmp.eq.f32.partialorder %v4215_v14, 8.507059e+37 }
0x1ead   : > { %5437 = vrot.lane.b32.xlu0 %v9383_v36, %s10208_s20  ;;  %v8490_v36 = vmul.f32 -1.442695, %v12959_v61 }
0x1eae   : > { %v9389_v46 = vpop.eup %9388 }
0x1eaf   : > { %5441 = vrot.lane.b32.xlu2 %v9385_v21, %s10208_s20  ;;  %v9391_v10 = vpop.eup %9390  ;;  %v4207_v22 = vmul.f32 %v9389_v46, %v4205_v25  ;;  %vm4212_vm12 = vweird.f32 %v9389_v46 }
0x1eb0   : > { %v5277_v9 = vadd.f32 1.0, %v9391_v10  ;;  %v9393_v26 = vpop.eup %9392  ;;  %vm4213_vm14 = vmor %vm4211_vm13, %vm4212_vm12 }
0x1eb1   : > { %v4208_v55 = vsub.f32 1.0, %v4207_v22  ;;  %v12967_v60 = vadd.f32 1.0, %v9393_v26 }
0x1eb2   : > { %9394 = vrcp.f32 %v5277_v9  ;;  %v5324_v13 = vand.u32 2147483648, %v5277_v9  ;;  %vm5318_vm9 = vweird.f32 %v5277_v9  ;;  %v5322_v35 = vand.u32 2147483647, %v5277_v9 }
0x1eb3   : > { %9396 = vpow2.f32 %v8492_v2  ;;  %v4209_v15 = vmul.f32 %v9389_v46, %v4208_v55  ;;  %v5354_v12 = vand.u32 2147483648, %v12967_v60  ;;  %vm5348_vm13 = vweird.f32 %v12967_v60 }
0x1eb4   : > { %9398 = vrcp.f32 %v12967_v60  ;;  %v5325_v2 = vor.u32 1.1754944e-38, %v5324_v13  ;;  %vm5323_vm11 = vcmp.eq.f32.partialorder %v5322_v35, 8.507059e+37  ;;  %v5352_v14 = vand.u32 2147483647, %v12967_v60 }
0x1eb5   : > { %v4210_v40 = vadd.f32 %v9389_v46, %v4209_v15  ;;  %9400 = vpow2.f32 %v8485_v28 }
0x1eb6   : > { %9402 = vpow2.f32 %v8488_v6 }
0x1eb7   : > { %v4214_v59 = vsel %vm4213_vm14, %v9389_v46, %v4210_v40 }
0x1eb8   : > { %v9395_v50 = vpop.eup %9394  ;;  %v12976_v54 = vsel %vm4216_vm8, %v4218_v38, %v4214_v59  ;;  %vm5353_vm8 = vcmp.eq.f32.partialorder %v5352_v14, 8.507059e+37 }
0x1eb9   : > { %v9397_v57 = vpop.eup %9396  ;;  %v5314_v8 = vmul.f32 %v9395_v50, %v5277_v9  ;;  %vm5319_vm15 = vweird.f32 %v9395_v50 }
0x1eba   : > { %v12971_v52 = vadd.f32 1.0, %v9397_v57  ;;  %v12974_v45 = vpop.eup %9398  ;;  %vm5320_vm10 = vmor %vm5318_vm9, %vm5319_vm15 }
0x1ebb   : > { %v5315_v0 = vsub.f32 1.0, %v5314_v8  ;;  %v9401_v49 = vpop.eup %9400  ;;  %v5344_v47 = vmul.f32 %v12974_v45, %v12967_v60  ;;  %vm5349_vm12 = vweird.f32 %v12974_v45 }
0x1ebc   : > { %9404 = vrcp.f32 %v12971_v52  ;;  %v9403_v29 = vpop.eup %9402  ;;  %v12984_v62 = vadd.f32 1.0, %v9401_v49  ;;  %vm5350_vm14 = vmor %vm5348_vm13, %vm5349_vm12  ;;  %vm5393_vm9 = vweird.f32 %v12971_v52 }
0x1ebd   : > { %v5316_v42 = vmul.f32 %v9395_v50, %v5315_v0  ;;  %9406 = vpow2.f32 %v8486_v44  ;;  %v5345_v23 = vsub.f32 1.0, %v5344_v47  ;;  %v12987_v7 = vadd.f32 1.0, %v9403_v29 }
0x1ebe   : > { %9408 = vpow2.f32 %v8491_v48  ;;  %v5355_v44 = vor.u32 1.1754944e-38, %v5354_v12  ;;  %v5399_v29 = vand.u32 2147483648, %v12971_v52  ;;  %vm5288_vm13 = vweird.f32 %v12984_v62 }
0x1ebf   : > { %v5317_v21 = vadd.f32 %v9395_v50, %v5316_v42  ;;  %9410 = vrcp.f32 %v12984_v62  ;;  %v5346_v10 = vmul.f32 %v12974_v45, %v5345_v23  ;;  %v5397_v23 = vand.u32 2147483647, %v12971_v52 }
0x1ec0   : > { %9412 = vpow2.f32 %v8490_v36  ;;  %v5339_v14 = vand.u32 2147483648, %v12987_v7 }
0x1ec1   : > { %v5321_v46 = vsel %vm5320_vm10, %v9395_v50, %v5317_v21  ;;  %9414 = vrcp.f32 %v12987_v7  ;;  %v5347_v50 = vadd.f32 %v12974_v45, %v5346_v10 }
0x1ec2   : > { %v12989_v25 = vpop.eup %9404  ;;  %v13000_v28 = vsel %vm5323_vm11, %v5325_v2, %v5321_v46  ;;  %v5400_v46 = vor.u32 1.1754944e-38, %v5399_v29  ;;  %vm5398_vm11 = vcmp.eq.f32.partialorder %v5397_v23, 8.507059e+37 }
0x1ec3   : > { %v9407_v4 = vpop.eup %9406  ;;  %v5389_v61 = vmul.f32 %v12989_v25, %v12971_v52  ;;  %v5351_v38 = vsel %vm5350_vm14, %v12974_v45, %v5347_v50  ;;  %vm5394_vm15 = vweird.f32 %v12989_v25  ;;  %v5294_v50 = vand.u32 2147483648, %v12984_v62 }
0x1ec4   : > { %v9409_v22 = vpop.eup %9408  ;;  %v12996_v55 = vadd.f32 1.0, %v9407_v4  ;;  %v13025_v60 = vsel %vm5353_vm8, %v5355_v44, %v5351_v38  ;;  %vm5395_vm10 = vmor %vm5393_vm9, %vm5394_vm15  ;;  %vm5333_vm15 = vweird.f32 %v12987_v7 }
0x1ec5   : > { %v12998_v26 = vpop.eup %9410  ;;  %v5390_v40 = vsub.f32 1.0, %v5389_v61  ;;  %v13005_v6 = vadd.f32 1.0, %v9409_v22  ;;  %v5295_v44 = vor.u32 1.1754944e-38, %v5294_v50 }
0x1ec6   : > { %v9413_v57 = vpop.eup %9412  ;;  %9416 = vrcp.f32 %v12996_v55  ;;  %v5284_v59 = vmul.f32 %v12998_v26, %v12984_v62  ;;  %vm5289_vm12 = vweird.f32 %v12998_v26 }
0x1ec7   : > { %v13009_v8 = vpop.eup %9414  ;;  %v5391_v0 = vmul.f32 %v12989_v25, %v5390_v40  ;;  %9418 = vrcp.f32 %v13005_v6  ;;  %v5292_v40 = vand.u32 2147483647, %v12984_v62  ;;  %vm13054_vm14 = vmor %vm5288_vm13, %vm5289_vm12  ;;  %vm5303_vm13 = vweird.f32 %v12996_v55 }
0x1ec8   : > { %v5329_v49 = vmul.f32 %v13009_v8, %v12987_v7  ;;  %vm5334_vm8 = vweird.f32 %v13009_v8 }
0x1ec9   : > { %v5392_v45 = vadd.f32 %v12989_v25, %v5391_v0  ;;  %vm5293_vm9 = vcmp.eq.f32.partialorder %v5292_v40, 8.507059e+37 }
0x1eca   : > { %v5330_v36 = vsub.f32 1.0, %v5329_v49  ;;  %v5337_v49 = vand.u32 2147483647, %v12987_v7  ;;  %v5309_v7 = vand.u32 2147483648, %v12996_v55 }
0x1ecb   : > { %v5396_v35 = vsel %vm5395_vm10, %v12989_v25, %v5392_v45  ;;  %vm5335_vm10 = vmor %vm5333_vm15, %vm5334_vm8  ;;  %v5340_v45 = vor.u32 1.1754944e-38, %v5339_v14  ;;  %vm5378_vm15 = vweird.f32 %v13005_v6 }
0x1ecc   : > { %v13023_v48 = vpop.eup %9416  ;;  %v5331_v10 = vmul.f32 %v13009_v8, %v5330_v36  ;;  %vm5338_vm12 = vcmp.eq.f32.partialorder %v5337_v49, 8.507059e+37 }
0x1ecd   : > { %v13032_v21 = vpop.eup %9418  ;;  %v5299_v4 = vmul.f32 %v13023_v48, %v12996_v55 }
0x1ece   : > { %v5374_v61 = vmul.f32 %v13032_v21, %v13005_v6  ;;  %v5332_v12 = vadd.f32 %v13009_v8, %v5331_v10  ;;  %vm5379_vm8 = vweird.f32 %v13032_v21 }
0x1ecf   : > { %v5300_v52 = vsub.f32 1.0, %v5299_v4 }
0x1ed1   : > { %v5301_v0 = vmul.f32 %v13023_v48, %v5300_v52  ;;  %v5310_v52 = vor.u32 1.1754944e-38, %v5309_v7 }
0x1ed3   : > { %v5302_v36 = vadd.f32 %v13023_v48, %v5301_v0 }
0x1eee   : > { %v4225_v31 = vpop.permute.xlu1 %4224 }
0x1eef   : > { %v4227_v17 = vmul.f32 %v4225_v31, %v12976_v54  ;;  %v13021_v31 = vadd.f32 1.0, %v9413_v57 }
0x1ef1   : > { %4229 = vrot.lane.b32.xlu1 %v4227_v17, %s10210_s5  ;;  %v5285_v17 = vsub.f32 1.0, %v5284_v59  ;;  %9420 = vrcp.f32 %v13021_v31  ;;  %v5375_v59 = vsub.f32 1.0, %v5374_v61  ;;  %v5384_v61 = vand.u32 2147483648, %v13005_v6 }
0x1ef3   : > { %v5286_v13 = vmul.f32 %v12998_v26, %v5285_v17  ;;  %v5385_v40 = vor.u32 1.1754944e-38, %v5384_v61 }
0x1ef5   : > { %v5287_v22 = vadd.f32 %v12998_v26, %v5286_v13 }
0x1ef7   : > { %v13046_v2 = vpop.eup %9420  ;;  %v5291_v38 = vsel %vm13054_vm14, %v12998_v26, %v5287_v22  ;;  %v5376_v26 = vmul.f32 %v13032_v21, %v5375_v59  ;;  %v5367_v59 = vand.u32 2147483647, %v13021_v31 }
0x1ef8   : > { %v5359_v62 = vmul.f32 %v13046_v2, %v13021_v31 }
0x1ef9   : > { %v5432_v15 = vpop.permute.xlu2 %5431 }
0x1efa   : > { %v5453_v9 = vmul.f32 %v5432_v15, %v13000_v28  ;;  %v13048_v15 = vsel %vm5398_vm11, %v5400_v46, %v5396_v35  ;;  %vm5304_vm11 = vweird.f32 %v13023_v48  ;;  %v5360_v23 = vsub.f32 1.0, %v5359_v62 }
0x1efb   : > { %vm5305_vm14 = vmor %vm5303_vm13, %vm5304_vm11  ;;  %v5377_v46 = vadd.f32 %v13032_v21, %v5376_v26  ;;  %vm5364_vm11 = vweird.f32 %v13046_v2  ;;  %vm5363_vm13 = vweird.f32 %v13021_v31  ;;  %v5418_v7 = vmul.f32 %v13048_v15, %v12873_v27 }
0x1efc   : > { %5471 = vrot.lane.b32.xlu2 %v5453_v9, %s10210_s5  ;;  %v5306_v10 = vsel %vm5305_vm14, %v13023_v48, %v5302_v36  ;;  %v5361_v22 = vmul.f32 %v13046_v2, %v5360_v23  ;;  %vm5365_vm14 = vmor %vm5363_vm13, %vm5364_vm11  ;;  %v4222_v36 = vmul.f32 %v12976_v54, %v12846_v39 }
0x1efe   : > { %v5362_v57 = vadd.f32 %v13046_v2, %v5361_v22 }
0x1f01   : > { %v5436_v42 = vpop.permute.xlu2 %5435 }
0x1f02   : > { %v5455_v47 = vmul.f32 %v5436_v42, %v13025_v60  ;;  %v13070_v42 = vsel %vm5293_vm9, %v5295_v44, %v5291_v38  ;;  %v5366_v38 = vsel %vm5365_vm14, %v13046_v2, %v5362_v57  ;;  %v5415_v2 = vmul.f32 %v13025_v60, %v12861_v37 }
0x1f04   : > { %5475 = vrot.lane.b32.xlu2 %v5455_v47, %s10210_s5  ;;  %v5336_v47 = vsel %vm5335_vm10, %v13009_v8, %v5332_v12  ;;  %v5307_v8 = vand.u32 2147483647, %v12996_v55  ;;  %v5382_v55 = vand.u32 2147483647, %v13005_v6  ;;  %vm5380_vm10 = vmor %vm5378_vm15, %vm5379_vm8  ;;  %v5369_v12 = vand.u32 2147483648, %v13021_v31 }
0x1f05   : > { %v13078_v4 = vsel %vm5338_vm12, %v5340_v45, %v5336_v47  ;;  %vm5368_vm8 = vcmp.eq.f32.partialorder %v5367_v59, 8.507059e+37 }
0x1f06   : > { %vm5308_vm9 = vcmp.eq.f32.partialorder %v5307_v8, 8.507059e+37  ;;  %vm5383_vm12 = vcmp.eq.f32.partialorder %v5382_v55, 8.507059e+37  ;;  %v5370_v0 = vor.u32 1.1754944e-38, %v5369_v12  ;;  %v5414_v27 = vmul.f32 %v13078_v4, %v12864_v18 }
0x1f07   : > { %v13092_v50 = vsel %vm5308_vm9, %v5310_v52, %v5306_v10 }
0x1f08   : > { %v13107_v62 = vsel %vm5368_vm8, %v5370_v0, %v5366_v38  ;;  %v5412_v55 = vmul.f32 %v13092_v50, %v12841_v30 }
0x1f09   : > { %v5442_v9 = vpop.permute.xlu2 %5441  ;;  %v5416_v30 = vmul.f32 %v13107_v62, %v12851_v41 }
0x1f0a   : > { %v5458_v25 = vmul.f32 %v5442_v9, %v13048_v15 }
0x1f0c   : > { %5481 = vrot.lane.b32.xlu2 %v5458_v25, %s10210_s5  ;;  %v5381_v25 = vsel %vm5380_vm10, %v13032_v21, %v5377_v46  ;;  %v5411_v46 = vmul.f32 %v13070_v42, %v12836_v19 }
0x1f0d   : > { %v13099_v14 = vsel %vm5383_vm12, %v5385_v40, %v5381_v25 }
0x1f0e   : > { %v5417_v19 = vmul.f32 %v13099_v14, %v12870_v58 }
0x1f0f   : > { %v5428_v17 = vpop.permute.xlu0 %5427 }
0x1f10   : > { %v5451_v29 = vmul.f32 %v5428_v17, %v13070_v42  ;;  %v5413_v17 = vmul.f32 %v13000_v28, %v12856_v24 }
0x1f12   : > { %v5434_v13 = vpop.permute.xlu1 %5433  ;;  %5467 = vrot.lane.b32.xlu0 %v5451_v29, %s10210_s5 }
0x1f13   : > { %v5454_v35 = vmul.f32 %v5434_v13, %v13078_v4 }
0x1f15   : > { %5473 = vrot.lane.b32.xlu1 %v5454_v35, %s10210_s5 }
0x1f17   : > { %v5430_v9 = vpop.permute.xlu0 %5429 }
0x1f18   : > { %v5452_v48 = vmul.f32 %v5430_v9, %v13092_v50 }
0x1f1a   : > { %v5440_v6 = vpop.permute.xlu1 %5439  ;;  %5469 = vrot.lane.b32.xlu0 %v5452_v48, %s10210_s5 }
0x1f1b   : > { %v5457_v21 = vmul.f32 %v5440_v6, %v13099_v14 }
0x1f1d   : > { %5479 = vrot.lane.b32.xlu1 %v5457_v21, %s10210_s5 }
0x1f1f   : > { %v5438_v44 = vpop.permute.xlu0 %5437 }
0x1f20   : > { %v5456_v49 = vmul.f32 %v5438_v44, %v13107_v62 }
0x1f22   : > { %5477 = vrot.lane.b32.xlu0 %v5456_v49, %s10210_s5 }
0x1f56   : > { %v5472_v31 = vpop.permute.xlu2 %5471 }
0x1f57   : > { %v13113_v47 = vadd.f32 %v5472_v31, %v5413_v17 }
0x1f59   : > { %9422 = vtanh.f32 %v13113_v47 }
0x1f5e   : > { %v5476_v45 = vpop.permute.xlu2 %5475 }
0x1f5f   : > { %v9423_v26 = vpop.eup %9422  ;;  %v13118_v29 = vadd.f32 %v5476_v45, %v5415_v2 }
0x1f60   : > { %5519 = vrot.lane.b32.xlu2 %v9423_v26, %s10208_s20 }
0x1f61   : > { %9424 = vtanh.f32 %v13118_v29 }
0x1f63   : > { %v4230_v24 = vpop.permute.xlu1 %4229 }
0x1f64   : > { %v13124_v23 = vadd.f32 %v4230_v24, %v4222_v36 }
0x1f66   : > { %9426 = vtanh.f32 %v13124_v23  ;;  %v5482_v37 = vpop.permute.xlu2 %5481 }
0x1f67   : > { %v9425_v13 = vpop.eup %9424  ;;  %v13129_v8 = vadd.f32 %v5482_v37, %v5418_v7 }
0x1f68   : > { %5523 = vrot.lane.b32.xlu2 %v9425_v13, %s10208_s20 }
0x1f69   : > { %9428 = vtanh.f32 %v13129_v8 }
0x1f6c   : > { %v9427_v35 = vpop.eup %9426 }
0x1f6d   : > { %4235 = vrot.lane.b32.xlu1 %v9427_v35, %s10208_s20 }
0x1f6f   : > { %v9429_v39 = vpop.eup %9428 }
0x1f70   : > { %5529 = vrot.lane.b32.xlu2 %v9429_v39, %s10208_s20 }
0x1f84   : > { %v5468_v10 = vpop.permute.xlu0 %5467 }
0x1f85   : > { %v13137_v61 = vadd.f32 %v5468_v10, %v5411_v46 }
0x1f87   : > { %9430 = vtanh.f32 %v13137_v61  ;;  %v5474_v22 = vpop.permute.xlu1 %5473 }
0x1f88   : > { %v13142_v52 = vadd.f32 %v5474_v22, %v5414_v27 }
0x1f8a   : > { %9432 = vtanh.f32 %v13142_v52 }
0x1f8c   : > { %v5470_v9 = vpop.permute.xlu0 %5469 }
0x1f8d   : > { %v9431_v25 = vpop.eup %9430  ;;  %v13147_v48 = vadd.f32 %v5470_v9, %v5412_v55 }
0x1f8e   : > { %5515 = vrot.lane.b32.xlu0 %v9431_v25, %s10208_s20 }
0x1f8f   : > { %9434 = vtanh.f32 %v13147_v48  ;;  %v5480_v18 = vpop.permute.xlu1 %5479 }
0x1f90   : > { %v9433_v40 = vpop.eup %9432  ;;  %v13153_v57 = vadd.f32 %v5480_v18, %v5417_v19  ;;  %v9841_v18 = vld [vmem:[#allocation10 + $0x18] sm:$0xff] }
0x1f91   : > { %5521 = vrot.lane.b32.xlu1 %v9433_v40, %s10208_s20  ;;  %v9843_v40 = vld [vmem:[#allocation10 + $0x8] sm:$0xff] }
0x1f92   : > { %9436 = vtanh.f32 %v13153_v57 }
0x1f94   : > { %v5478_v12 = vpop.permute.xlu0 %5477 }
0x1f95   : > { %v9435_v6 = vpop.eup %9434  ;;  %v13159_v59 = vadd.f32 %v5478_v12, %v5416_v30  ;;  %v9844_v30 = vld [vmem:[#allocation10] sm:$0xff] }
0x1f96   : > { %5517 = vrot.lane.b32.xlu0 %v9435_v6, %s10208_s20 }
0x1f97   : > { %9438 = vtanh.f32 %v13159_v59 }
0x1f98   : > { %v9437_v58 = vpop.eup %9436 }
0x1f99   : > { %5527 = vrot.lane.b32.xlu1 %v9437_v58, %s10208_s20 }
0x1f9d   : > { %v9439_v21 = vpop.eup %9438 }
0x1f9e   : > { %5525 = vrot.lane.b32.xlu0 %v9439_v21, %s10208_s20 }
0x1fba   : > { %v5520_v38 = vpop.permute.xlu2 %5519 }
0x1fbb   : > { %v5541_v0 = vmul.f32 %v5520_v38, %v13000_v28  ;;  %v5555_v38 = vld [vmem:[%s10492_s15 + $0x3] sm:$0x1] }
0x1fbd   : > { %v13167_v44 = vadd.f32 %v5541_v0, %v12908_v1  ;;  %v5573_v35 = vrot.slane %v5541_v0, 6  ;;  %v5557_v0 = vld [vmem:[%s10492_s15 + $0x13] sm:$0x1] }
0x1fc2   : > { %v5524_v41 = vpop.permute.xlu2 %5523 }
0x1fc3   : > { %v5543_v49 = vmul.f32 %v5524_v41, %v13025_v60  ;;  %v5558_v41 = vld [vmem:[%s10492_s15 + $0x1b] sm:$0x1] }
0x1fc5   : > { %v13171_v17 = vadd.f32 %v5543_v49, %v12914_v16 }
0x1fca   : > { %v5530_v31 = vpop.permute.xlu2 %5529 }
0x1fcb   : > { %v5546_v2 = vmul.f32 %v5530_v31, %v13048_v15 }
0x1fcd   : > { %v13175_v45 = vadd.f32 %v5546_v2, %v12921_v53  ;;  %v5583_v9 = vrot.slane %v5546_v2, 1 }
0x1fdf   : > { %v4236_v26 = vpop.permute.xlu1 %4235 }
0x1fe0   : > { %v13178_v36 = vmul.f32 %v4236_v26, %v12976_v54 }
0x1fe2   : > { %4284 = vrot.lane.b32.xlu0 %v13178_v36, %s10210_s5 }
0x2000   : > { %v5516_v1 = vpop.permute.xlu0 %5515 }
0x2001   : > { %v5539_v28 = vmul.f32 %v5516_v1, %v13070_v42 }
0x2003   : > { %v13184_v60 = vadd.f32 %v5539_v28, %v12883_v63  ;;  %v5522_v16 = vpop.permute.xlu1 %5521 }
0x2004   : > { %v5542_v24 = vmul.f32 %v5522_v16, %v13078_v4 }
0x2006   : > { %v13188_v15 = vadd.f32 %v5542_v24, %v12896_v3  ;;  %v5575_v3 = vrot.slane %v5542_v24, 5 }
0x2008   : > { %v5518_v53 = vpop.permute.xlu0 %5517 }
0x2009   : > { %v5540_v7 = vmul.f32 %v5518_v53, %v13092_v50  ;;  %v5559_v53 = vld [vmem:[%s10492_s15 + $0x23] sm:$0x1] }
0x200b   : > { %v13192_v54 = vadd.f32 %v5540_v7, %v12892_v5  ;;  %v5571_v37 = vrot.slane %v5540_v7, 7  ;;  %v5528_v13 = vpop.permute.xlu1 %5527  ;;  %v5577_v5 = vrot.slane %v5543_v49, 4 }
0x200c   : > { %v5545_v42 = vmul.f32 %v5528_v13, %v13099_v14 }
0x200d   : > { %v5572_v63 = vsel %vm898_vm0, %v5571_v37, %v5539_v28  ;;  %v5561_v37 = vld [vmem:[%s10492_s15 + $0x33] sm:$0x1] }
0x200e   : > { %v5574_v39 = vsel %vm901_vm1, %v5573_v35, %v5572_v63  ;;  %v13198_v4 = vadd.f32 %v5545_v42, %v12901_v11  ;;  %v5581_v55 = vrot.slane %v5545_v42, 2 }
0x200f   : > { %v5576_v50 = vsel %vm904_vm2, %v5575_v3, %v5574_v39 }
0x2010   : > { %v5526_v46 = vpop.permute.xlu0 %5525  ;;  %v5578_v14 = vsel %vm907_vm3, %v5577_v5, %v5576_v50  ;;  %v5562_v5 = vld [vmem:[%s10492_s15 + $0x3b] sm:$0x1] }
0x2011   : > { %v5544_v10 = vmul.f32 %v5526_v46, %v13107_v62 }
0x2013   : > { %v13203_v27 = vadd.f32 %v5544_v10, %v12904_v20  ;;  %v5579_v22 = vrot.slane %v5544_v10, 3  ;;  %v9842_v20 = vld [vmem:[#allocation10 + $0x10] sm:$0xff]  ;;  %v5560_v10 = vld [vmem:[%s10492_s15 + $0x2b] sm:$0x1] }
0x2015   : > { %v5580_v25 = vsel %vm910_vm4, %v5579_v22, %v5578_v14 }
0x2016   : > { %v5582_v11 = vsel %vm913_vm5, %v5581_v55, %v5580_v25 }
0x2017   : > { %v5584_v19 = vsel %vm916_vm6, %v5583_v9, %v5582_v11 }
0x2018   : > { %5585 = vrot.lane.b32.xlu1 %v5584_v19, %s10210_s5 }
0x2054   : > { %v4285_v62 = vpop.permute.xlu0 %4284 }
0x2055   : > { %8463 = vmatmul.msk.f32.vlgmr.msrb.gmra.mxu1 %vm920_vm7, %v4285_v62 }
0x2056   : > { %7129 = vmatpush.msrb.mxu1 %v9841_v18 }
0x2058   : > { %7130 = vmatpush.msrb.mxu1 %v9842_v20 }
0x205a   : > { %7131 = vmatpush.msrb.mxu1 %v9843_v40 }
0x205c   : > { %7132 = vmatpush.msrb.mxu1 %v9844_v30 }
0x208a   : > { %v5586_v12 = vpop.permute.xlu1 %5585 }
0x208b   : > { %8493 = vmatmul.msk.f32.vlgmr.msra.gmra.mxu1 %vm920_vm7, %v5586_v12 }
0x20d2   : > { %v4305_v6 = vpop.f32.mrf.mxu1 }
0x20d3   : > { %v4306_v58 = vadd.f32 %v12935_v43, %v4305_v6  ;;  %v5556_v43 = vld [vmem:[%s10492_s15 + $0xb] sm:$0x1] }
0x20d5   : > { %9440 = vtanh.f32 %v4306_v58  ;;  %v8464_v11 = vmul.f32 -1.442695, %v4306_v58 }
0x20db   : > { %v9441_v21 = vpop.eup %9440 }
0x20dc   : > { %4330 = vrot.lane.b32.xlu0 %v9441_v21, %s10208_s20 }
0x2108   : > { %v5606_v49 = vpop.f32.mrf.mxu1 }
0x2109   : > { %v5611_v31 = vrot.slane %v5606_v49, 2  ;;  %v5612_v2 = vrot.slane %v5606_v49, 3  ;;  %v5625_v26 = vadd.f32 %v5606_v49, %v5555_v38  ;;  %v5610_v16 = vrot.slane %v5606_v49, 1 }
0x210a   : > { %v5613_v24 = vrot.slane %v5606_v49, 4  ;;  %v5615_v7 = vrot.slane %v5606_v49, 6  ;;  %v5614_v3 = vrot.slane %v5606_v49, 5  ;;  %v5616_v50 = vrot.slane %v5606_v49, 7 }
0x210b   : > { %v13217_v1 = vadd.f32 %v5611_v31, %v5557_v0  ;;  %v13219_v28 = vadd.f32 %v5612_v2, %v5558_v41  ;;  %9442 = vtanh.f32 %v5625_v26  ;;  %v5626_v13 = vadd.f32 %v5610_v16, %v5556_v43 }
0x210c   : > { %v13226_v42 = vadd.f32 %v5613_v24, %v5559_v53  ;;  %v13228_v63 = vadd.f32 %v5615_v7, %v5561_v37  ;;  %v5630_v22 = vadd.f32 %v5614_v3, %v5560_v10  ;;  %v13237_v14 = vadd.f32 %v5616_v50, %v5562_v5 }
0x210d   : > { %9444 = vtanh.f32 %v13217_v1  ;;  %v8494_v6 = vmul.f32 -1.442695, %v5625_v26  ;;  %v8495_v41 = vmul.f32 -1.442695, %v5626_v13  ;;  %v8496_v3 = vmul.f32 -1.442695, %v13217_v1 }
0x210e   : > { %9446 = vtanh.f32 %v13219_v28  ;;  %v8499_v53 = vmul.f32 -1.442695, %v5630_v22 }
0x210f   : > { %9448 = vtanh.f32 %v5626_v13 }
0x2110   : > { %9450 = vtanh.f32 %v13226_v42 }
0x2111   : > { %v9443_v35 = vpop.eup %9442  ;;  %9452 = vtanh.f32 %v13228_v63 }
0x2112   : > { %5809 = vrot.lane.b32.xlu2 %v9443_v35, %s10208_s20  ;;  %9454 = vtanh.f32 %v5630_v22 }
0x2113   : > { %v9445_v39 = vpop.eup %9444  ;;  %9456 = vtanh.f32 %v13237_v14 }
0x2114   : > { %v9447_v46 = vpop.eup %9446  ;;  %5813 = vrot.lane.b32.xlu1 %v9445_v39, %s10208_s20  ;;  %9458 = vpow2.f32 %v8464_v11 }
0x2115   : > { %5815 = vrot.lane.b32.xlu0 %v9447_v46, %s10208_s20  ;;  %v9449_v55 = vpop.eup %9448  ;;  %v8497_v46 = vmul.f32 -1.442695, %v13219_v28 }
0x2116   : > { %v9451_v9 = vpop.eup %9450 }
0x2117   : > { %v9453_v25 = vpop.eup %9452 }
0x2118   : > { %v9455_v19 = vpop.eup %9454 }
0x2119   : > { %v9457_v62 = vpop.eup %9456 }
0x211a   : > { %5811 = vrot.lane.b32.xlu2 %v9449_v55, %s10208_s20  ;;  %v9459_v18 = vpop.eup %9458 }
0x211b   : > { %v4311_v20 = vadd.f32 1.0, %v9459_v18 }
0x211c   : > { %5817 = vrot.lane.b32.xlu1 %v9451_v9, %s10208_s20  ;;  %v8498_v9 = vmul.f32 -1.442695, %v13226_v42  ;;  %v8501_v42 = vmul.f32 -1.442695, %v13237_v14 }
0x211d   : > { %5821 = vrot.lane.b32.xlu0 %v9453_v25, %s10208_s20  ;;  %9460 = vrcp.f32 %v4311_v20  ;;  %v4323_v0 = vand.u32 2147483648, %v4311_v20  ;;  %vm4317_vm9 = vweird.f32 %v4311_v20  ;;  %v4321_v58 = vand.u32 2147483647, %v4311_v20 }
0x211e   : > { %9462 = vpow2.f32 %v8494_v6  ;;  %v8500_v25 = vmul.f32 -1.442695, %v13228_v63 }
0x211f   : > { %v4324_v2 = vor.u32 1.1754944e-38, %v4323_v0  ;;  %vm4322_vm11 = vcmp.eq.f32.partialorder %v4321_v58, 8.507059e+37  ;;  %9464 = vpow2.f32 %v8495_v41 }
0x2122   : > { %5819 = vrot.lane.b32.xlu2 %v9455_v19, %s10208_s20 }
0x2123   : > { %v9461_v40 = vpop.eup %9460 }
0x2124   : > { %5823 = vrot.lane.b32.xlu1 %v9457_v62, %s10208_s20  ;;  %v4313_v30 = vmul.f32 %v9461_v40, %v4311_v20  ;;  %vm4318_vm15 = vweird.f32 %v9461_v40  ;;  %v9463_v31 = vpop.eup %9462 }
0x2125   : > { %vm4319_vm10 = vmor %vm4317_vm9, %vm4318_vm15  ;;  %v5657_v26 = vadd.f32 1.0, %v9463_v31  ;;  %v9465_v7 = vpop.eup %9464 }
0x2126   : > { %v4314_v12 = vsub.f32 1.0, %v4313_v30  ;;  %v5658_v37 = vadd.f32 1.0, %v9465_v7 }
0x2127   : > { %9466 = vrcp.f32 %v5657_v26  ;;  %v5676_v18 = vand.u32 2147483648, %v5657_v26  ;;  %vm5670_vm13 = vweird.f32 %v5657_v26 }
0x2128   : > { %v4315_v21 = vmul.f32 %v9461_v40, %v4314_v12  ;;  %9468 = vpow2.f32 %v8499_v53  ;;  %vm5685_vm9 = vweird.f32 %v5658_v37 }
0x2129   : > { %9470 = vrcp.f32 %v5658_v37 }
0x212a   : > { %v4316_v38 = vadd.f32 %v9461_v40, %v4315_v21  ;;  %9472 = vpow2.f32 %v8496_v3  ;;  %v5677_v21 = vor.u32 1.1754944e-38, %v5676_v18 }
0x212b   : > { %9474 = vpow2.f32 %v8497_v46 }
0x212c   : > { %v4320_v49 = vsel %vm4319_vm10, %v9461_v40, %v4316_v38  ;;  %v5674_v40 = vand.u32 2147483647, %v5657_v26 }
0x212d   : > { %v13245_v43 = vsel %vm4322_vm11, %v4324_v2, %v4320_v49  ;;  %v9467_v35 = vpop.eup %9466  ;;  %v5691_v2 = vand.u32 2147483648, %v5658_v37 }
0x212e   : > { %v9469_v13 = vpop.eup %9468  ;;  %v5666_v39 = vmul.f32 %v9467_v35, %v5657_v26  ;;  %vm5671_vm12 = vweird.f32 %v9467_v35  ;;  %vm5675_vm8 = vcmp.eq.f32.partialorder %v5674_v40, 8.507059e+37 }
0x212f   : > { %v13251_v10 = vadd.f32 1.0, %v9469_v13  ;;  %v9471_v5 = vpop.eup %9470  ;;  %vm5672_vm14 = vmor %vm5670_vm13, %vm5671_vm12  ;;  %v5692_v3 = vor.u32 1.1754944e-38, %v5691_v2 }
0x2130   : > { %v5667_v50 = vsub.f32 1.0, %v5666_v39  ;;  %v5681_v55 = vmul.f32 %v9471_v5, %v5658_v37  ;;  %v9473_v11 = vpop.eup %9472  ;;  %vm5686_vm15 = vweird.f32 %v9471_v5 }
0x2131   : > { %9476 = vrcp.f32 %v13251_v10  ;;  %v9475_v19 = vpop.eup %9474  ;;  %v13258_v20 = vadd.f32 1.0, %v9473_v11  ;;  %vm5687_vm10 = vmor %vm5685_vm9, %vm5686_vm15  ;;  %vm5745_vm13 = vweird.f32 %v13251_v10  ;;  %v5749_v11 = vand.u32 2147483647, %v13251_v10 }
0x2132   : > { %v5668_v22 = vmul.f32 %v9467_v35, %v5667_v50  ;;  %v5682_v1 = vsub.f32 1.0, %v5681_v55  ;;  %9478 = vpow2.f32 %v8498_v9  ;;  %v13260_v30 = vadd.f32 1.0, %v9475_v19 }
0x2133   : > { %9480 = vpow2.f32 %v8500_v25  ;;  %v5751_v9 = vand.u32 2147483648, %v13251_v10 }
0x2134   : > { %v5669_v62 = vadd.f32 %v9467_v35, %v5668_v22  ;;  %v5683_v12 = vmul.f32 %v9471_v5, %v5682_v1  ;;  %9482 = vrcp.f32 %v13258_v20 }
0x2135   : > { %9484 = vrcp.f32 %v13260_v30 }
0x2136   : > { %v5673_v63 = vsel %vm5672_vm14, %v9467_v35, %v5669_v62  ;;  %9486 = vpow2.f32 %v8501_v42  ;;  %v5684_v14 = vadd.f32 %v9471_v5, %v5683_v12  ;;  %v5752_v42 = vor.u32 1.1754944e-38, %v5751_v9 }
0x2137   : > { %v13256_v28 = vpop.eup %9476  ;;  %v13267_v41 = vsel %vm5675_vm8, %v5677_v21, %v5673_v63  ;;  %vm5750_vm8 = vcmp.eq.f32.partialorder %v5749_v11, 8.507059e+37 }
0x2138   : > { %v5741_v6 = vmul.f32 %v13256_v28, %v13251_v10  ;;  %v9479_v38 = vpop.eup %9478  ;;  %v5688_v35 = vsel %vm5687_vm10, %v9471_v5, %v5684_v14  ;;  %vm5746_vm12 = vweird.f32 %v13256_v28  ;;  %v5706_v14 = vand.u32 2147483648, %v13258_v20 }
0x2139   : > { %v9481_v0 = vpop.eup %9480  ;;  %vm5747_vm14 = vmor %vm5745_vm13, %vm5746_vm12  ;;  %vm5700_vm10 = vweird.f32 %v13258_v20  ;;  %vm5715_vm12 = vweird.f32 %v13260_v30 }
0x213a   : > { %v5742_v31 = vsub.f32 1.0, %v5741_v6  ;;  %v13273_v26 = vadd.f32 1.0, %v9481_v0  ;;  %v13275_v53 = vpop.eup %9482 }
0x213b   : > { %v13277_v7 = vpop.eup %9484  ;;  %v5696_v46 = vmul.f32 %v13275_v53, %v13258_v20  ;;  %vm5701_vm15 = vweird.f32 %v13275_v53 }
0x213c   : > { %v5743_v13 = vmul.f32 %v13256_v28, %v5742_v31  ;;  %v9487_v39 = vpop.eup %9486  ;;  %v5711_v22 = vmul.f32 %v13277_v7, %v13260_v30  ;;  %vm5716_vm9 = vweird.f32 %v13277_v7 }
0x213d   : > { %v13292_v25 = vadd.f32 1.0, %v9487_v39  ;;  %v5697_v19 = vsub.f32 1.0, %v5696_v46  ;;  %vm5717_vm13 = vmor %vm5715_vm12, %vm5716_vm9  ;;  %vm5760_vm12 = vweird.f32 %v13273_v26 }
0x213e   : > { %v5744_v55 = vadd.f32 %v13256_v28, %v5743_v13  ;;  %v5712_v1 = vsub.f32 1.0, %v5711_v22  ;;  %v5719_v13 = vand.u32 2147483647, %v13260_v30 }
0x213f   : > { %v5698_v63 = vmul.f32 %v13275_v53, %v5697_v19 }
0x2140   : > { %v5748_v40 = vsel %vm5747_vm14, %v13256_v28, %v5744_v55  ;;  %v5713_v21 = vmul.f32 %v13277_v7, %v5712_v1 }
0x2141   : > { %v13306_v6 = vsel %vm5750_vm8, %v5752_v42, %v5748_v40  ;;  %v5699_v28 = vadd.f32 %v13275_v53, %v5698_v63  ;;  %vm5720_vm8 = vcmp.eq.f32.partialorder %v5719_v13, 8.507059e+37 }
0x2142   : > { %v5714_v31 = vadd.f32 %v13277_v7, %v5713_v21 }
0x2144   : > { %v5718_v22 = vsel %vm5717_vm13, %v13277_v7, %v5714_v31 }
0x214e   : > { %v4331_v16 = vpop.permute.xlu0 %4330 }
0x214f   : > { %v4333_v24 = vmul.f32 %v4331_v16, %v13245_v43  ;;  %v13270_v16 = vadd.f32 1.0, %v9479_v38 }
0x2151   : > { %4335 = vrot.lane.b32.xlu0 %v4333_v24, %s10210_s5  ;;  %v5689_v24 = vand.u32 2147483647, %v5658_v37  ;;  %9488 = vrcp.f32 %v13270_v16  ;;  %v5736_v40 = vand.u32 2147483648, %v13270_v16  ;;  %v5734_v63 = vand.u32 2147483647, %v13270_v16 }
0x2152   : > { %9490 = vrcp.f32 %v13273_v26 }
0x2153   : > { %vm5690_vm11 = vcmp.eq.f32.partialorder %v5689_v24, 8.507059e+37  ;;  %9492 = vrcp.f32 %v13292_v25  ;;  %v5704_v24 = vand.u32 2147483647, %v13258_v20 }
0x2154   : > { %v13284_v50 = vsel %vm5690_vm11, %v5692_v3, %v5688_v35  ;;  %v5721_v35 = vand.u32 2147483648, %v13260_v30  ;;  %vm5702_vm11 = vmor %vm5700_vm10, %vm5701_vm15  ;;  %vm5730_vm10 = vweird.f32 %v13270_v16 }
0x2155   : > { %v5703_v39 = vsel %vm5702_vm11, %v13275_v53, %v5699_v28  ;;  %vm5705_vm14 = vcmp.eq.f32.partialorder %v5704_v24, 8.507059e+37 }
0x2157   : > { %v13297_v62 = vpop.eup %9488 }
0x2158   : > { %v13299_v18 = vpop.eup %9490  ;;  %v5726_v12 = vmul.f32 %v13297_v62, %v13270_v16  ;;  %vm5731_vm15 = vweird.f32 %v13297_v62 }
0x2159   : > { %v5756_v38 = vmul.f32 %v13299_v18, %v13273_v26  ;;  %vm5761_vm9 = vweird.f32 %v13299_v18  ;;  %vm5732_vm11 = vmor %vm5730_vm10, %vm5731_vm15 }
0x215a   : > { %vm5762_vm13 = vmor %vm5760_vm12, %vm5761_vm9  ;;  %vm5775_vm9 = vweird.f32 %v13292_v25 }
0x215b   : > { %v5757_v2 = vsub.f32 1.0, %v5756_v38 }
0x215d   : > { %v5758_v20 = vmul.f32 %v13299_v18, %v5757_v2 }
0x215f   : > { %v5759_v42 = vadd.f32 %v13299_v18, %v5758_v20 }
0x2161   : > { %v5763_v28 = vsel %vm5762_vm13, %v13299_v18, %v5759_v42  ;;  %v5779_v18 = vand.u32 2147483647, %v13292_v25 }
0x216c   : > { %v5810_v58 = vpop.permute.xlu2 %5809 }
0x216d   : > { %v5833_v49 = vmul.f32 %v5810_v58, %v13267_v41  ;;  %v5727_v58 = vsub.f32 1.0, %v5726_v12  ;;  %v5766_v12 = vand.u32 2147483648, %v13273_v26 }
0x216f   : > { %5849 = vrot.lane.b32.xlu2 %v5833_v49, %s10210_s5  ;;  %v13315_v49 = vpop.eup %9492  ;;  %v5728_v3 = vmul.f32 %v13297_v62, %v5727_v58  ;;  %v5767_v16 = vor.u32 1.1754944e-38, %v5766_v12 }
0x2170   : > { %v5771_v46 = vmul.f32 %v13315_v49, %v13292_v25  ;;  %vm5776_vm15 = vweird.f32 %v13315_v49 }
0x2171   : > { %v5729_v19 = vadd.f32 %v13297_v62, %v5728_v3  ;;  %vm5777_vm10 = vmor %vm5775_vm9, %vm5776_vm15 }
0x2172   : > { %v5772_v1 = vsub.f32 1.0, %v5771_v46 }
0x2173   : > { %v5733_v21 = vsel %vm5732_vm11, %v13297_v62, %v5729_v19  ;;  %vm5780_vm11 = vcmp.eq.f32.partialorder %v5779_v18, 8.507059e+37 }
0x2174   : > { %v5812_v37 = vpop.permute.xlu2 %5811  ;;  %v5773_v38 = vmul.f32 %v13315_v49, %v5772_v1 }
0x2175   : > { %v5834_v5 = vmul.f32 %v5812_v37, %v13284_v50  ;;  %v5707_v37 = vor.u32 1.1754944e-38, %v5706_v14 }
0x2177   : > { %5851 = vrot.lane.b32.xlu2 %v5834_v5, %s10210_s5  ;;  %v5722_v5 = vor.u32 1.1754944e-38, %v5721_v35  ;;  %v13331_v9 = vsel %vm5705_vm14, %v5707_v37, %v5703_v39  ;;  %vm5735_vm14 = vcmp.eq.f32.partialorder %v5734_v63, 8.507059e+37  ;;  %v5781_v35 = vand.u32 2147483648, %v13292_v25 }
0x2178   : > { %v5793_v25 = vmul.f32 %v13267_v41, %v13137_v61  ;;  %v5798_v61 = vmul.f32 %v13306_v6, %v13159_v59  ;;  %v5795_v63 = vmul.f32 %v13331_v9, %v13113_v47 }
0x2179   : > { %v13335_v53 = vsel %vm5720_vm8, %v5722_v5, %v5718_v22  ;;  %v5782_v39 = vor.u32 1.1754944e-38, %v5781_v35  ;;  %v4328_v22 = vmul.f32 %v13245_v43, %v13124_v23 }
0x217c   : > { %v5820_v10 = vpop.permute.xlu2 %5819 }
0x217d   : > { %v5838_v0 = vmul.f32 %v5820_v10, %v13306_v6  ;;  %v5764_v10 = vand.u32 2147483647, %v13273_v26  ;;  %v5774_v26 = vadd.f32 %v13315_v49, %v5773_v38 }
0x217f   : > { %5859 = vrot.lane.b32.xlu2 %v5838_v0, %s10210_s5  ;;  %v5737_v0 = vor.u32 1.1754944e-38, %v5736_v40  ;;  %vm5765_vm8 = vcmp.eq.f32.partialorder %v5764_v10, 8.507059e+37  ;;  %v5778_v13 = vsel %vm5777_vm10, %v13315_v49, %v5774_v26  ;;  %v5796_v10 = vmul.f32 %v13335_v53, %v13142_v52 }
0x2180   : > { %v13357_v2 = vsel %vm5765_vm8, %v5767_v16, %v5763_v28  ;;  %v13368_v3 = vsel %vm5780_vm11, %v5782_v39, %v5778_v13 }
0x2181   : > { %v13354_v58 = vsel %vm5735_vm14, %v5737_v0, %v5733_v21  ;;  %v5799_v47 = vmul.f32 %v13357_v2, %v13153_v57 }
0x2182   : > { %v5797_v0 = vmul.f32 %v13354_v58, %v13118_v29  ;;  %v5800_v29 = vmul.f32 %v13368_v3, %v13129_v8 }
0x2186   : > { %v5814_v55 = vpop.permute.xlu1 %5813 }
0x2187   : > { %v5835_v30 = vmul.f32 %v5814_v55, %v13331_v9  ;;  %v5816_v11 = vpop.permute.xlu0 %5815 }
0x2188   : > { %v5836_v7 = vmul.f32 %v5816_v11, %v13335_v53  ;;  %v5794_v11 = vmul.f32 %v13284_v50, %v13147_v48 }
0x2189   : > { %5853 = vrot.lane.b32.xlu1 %v5835_v30, %s10210_s5 }
0x218a   : > { %5855 = vrot.lane.b32.xlu0 %v5836_v7, %s10210_s5 }
0x218e   : > { %v5818_v14 = vpop.permute.xlu1 %5817 }
0x218f   : > { %v5837_v31 = vmul.f32 %v5818_v14, %v13354_v58  ;;  %v5822_v24 = vpop.permute.xlu0 %5821 }
0x2190   : > { %v5839_v62 = vmul.f32 %v5822_v24, %v13357_v2 }
0x2191   : > { %5857 = vrot.lane.b32.xlu1 %v5837_v31, %s10210_s5 }
0x2192   : > { %5861 = vrot.lane.b32.xlu0 %v5839_v62, %s10210_s5 }
0x2196   : > { %v5824_v46 = vpop.permute.xlu1 %5823 }
0x2197   : > { %v5840_v37 = vmul.f32 %v5824_v46, %v13368_v3 }
0x2199   : > { %5863 = vrot.lane.b32.xlu1 %v5840_v37, %s10210_s5 }
0x21c3   : > { %v4336_v20 = vpop.permute.xlu0 %4335 }
0x21c4   : > { %v13374_v5 = vadd.f32 %v4336_v20, %v4328_v22 }
0x21c6   : > { %9494 = vtanh.f32 %v13374_v5 }
0x21c9   : > { %v5850_v55 = vpop.permute.xlu2 %5849 }
0x21ca   : > { %v13379_v30 = vadd.f32 %v5850_v55, %v5793_v25 }
0x21cc   : > { %v9495_v49 = vpop.eup %9494  ;;  %9496 = vtanh.f32 %v13379_v30 }
0x21cd   : > { %4341 = vrot.lane.b32.xlu0 %v9495_v49, %s10208_s20 }
0x21d1   : > { %v5852_v23 = vpop.permute.xlu2 %5851 }
0x21d2   : > { %v9497_v19 = vpop.eup %9496  ;;  %v13385_v1 = vadd.f32 %v5852_v23, %v5794_v11 }
0x21d3   : > { %5897 = vrot.lane.b32.xlu2 %v9497_v19, %s10208_s20 }
0x21d4   : > { %9498 = vtanh.f32 %v13385_v1 }
0x21d9   : > { %v5860_v7 = vpop.permute.xlu2 %5859 }
0x21da   : > { %v9499_v40 = vpop.eup %9498  ;;  %v13391_v42 = vadd.f32 %v5860_v7, %v5798_v61 }
0x21db   : > { %5899 = vrot.lane.b32.xlu2 %v9499_v40, %s10208_s20 }
0x21dc   : > { %9500 = vtanh.f32 %v13391_v42 }
0x21e2   : > { %v9501_v48 = vpop.eup %9500 }
0x21e3   : > { %5907 = vrot.lane.b32.xlu2 %v9501_v48, %s10208_s20 }
0x21fb   : > { %v5854_v12 = vpop.permute.xlu1 %5853 }
0x21fc   : > { %v13400_v21 = vadd.f32 %v5854_v12, %v5795_v63  ;;  %v5856_v59 = vpop.permute.xlu0 %5855 }
0x21fd   : > { %v13402_v38 = vadd.f32 %v5856_v59, %v5796_v10 }
0x21fe   : > { %9502 = vtanh.f32 %v13400_v21 }
0x21ff   : > { %9504 = vtanh.f32 %v13402_v38 }
0x2203   : > { %v5858_v28 = vpop.permute.xlu1 %5857 }
0x2204   : > { %v9503_v16 = vpop.eup %9502  ;;  %v13410_v14 = vadd.f32 %v5858_v28, %v5797_v0  ;;  %v5862_v52 = vpop.permute.xlu0 %5861 }
0x2205   : > { %v9505_v31 = vpop.eup %9504  ;;  %v13412_v24 = vadd.f32 %v5862_v52, %v5799_v47  ;;  %5901 = vrot.lane.b32.xlu1 %v9503_v16, %s10208_s20 }
0x2206   : > { %9506 = vtanh.f32 %v13410_v14  ;;  %5903 = vrot.lane.b32.xlu0 %v9505_v31, %s10208_s20 }
0x2207   : > { %9508 = vtanh.f32 %v13412_v24 }
0x220b   : > { %v5864_v26 = vpop.permute.xlu1 %5863 }
0x220c   : > { %v9507_v57 = vpop.eup %9506  ;;  %v13420_v62 = vadd.f32 %v5864_v26, %v5800_v29  ;;  %v5937_v29 = vld [vmem:[%s10492_s15 + $0x4] sm:$0x1]  ;;  %v5939_v26 = vld [vmem:[%s10492_s15 + $0x14] sm:$0x1] }
0x220d   : > { %v9509_v35 = vpop.eup %9508  ;;  %5905 = vrot.lane.b32.xlu1 %v9507_v57, %s10208_s20 }
0x220e   : > { %9510 = vtanh.f32 %v13420_v62  ;;  %5909 = vrot.lane.b32.xlu0 %v9509_v35, %s10208_s20 }
0x2214   : > { %v9511_v18 = vpop.eup %9510 }
0x2215   : > { %5911 = vrot.lane.b32.xlu1 %v9511_v18, %s10208_s20 }
0x222d   : > { %v5898_v13 = vpop.permute.xlu2 %5897 }
0x222e   : > { %v5921_v39 = vmul.f32 %v5898_v13, %v13267_v41 }
0x2230   : > { %v13428_v46 = vadd.f32 %v5921_v39, %v13184_v60 }
0x2235   : > { %v5900_v8 = vpop.permute.xlu2 %5899 }
0x2236   : > { %v5922_v37 = vmul.f32 %v5900_v8, %v13284_v50 }
0x2238   : > { %v13432_v22 = vadd.f32 %v5922_v37, %v13192_v54  ;;  %v5953_v19 = vrot.slane %v5922_v37, 7 }
0x223a   : > { %v5954_v7 = vsel %vm898_vm0, %v5953_v19, %v5921_v39 }
0x223d   : > { %v5908_v25 = vpop.permute.xlu2 %5907 }
0x223e   : > { %v5926_v55 = vmul.f32 %v5908_v25, %v13306_v6 }
0x223f   : > { %v4342_v20 = vpop.permute.xlu0 %4341 }
0x2240   : > { %v13435_v49 = vmul.f32 %v4342_v20, %v13245_v43  ;;  %v13441_v41 = vadd.f32 %v5926_v55, %v13203_v27  ;;  %v5961_v59 = vrot.slane %v5926_v55, 3  ;;  %v5942_v20 = vld [vmem:[%s10492_s15 + $0x2c] sm:$0x1]  ;;  %v5940_v55 = vld [vmem:[%s10492_s15 + $0x1c] sm:$0x1] }
0x2242   : > { %4390 = vrot.lane.b32.xlu2 %v13435_v49, %s10210_s5 }
0x2277   : > { %v5902_v60 = vpop.permute.xlu1 %5901 }
0x2278   : > { %v5923_v11 = vmul.f32 %v5902_v60, %v13331_v9  ;;  %v5904_v50 = vpop.permute.xlu0 %5903 }
0x2279   : > { %v5924_v54 = vmul.f32 %v5904_v50, %v13335_v53 }
0x227a   : > { %v13446_v23 = vadd.f32 %v5923_v11, %v13167_v44  ;;  %v5955_v6 = vrot.slane %v5923_v11, 6  ;;  %v5941_v11 = vld [vmem:[%s10492_s15 + $0x24] sm:$0x1] }
0x227b   : > { %v13449_v43 = vadd.f32 %v5924_v54, %v13188_v15  ;;  %v5957_v40 = vrot.slane %v5924_v54, 5 }
0x227c   : > { %v5956_v9 = vsel %vm901_vm1, %v5955_v6, %v5954_v7 }
0x227d   : > { %v5958_v12 = vsel %vm904_vm2, %v5957_v40, %v5956_v9  ;;  %v5944_v9 = vld [vmem:[%s10492_s15 + $0x3c] sm:$0x1] }
0x227f   : > { %v5906_v61 = vpop.permute.xlu1 %5905 }
0x2280   : > { %v5925_v27 = vmul.f32 %v5906_v61, %v13354_v58  ;;  %v5910_v48 = vpop.permute.xlu0 %5909 }
0x2281   : > { %v5927_v63 = vmul.f32 %v5910_v48, %v13357_v2 }
0x2282   : > { %v13456_v53 = vadd.f32 %v5925_v27, %v13171_v17  ;;  %v5959_v44 = vrot.slane %v5925_v27, 4  ;;  %v5943_v27 = vld [vmem:[%s10492_s15 + $0x34] sm:$0x1] }
0x2283   : > { %v13459_v15 = vadd.f32 %v5927_v63, %v13198_v4  ;;  %v5963_v28 = vrot.slane %v5927_v63, 2 }
0x2284   : > { %v5960_v10 = vsel %vm907_vm3, %v5959_v44, %v5958_v12 }
0x2285   : > { %v5962_v2 = vsel %vm910_vm4, %v5961_v59, %v5960_v10 }
0x2286   : > { %v5964_v4 = vsel %vm913_vm5, %v5963_v28, %v5962_v2 }
0x2287   : > { %v5912_v58 = vpop.permute.xlu1 %5911 }
0x2288   : > { %v5928_v0 = vmul.f32 %v5912_v58, %v13368_v3 }
0x228a   : > { %v13466_v17 = vadd.f32 %v5928_v0, %v13175_v45  ;;  %v5965_v47 = vrot.slane %v5928_v0, 1  ;;  %v5938_v45 = vld [vmem:[%s10492_s15 + $0xc] sm:$0x1] }
0x228c   : > { %v5966_v16 = vsel %vm916_vm6, %v5965_v47, %v5964_v4 }
0x228d   : > { %5967 = vrot.lane.b32.xlu0 %v5966_v16, %s10210_s5 }
0x229c   : > { %v4391_v52 = vpop.permute.xlu2 %4390 }
0x229d   : > { %8465 = vmatmul.msk.f32.vlgmr.msrb.gmra.mxu2 %vm920_vm7, %v4391_v52 }
0x22ff   : > { %v5968_v31 = vpop.permute.xlu0 %5967 }
0x2300   : > { %8502 = vmatmul.msk.f32.vlgmr.msra.gmra.mxu2 %vm920_vm7, %v5968_v31 }
0x2320   : > { %v13473_v3 = vpop.f32.mrf.mxu2 }
0x2383   : > { %v5988_v57 = vpop.f32.mrf.mxu2 }
0x2384   : > { %v5992_v35 = vrot.slane %v5988_v57, 1  ;;  %v5993_v18 = vrot.slane %v5988_v57, 2  ;;  %v6007_v13 = vadd.f32 %v5988_v57, %v5937_v29  ;;  %v5996_v37 = vrot.slane %v5988_v57, 5 }
0x2385   : > { %v5994_v25 = vrot.slane %v5988_v57, 3  ;;  %v5995_v60 = vrot.slane %v5988_v57, 4  ;;  %v5997_v40 = vrot.slane %v5988_v57, 6  ;;  %v5998_v48 = vrot.slane %v5988_v57, 7 }
0x2386   : > { %v6008_v39 = vadd.f32 %v5992_v35, %v5938_v45  ;;  %v6009_v8 = vadd.f32 %v5993_v18, %v5939_v26  ;;  %9512 = vtanh.f32 %v6007_v13  ;;  %v6012_v50 = vadd.f32 %v5996_v37, %v5942_v20 }
0x2387   : > { %v6010_v54 = vadd.f32 %v5994_v25, %v5940_v55  ;;  %v6011_v6 = vadd.f32 %v5995_v60, %v5941_v11  ;;  %v6013_v63 = vadd.f32 %v5997_v40, %v5943_v27  ;;  %v6014_v12 = vadd.f32 %v5998_v48, %v5944_v9 }
0x2388   : > { %9514 = vtanh.f32 %v6008_v39  ;;  %v8505_v2 = vmul.f32 -1.442695, %v6009_v8  ;;  %v8503_v29 = vmul.f32 -1.442695, %v6007_v13  ;;  %v8504_v26 = vmul.f32 -1.442695, %v6008_v39 }
0x2389   : > { %9516 = vtanh.f32 %v6009_v8  ;;  %v8507_v28 = vmul.f32 -1.442695, %v6011_v6  ;;  %v8510_v16 = vmul.f32 -1.442695, %v6014_v12  ;;  %v8508_v37 = vmul.f32 -1.442695, %v6012_v50 }
0x238a   : > { %9518 = vtanh.f32 %v6012_v50  ;;  %v8506_v25 = vmul.f32 -1.442695, %v6010_v54 }
0x238b   : > { %9520 = vtanh.f32 %v6010_v54  ;;  %v8509_v54 = vmul.f32 -1.442695, %v6013_v63 }
0x238c   : > { %v9513_v19 = vpop.eup %9512  ;;  %9522 = vtanh.f32 %v6011_v6 }
0x238d   : > { %6191 = vrot.lane.b32.xlu0 %v9513_v19, %s10208_s20  ;;  %9524 = vtanh.f32 %v6013_v63 }
0x238e   : > { %v9515_v61 = vpop.eup %9514  ;;  %9526 = vtanh.f32 %v6014_v12 }
0x238f   : > { %v9517_v7 = vpop.eup %9516  ;;  %6193 = vrot.lane.b32.xlu1 %v9515_v61, %s10208_s20  ;;  %9528 = vpow2.f32 %v8505_v2 }
0x2390   : > { %6195 = vrot.lane.b32.xlu2 %v9517_v7, %s10208_s20  ;;  %v9519_v44 = vpop.eup %9518  ;;  %9530 = vpow2.f32 %v8507_v28 }
0x2391   : > { %v9521_v10 = vpop.eup %9520 }
0x2392   : > { %v9523_v59 = vpop.eup %9522 }
0x2393   : > { %v9525_v58 = vpop.eup %9524 }
0x2394   : > { %v9527_v0 = vpop.eup %9526 }
0x2395   : > { %6201 = vrot.lane.b32.xlu0 %v9519_v44, %s10208_s20  ;;  %v9529_v47 = vpop.eup %9528 }
0x2396   : > { %v6041_v4 = vadd.f32 1.0, %v9529_v47  ;;  %v9531_v52 = vpop.eup %9530 }
0x2397   : > { %6197 = vrot.lane.b32.xlu1 %v9521_v10, %s10208_s20  ;;  %v13491_v31 = vadd.f32 1.0, %v9531_v52 }
0x2398   : > { %6199 = vrot.lane.b32.xlu2 %v9523_v59, %s10208_s20  ;;  %9532 = vrcp.f32 %v6041_v4  ;;  %v6088_v50 = vand.u32 2147483648, %v6041_v4  ;;  %vm6082_vm13 = vweird.f32 %v6041_v4  ;;  %v6086_v27 = vand.u32 2147483647, %v6041_v4 }
0x2399   : > { %9534 = vpow2.f32 %v8510_v16  ;;  %v6118_v52 = vand.u32 2147483648, %v13491_v31  ;;  %vm6112_vm9 = vweird.f32 %v13491_v31 }
0x239a   : > { %9536 = vrcp.f32 %v13491_v31  ;;  %v6089_v10 = vor.u32 1.1754944e-38, %v6088_v50  ;;  %vm6087_vm8 = vcmp.eq.f32.partialorder %v6086_v27, 8.507059e+37 }
0x239b   : > { %9538 = vpow2.f32 %v8503_v29  ;;  %v6116_v29 = vand.u32 2147483647, %v13491_v31 }
0x239c   : > { %9540 = vpow2.f32 %v8504_v26 }
0x239d   : > { %vm6117_vm11 = vcmp.eq.f32.partialorder %v6116_v29, 8.507059e+37 }
0x239e   : > { %v9533_v45 = vpop.eup %9532 }
0x239f   : > { %6203 = vrot.lane.b32.xlu1 %v9525_v58, %s10208_s20  ;;  %v9535_v57 = vpop.eup %9534  ;;  %v6078_v35 = vmul.f32 %v9533_v45, %v6041_v4  ;;  %vm6083_vm12 = vweird.f32 %v9533_v45 }
0x23a0   : > { %6205 = vrot.lane.b32.xlu2 %v9527_v0, %s10208_s20  ;;  %v13494_v18 = vadd.f32 1.0, %v9535_v57  ;;  %v9537_v20 = vpop.eup %9536  ;;  %vm6084_vm14 = vmor %vm6082_vm13, %vm6083_vm12 }
0x23a1   : > { %v6079_v8 = vsub.f32 1.0, %v6078_v35  ;;  %v9539_v55 = vpop.eup %9538  ;;  %v6108_v13 = vmul.f32 %v9537_v20, %v13491_v31  ;;  %vm6113_vm15 = vweird.f32 %v9537_v20 }
0x23a2   : > { %v9541_v60 = vpop.eup %9540  ;;  %9542 = vrcp.f32 %v13494_v18  ;;  %v13498_v39 = vadd.f32 1.0, %v9539_v55  ;;  %vm6114_vm10 = vmor %vm6112_vm9, %vm6113_vm15  ;;  %vm6157_vm13 = vweird.f32 %v13494_v18 }
0x23a3   : > { %v6080_v11 = vmul.f32 %v9533_v45, %v6079_v8  ;;  %9544 = vpow2.f32 %v8508_v37  ;;  %v13500_v19 = vadd.f32 1.0, %v9541_v60  ;;  %v6109_v61 = vsub.f32 1.0, %v6108_v13 }
0x23a4   : > { %9546 = vpow2.f32 %v8506_v25  ;;  %v6119_v37 = vor.u32 1.1754944e-38, %v6118_v52 }
0x23a5   : > { %v6081_v6 = vadd.f32 %v9533_v45, %v6080_v11  ;;  %9548 = vrcp.f32 %v13498_v39  ;;  %v6110_v44 = vmul.f32 %v9537_v20, %v6109_v61 }
0x23a6   : > { %9550 = vrcp.f32 %v13500_v19 }
0x23a7   : > { %v6085_v9 = vsel %vm6084_vm14, %v9533_v45, %v6081_v6  ;;  %9552 = vpow2.f32 %v8509_v54  ;;  %v6111_v4 = vadd.f32 %v9537_v20, %v6110_v44  ;;  %v6161_v54 = vand.u32 2147483647, %v13494_v18 }
0x23a8   : > { %v13502_v7 = vpop.eup %9542  ;;  %v13514_v2 = vsel %vm6087_vm8, %v6089_v10, %v6085_v9  ;;  %v6058_v10 = vand.u32 2147483648, %v13498_v39 }
0x23a9   : > { %v9545_v40 = vpop.eup %9544  ;;  %v6153_v12 = vmul.f32 %v13502_v7, %v13494_v18  ;;  %v6115_v35 = vsel %vm6114_vm10, %v9537_v20, %v6111_v4  ;;  %vm6158_vm12 = vweird.f32 %v13502_v7  ;;  %v6163_v20 = vand.u32 2147483648, %v13494_v18 }
0x23aa   : > { %v9547_v48 = vpop.eup %9546  ;;  %v13508_v59 = vadd.f32 1.0, %v9545_v40  ;;  %v13534_v31 = vsel %vm6117_vm11, %v6119_v37, %v6115_v35  ;;  %vm6159_vm14 = vmor %vm6157_vm13, %vm6158_vm12  ;;  %vm6162_vm8 = vcmp.eq.f32.partialorder %v6161_v54, 8.507059e+37  ;;  %vm6052_vm10 = vweird.f32 %v13498_v39 }
0x23ab   : > { %v13510_v58 = vadd.f32 1.0, %v9547_v48  ;;  %v13512_v63 = vpop.eup %9548  ;;  %v6154_v16 = vsub.f32 1.0, %v6153_v12  ;;  %v6164_v12 = vor.u32 1.1754944e-38, %v6163_v20  ;;  %vm6067_vm12 = vweird.f32 %v13500_v19 }
0x23ac   : > { %v13516_v28 = vpop.eup %9550  ;;  %9554 = vrcp.f32 %v13508_v59  ;;  %v6048_v45 = vmul.f32 %v13512_v63, %v13498_v39  ;;  %vm6053_vm15 = vweird.f32 %v13512_v63  ;;  %v6059_v37 = vor.u32 1.1754944e-38, %v6058_v10 }
0x23ad   : > { %9556 = vrcp.f32 %v13510_v58  ;;  %v9553_v26 = vpop.eup %9552  ;;  %v6063_v57 = vmul.f32 %v13516_v28, %v13500_v19  ;;  %v6155_v8 = vmul.f32 %v13502_v7, %v6154_v16  ;;  %vm6068_vm9 = vweird.f32 %v13516_v28  ;;  %vm6054_vm11 = vmor %vm6052_vm10, %vm6053_vm15 }
0x23ae   : > { %v6049_v25 = vsub.f32 1.0, %v6048_v45  ;;  %v13530_v55 = vadd.f32 1.0, %v9553_v26  ;;  %v6056_v45 = vand.u32 2147483647, %v13498_v39  ;;  %v6073_v26 = vand.u32 2147483648, %v13500_v19  ;;  %vm6069_vm13 = vmor %vm6067_vm12, %vm6068_vm9 }
0x23af   : > { %v6064_v13 = vsub.f32 1.0, %v6063_v57  ;;  %v6156_v50 = vadd.f32 %v13502_v7, %v6155_v8  ;;  %v6071_v57 = vand.u32 2147483647, %v13500_v19  ;;  %v6133_v19 = vand.u32 2147483648, %v13508_v59 }
0x23b0   : > { %v6050_v40 = vmul.f32 %v13512_v63, %v6049_v25  ;;  %9558 = vrcp.f32 %v13530_v55  ;;  %vm6127_vm10 = vweird.f32 %v13508_v59  ;;  %vm6097_vm12 = vweird.f32 %v13510_v58 }
0x23b1   : > { %v6065_v48 = vmul.f32 %v13516_v28, %v6064_v13  ;;  %v6160_v44 = vsel %vm6159_vm14, %v13502_v7, %v6156_v50  ;;  %vm6057_vm14 = vcmp.eq.f32.partialorder %v6056_v45, 8.507059e+37  ;;  %v6074_v13 = vor.u32 1.1754944e-38, %v6073_v26 }
0x23b2   : > { %v13532_v60 = vpop.eup %9554  ;;  %v6051_v18 = vadd.f32 %v13512_v63, %v6050_v40 }
0x23b3   : > { %v13536_v6 = vpop.eup %9556  ;;  %v6123_v27 = vmul.f32 %v13532_v60, %v13508_v59  ;;  %v6066_v16 = vadd.f32 %v13516_v28, %v6065_v48  ;;  %vm6128_vm15 = vweird.f32 %v13532_v60 }
0x23b4   : > { %v6093_v9 = vmul.f32 %v13536_v6, %v13510_v58  ;;  %v6055_v35 = vsel %vm6054_vm11, %v13512_v63, %v6051_v18  ;;  %vm6098_vm9 = vweird.f32 %v13536_v6  ;;  %vm6129_vm11 = vmor %vm6127_vm10, %vm6128_vm15  ;;  %v6134_v18 = vor.u32 1.1754944e-38, %v6133_v19 }
0x23b5   : > { %v6070_v25 = vsel %vm6069_vm13, %v13516_v28, %v6066_v16  ;;  %v13575_v50 = vsel %vm6057_vm14, %v6059_v37, %v6055_v35  ;;  %vm6099_vm13 = vmor %vm6097_vm12, %vm6098_vm9  ;;  %vm6142_vm9 = vweird.f32 %v13530_v55 }
0x23b6   : > { %v6094_v52 = vsub.f32 1.0, %v6093_v9  ;;  %v13560_v29 = vpop.eup %9558  ;;  %v6131_v9 = vand.u32 2147483647, %v13508_v59 }
0x23b7   : > { %v6138_v39 = vmul.f32 %v13560_v29, %v13530_v55  ;;  %vm6143_vm15 = vweird.f32 %v13560_v29 }
0x23b8   : > { %vm6132_vm14 = vcmp.eq.f32.partialorder %v6131_v9, 8.507059e+37  ;;  %vm6144_vm10 = vmor %vm6142_vm9, %vm6143_vm15 }
0x23b9   : > { %v6139_v48 = vsub.f32 1.0, %v6138_v39  ;;  %v6175_v39 = vmul.f32 %v13575_v50, %v13379_v30  ;;  %v6179_v30 = vmul.f32 %v13534_v31, %v13410_v14 }
0x23ea   : > { %v6196_v0 = vpop.permute.xlu2 %6195 }
0x23eb   : > { %v6217_v47 = vmul.f32 %v6196_v0, %v13514_v2  ;;  %v6124_v0 = vsub.f32 1.0, %v6123_v27 }
0x23ed   : > { %6235 = vrot.lane.b32.xlu1 %v6217_v47, %s10210_s5  ;;  %v13556_v47 = vsel %vm6162_vm8, %v6164_v12, %v6160_v44  ;;  %v6125_v8 = vmul.f32 %v13532_v60, %v6124_v0  ;;  %vm6072_vm8 = vcmp.eq.f32.partialorder %v6071_v57, 8.507059e+37  ;;  %v6103_v44 = vand.u32 2147483648, %v13510_v58 }
0x23ee   : > { %v13579_v54 = vsel %vm6072_vm8, %v6074_v13, %v6070_v25  ;;  %v6101_v12 = vand.u32 2147483647, %v13510_v58  ;;  %v6146_v57 = vand.u32 2147483647, %v13530_v55  ;;  %v6182_v9 = vmul.f32 %v13556_v47, %v13420_v62 }
0x23ef   : > { %v6126_v28 = vadd.f32 %v13532_v60, %v6125_v8  ;;  %v6104_v16 = vor.u32 1.1754944e-38, %v6103_v44 }
0x23f0   : > { %vm6102_vm8 = vcmp.eq.f32.partialorder %v6101_v12, 8.507059e+37 }
0x23f1   : > { %v6130_v10 = vsel %vm6129_vm11, %v13532_v60, %v6126_v28  ;;  %vm6147_vm11 = vcmp.eq.f32.partialorder %v6146_v57, 8.507059e+37 }
0x23f2   : > { %v6200_v11 = vpop.permute.xlu2 %6199 }
0x23f3   : > { %v6219_v61 = vmul.f32 %v6200_v11, %v13534_v31  ;;  %v6095_v11 = vmul.f32 %v13536_v6, %v6094_v52  ;;  %v13596_v52 = vsel %vm6132_vm14, %v6134_v18, %v6130_v10  ;;  %v6176_v10 = vmul.f32 %v13579_v54, %v13385_v1 }
0x23f5   : > { %6239 = vrot.lane.b32.xlu1 %v6219_v61, %s10210_s5  ;;  %v6096_v27 = vadd.f32 %v13536_v6, %v6095_v11 }
0x23f7   : > { %v6100_v0 = vsel %vm6099_vm13, %v13536_v6, %v6096_v27  ;;  %v6148_v6 = vand.u32 2147483648, %v13530_v55  ;;  %v6177_v55 = vmul.f32 %v13514_v2, %v13400_v21 }
0x23f8   : > { %v13599_v45 = vsel %vm6102_vm8, %v6104_v16, %v6100_v0 }
0x23f9   : > { %v6149_v8 = vor.u32 1.1754944e-38, %v6148_v6  ;;  %v6178_v62 = vmul.f32 %v13599_v45, %v13402_v38 }
0x23fa   : > { %v6206_v4 = vpop.permute.xlu2 %6205 }
0x23fb   : > { %v6222_v7 = vmul.f32 %v6206_v4, %v13556_v47  ;;  %v6140_v4 = vmul.f32 %v13560_v29, %v6139_v48 }
0x23fd   : > { %6245 = vrot.lane.b32.xlu1 %v6222_v7, %s10210_s5  ;;  %v6141_v60 = vadd.f32 %v13560_v29, %v6140_v4 }
0x23ff   : > { %v6192_v61 = vpop.permute.xlu0 %6191  ;;  %v6145_v35 = vsel %vm6144_vm10, %v13560_v29, %v6141_v60 }
0x2400   : > { %v6215_v63 = vmul.f32 %v6192_v61, %v13575_v50  ;;  %v13610_v37 = vsel %vm6147_vm11, %v6149_v8, %v6145_v35 }
0x2401   : > { %v6194_v20 = vpop.permute.xlu1 %6193  ;;  %v6181_v1 = vmul.f32 %v13610_v37, %v13412_v24 }
0x2402   : > { %v6216_v40 = vmul.f32 %v6194_v20, %v13579_v54  ;;  %6231 = vrot.lane.b32.xlu2 %v6215_v63, %s10210_s5  ;;  %v6180_v63 = vmul.f32 %v13596_v52, %v13391_v42 }
0x2404   : > { %6233 = vrot.lane.b32.xlu0 %v6216_v40, %s10210_s5 }
0x2407   : > { %v6202_v59 = vpop.permute.xlu0 %6201 }
0x2408   : > { %v6220_v7 = vmul.f32 %v6202_v59, %v13596_v52 }
0x2409   : > { %v6198_v26 = vpop.permute.xlu1 %6197 }
0x240a   : > { %v6218_v58 = vmul.f32 %v6198_v26, %v13599_v45  ;;  %6241 = vrot.lane.b32.xlu2 %v6220_v7, %s10210_s5 }
0x240c   : > { %6237 = vrot.lane.b32.xlu0 %v6218_v58, %s10210_s5 }
0x2411   : > { %v6204_v25 = vpop.permute.xlu1 %6203 }
0x2412   : > { %v6221_v11 = vmul.f32 %v6204_v25, %v13610_v37 }
0x2414   : > { %6243 = vrot.lane.b32.xlu0 %v6221_v11, %s10210_s5 }
0x245c   : > { %v6232_v13 = vpop.permute.xlu2 %6231 }
0x245d   : > { %v13616_v61 = vadd.f32 %v6232_v13, %v6175_v39 }
0x245f   : > { %v6236_v19 = vpop.permute.xlu1 %6235  ;;  %9560 = vtanh.f32 %v13616_v61 }
0x2460   : > { %v13621_v29 = vadd.f32 %v6236_v19, %v6177_v55 }
0x2462   : > { %9562 = vtanh.f32 %v13621_v29 }
0x2464   : > { %v6242_v20 = vpop.permute.xlu2 %6241 }
0x2465   : > { %v9561_v28 = vpop.eup %9560  ;;  %v13626_v40 = vadd.f32 %v6242_v20, %v6180_v63 }
0x2466   : > { %6279 = vrot.lane.b32.xlu1 %v9561_v28, %s10208_s20 }
0x2467   : > { %v6240_v21 = vpop.permute.xlu1 %6239  ;;  %9564 = vtanh.f32 %v13626_v40 }
0x2468   : > { %v9563_v27 = vpop.eup %9562  ;;  %v13632_v48 = vadd.f32 %v6240_v21, %v6179_v30 }
0x2469   : > { %6283 = vrot.lane.b32.xlu0 %v9563_v27, %s10208_s20 }
0x246a   : > { %9566 = vtanh.f32 %v13632_v48 }
0x246d   : > { %v9565_v42 = vpop.eup %9564 }
0x246e   : > { %6289 = vrot.lane.b32.xlu1 %v9565_v42, %s10208_s20 }
0x246f   : > { %v6246_v44 = vpop.permute.xlu1 %6245 }
0x2470   : > { %v9567_v14 = vpop.eup %9566  ;;  %v13639_v12 = vadd.f32 %v6246_v44, %v6182_v9 }
0x2471   : > { %6287 = vrot.lane.b32.xlu0 %v9567_v14, %s10208_s20 }
0x2472   : > { %9568 = vtanh.f32 %v13639_v12 }
0x2476   : > { %v6234_v18 = vpop.permute.xlu0 %6233 }
0x2477   : > { %v13645_v0 = vadd.f32 %v6234_v18, %v6176_v10 }
0x2478   : > { %v9569_v4 = vpop.eup %9568 }
0x2479   : > { %9570 = vtanh.f32 %v13645_v0  ;;  %6293 = vrot.lane.b32.xlu0 %v9569_v4, %s10208_s20 }
0x247e   : > { %v6238_v16 = vpop.permute.xlu0 %6237 }
0x247f   : > { %v9571_v59 = vpop.eup %9570  ;;  %v13651_v7 = vadd.f32 %v6238_v16, %v6178_v62 }
0x2480   : > { %6281 = vrot.lane.b32.xlu2 %v9571_v59, %s10208_s20  ;;  %v6321_v59 = vld [vmem:[%s10492_s15 + $0x15] sm:$0x1] }
0x2481   : > { %9572 = vtanh.f32 %v13651_v7 }
0x2486   : > { %v6244_v26 = vpop.permute.xlu0 %6243 }
0x2487   : > { %v9573_v58 = vpop.eup %9572  ;;  %v13657_v60 = vadd.f32 %v6244_v26, %v6181_v1 }
0x2488   : > { %6285 = vrot.lane.b32.xlu2 %v9573_v58, %s10208_s20 }
0x2489   : > { %9574 = vtanh.f32 %v13657_v60 }
0x248f   : > { %v9575_v38 = vpop.eup %9574 }
0x2490   : > { %6291 = vrot.lane.b32.xlu2 %v9575_v38, %s10208_s20 }
0x24d8   : > { %v6280_v6 = vpop.permute.xlu1 %6279 }
0x24d9   : > { %v6303_v57 = vmul.f32 %v6280_v6, %v13575_v50 }
0x24da   : > { %v6282_v35 = vpop.permute.xlu2 %6281 }
0x24db   : > { %v6284_v8 = vpop.permute.xlu0 %6283  ;;  %v6304_v25 = vmul.f32 %v6282_v35, %v13579_v54  ;;  %v13665_v24 = vadd.f32 %v6303_v57, %v13428_v46  ;;  %v6324_v35 = vld [vmem:[%s10492_s15 + $0x2d] sm:$0x1] }
0x24dc   : > { %v6305_v11 = vmul.f32 %v6284_v8, %v13514_v2 }
0x24dd   : > { %v13669_v39 = vadd.f32 %v6304_v25, %v13432_v22  ;;  %v6335_v55 = vrot.slane %v6304_v25, 7  ;;  %v6322_v25 = vld [vmem:[%s10492_s15 + $0x1d] sm:$0x1] }
0x24de   : > { %v13672_v13 = vadd.f32 %v6305_v11, %v13446_v23  ;;  %v6337_v20 = vrot.slane %v6305_v11, 6 }
0x24df   : > { %v6336_v46 = vsel %vm898_vm0, %v6335_v55, %v6303_v57  ;;  %v6323_v55 = vld [vmem:[%s10492_s15 + $0x25] sm:$0x1] }
0x24e0   : > { %v6290_v19 = vpop.permute.xlu1 %6289  ;;  %v6338_v27 = vsel %vm901_vm1, %v6337_v20, %v6336_v46 }
0x24e1   : > { %v6308_v63 = vmul.f32 %v6290_v19, %v13596_v52 }
0x24e2   : > { %v6286_v50 = vpop.permute.xlu2 %6285 }
0x24e3   : > { %v6288_v28 = vpop.permute.xlu0 %6287  ;;  %v6306_v54 = vmul.f32 %v6286_v50, %v13599_v45  ;;  %v13678_v30 = vadd.f32 %v6308_v63, %v13441_v41 }
0x24e4   : > { %v6307_v22 = vmul.f32 %v6288_v28, %v13534_v31 }
0x24e5   : > { %v13682_v2 = vadd.f32 %v6306_v54, %v13449_v43  ;;  %v6339_v23 = vrot.slane %v6306_v54, 5  ;;  %v6343_v43 = vrot.slane %v6308_v63, 3 }
0x24e6   : > { %v13685_v21 = vadd.f32 %v6307_v22, %v13456_v53  ;;  %v6341_v52 = vrot.slane %v6307_v22, 4  ;;  %v6325_v22 = vld [vmem:[%s10492_s15 + $0x35] sm:$0x1] }
0x24e7   : > { %v6340_v42 = vsel %vm904_vm2, %v6339_v23, %v6338_v27 }
0x24e8   : > { %v6342_v9 = vsel %vm907_vm3, %v6341_v52, %v6340_v42  ;;  %v6326_v52 = vld [vmem:[%s10492_s15 + $0x3d] sm:$0x1] }
0x24e9   : > { %v6344_v4 = vsel %vm910_vm4, %v6343_v43, %v6342_v9 }
0x24ea   : > { %v6292_v45 = vpop.permute.xlu2 %6291 }
0x24eb   : > { %v6294_v41 = vpop.permute.xlu0 %6293  ;;  %v6309_v31 = vmul.f32 %v6292_v45, %v13610_v37 }
0x24ec   : > { %v6310_v44 = vmul.f32 %v6294_v41, %v13556_v47  ;;  %v6320_v47 = vld [vmem:[%s10492_s15 + $0xd] sm:$0x1] }
0x24ed   : > { %v13693_v53 = vadd.f32 %v6309_v31, %v13459_v15  ;;  %v6345_v14 = vrot.slane %v6309_v31, 2  ;;  %v6319_v15 = vld [vmem:[%s10492_s15 + $0x5] sm:$0x1] }
0x24ee   : > { %v13696_v10 = vadd.f32 %v6310_v44, %v13466_v17  ;;  %v6347_v18 = vrot.slane %v6310_v44, 1 }
0x24ef   : > { %v6346_v62 = vsel %vm913_vm5, %v6345_v14, %v6344_v4 }
0x24f0   : > { %v6348_v16 = vsel %vm916_vm6, %v6347_v18, %v6346_v62 }
0x24f1   : > { %6349 = vrot.lane.b32.xlu1 %v6348_v16, %s10210_s5 }
0x2563   : > { %v6350_v37 = vpop.permute.xlu1 %6349 }
0x2564   : > { %8511 = vmatmul.msk.f32.vlgmr.msra.gmra.mxu3 %vm920_vm7, %v6350_v37 }
0x25e7   : > { %v6370_v17 = vpop.f32.mrf.mxu3 }
0x25e8   : > { %v6374_v1 = vrot.slane %v6370_v17, 1  ;;  %v6375_v26 = vrot.slane %v6370_v17, 2  ;;  %v6389_v58 = vadd.f32 %v6370_v17, %v6319_v15  ;;  %v6378_v57 = vrot.slane %v6370_v17, 5 }
0x25e9   : > { %v6376_v8 = vrot.slane %v6370_v17, 3  ;;  %v6377_v11 = vrot.slane %v6370_v17, 4  ;;  %v6379_v46 = vrot.slane %v6370_v17, 6  ;;  %v6380_v23 = vrot.slane %v6370_v17, 7 }
0x25ea   : > { %v6390_v38 = vadd.f32 %v6374_v1, %v6320_v47  ;;  %v6391_v6 = vadd.f32 %v6375_v26, %v6321_v59  ;;  %9576 = vtanh.f32 %v6389_v58  ;;  %v6394_v19 = vadd.f32 %v6378_v57, %v6324_v35 }
0x25eb   : > { %v6392_v63 = vadd.f32 %v6376_v8, %v6322_v25  ;;  %v6393_v20 = vadd.f32 %v6377_v11, %v6323_v55  ;;  %v6395_v27 = vadd.f32 %v6379_v46, %v6325_v22  ;;  %v6396_v45 = vadd.f32 %v6380_v23, %v6326_v52 }
0x25ec   : > { %9578 = vtanh.f32 %v6390_v38  ;;  %v8513_v44 = vmul.f32 -1.442695, %v6390_v38  ;;  %v8512_v47 = vmul.f32 -1.442695, %v6389_v58  ;;  %v8514_v59 = vmul.f32 -1.442695, %v6391_v6 }
0x25ed   : > { %9580 = vtanh.f32 %v6391_v6  ;;  %v8515_v14 = vmul.f32 -1.442695, %v6392_v63  ;;  %v8518_v62 = vmul.f32 -1.442695, %v6395_v27  ;;  %v8517_v35 = vmul.f32 -1.442695, %v6394_v19 }
0x25ee   : > { %9582 = vtanh.f32 %v6394_v19  ;;  %v8516_v25 = vmul.f32 -1.442695, %v6393_v20  ;;  %v8519_v22 = vmul.f32 -1.442695, %v6396_v45 }
0x25ef   : > { %9584 = vtanh.f32 %v6392_v63 }
0x25f0   : > { %v9577_v50 = vpop.eup %9576  ;;  %9586 = vtanh.f32 %v6393_v20 }
0x25f1   : > { %6573 = vrot.lane.b32.xlu1 %v9577_v50, %s10208_s20  ;;  %9588 = vtanh.f32 %v6395_v27 }
0x25f2   : > { %v9579_v28 = vpop.eup %9578  ;;  %9590 = vtanh.f32 %v6396_v45 }
0x25f3   : > { %v9581_v54 = vpop.eup %9580  ;;  %6575 = vrot.lane.b32.xlu2 %v9579_v28, %s10208_s20  ;;  %9592 = vpow2.f32 %v8513_v44 }
0x25f4   : > { %6577 = vrot.lane.b32.xlu0 %v9581_v54, %s10208_s20  ;;  %v9583_v42 = vpop.eup %9582  ;;  %9594 = vpow2.f32 %v8515_v14 }
0x25f5   : > { %v9585_v9 = vpop.eup %9584 }
0x25f6   : > { %v9587_v41 = vpop.eup %9586 }
0x25f7   : > { %v9589_v31 = vpop.eup %9588 }
0x25f8   : > { %v9591_v43 = vpop.eup %9590 }
0x25f9   : > { %6583 = vrot.lane.b32.xlu1 %v9583_v42, %s10208_s20  ;;  %v9593_v18 = vpop.eup %9592 }
0x25fa   : > { %v6422_v4 = vadd.f32 1.0, %v9593_v18  ;;  %v9595_v16 = vpop.eup %9594 }
0x25fb   : > { %6579 = vrot.lane.b32.xlu2 %v9585_v9, %s10208_s20  ;;  %v13719_v37 = vadd.f32 1.0, %v9595_v16 }
0x25fc   : > { %6581 = vrot.lane.b32.xlu0 %v9587_v41, %s10208_s20  ;;  %9596 = vrcp.f32 %v6422_v4  ;;  %v6455_v19 = vand.u32 2147483648, %v6422_v4  ;;  %vm6449_vm13 = vweird.f32 %v6422_v4  ;;  %v6453_v46 = vand.u32 2147483647, %v6422_v4 }
0x25fd   : > { %9598 = vpow2.f32 %v8518_v62  ;;  %v6485_v62 = vand.u32 2147483648, %v13719_v37  ;;  %vm6479_vm9 = vweird.f32 %v13719_v37 }
0x25fe   : > { %9600 = vrcp.f32 %v13719_v37  ;;  %v6456_v9 = vor.u32 1.1754944e-38, %v6455_v19  ;;  %vm6454_vm8 = vcmp.eq.f32.partialorder %v6453_v46, 8.507059e+37 }
0x25ff   : > { %9602 = vpow2.f32 %v8512_v47 }
0x2600   : > { %9604 = vpow2.f32 %v8514_v59 }
0x2602   : > { %v9597_v15 = vpop.eup %9596 }
0x2603   : > { %6585 = vrot.lane.b32.xlu2 %v9589_v31, %s10208_s20  ;;  %v9599_v17 = vpop.eup %9598  ;;  %v6445_v1 = vmul.f32 %v9597_v15, %v6422_v4  ;;  %vm6450_vm12 = vweird.f32 %v9597_v15 }
0x2604   : > { %6587 = vrot.lane.b32.xlu0 %v9591_v43, %s10208_s20  ;;  %v13722_v26 = vadd.f32 1.0, %v9599_v17  ;;  %v9601_v57 = vpop.eup %9600  ;;  %vm6451_vm14 = vmor %vm6449_vm13, %vm6450_vm12 }
0x2605   : > { %v6446_v38 = vsub.f32 1.0, %v6445_v1  ;;  %v9603_v8 = vpop.eup %9602  ;;  %v6475_v55 = vmul.f32 %v9601_v57, %v13719_v37  ;;  %vm6480_vm15 = vweird.f32 %v9601_v57 }
0x2606   : > { %9606 = vrcp.f32 %v13722_v26  ;;  %v9605_v58 = vpop.eup %9604  ;;  %v13726_v63 = vadd.f32 1.0, %v9603_v8  ;;  %vm6481_vm10 = vmor %vm6479_vm9, %vm6480_vm15  ;;  %vm6524_vm13 = vweird.f32 %v13722_v26  ;;  %v6528_v46 = vand.u32 2147483647, %v13722_v26 }
0x2607   : > { %v6447_v11 = vmul.f32 %v9597_v15, %v6446_v38  ;;  %9608 = vpow2.f32 %v8517_v35  ;;  %v6476_v50 = vsub.f32 1.0, %v6475_v55  ;;  %v13728_v28 = vadd.f32 1.0, %v9605_v58 }
0x2608   : > { %9610 = vpow2.f32 %v8516_v25  ;;  %v6486_v38 = vor.u32 1.1754944e-38, %v6485_v62  ;;  %vm6434_vm9 = vweird.f32 %v13726_v63 }
0x2609   : > { %v6448_v6 = vadd.f32 %v9597_v15, %v6447_v11  ;;  %9612 = vrcp.f32 %v13726_v63  ;;  %v6477_v52 = vmul.f32 %v9601_v57, %v6476_v50 }
0x260a   : > { %9614 = vrcp.f32 %v13728_v28 }
0x260b   : > { %v6452_v23 = vsel %vm6451_vm14, %v9597_v15, %v6448_v6  ;;  %9616 = vpow2.f32 %v8519_v22  ;;  %v6478_v14 = vadd.f32 %v9601_v57, %v6477_v52  ;;  %v6483_v15 = vand.u32 2147483647, %v13719_v37 }
0x260c   : > { %v13730_v54 = vpop.eup %9606  ;;  %v13738_v43 = vsel %vm6454_vm8, %v6456_v9, %v6452_v23  ;;  %v6530_v6 = vand.u32 2147483648, %v13722_v26  ;;  %vm6529_vm8 = vcmp.eq.f32.partialorder %v6528_v46, 8.507059e+37 }
0x260d   : > { %v9609_v20 = vpop.eup %9608  ;;  %v6520_v27 = vmul.f32 %v13730_v54, %v13722_v26  ;;  %v6482_v59 = vsel %vm6481_vm10, %v9601_v57, %v6478_v14  ;;  %vm6484_vm11 = vcmp.eq.f32.partialorder %v6483_v15, 8.507059e+37  ;;  %vm6525_vm12 = vweird.f32 %v13730_v54 }
0x260e   : > { %v9611_v42 = vpop.eup %9610  ;;  %v13736_v41 = vadd.f32 1.0, %v9609_v20  ;;  %v13758_v8 = vsel %vm6484_vm11, %v6486_v38, %v6482_v59  ;;  %vm6526_vm14 = vmor %vm6524_vm13, %vm6525_vm12  ;;  %v6531_v52 = vor.u32 1.1754944e-38, %v6530_v6  ;;  %v6470_v59 = vand.u32 2147483648, %v13728_v28 }
0x260f   : > { %v13740_v44 = vpop.eup %9612  ;;  %v6521_v18 = vsub.f32 1.0, %v6520_v27  ;;  %v13743_v4 = vadd.f32 1.0, %v9611_v42  ;;  %vm6464_vm12 = vweird.f32 %v13728_v28 }
0x2610   : > { %v13746_v16 = vpop.eup %9614  ;;  %9618 = vrcp.f32 %v13736_v41  ;;  %v6430_v47 = vmul.f32 %v13740_v44, %v13726_v63  ;;  %vm6435_vm15 = vweird.f32 %v13740_v44 }
0x2611   : > { %v6522_v17 = vmul.f32 %v13730_v54, %v6521_v18  ;;  %9620 = vrcp.f32 %v13743_v4  ;;  %v9617_v1 = vpop.eup %9616  ;;  %v6460_v35 = vmul.f32 %v13746_v16, %v13728_v28  ;;  %v6438_v18 = vand.u32 2147483647, %v13726_v63  ;;  %vm6436_vm11 = vmor %vm6434_vm9, %vm6435_vm15 }
0x2612   : > { %v6431_v25 = vsub.f32 1.0, %v6430_v47  ;;  %v13765_v58 = vadd.f32 1.0, %v9617_v1  ;;  %vm6465_vm10 = vweird.f32 %v13746_v16  ;;  %v6468_v1 = vand.u32 2147483647, %v13728_v28 }
0x2613   : > { %v6523_v57 = vadd.f32 %v13730_v54, %v6522_v17  ;;  %v6461_v50 = vsub.f32 1.0, %v6460_v35  ;;  %vm6466_vm13 = vmor %vm6464_vm12, %vm6465_vm10  ;;  %vm6509_vm9 = vweird.f32 %v13736_v41  ;;  %vm6494_vm12 = vweird.f32 %v13743_v4 }
0x2614   : > { %v6432_v20 = vmul.f32 %v13740_v44, %v6431_v25  ;;  %9622 = vrcp.f32 %v13765_v58 }
0x2615   : > { %v6527_v23 = vsel %vm6526_vm14, %v13730_v54, %v6523_v57  ;;  %v6462_v27 = vmul.f32 %v13746_v16, %v6461_v50  ;;  %v6440_v54 = vand.u32 2147483648, %v13726_v63  ;;  %vm6439_vm14 = vcmp.eq.f32.partialorder %v6438_v18, 8.507059e+37 }
0x2616   : > { %v13760_v11 = vpop.eup %9618  ;;  %v13781_v9 = vsel %vm6529_vm8, %v6531_v52, %v6527_v23  ;;  %vm6469_vm8 = vcmp.eq.f32.partialorder %v6468_v1, 8.507059e+37 }
0x2617   : > { %v13768_v19 = vpop.eup %9620  ;;  %v6505_v22 = vmul.f32 %v13760_v11, %v13736_v41  ;;  %v6463_v62 = vadd.f32 %v13746_v16, %v6462_v27  ;;  %v6441_v38 = vor.u32 1.1754944e-38, %v6440_v54  ;;  %vm6510_vm15 = vweird.f32 %v13760_v11 }
0x2618   : > { %v6490_v42 = vmul.f32 %v13768_v19, %v13743_v4  ;;  %vm6495_vm10 = vweird.f32 %v13768_v19  ;;  %v6500_v27 = vand.u32 2147483648, %v13743_v4 }
0x2619   : > { %v6467_v35 = vsel %vm6466_vm13, %v13746_v16, %v6463_v62  ;;  %v6513_v16 = vand.u32 2147483647, %v13736_v41  ;;  %vm6496_vm13 = vmor %vm6494_vm12, %vm6495_vm10 }
0x261a   : > { %v6491_v15 = vsub.f32 1.0, %v6490_v42  ;;  %v13791_v47 = vpop.eup %9622  ;;  %v6501_v18 = vor.u32 1.1754944e-38, %v6500_v27 }
0x261b   : > { %v6535_v25 = vmul.f32 %v13791_v47, %v13765_v58 }
0x261d   : > { %v6536_v52 = vsub.f32 1.0, %v6535_v25  ;;  %v6558_v25 = vmul.f32 %v13738_v43, %v13645_v0 }
0x264d   : > { %v6576_v31 = vpop.permute.xlu2 %6575 }
0x264e   : > { %v6598_v45 = vmul.f32 %v6576_v31, %v13738_v43  ;;  %v6433_v31 = vadd.f32 %v13740_v44, %v6432_v20  ;;  %v6515_v20 = vand.u32 2147483648, %v13736_v41  ;;  %v6498_v41 = vand.u32 2147483647, %v13743_v4 }
0x2650   : > { %6615 = vrot.lane.b32.xlu1 %v6598_v45, %s10210_s5  ;;  %v6506_v45 = vsub.f32 1.0, %v6505_v22  ;;  %v6437_v17 = vsel %vm6436_vm11, %v13740_v44, %v6433_v31  ;;  %v6471_v44 = vor.u32 1.1754944e-38, %v6470_v59  ;;  %vm6511_vm11 = vmor %vm6509_vm9, %vm6510_vm15  ;;  %vm6540_vm15 = vweird.f32 %v13791_v47 }
0x2651   : > { %v13803_v57 = vsel %vm6439_vm14, %v6441_v38, %v6437_v17  ;;  %vm6514_vm14 = vcmp.eq.f32.partialorder %v6513_v16, 8.507059e+37  ;;  %vm6539_vm9 = vweird.f32 %v13765_v58  ;;  %v6543_v17 = vand.u32 2147483647, %v13765_v58 }
0x2652   : > { %v6507_v63 = vmul.f32 %v13760_v11, %v6506_v45  ;;  %v13808_v46 = vsel %vm6469_vm8, %v6471_v44, %v6467_v35  ;;  %v6537_v45 = vmul.f32 %v13791_v47, %v6536_v52  ;;  %vm6499_vm8 = vcmp.eq.f32.partialorder %v6498_v41, 8.507059e+37  ;;  %vm6541_vm10 = vmor %vm6539_vm9, %vm6540_vm15 }
0x2654   : > { %v6508_v28 = vadd.f32 %v13760_v11, %v6507_v63  ;;  %v6538_v4 = vadd.f32 %v13791_v47, %v6537_v45 }
0x2655   : > { %v6580_v37 = vpop.permute.xlu2 %6579 }
0x2656   : > { %v6600_v55 = vmul.f32 %v6580_v37, %v13758_v8  ;;  %v6492_v37 = vmul.f32 %v13768_v19, %v6491_v15  ;;  %v6512_v42 = vsel %vm6511_vm11, %v13760_v11, %v6508_v28  ;;  %v6542_v1 = vsel %vm6541_vm10, %v13791_v47, %v6538_v4 }
0x2657   : > { %vm6544_vm11 = vcmp.eq.f32.partialorder %v6543_v17, 8.507059e+37  ;;  %v6560_v28 = vmul.f32 %v13758_v8, %v13651_v7  ;;  %v6563_v7 = vmul.f32 %v13781_v9, %v13657_v60  ;;  %v6557_v60 = vmul.f32 %v13803_v57, %v13616_v61 }
0x2658   : > { %6619 = vrot.lane.b32.xlu1 %v6600_v55, %s10210_s5  ;;  %v6493_v23 = vadd.f32 %v13768_v19, %v6492_v37 }
0x265a   : > { %v6497_v31 = vsel %vm6496_vm13, %v13768_v19, %v6493_v23  ;;  %v6545_v19 = vand.u32 2147483648, %v13765_v58 }
0x265b   : > { %v13827_v15 = vsel %vm6499_vm8, %v6501_v18, %v6497_v31 }
0x265c   : > { %v6546_v63 = vor.u32 1.1754944e-38, %v6545_v19 }
0x265d   : > { %v6586_v26 = vpop.permute.xlu2 %6585 }
0x265e   : > { %v6603_v14 = vmul.f32 %v6586_v26, %v13781_v9  ;;  %v6516_v26 = vor.u32 1.1754944e-38, %v6515_v20  ;;  %v13838_v38 = vsel %vm6544_vm11, %v6546_v63, %v6542_v1 }
0x2660   : > { %6625 = vrot.lane.b32.xlu1 %v6603_v14, %s10210_s5  ;;  %v13824_v54 = vsel %vm6514_vm14, %v6516_v26, %v6512_v42 }
0x2663   : > { %v6574_v55 = vpop.permute.xlu1 %6573 }
0x2664   : > { %v6597_v6 = vmul.f32 %v6574_v55, %v13803_v57  ;;  %v6559_v55 = vmul.f32 %v13808_v46, %v13621_v29 }
0x2666   : > { %v6578_v50 = vpop.permute.xlu0 %6577  ;;  %6613 = vrot.lane.b32.xlu0 %v6597_v6, %s10210_s5 }
0x2667   : > { %v6599_v22 = vmul.f32 %v6578_v50, %v13808_v46  ;;  %v6561_v50 = vmul.f32 %v13827_v15, %v13632_v48  ;;  %v6564_v48 = vmul.f32 %v13838_v38, %v13639_v12 }
0x2669   : > { %6617 = vrot.lane.b32.xlu2 %v6599_v22, %s10210_s5 }
0x266b   : > { %v6584_v14 = vpop.permute.xlu1 %6583 }
0x266c   : > { %v6602_v62 = vmul.f32 %v6584_v14, %v13824_v54 }
0x266e   : > { %v6582_v11 = vpop.permute.xlu0 %6581  ;;  %6623 = vrot.lane.b32.xlu0 %v6602_v62, %s10210_s5  ;;  %v6562_v62 = vmul.f32 %v13824_v54, %v13626_v40 }
0x266f   : > { %v6601_v59 = vmul.f32 %v6582_v11, %v13827_v15 }
0x2671   : > { %6621 = vrot.lane.b32.xlu2 %v6601_v59, %s10210_s5 }
0x2676   : > { %v6588_v35 = vpop.permute.xlu0 %6587 }
0x2677   : > { %v6604_v37 = vmul.f32 %v6588_v35, %v13838_v38 }
0x2679   : > { %6627 = vrot.lane.b32.xlu2 %v6604_v37, %s10210_s5 }
0x26c2   : > { %v6616_v44 = vpop.permute.xlu1 %6615 }
0x26c3   : > { %v6618_v58 = vpop.permute.xlu2 %6617  ;;  %v13846_v6 = vadd.f32 %v6616_v44, %v6558_v25 }
0x26c4   : > { %v13848_v47 = vadd.f32 %v6618_v58, %v6559_v55 }
0x26c5   : > { %9624 = vtanh.f32 %v13846_v6 }
0x26c6   : > { %9626 = vtanh.f32 %v13848_v47 }
0x26ca   : > { %v6620_v0 = vpop.permute.xlu1 %6619 }
0x26cb   : > { %v9625_v16 = vpop.eup %9624  ;;  %v6622_v20 = vpop.permute.xlu2 %6621  ;;  %v13856_v29 = vadd.f32 %v6620_v0, %v6560_v28 }
0x26cc   : > { %v9627_v22 = vpop.eup %9626  ;;  %v13858_v23 = vadd.f32 %v6622_v20, %v6561_v50  ;;  %6663 = vrot.lane.b32.xlu0 %v9625_v16, %s10208_s20 }
0x26cd   : > { %9628 = vtanh.f32 %v13856_v29  ;;  %6665 = vrot.lane.b32.xlu1 %v9627_v22, %s10208_s20 }
0x26ce   : > { %9630 = vtanh.f32 %v13858_v23 }
0x26d2   : > { %v6626_v52 = vpop.permute.xlu1 %6625 }
0x26d3   : > { %v9629_v27 = vpop.eup %9628  ;;  %v6628_v42 = vpop.permute.xlu2 %6627  ;;  %v13868_v41 = vadd.f32 %v6626_v52, %v6563_v7 }
0x26d4   : > { %v9631_v26 = vpop.eup %9630  ;;  %v13870_v31 = vadd.f32 %v6628_v42, %v6564_v48  ;;  %6667 = vrot.lane.b32.xlu0 %v9629_v27, %s10208_s20 }
0x26d5   : > { %9632 = vtanh.f32 %v13868_v41  ;;  %6669 = vrot.lane.b32.xlu1 %v9631_v26, %s10208_s20 }
0x26d6   : > { %9634 = vtanh.f32 %v13870_v31 }
0x26d8   : > { %v6614_v12 = vpop.permute.xlu0 %6613 }
0x26d9   : > { %v13878_v45 = vadd.f32 %v6614_v12, %v6557_v60 }
0x26db   : > { %v9633_v14 = vpop.eup %9632  ;;  %9636 = vtanh.f32 %v13878_v45 }
0x26dc   : > { %v9635_v18 = vpop.eup %9634  ;;  %6673 = vrot.lane.b32.xlu0 %v9633_v14, %s10208_s20 }
0x26dd   : > { %6675 = vrot.lane.b32.xlu1 %v9635_v18, %s10208_s20  ;;  %v6703_v18 = vld [vmem:[%s10492_s15 + $0x16] sm:$0x1] }
0x26e0   : > { %v6624_v11 = vpop.permute.xlu0 %6623 }
0x26e1   : > { %v9637_v59 = vpop.eup %9636  ;;  %v13885_v4 = vadd.f32 %v6624_v11, %v6562_v62 }
0x26e2   : > { %6661 = vrot.lane.b32.xlu2 %v9637_v59, %s10208_s20 }
0x26e3   : > { %9638 = vtanh.f32 %v13885_v4 }
0x26e9   : > { %v9639_v61 = vpop.eup %9638 }
0x26ea   : > { %6671 = vrot.lane.b32.xlu2 %v9639_v61, %s10208_s20 }
0x273c   : > { %v6662_v19 = vpop.permute.xlu2 %6661 }
0x273d   : > { %v6685_v17 = vmul.f32 %v6662_v19, %v13803_v57 }
0x273e   : > { %v6664_v1 = vpop.permute.xlu0 %6663 }
0x273f   : > { %v6666_v63 = vpop.permute.xlu1 %6665  ;;  %v6686_v35 = vmul.f32 %v6664_v1, %v13738_v43  ;;  %v13893_v40 = vadd.f32 %v6685_v17, %v13665_v24  ;;  %v6706_v1 = vld [vmem:[%s10492_s15 + $0x2e] sm:$0x1] }
0x2740   : > { %v6687_v37 = vmul.f32 %v6666_v63, %v13808_v46 }
0x2741   : > { %v13897_v25 = vadd.f32 %v6686_v35, %v13669_v39  ;;  %v6717_v44 = vrot.slane %v6686_v35, 7  ;;  %v6704_v35 = vld [vmem:[%s10492_s15 + $0x1e] sm:$0x1] }
0x2742   : > { %v13900_v55 = vadd.f32 %v6687_v37, %v13672_v13  ;;  %v6719_v50 = vrot.slane %v6687_v37, 6 }
0x2743   : > { %v6718_v24 = vsel %vm898_vm0, %v6717_v44, %v6685_v17  ;;  %v6705_v44 = vld [vmem:[%s10492_s15 + $0x26] sm:$0x1] }
0x2744   : > { %v6672_v58 = vpop.permute.xlu2 %6671  ;;  %v6720_v22 = vsel %vm901_vm1, %v6719_v50, %v6718_v24 }
0x2745   : > { %v6690_v28 = vmul.f32 %v6672_v58, %v13824_v54 }
0x2746   : > { %v6668_v57 = vpop.permute.xlu0 %6667 }
0x2747   : > { %v6670_v0 = vpop.permute.xlu1 %6669  ;;  %v6688_v43 = vmul.f32 %v6668_v57, %v13758_v8  ;;  %v13906_v16 = vadd.f32 %v6690_v28, %v13678_v30 }
0x2748   : > { %v6689_v39 = vmul.f32 %v6670_v0, %v13827_v15 }
0x2749   : > { %v13910_v46 = vadd.f32 %v6688_v43, %v13682_v2  ;;  %v6721_v13 = vrot.slane %v6688_v43, 5  ;;  %v6725_v2 = vrot.slane %v6690_v28, 3 }
0x274a   : > { %v13913_v20 = vadd.f32 %v6689_v39, %v13685_v21  ;;  %v6723_v54 = vrot.slane %v6689_v39, 4  ;;  %v6707_v39 = vld [vmem:[%s10492_s15 + $0x36] sm:$0x1] }
0x274b   : > { %v6722_v7 = vsel %vm904_vm2, %v6721_v13, %v6720_v22 }
0x274c   : > { %v6724_v48 = vsel %vm907_vm3, %v6723_v54, %v6722_v7  ;;  %v6708_v54 = vld [vmem:[%s10492_s15 + $0x3e] sm:$0x1] }
0x274d   : > { %v6726_v60 = vsel %vm910_vm4, %v6725_v2, %v6724_v48 }
0x274e   : > { %v6674_v8 = vpop.permute.xlu0 %6673 }
0x274f   : > { %v6676_v30 = vpop.permute.xlu1 %6675  ;;  %v6691_v15 = vmul.f32 %v6674_v8, %v13781_v9 }
0x2750   : > { %v6692_v52 = vmul.f32 %v6676_v30, %v13838_v38  ;;  %v6702_v38 = vld [vmem:[%s10492_s15 + $0xe] sm:$0x1] }
0x2751   : > { %v13921_v21 = vadd.f32 %v6691_v15, %v13693_v53  ;;  %v6727_v27 = vrot.slane %v6691_v15, 2  ;;  %v6701_v53 = vld [vmem:[%s10492_s15 + $0x6] sm:$0x1] }
0x2752   : > { %v13924_v42 = vadd.f32 %v6692_v52, %v13696_v10  ;;  %v6729_v26 = vrot.slane %v6692_v52, 1 }
0x2753   : > { %v6728_v12 = vsel %vm913_vm5, %v6727_v27, %v6726_v60 }
0x2754   : > { %v6730_v14 = vsel %vm916_vm6, %v6729_v26, %v6728_v12 }
0x2755   : > { %6731 = vrot.lane.b32.xlu2 %v6730_v14, %s10210_s5 }
0x27af   : > { %v6732_v9 = vpop.permute.xlu2 %6731 }
0x27b0   : > { %8520 = vmatmul.msk.f32.vlgmr.msrb.gmra.mxu0 %vm920_vm7, %v6732_v9 }
0x282d   : > { %v6752_v10 = vpop.f32.mrf.mxu0 }
0x282e   : > { %v6756_v62 = vrot.slane %v6752_v10, 1  ;;  %v6757_v11 = vrot.slane %v6752_v10, 2  ;;  %v6771_v59 = vadd.f32 %v6752_v10, %v6701_v53  ;;  %v6760_v17 = vrot.slane %v6752_v10, 5 }
0x282f   : > { %v6758_v63 = vrot.slane %v6752_v10, 3  ;;  %v6759_v37 = vrot.slane %v6752_v10, 4  ;;  %v6761_v24 = vrot.slane %v6752_v10, 6  ;;  %v6762_v13 = vrot.slane %v6752_v10, 7 }
0x2830   : > { %v6772_v61 = vadd.f32 %v6756_v62, %v6702_v38  ;;  %v6773_v19 = vadd.f32 %v6757_v11, %v6703_v18  ;;  %9640 = vtanh.f32 %v6771_v59  ;;  %v6776_v58 = vadd.f32 %v6760_v17, %v6706_v1 }
0x2831   : > { %v6774_v28 = vadd.f32 %v6758_v63, %v6704_v35  ;;  %v6775_v50 = vadd.f32 %v6759_v37, %v6705_v44  ;;  %v6777_v22 = vadd.f32 %v6761_v24, %v6707_v39  ;;  %v6778_v8 = vadd.f32 %v6762_v13, %v6708_v54 }
0x2832   : > { %9642 = vtanh.f32 %v6772_v61  ;;  %v8521_v52 = vmul.f32 -1.442695, %v6771_v59  ;;  %v8526_v27 = vmul.f32 -1.442695, %v6776_v58  ;;  %v8522_v53 = vmul.f32 -1.442695, %v6772_v61 }
0x2833   : > { %9644 = vtanh.f32 %v6773_v19  ;;  %v8523_v18 = vmul.f32 -1.442695, %v6773_v19  ;;  %v8525_v11 = vmul.f32 -1.442695, %v6775_v50  ;;  %v8524_v17 = vmul.f32 -1.442695, %v6774_v28 }
0x2834   : > { %9646 = vtanh.f32 %v6776_v58 }
0x2835   : > { %9648 = vtanh.f32 %v6774_v28 }
0x2836   : > { %v9641_v57 = vpop.eup %9640  ;;  %9650 = vtanh.f32 %v6775_v50  ;;  %v8527_v50 = vmul.f32 -1.442695, %v6777_v22 }
0x2837   : > { %6955 = vrot.lane.b32.xlu2 %v9641_v57, %s10208_s20  ;;  %9652 = vtanh.f32 %v6777_v22 }
0x2838   : > { %v9643_v0 = vpop.eup %9642  ;;  %9654 = vtanh.f32 %v6778_v8 }
0x2839   : > { %v9645_v43 = vpop.eup %9644  ;;  %6957 = vrot.lane.b32.xlu0 %v9643_v0, %s10208_s20  ;;  %9656 = vpow2.f32 %v8521_v52  ;;  %v8528_v0 = vmul.f32 -1.442695, %v6778_v8 }
0x283a   : > { %6959 = vrot.lane.b32.xlu1 %v9645_v43, %s10208_s20  ;;  %v9647_v7 = vpop.eup %9646  ;;  %9658 = vpow2.f32 %v8526_v27 }
0x283b   : > { %v9649_v48 = vpop.eup %9648 }
0x283c   : > { %v9651_v30 = vpop.eup %9650 }
0x283d   : > { %v9653_v15 = vpop.eup %9652 }
0x283e   : > { %v9655_v2 = vpop.eup %9654 }
0x283f   : > { %6965 = vrot.lane.b32.xlu2 %v9647_v7, %s10208_s20  ;;  %v9657_v26 = vpop.eup %9656 }
0x2840   : > { %v6803_v60 = vadd.f32 1.0, %v9657_v26  ;;  %v9659_v12 = vpop.eup %9658 }
0x2841   : > { %6961 = vrot.lane.b32.xlu0 %v9649_v48, %s10208_s20  ;;  %v6808_v14 = vadd.f32 1.0, %v9659_v12 }
0x2842   : > { %6963 = vrot.lane.b32.xlu1 %v9651_v30, %s10208_s20  ;;  %9660 = vrcp.f32 %v6803_v60  ;;  %v6822_v61 = vand.u32 2147483648, %v6803_v60  ;;  %vm6816_vm13 = vweird.f32 %v6803_v60  ;;  %v6820_v19 = vand.u32 2147483647, %v6803_v60 }
0x2843   : > { %9662 = vrcp.f32 %v6808_v14  ;;  %v6897_v30 = vand.u32 2147483648, %v6808_v14  ;;  %vm6891_vm9 = vweird.f32 %v6808_v14  ;;  %v6895_v52 = vand.u32 2147483647, %v6808_v14 }
0x2844   : > { %9664 = vpow2.f32 %v8522_v53  ;;  %v6823_v13 = vor.u32 1.1754944e-38, %v6822_v61  ;;  %vm6821_vm8 = vcmp.eq.f32.partialorder %v6820_v19, 8.507059e+37 }
0x2845   : > { %9666 = vpow2.f32 %v8523_v18  ;;  %vm6896_vm11 = vcmp.eq.f32.partialorder %v6895_v52, 8.507059e+37 }
0x2846   : > { %9668 = vpow2.f32 %v8525_v11 }
0x2847   : > { %9670 = vpow2.f32 %v8524_v17 }
0x2848   : > { %v9661_v9 = vpop.eup %9660 }
0x2849   : > { %6967 = vrot.lane.b32.xlu0 %v9653_v15, %s10208_s20  ;;  %v6812_v38 = vmul.f32 %v9661_v9, %v6803_v60  ;;  %v9663_v62 = vpop.eup %9662  ;;  %vm6817_vm12 = vweird.f32 %v9661_v9 }
0x284a   : > { %6969 = vrot.lane.b32.xlu1 %v9655_v2, %s10208_s20  ;;  %v6887_v1 = vmul.f32 %v9663_v62, %v6808_v14  ;;  %v9665_v63 = vpop.eup %9664  ;;  %vm6818_vm14 = vmor %vm6816_vm13, %vm6817_vm12  ;;  %vm6892_vm15 = vweird.f32 %v9663_v62 }
0x284b   : > { %v6813_v10 = vsub.f32 1.0, %v6812_v38  ;;  %v9667_v35 = vpop.eup %9666  ;;  %v13947_v58 = vadd.f32 1.0, %v9665_v63  ;;  %vm6893_vm10 = vmor %vm6891_vm9, %vm6892_vm15 }
0x284c   : > { %v6888_v44 = vsub.f32 1.0, %v6887_v1  ;;  %v13949_v57 = vadd.f32 1.0, %v9667_v35  ;;  %v9669_v28 = vpop.eup %9668 }
0x284d   : > { %v6814_v59 = vmul.f32 %v9661_v9, %v6813_v10  ;;  %9672 = vrcp.f32 %v13947_v58  ;;  %v9671_v39 = vpop.eup %9670  ;;  %v13958_v15 = vadd.f32 1.0, %v9669_v28 }
0x284e   : > { %v6889_v24 = vmul.f32 %v9663_v62, %v6888_v44  ;;  %9674 = vrcp.f32 %v13949_v57  ;;  %v13956_v22 = vadd.f32 1.0, %v9671_v39 }
0x284f   : > { %v6815_v37 = vadd.f32 %v9661_v9, %v6814_v59  ;;  %9676 = vpow2.f32 %v8528_v0 }
0x2850   : > { %9678 = vpow2.f32 %v8527_v50  ;;  %v6890_v8 = vadd.f32 %v9663_v62, %v6889_v24 }
0x2851   : > { %v6819_v43 = vsel %vm6818_vm14, %v9661_v9, %v6815_v37  ;;  %9680 = vrcp.f32 %v13956_v22  ;;  %v6898_v9 = vor.u32 1.1754944e-38, %v6897_v30  ;;  %vm6831_vm14 = vweird.f32 %v13947_v58 }
0x2852   : > { %v13953_v7 = vsel %vm6821_vm8, %v6823_v13, %v6819_v43  ;;  %v6894_v60 = vsel %vm6893_vm10, %v9663_v62, %v6890_v8  ;;  %9682 = vrcp.f32 %v13958_v15  ;;  %v6837_v43 = vand.u32 2147483648, %v13947_v58 }
0x2853   : > { %v9673_v2 = vpop.eup %9672  ;;  %v13965_v10 = vsel %vm6896_vm11, %v6898_v9, %v6894_v60  ;;  %v6852_v13 = vand.u32 2147483648, %v13949_v57  ;;  %vm6846_vm8 = vweird.f32 %v13949_v57 }
0x2854   : > { %v9675_v27 = vpop.eup %9674  ;;  %v6827_v53 = vmul.f32 %v9673_v2, %v13947_v58  ;;  %vm6832_vm12 = vweird.f32 %v9673_v2 }
0x2855   : > { %v9677_v26 = vpop.eup %9676  ;;  %v6842_v38 = vmul.f32 %v9675_v27, %v13949_v57  ;;  %vm6847_vm13 = vweird.f32 %v9675_v27  ;;  %vm6833_vm15 = vmor %vm6831_vm14, %vm6832_vm12  ;;  %v6853_v9 = vor.u32 1.1754944e-38, %v6852_v13  ;;  %vm6861_vm14 = vweird.f32 %v13956_v22 }
0x2856   : > { %v9679_v12 = vpop.eup %9678  ;;  %v6828_v17 = vsub.f32 1.0, %v6827_v53  ;;  %v13970_v62 = vadd.f32 1.0, %v9677_v26  ;;  %vm13993_vm9 = vmor %vm6846_vm8, %vm6847_vm13  ;;  %vm6876_vm8 = vweird.f32 %v13958_v15 }
0x2857   : > { %v13968_v11 = vadd.f32 1.0, %v9679_v12  ;;  %v13972_v59 = vpop.eup %9680  ;;  %v6843_v1 = vsub.f32 1.0, %v6842_v38  ;;  %v6838_v12 = vor.u32 1.1754944e-38, %v6837_v43 }
0x2858   : > { %v13975_v63 = vpop.eup %9682  ;;  %v6829_v35 = vmul.f32 %v9673_v2, %v6828_v17  ;;  %v6857_v37 = vmul.f32 %v13972_v59, %v13956_v22  ;;  %vm6862_vm12 = vweird.f32 %v13972_v59 }
0x2859   : > { %9684 = vrcp.f32 %v13968_v11  ;;  %v6844_v44 = vmul.f32 %v9675_v27, %v6843_v1  ;;  %v6872_v61 = vmul.f32 %v13975_v63, %v13958_v15  ;;  %vm6877_vm13 = vweird.f32 %v13975_v63 }
0x285a   : > { %9686 = vrcp.f32 %v13970_v62  ;;  %v6830_v19 = vadd.f32 %v9673_v2, %v6829_v35  ;;  %v6858_v0 = vsub.f32 1.0, %v6857_v37 }
0x285b   : > { %v6845_v28 = vadd.f32 %v9675_v27, %v6844_v44  ;;  %v6873_v24 = vsub.f32 1.0, %v6872_v61  ;;  %v6882_v61 = vand.u32 2147483648, %v13958_v15 }
0x285c   : > { %v6834_v30 = vsel %vm6833_vm15, %v9673_v2, %v6830_v19  ;;  %v6859_v52 = vmul.f32 %v13972_v59, %v6858_v0  ;;  %v6867_v2 = vand.u32 2147483648, %v13956_v22  ;;  %v6865_v19 = vand.u32 2147483647, %v13956_v22  ;;  %vm6863_vm15 = vmor %vm6861_vm14, %vm6862_vm12 }
0x285d   : > { %v6849_v60 = vsel %vm13993_vm9, %v9675_v27, %v6845_v28  ;;  %v6880_v0 = vand.u32 2147483647, %v13958_v15  ;;  %vm6878_vm9 = vmor %vm6876_vm8, %vm6877_vm13  ;;  %v6883_v22 = vor.u32 1.1754944e-38, %v6882_v61  ;;  %vm6906_vm14 = vweird.f32 %v13968_v11 }
0x285e   : > { %v6860_v17 = vadd.f32 %v13972_v59, %v6859_v52  ;;  %v6868_v13 = vor.u32 1.1754944e-38, %v6867_v2  ;;  %vm6921_vm8 = vweird.f32 %v13970_v62 }
0x285f   : > { %v13983_v50 = vpop.eup %9684 }
0x2860   : > { %v13986_v39 = vpop.eup %9686  ;;  %v6902_v26 = vmul.f32 %v13983_v50, %v13968_v11  ;;  %v6864_v28 = vsel %vm6863_vm15, %v13972_v59, %v6860_v17  ;;  %vm6907_vm12 = vweird.f32 %v13983_v50 }
0x2861   : > { %vm6922_vm13 = vweird.f32 %v13986_v39  ;;  %vm6908_vm15 = vmor %vm6906_vm14, %vm6907_vm12 }
0x2862   : > { %v6903_v1 = vsub.f32 1.0, %v6902_v26 }
0x2864   : > { %v6904_v43 = vmul.f32 %v13983_v50, %v6903_v1 }
0x2866   : > { %v6905_v59 = vadd.f32 %v13983_v50, %v6904_v43 }
0x2891   : > { %v6956_v54 = vpop.permute.xlu2 %6955 }
0x2892   : > { %v6979_v48 = vmul.f32 %v6956_v54, %v13953_v7  ;;  %v6835_v54 = vand.u32 2147483647, %v13947_v58  ;;  %v6874_v58 = vmul.f32 %v13975_v63, %v6873_v24 }
0x2894   : > { %6995 = vrot.lane.b32.xlu1 %v6979_v48, %s10210_s5  ;;  %v6850_v48 = vand.u32 2147483647, %v13949_v57  ;;  %v6917_v57 = vmul.f32 %v13986_v39, %v13970_v62  ;;  %vm6836_vm10 = vcmp.eq.f32.partialorder %v6835_v54, 8.507059e+37  ;;  %v6875_v37 = vadd.f32 %v13975_v63, %v6874_v58 }
0x2895   : > { %v14005_v38 = vsel %vm6836_vm10, %v6838_v12, %v6834_v30  ;;  %vm6866_vm10 = vcmp.eq.f32.partialorder %v6865_v19, 8.507059e+37  ;;  %v6927_v12 = vand.u32 2147483648, %v13970_v62  ;;  %v6910_v58 = vand.u32 2147483647, %v13968_v11 }
0x2896   : > { %vm6851_vm11 = vcmp.eq.f32.partialorder %v6850_v48, 8.507059e+37  ;;  %v6918_v44 = vsub.f32 1.0, %v6917_v57  ;;  %v6879_v24 = vsel %vm6878_vm9, %v13975_v63, %v6875_v37  ;;  %v14029_v48 = vsel %vm6866_vm10, %v6868_v13, %v6864_v28  ;;  %vm6923_vm9 = vmor %vm6921_vm8, %vm6922_vm13 }
0x2897   : > { %v6925_v57 = vand.u32 2147483647, %v13970_v62  ;;  %vm6911_vm10 = vcmp.eq.f32.partialorder %v6910_v58, 8.507059e+37  ;;  %v6940_v37 = vmul.f32 %v14005_v38, %v13846_v6 }
0x2898   : > { %v6919_v54 = vmul.f32 %v13986_v39, %v6918_v44 }
0x2899   : > { %v6966_v18 = vpop.permute.xlu2 %6965 }
0x289a   : > { %v6984_v14 = vmul.f32 %v6966_v18, %v13965_v10  ;;  %v6920_v26 = vadd.f32 %v13986_v39, %v6919_v54 }
0x289c   : > { %7005 = vrot.lane.b32.xlu1 %v6984_v14, %s10210_s5  ;;  %v14009_v14 = vsel %vm6851_vm11, %v6853_v9, %v6849_v60  ;;  %vm6881_vm11 = vcmp.eq.f32.partialorder %v6880_v0, 8.507059e+37  ;;  %v6912_v60 = vand.u32 2147483648, %v13968_v11  ;;  %v6909_v9 = vsel %vm6908_vm15, %v13983_v50, %v6905_v59 }
0x289d   : > { %v14031_v15 = vsel %vm6881_vm11, %v6883_v22, %v6879_v24  ;;  %vm6926_vm11 = vcmp.eq.f32.partialorder %v6925_v57, 8.507059e+37  ;;  %v6939_v50 = vmul.f32 %v13953_v7, %v13878_v45  ;;  %v6944_v0 = vmul.f32 %v13965_v10, %v13885_v4 }
0x289e   : > { %v6913_v2 = vor.u32 1.1754944e-38, %v6912_v60  ;;  %v6942_v45 = vmul.f32 %v14029_v48, %v13856_v29 }
0x28ab   : > { %v6958_v53 = vpop.permute.xlu0 %6957 }
0x28ac   : > { %v6960_v18 = vpop.permute.xlu1 %6959  ;;  %v6980_v27 = vmul.f32 %v6958_v53, %v14005_v38  ;;  %v6924_v53 = vsel %vm6923_vm9, %v13986_v39, %v6920_v26 }
0x28ad   : > { %v6981_v35 = vmul.f32 %v6960_v18, %v14009_v14  ;;  %v6928_v18 = vor.u32 1.1754944e-38, %v6927_v12 }
0x28ae   : > { %6997 = vrot.lane.b32.xlu2 %v6980_v27, %s10210_s5  ;;  %v14049_v27 = vsel %vm6911_vm10, %v6913_v2, %v6909_v9 }
0x28af   : > { %6999 = vrot.lane.b32.xlu0 %v6981_v35, %s10210_s5  ;;  %v14051_v11 = vsel %vm6926_vm11, %v6928_v18, %v6924_v53  ;;  %v6945_v4 = vmul.f32 %v14049_v27, %v13868_v41  ;;  %v6943_v41 = vmul.f32 %v14031_v15, %v13858_v23 }
0x28b3   : > { %v6962_v8 = vpop.permute.xlu0 %6961 }
0x28b4   : > { %v6964_v30 = vpop.permute.xlu1 %6963  ;;  %v6982_v52 = vmul.f32 %v6962_v8, %v14029_v48 }
0x28b5   : > { %v6983_v63 = vmul.f32 %v6964_v30, %v14031_v15 }
0x28b6   : > { %7001 = vrot.lane.b32.xlu2 %v6982_v52, %s10210_s5  ;;  %v6941_v52 = vmul.f32 %v14009_v14, %v13848_v47  ;;  %v6946_v47 = vmul.f32 %v14051_v11, %v13870_v31 }
0x28b7   : > { %7003 = vrot.lane.b32.xlu0 %v6983_v63, %s10210_s5 }
0x28bb   : > { %v6968_v17 = vpop.permute.xlu0 %6967 }
0x28bc   : > { %v6970_v1 = vpop.permute.xlu1 %6969  ;;  %v6985_v35 = vmul.f32 %v6968_v17, %v14049_v27 }
0x28bd   : > { %v6986_v62 = vmul.f32 %v6970_v1, %v14051_v11 }
0x28be   : > { %7007 = vrot.lane.b32.xlu2 %v6985_v35, %s10210_s5 }
0x28bf   : > { %7009 = vrot.lane.b32.xlu0 %v6986_v62, %s10210_s5 }
0x2906   : > { %v6996_v39 = vpop.permute.xlu1 %6995 }
0x2907   : > { %v14061_v44 = vadd.f32 %v6996_v39, %v6939_v50 }
0x2908   : > { %v6998_v61 = vpop.permute.xlu2 %6997 }
0x2909   : > { %v14063_v19 = vadd.f32 %v6998_v61, %v6940_v37  ;;  %9688 = vtanh.f32 %v14061_v44 }
0x290b   : > { %9690 = vtanh.f32 %v14063_v19 }
0x290e   : > { %v7006_v28 = vpop.permute.xlu1 %7005 }
0x290f   : > { %v9689_v43 = vpop.eup %9688  ;;  %v14071_v24 = vadd.f32 %v7006_v28, %v6944_v0 }
0x2910   : > { %v7002_v6 = vpop.permute.xlu2 %7001  ;;  %7043 = vrot.lane.b32.xlu0 %v9689_v43, %s10208_s20 }
0x2911   : > { %v9691_v13 = vpop.eup %9690  ;;  %v14074_v54 = vadd.f32 %v7002_v6, %v6942_v45  ;;  %9692 = vtanh.f32 %v14071_v24 }
0x2912   : > { %7045 = vrot.lane.b32.xlu1 %v9691_v13, %s10208_s20 }
0x2913   : > { %9694 = vtanh.f32 %v14074_v54 }
0x2917   : > { %v9693_v22 = vpop.eup %9692 }
0x2918   : > { %v7008_v29 = vpop.permute.xlu2 %7007  ;;  %7053 = vrot.lane.b32.xlu0 %v9693_v22, %s10208_s20 }
0x2919   : > { %v9695_v8 = vpop.eup %9694  ;;  %v14082_v30 = vadd.f32 %v7008_v29, %v6945_v4 }
0x291a   : > { %7049 = vrot.lane.b32.xlu1 %v9695_v8, %s10208_s20 }
0x291b   : > { %9696 = vtanh.f32 %v14082_v30 }
0x2921   : > { %v9697_v59 = vpop.eup %9696  ;;  %v7000_v63 = vpop.permute.xlu0 %6999 }
0x2922   : > { %v14088_v26 = vadd.f32 %v7000_v63, %v6941_v52  ;;  %7055 = vrot.lane.b32.xlu1 %v9697_v59, %s10208_s20 }
0x2924   : > { %9698 = vtanh.f32 %v14088_v26 }
0x2929   : > { %v7004_v60 = vpop.permute.xlu0 %7003 }
0x292a   : > { %v9699_v12 = vpop.eup %9698  ;;  %v14094_v58 = vadd.f32 %v7004_v60, %v6943_v41 }
0x292b   : > { %7047 = vrot.lane.b32.xlu2 %v9699_v12, %s10208_s20  ;;  %v7085_v12 = vld [vmem:[%s10492_s15 + $0x17] sm:$0x1] }
0x292c   : > { %9700 = vtanh.f32 %v14094_v58 }
0x2931   : > { %v7010_v57 = vpop.permute.xlu0 %7009 }
0x2932   : > { %v9701_v9 = vpop.eup %9700  ;;  %v14100_v53 = vadd.f32 %v7010_v57, %v6946_v47 }
0x2933   : > { %7051 = vrot.lane.b32.xlu2 %v9701_v9, %s10208_s20 }
0x2934   : > { %9702 = vtanh.f32 %v14100_v53 }
0x293a   : > { %v9703_v23 = vpop.eup %9702 }
0x293b   : > { %7057 = vrot.lane.b32.xlu2 %v9703_v23, %s10208_s20 }
0x2982   : > { %v7044_v2 = vpop.permute.xlu0 %7043 }
0x2983   : > { %v7067_v18 = vmul.f32 %v7044_v2, %v13953_v7 }
0x2984   : > { %v7046_v17 = vpop.permute.xlu1 %7045 }
0x2985   : > { %v7048_v1 = vpop.permute.xlu2 %7047  ;;  %v7068_v35 = vmul.f32 %v7046_v17, %v14005_v38  ;;  %v14108_v31 = vadd.f32 %v7067_v18, %v13893_v40  ;;  %v7088_v17 = vld [vmem:[%s10492_s15 + $0x2f] sm:$0x1] }
0x2986   : > { %v7069_v62 = vmul.f32 %v7048_v1, %v14009_v14 }
0x2987   : > { %v14112_v50 = vadd.f32 %v7068_v35, %v13897_v25  ;;  %v7099_v37 = vrot.slane %v7068_v35, 7  ;;  %v7086_v35 = vld [vmem:[%s10492_s15 + $0x1f] sm:$0x1] }
0x2988   : > { %v14115_v39 = vadd.f32 %v7069_v62, %v13900_v55  ;;  %v7101_v28 = vrot.slane %v7069_v62, 6 }
0x2989   : > { %v7100_v40 = vsel %vm898_vm0, %v7099_v37, %v7067_v18  ;;  %v7087_v37 = vld [vmem:[%s10492_s15 + $0x27] sm:$0x1] }
0x298a   : > { %v7054_v61 = vpop.permute.xlu0 %7053  ;;  %v7102_v13 = vsel %vm901_vm1, %v7101_v28, %v7100_v40 }
0x298b   : > { %v7072_v0 = vmul.f32 %v7054_v61, %v13965_v10 }
0x298c   : > { %v7050_v7 = vpop.permute.xlu1 %7049 }
0x298d   : > { %v7052_v45 = vpop.permute.xlu2 %7051  ;;  %v7070_v38 = vmul.f32 %v7050_v7, %v14029_v48  ;;  %v14121_v43 = vadd.f32 %v7072_v0, %v13906_v16 }
0x298e   : > { %v7071_v25 = vmul.f32 %v7052_v45, %v14031_v15 }
0x298f   : > { %v14125_v14 = vadd.f32 %v7070_v38, %v13910_v46  ;;  %v7103_v55 = vrot.slane %v7070_v38, 5  ;;  %v7107_v46 = vrot.slane %v7072_v0, 3 }
0x2990   : > { %v14128_v6 = vadd.f32 %v7071_v25, %v13913_v20  ;;  %v7105_v10 = vrot.slane %v7071_v25, 4  ;;  %v7089_v25 = vld [vmem:[%s10492_s15 + $0x37] sm:$0x1] }
0x2991   : > { %v7104_v4 = vsel %vm904_vm2, %v7103_v55, %v7102_v13 }
0x2992   : > { %v7106_v22 = vsel %vm907_vm3, %v7105_v10, %v7104_v4  ;;  %v7090_v10 = vld [vmem:[%s10492_s15 + $0x3f] sm:$0x1] }
0x2993   : > { %v7108_v63 = vsel %vm910_vm4, %v7107_v46, %v7106_v22 }
0x2994   : > { %v7056_v48 = vpop.permute.xlu1 %7055 }
0x2995   : > { %v7058_v16 = vpop.permute.xlu2 %7057  ;;  %v7073_v15 = vmul.f32 %v7056_v48, %v14049_v27 }
0x2996   : > { %v7074_v29 = vmul.f32 %v7058_v16, %v14051_v11  ;;  %v7084_v11 = vld [vmem:[%s10492_s15 + $0xf] sm:$0x1] }
0x2997   : > { %v14136_v20 = vadd.f32 %v7073_v15, %v13921_v21  ;;  %v7109_v8 = vrot.slane %v7073_v15, 2  ;;  %v7083_v21 = vld [vmem:[%s10492_s15 + $0x7] sm:$0x1]  ;;  %s15016_s15 = sld [smem:[#allocation37_spill]] }
0x2998   : > { %v14139_v52 = vadd.f32 %v7074_v29, %v13924_v42  ;;  %v7111_v59 = vrot.slane %v7074_v29, 1 }
0x2999   : > { %v7110_v41 = vsel %vm913_vm5, %v7109_v8, %v7108_v63 }
0x299a   : > { %v7112_v60 = vsel %vm916_vm6, %v7111_v59, %v7110_v41 }
0x299b   : > { %7113 = vrot.lane.b32.xlu0 %v7112_v60, %s10210_s5 }
0x2a0d   : > { %v7114_v27 = vpop.permute.xlu0 %7113 }
0x2a0e   : > { %8529 = vmatmul.msk.f32.vlgmr.msrb.gmra.mxu1 %vm920_vm7, %v7114_v27 }
0x2a8b   : > { %v7134_v42 = vpop.f32.mrf.mxu1 }
0x2a8c   : > { %v7138_v47 = vrot.slane %v7134_v42, 1  ;;  %v7139_v57 = vrot.slane %v7134_v42, 2  ;;  %v7153_v9 = vadd.f32 %v7134_v42, %v7083_v21  ;;  %v7142_v18 = vrot.slane %v7134_v42, 5 }
0x2a8d   : > { %v7140_v1 = vrot.slane %v7134_v42, 3  ;;  %v7141_v62 = vrot.slane %v7134_v42, 4  ;;  %v7143_v40 = vrot.slane %v7134_v42, 6  ;;  %v7144_v55 = vrot.slane %v7134_v42, 7 }
0x2a8e   : > { %v7154_v23 = vadd.f32 %v7138_v47, %v7084_v11  ;;  %v7155_v2 = vadd.f32 %v7139_v57, %v7085_v12  ;;  %9704 = vtanh.f32 %v7153_v9  ;;  %v7158_v61 = vadd.f32 %v7142_v18, %v7088_v17 }
0x2a8f   : > { %v7156_v0 = vadd.f32 %v7140_v1, %v7086_v35  ;;  %v7157_v28 = vadd.f32 %v7141_v62, %v7087_v37  ;;  %v7159_v13 = vadd.f32 %v7143_v40, %v7089_v25  ;;  %v7160_v48 = vadd.f32 %v7144_v55, %v7090_v10 }
0x2a90   : > { %9706 = vtanh.f32 %v7154_v23  ;;  %v8532_v29 = vmul.f32 -1.442695, %v7155_v2  ;;  %v8530_v21 = vmul.f32 -1.442695, %v7153_v9  ;;  %v8531_v12 = vmul.f32 -1.442695, %v7154_v23 }
0x2a91   : > { %9708 = vtanh.f32 %v7155_v2  ;;  %v8534_v8 = vmul.f32 -1.442695, %v7157_v28  ;;  %v8537_v41 = vmul.f32 -1.442695, %v7160_v48  ;;  %v8535_v18 = vmul.f32 -1.442695, %v7158_v61 }
0x2a92   : > { %9710 = vtanh.f32 %v7158_v61  ;;  %v8533_v1 = vmul.f32 -1.442695, %v7156_v0 }
0x2a93   : > { %9712 = vtanh.f32 %v7156_v0  ;;  %v8536_v0 = vmul.f32 -1.442695, %v7159_v13 }
0x2a94   : > { %v9705_v7 = vpop.eup %9704  ;;  %9714 = vtanh.f32 %v7157_v28 }
0x2a95   : > { %7337 = vrot.lane.b32.xlu0 %v9705_v7, %s10208_s20  ;;  %9716 = vtanh.f32 %v7159_v13 }
0x2a96   : > { %v9707_v45 = vpop.eup %9706  ;;  %9718 = vtanh.f32 %v7160_v48 }
0x2a97   : > { %v9709_v38 = vpop.eup %9708  ;;  %7339 = vrot.lane.b32.xlu1 %v9707_v45, %s10208_s20  ;;  %9720 = vpow2.f32 %v8532_v29 }
0x2a98   : > { %7341 = vrot.lane.b32.xlu2 %v9709_v38, %s10208_s20  ;;  %v9711_v4 = vpop.eup %9710  ;;  %9722 = vpow2.f32 %v8534_v8 }
0x2a99   : > { %v9713_v22 = vpop.eup %9712 }
0x2a9a   : > { %v9715_v16 = vpop.eup %9714 }
0x2a9b   : > { %v9717_v15 = vpop.eup %9716 }
0x2a9c   : > { %v9719_v46 = vpop.eup %9718 }
0x2a9d   : > { %7347 = vrot.lane.b32.xlu0 %v9711_v4, %s10208_s20  ;;  %v9721_v59 = vpop.eup %9720 }
0x2a9e   : > { %v7187_v63 = vadd.f32 1.0, %v9721_v59  ;;  %v9723_v60 = vpop.eup %9722 }
0x2a9f   : > { %7343 = vrot.lane.b32.xlu1 %v9713_v22, %s10208_s20  ;;  %v14162_v27 = vadd.f32 1.0, %v9723_v60 }
0x2aa0   : > { %7345 = vrot.lane.b32.xlu2 %v9715_v16, %s10208_s20  ;;  %9724 = vrcp.f32 %v7187_v63  ;;  %v7234_v61 = vand.u32 2147483648, %v7187_v63  ;;  %vm7228_vm13 = vweird.f32 %v7187_v63  ;;  %v7232_v25 = vand.u32 2147483647, %v7187_v63 }
0x2aa1   : > { %9726 = vpow2.f32 %v8537_v41  ;;  %v7264_v60 = vand.u32 2147483648, %v14162_v27  ;;  %vm7258_vm9 = vweird.f32 %v14162_v27 }
0x2aa2   : > { %9728 = vrcp.f32 %v14162_v27  ;;  %v7235_v22 = vor.u32 1.1754944e-38, %v7234_v61  ;;  %vm7233_vm8 = vcmp.eq.f32.partialorder %v7232_v25, 8.507059e+37 }
0x2aa3   : > { %9730 = vpow2.f32 %v8530_v21  ;;  %v7262_v21 = vand.u32 2147483647, %v14162_v27 }
0x2aa4   : > { %9732 = vpow2.f32 %v8531_v12 }
0x2aa5   : > { %vm7263_vm11 = vcmp.eq.f32.partialorder %v7262_v21, 8.507059e+37 }
0x2aa6   : > { %v9725_v11 = vpop.eup %9724 }
0x2aa7   : > { %7349 = vrot.lane.b32.xlu1 %v9717_v15, %s10208_s20  ;;  %v9727_v42 = vpop.eup %9726  ;;  %v7224_v47 = vmul.f32 %v9725_v11, %v7187_v63  ;;  %vm7229_vm12 = vweird.f32 %v9725_v11 }
0x2aa8   : > { %7351 = vrot.lane.b32.xlu2 %v9719_v46, %s10208_s20  ;;  %v14165_v57 = vadd.f32 1.0, %v9727_v42  ;;  %v9729_v17 = vpop.eup %9728  ;;  %vm7230_vm14 = vmor %vm7228_vm13, %vm7229_vm12 }
0x2aa9   : > { %v7225_v2 = vsub.f32 1.0, %v7224_v47  ;;  %v9731_v35 = vpop.eup %9730  ;;  %v7254_v9 = vmul.f32 %v9729_v17, %v14162_v27  ;;  %vm7259_vm15 = vweird.f32 %v9729_v17 }
0x2aaa   : > { %v9733_v62 = vpop.eup %9732  ;;  %9734 = vrcp.f32 %v14165_v57  ;;  %v14169_v23 = vadd.f32 1.0, %v9731_v35  ;;  %vm7260_vm10 = vmor %vm7258_vm9, %vm7259_vm15  ;;  %vm7303_vm13 = vweird.f32 %v14165_v57 }
0x2aab   : > { %v7226_v37 = vmul.f32 %v9725_v11, %v7225_v2  ;;  %9736 = vpow2.f32 %v8535_v18  ;;  %v14171_v7 = vadd.f32 1.0, %v9733_v62  ;;  %v7255_v45 = vsub.f32 1.0, %v7254_v9 }
0x2aac   : > { %9738 = vpow2.f32 %v8533_v1  ;;  %v7265_v18 = vor.u32 1.1754944e-38, %v7264_v60 }
0x2aad   : > { %v7227_v28 = vadd.f32 %v9725_v11, %v7226_v37  ;;  %9740 = vrcp.f32 %v14169_v23  ;;  %v7256_v4 = vmul.f32 %v9729_v17, %v7255_v45 }
0x2aae   : > { %9742 = vrcp.f32 %v14171_v7 }
0x2aaf   : > { %v7231_v10 = vsel %vm7230_vm14, %v9725_v11, %v7227_v28  ;;  %9744 = vpow2.f32 %v8536_v0  ;;  %v7257_v63 = vadd.f32 %v9729_v17, %v7256_v4  ;;  %v7307_v0 = vand.u32 2147483647, %v14165_v57 }
0x2ab0   : > { %v14173_v38 = vpop.eup %9734  ;;  %v14185_v29 = vsel %vm7233_vm8, %v7235_v22, %v7231_v10  ;;  %v7204_v22 = vand.u32 2147483648, %v14169_v23 }
0x2ab1   : > { %v9737_v40 = vpop.eup %9736  ;;  %v7299_v48 = vmul.f32 %v14173_v38, %v14165_v57  ;;  %v7261_v47 = vsel %vm7260_vm10, %v9729_v17, %v7257_v63  ;;  %vm7304_vm12 = vweird.f32 %v14173_v38  ;;  %v7309_v17 = vand.u32 2147483648, %v14165_v57 }
0x2ab2   : > { %v9739_v55 = vpop.eup %9738  ;;  %v14179_v16 = vadd.f32 1.0, %v9737_v40  ;;  %v14205_v27 = vsel %vm7263_vm11, %v7265_v18, %v7261_v47  ;;  %vm7305_vm14 = vmor %vm7303_vm13, %vm7304_vm12  ;;  %vm7308_vm8 = vcmp.eq.f32.partialorder %v7307_v0, 8.507059e+37  ;;  %vm7198_vm10 = vweird.f32 %v14169_v23 }
0x2ab3   : > { %v14181_v15 = vadd.f32 1.0, %v9739_v55  ;;  %v14183_v13 = vpop.eup %9740  ;;  %v7300_v41 = vsub.f32 1.0, %v7299_v48  ;;  %v7310_v48 = vor.u32 1.1754944e-38, %v7309_v17  ;;  %vm7213_vm12 = vweird.f32 %v14171_v7 }
0x2ab4   : > { %v14187_v8 = vpop.eup %9742  ;;  %9746 = vrcp.f32 %v14179_v16  ;;  %v7194_v11 = vmul.f32 %v14183_v13, %v14169_v23  ;;  %vm7199_vm15 = vweird.f32 %v14183_v13  ;;  %v7205_v18 = vor.u32 1.1754944e-38, %v7204_v22 }
0x2ab5   : > { %9748 = vrcp.f32 %v14181_v15  ;;  %v9745_v12 = vpop.eup %9744  ;;  %v7209_v42 = vmul.f32 %v14187_v8, %v14171_v7  ;;  %v7301_v2 = vmul.f32 %v14173_v38, %v7300_v41  ;;  %vm7214_vm9 = vweird.f32 %v14187_v8  ;;  %vm7200_vm11 = vmor %vm7198_vm10, %vm7199_vm15 }
0x2ab6   : > { %v7195_v1 = vsub.f32 1.0, %v7194_v11  ;;  %v14201_v35 = vadd.f32 1.0, %v9745_v12  ;;  %v7202_v11 = vand.u32 2147483647, %v14169_v23  ;;  %v7219_v12 = vand.u32 2147483648, %v14171_v7  ;;  %vm7215_vm13 = vmor %vm7213_vm12, %vm7214_vm9 }
0x2ab7   : > { %v7210_v9 = vsub.f32 1.0, %v7209_v42  ;;  %v7302_v61 = vadd.f32 %v14173_v38, %v7301_v2  ;;  %v7217_v42 = vand.u32 2147483647, %v14171_v7  ;;  %v7279_v7 = vand.u32 2147483648, %v14179_v16 }
0x2ab8   : > { %v7196_v40 = vmul.f32 %v14183_v13, %v7195_v1  ;;  %9750 = vrcp.f32 %v14201_v35  ;;  %vm7273_vm10 = vweird.f32 %v14179_v16  ;;  %vm7243_vm12 = vweird.f32 %v14181_v15 }
0x2ab9   : > { %v7211_v55 = vmul.f32 %v14187_v8, %v7210_v9  ;;  %v7306_v4 = vsel %vm7305_vm14, %v14173_v38, %v7302_v61  ;;  %vm7203_vm14 = vcmp.eq.f32.partialorder %v7202_v11, 8.507059e+37  ;;  %v7220_v9 = vor.u32 1.1754944e-38, %v7219_v12 }
0x2aba   : > { %v14203_v62 = vpop.eup %9746  ;;  %v7197_v57 = vadd.f32 %v14183_v13, %v7196_v40 }
0x2abb   : > { %v14207_v28 = vpop.eup %9748  ;;  %v7269_v25 = vmul.f32 %v14203_v62, %v14179_v16  ;;  %v7212_v41 = vadd.f32 %v14187_v8, %v7211_v55  ;;  %vm7274_vm15 = vweird.f32 %v14203_v62 }
0x2abc   : > { %v7239_v10 = vmul.f32 %v14207_v28, %v14181_v15  ;;  %v7201_v47 = vsel %vm7200_vm11, %v14183_v13, %v7197_v57  ;;  %vm7244_vm9 = vweird.f32 %v14207_v28  ;;  %vm7275_vm11 = vmor %vm7273_vm10, %vm7274_vm15  ;;  %v7280_v57 = vor.u32 1.1754944e-38, %v7279_v7 }
0x2abd   : > { %v7216_v1 = vsel %vm7215_vm13, %v14187_v8, %v7212_v41  ;;  %v14246_v61 = vsel %vm7203_vm14, %v7205_v18, %v7201_v47  ;;  %vm7245_vm13 = vmor %vm7243_vm12, %vm7244_vm9  ;;  %vm7288_vm9 = vweird.f32 %v14201_v35 }
0x2abe   : > { %v7240_v60 = vsub.f32 1.0, %v7239_v10  ;;  %v14231_v21 = vpop.eup %9750  ;;  %v7277_v10 = vand.u32 2147483647, %v14179_v16 }
0x2abf   : > { %v7284_v23 = vmul.f32 %v14231_v21, %v14201_v35  ;;  %vm7289_vm15 = vweird.f32 %v14231_v21 }
0x2ac0   : > { %vm7278_vm14 = vcmp.eq.f32.partialorder %v7277_v10, 8.507059e+37  ;;  %vm7290_vm10 = vmor %vm7288_vm9, %vm7289_vm15 }
0x2ac1   : > { %v7285_v55 = vsub.f32 1.0, %v7284_v23  ;;  %v7321_v23 = vmul.f32 %v14246_v61, %v14061_v44 }
0x2af2   : > { %v7342_v46 = vpop.permute.xlu2 %7341 }
0x2af3   : > { %v7363_v59 = vmul.f32 %v7342_v46, %v14185_v29  ;;  %v7270_v46 = vsub.f32 1.0, %v7269_v25 }
0x2af5   : > { %7381 = vrot.lane.b32.xlu1 %v7363_v59, %s10210_s5  ;;  %v14227_v59 = vsel %vm7308_vm8, %v7310_v48, %v7306_v4  ;;  %v7271_v2 = vmul.f32 %v14203_v62, %v7270_v46  ;;  %vm7218_vm8 = vcmp.eq.f32.partialorder %v7217_v42, 8.507059e+37  ;;  %v7249_v4 = vand.u32 2147483648, %v14181_v15 }
0x2af6   : > { %v14250_v0 = vsel %vm7218_vm8, %v7220_v9, %v7216_v1  ;;  %v7247_v48 = vand.u32 2147483647, %v14181_v15  ;;  %v7292_v42 = vand.u32 2147483647, %v14201_v35 }
0x2af7   : > { %v7272_v8 = vadd.f32 %v14203_v62, %v7271_v2  ;;  %v7250_v41 = vor.u32 1.1754944e-38, %v7249_v4  ;;  %v7328_v4 = vmul.f32 %v14227_v59, %v14100_v53 }
0x2af8   : > { %vm7248_vm8 = vcmp.eq.f32.partialorder %v7247_v48, 8.507059e+37 }
0x2af9   : > { %v7276_v22 = vsel %vm7275_vm11, %v14203_v62, %v7272_v8  ;;  %vm7293_vm11 = vcmp.eq.f32.partialorder %v7292_v42, 8.507059e+37 }
0x2afa   : > { %v7346_v37 = vpop.permute.xlu2 %7345 }
0x2afb   : > { %v7365_v45 = vmul.f32 %v7346_v37, %v14205_v27  ;;  %v7241_v37 = vmul.f32 %v14207_v28, %v7240_v60  ;;  %v14267_v60 = vsel %vm7278_vm14, %v7280_v57, %v7276_v22 }
0x2afd   : > { %7385 = vrot.lane.b32.xlu1 %v7365_v45, %s10210_s5  ;;  %v7242_v25 = vadd.f32 %v14207_v28, %v7241_v37 }
0x2aff   : > { %v7246_v46 = vsel %vm7245_vm13, %v14207_v28, %v7242_v25  ;;  %v7294_v28 = vand.u32 2147483648, %v14201_v35  ;;  %v7323_v35 = vmul.f32 %v14185_v29, %v14088_v26  ;;  %v7325_v25 = vmul.f32 %v14205_v27, %v14094_v58 }
0x2b00   : > { %v14270_v11 = vsel %vm7248_vm8, %v7250_v41, %v7246_v46  ;;  %v7322_v58 = vmul.f32 %v14250_v0, %v14063_v19 }
0x2b01   : > { %v7295_v2 = vor.u32 1.1754944e-38, %v7294_v28 }
0x2b02   : > { %v7352_v63 = vpop.permute.xlu2 %7351 }
0x2b03   : > { %v7368_v38 = vmul.f32 %v7352_v63, %v14227_v59  ;;  %v7286_v63 = vmul.f32 %v14231_v21, %v7285_v55 }
0x2b05   : > { %7391 = vrot.lane.b32.xlu1 %v7368_v38, %s10210_s5  ;;  %v7287_v62 = vadd.f32 %v14231_v21, %v7286_v63 }
0x2b07   : > { %v7338_v45 = vpop.permute.xlu0 %7337  ;;  %v7291_v47 = vsel %vm7290_vm10, %v14231_v21, %v7287_v62 }
0x2b08   : > { %v7361_v13 = vmul.f32 %v7338_v45, %v14246_v61  ;;  %v14281_v18 = vsel %vm7293_vm11, %v7295_v2, %v7291_v47 }
0x2b09   : > { %v7340_v17 = vpop.permute.xlu1 %7339 }
0x2b0a   : > { %v7362_v40 = vmul.f32 %v7340_v17, %v14250_v0  ;;  %7377 = vrot.lane.b32.xlu2 %v7361_v13, %s10210_s5  ;;  %v7326_v13 = vmul.f32 %v14267_v60, %v14071_v24 }
0x2b0c   : > { %7379 = vrot.lane.b32.xlu0 %v7362_v40, %s10210_s5 }
0x2b0f   : > { %v7348_v16 = vpop.permute.xlu0 %7347 }
0x2b10   : > { %v7366_v38 = vmul.f32 %v7348_v16, %v14267_v60 }
0x2b11   : > { %v7344_v12 = vpop.permute.xlu1 %7343 }
0x2b12   : > { %v7364_v15 = vmul.f32 %v7344_v12, %v14270_v11  ;;  %7387 = vrot.lane.b32.xlu2 %v7366_v38, %s10210_s5  ;;  %v7324_v12 = vmul.f32 %v14270_v11, %v14074_v54 }
0x2b14   : > { %7383 = vrot.lane.b32.xlu0 %v7364_v15, %s10210_s5 }
0x2b19   : > { %v7350_v1 = vpop.permute.xlu1 %7349 }
0x2b1a   : > { %v7367_v37 = vmul.f32 %v7350_v1, %v14281_v18 }
0x2b1c   : > { %7389 = vrot.lane.b32.xlu0 %v7367_v37, %s10210_s5  ;;  %v7327_v37 = vmul.f32 %v14281_v18, %v14082_v30  ;;  %v14318_v30 = vld [vmem:[#allocation13 + $0x18] sm:$0xff] }
0x2b1d   : > { %7535 = vmatpush.msrb.mxu3 %v14318_v30  ;;  %7623 = vmatpush.msra.mxu0 %v14318_v30 }
0x2b1e   : > { %7688 = vmatpush.msra.mxu1 %v14318_v30 }
0x2b64   : > { %v7378_v9 = vpop.permute.xlu2 %7377 }
0x2b65   : > { %v7401_v45 = vadd.f32 %v7378_v9, %v7321_v23 }
0x2b67   : > { %v7382_v7 = vpop.permute.xlu1 %7381  ;;  %9752 = vtanh.f32 %v7401_v45 }
0x2b68   : > { %v7403_v21 = vadd.f32 %v7382_v7, %v7323_v35 }
0x2b6a   : > { %9754 = vtanh.f32 %v7403_v21  ;;  %v7573_v16 = vrot.slane %v7403_v21, 6 }
0x2b6c   : > { %v7388_v17 = vpop.permute.xlu2 %7387 }
0x2b6d   : > { %v9753_v8 = vpop.eup %9752  ;;  %v7406_v40 = vadd.f32 %v7388_v17, %v7326_v13 }
0x2b6e   : > { %7425 = vrot.lane.b32.xlu1 %v9753_v8, %s10208_s20  ;;  %v7472_v8 = vld [vmem:[#allocation14 + $0x18] sm:$0xff] }
0x2b6f   : > { %v7386_v44 = vpop.permute.xlu1 %7385  ;;  %9756 = vtanh.f32 %v7406_v40  ;;  %v7579_v47 = vrot.slane %v7406_v40, 3  ;;  %v7471_v40 = vld [vmem:[#allocation14 + $0x10] sm:$0xff]  ;;  %7515 = vmatpush.msrb.mxu2 %v7472_v8 }
0x2b70   : > { %v9755_v55 = vpop.eup %9754  ;;  %v7405_v10 = vadd.f32 %v7386_v44, %v7325_v25  ;;  %v14321_v25 = vld [vmem:[#allocation13 + $0x10] sm:$0xff]  ;;  %v7470_v44 = vld [vmem:[#allocation14 + $0x8] sm:$0xff] }
0x2b71   : > { %7429 = vrot.lane.b32.xlu0 %v9755_v55, %s10208_s20  ;;  %v14323_v55 = vld [vmem:[#allocation13 + $0x8] sm:$0xff]  ;;  %7516 = vmatpush.msrb.mxu2 %v7471_v40 }
0x2b72   : > { %9758 = vtanh.f32 %v7405_v10  ;;  %v7577_v42 = vrot.slane %v7405_v10, 4  ;;  %7536 = vmatpush.msrb.mxu3 %v14321_v25  ;;  %v7469_v10 = vld [vmem:[#allocation14] sm:$0xff]  ;;  %7624 = vmatpush.msra.mxu0 %v14321_v25 }
0x2b73   : > { %7689 = vmatpush.msra.mxu1 %v14321_v25  ;;  %7517 = vmatpush.msrb.mxu2 %v7470_v44 }
0x2b74   : > { %7537 = vmatpush.msrb.mxu3 %v14323_v55  ;;  %7625 = vmatpush.msra.mxu0 %v14323_v55 }
0x2b75   : > { %v9757_v26 = vpop.eup %9756  ;;  %7690 = vmatpush.msra.mxu1 %v14323_v55  ;;  %7518 = vmatpush.msrb.mxu2 %v7469_v10 }
0x2b76   : > { %7435 = vrot.lane.b32.xlu1 %v9757_v26, %s10208_s20  ;;  %v14328_v26 = vld [vmem:[#allocation13] sm:$0xff] }
0x2b77   : > { %v7392_v24 = vpop.permute.xlu1 %7391  ;;  %7538 = vmatpush.msrb.mxu3 %v14328_v26  ;;  %7626 = vmatpush.msra.mxu0 %v14328_v26 }
0x2b78   : > { %v9759_v48 = vpop.eup %9758  ;;  %v7408_v22 = vadd.f32 %v7392_v24, %v7328_v4  ;;  %7691 = vmatpush.msra.mxu1 %v14328_v26  ;;  %7753 = vmatpush.msra.mxu2 %v14318_v30 }
0x2b79   : > { %7433 = vrot.lane.b32.xlu0 %v9759_v48, %s10208_s20  ;;  %7818 = vmatpush.msra.mxu3 %v14318_v30 }
0x2b7a   : > { %9760 = vtanh.f32 %v7408_v22  ;;  %v7583_v7 = vrot.slane %v7408_v22, 1  ;;  %7883 = vmatpush.msrb.mxu0 %v14318_v30  ;;  %7948 = vmatpush.msrb.mxu1 %v14318_v30 }
0x2b7b   : > { %7754 = vmatpush.msra.mxu2 %v14321_v25  ;;  %7819 = vmatpush.msra.mxu3 %v14321_v25 }
0x2b7c   : > { %7884 = vmatpush.msrb.mxu0 %v14321_v25  ;;  %7949 = vmatpush.msrb.mxu1 %v14321_v25 }
0x2b7d   : > { %7755 = vmatpush.msra.mxu2 %v14323_v55  ;;  %7820 = vmatpush.msra.mxu3 %v14323_v55 }
0x2b7e   : > { %v7380_v57 = vpop.permute.xlu0 %7379  ;;  %7885 = vmatpush.msrb.mxu0 %v14323_v55  ;;  %7950 = vmatpush.msrb.mxu1 %v14323_v55 }
0x2b7f   : > { %v7402_v46 = vadd.f32 %v7380_v57, %v7322_v58  ;;  %7756 = vmatpush.msra.mxu2 %v14328_v26  ;;  %7821 = vmatpush.msra.mxu3 %v14328_v26 }
0x2b80   : > { %v9761_v63 = vpop.eup %9760  ;;  %7886 = vmatpush.msrb.mxu0 %v14328_v26  ;;  %7951 = vmatpush.msrb.mxu1 %v14328_v26 }
0x2b81   : > { %9762 = vtanh.f32 %v7402_v46  ;;  %v7571_v41 = vrot.slane %v7402_v46, 7  ;;  %7439 = vrot.lane.b32.xlu0 %v9761_v63, %s10208_s20 }
0x2b83   : > { %v7572_v53 = vsel %vm898_vm0, %v7571_v41, %v7401_v45 }
0x2b84   : > { %v7574_v38 = vsel %vm901_vm1, %v7573_v16, %v7572_v53 }
0x2b86   : > { %v7384_v15 = vpop.permute.xlu0 %7383 }
0x2b87   : > { %v9763_v62 = vpop.eup %9762  ;;  %v7404_v28 = vadd.f32 %v7384_v15, %v7324_v12 }
0x2b88   : > { %7427 = vrot.lane.b32.xlu2 %v9763_v62, %s10208_s20 }
0x2b89   : > { %9764 = vtanh.f32 %v7404_v28  ;;  %v7575_v19 = vrot.slane %v7404_v28, 5 }
0x2b8b   : > { %v7576_v2 = vsel %vm904_vm2, %v7575_v19, %v7574_v38 }
0x2b8c   : > { %v7578_v1 = vsel %vm907_vm3, %v7577_v42, %v7576_v2 }
0x2b8d   : > { %v7580_v23 = vsel %vm910_vm4, %v7579_v47, %v7578_v1 }
0x2b8e   : > { %v7390_v9 = vpop.permute.xlu0 %7389 }
0x2b8f   : > { %v9765_v54 = vpop.eup %9764  ;;  %v7407_v45 = vadd.f32 %v7390_v9, %v7327_v37 }
0x2b90   : > { %7431 = vrot.lane.b32.xlu2 %v9765_v54, %s10208_s20 }
0x2b91   : > { %9766 = vtanh.f32 %v7407_v45  ;;  %v7581_v35 = vrot.slane %v7407_v45, 2 }
0x2b93   : > { %v7582_v21 = vsel %vm913_vm5, %v7581_v35, %v7580_v23 }
0x2b94   : > { %v14315_v13 = vsel %vm916_vm6, %v7583_v7, %v7582_v21 }
0x2b97   : > { %v9767_v17 = vpop.eup %9766 }
0x2b98   : > { %7437 = vrot.lane.b32.xlu2 %v9767_v17, %s10208_s20 }
0x2be0   : > { %v7426_v4 = vpop.permute.xlu1 %7425 }
0x2be1   : > { %v7449_v24 = vmul.f32 %v7426_v4, %v14246_v61 }
0x2be2   : > { %v7428_v48 = vpop.permute.xlu2 %7427 }
0x2be3   : > { %v7430_v22 = vpop.permute.xlu0 %7429  ;;  %v7450_v58 = vmul.f32 %v7428_v48, %v14250_v0  ;;  %v14345_v57 = vadd.f32 %v7449_v24, %v14108_v31 }
0x2be4   : > { %v7451_v46 = vmul.f32 %v7430_v22, %v14185_v29 }
0x2be5   : > { %v14351_v61 = vadd.f32 %v7450_v58, %v14112_v50  ;;  %v7485_v31 = vrot.slane %v7450_v58, 7 }
0x2be6   : > { %v14356_v0 = vadd.f32 %v7451_v46, %v14115_v39  ;;  %v7487_v63 = vrot.slane %v7451_v46, 6 }
0x2be7   : > { %v7486_v53 = vsel %vm898_vm0, %v7485_v31, %v7449_v24 }
0x2be8   : > { %v7436_v50 = vpop.permute.xlu1 %7435  ;;  %v7488_v19 = vsel %vm901_vm1, %v7487_v63, %v7486_v53 }
0x2be9   : > { %v7454_v39 = vmul.f32 %v7436_v50, %v14267_v60 }
0x2bea   : > { %v7432_v29 = vpop.permute.xlu2 %7431 }
0x2beb   : > { %v7434_v41 = vpop.permute.xlu0 %7433  ;;  %v7452_v16 = vmul.f32 %v7432_v29, %v14270_v11  ;;  %v14370_v38 = vadd.f32 %v7454_v39, %v14121_v43  ;;  %v7493_v1 = vrot.slane %v7454_v39, 3 }
0x2bec   : > { %v7453_v12 = vmul.f32 %v7434_v41, %v14205_v27 }
0x2bed   : > { %v14374_v15 = vadd.f32 %v7452_v16, %v14125_v14  ;;  %v7489_v62 = vrot.slane %v7452_v16, 5 }
0x2bee   : > { %v14377_v28 = vadd.f32 %v7453_v12, %v14128_v6  ;;  %v7491_v60 = vrot.slane %v7453_v12, 4 }
0x2bef   : > { %v7490_v42 = vsel %vm904_vm2, %v7489_v62, %v7488_v19 }
0x2bf0   : > { %v7492_v47 = vsel %vm907_vm3, %v7491_v60, %v7490_v42 }
0x2bf1   : > { %v7494_v9 = vsel %vm910_vm4, %v7493_v1, %v7492_v47 }
0x2bf2   : > { %v7438_v11 = vpop.permute.xlu2 %7437 }
0x2bf3   : > { %v7440_v2 = vpop.permute.xlu0 %7439  ;;  %v7455_v43 = vmul.f32 %v7438_v11, %v14281_v18 }
0x2bf4   : > { %v7456_v27 = vmul.f32 %v7440_v2, %v14227_v59 }
0x2bf5   : > { %v14385_v14 = vadd.f32 %v7455_v43, %v14136_v20  ;;  %v7495_v37 = vrot.slane %v7455_v43, 2  ;;  %v8686_v20 = vld [vmem:[%s14901_s9] ss:$0 sm:$0xff] }
0x2bf6   : > { %v14388_v6 = vadd.f32 %v7456_v27, %v14139_v52  ;;  %v7497_v23 = vrot.slane %v7456_v27, 1 }
0x2bf7   : > { %v7496_v54 = vsel %vm913_vm5, %v7495_v37, %v7494_v9 }
0x2bf8   : > { %v7498_v45 = vsel %vm916_vm6, %v7497_v23, %v7496_v54 }
0x2bf9   : > { %7499 = vrot.lane.b32.xlu1 %v7498_v45, %s10210_s5 }
0x2c6b   : > { %v7500_v18 = vpop.permute.xlu1 %7499 }
0x2c6c   : > { %8538 = vmatmul.msk.f32.vlgmr.msrb.gmra.mxu2 %vm920_vm7, %v7500_v18  ;;  %8539 = vmatmul.msk.f32.vlgmr.msrb.gmra.mxu3 %vm920_vm7, %v7500_v18 }
0x2c6d   : > { %8013 = vmatpush.msrb.mxu2 %v14318_v30 }
0x2c6f   : > { %8014 = vmatpush.msrb.mxu2 %v14321_v25 }
0x2c71   : > { %8015 = vmatpush.msrb.mxu2 %v14323_v55 }
0x2c73   : > { %8016 = vmatpush.msrb.mxu2 %v14328_v26 }
0x2cef   : > { %v7520_v52 = vpop.f32.mrf.mxu2  ;;  %v7540_v35 = vpop.f32.mrf.mxu3 }
0x2cf0   : > { %v14403_v59 = vadd.f32 %v8686_v20, %v7520_v52 }
0x2cf2   : > { %v7541_v7 = vadd.f32 %v7540_v35, %v14403_v59 }
0x2cf4   : > { %9768 = vtanh.f32 %v7541_v7  ;;  %v8540_v17 = vmul.f32 -1.442695, %v7541_v7 }
0x2cf6   : > { %9770 = vpow2.f32 %v8540_v17 }
0x2cfa   : > { %v9769_v21 = vpop.eup %9768 }
0x2cfb   : > { %7588 = vrot.lane.b32.xlu2 %v9769_v21, %s10208_s20 }
0x2cfc   : > { %v9771_v8 = vpop.eup %9770 }
0x2cfd   : > { %v7546_v30 = vadd.f32 1.0, %v9771_v8 }
0x2cff   : > { %9772 = vrcp.f32 %v7546_v30  ;;  %v7558_v26 = vand.u32 2147483648, %v7546_v30  ;;  %vm7552_vm13 = vweird.f32 %v7546_v30  ;;  %v7556_v4 = vand.u32 2147483647, %v7546_v30 }
0x2d01   : > { %v7559_v48 = vor.u32 1.1754944e-38, %v7558_v26  ;;  %vm7557_vm8 = vcmp.eq.f32.partialorder %v7556_v4, 8.507059e+37 }
0x2d05   : > { %v9773_v40 = vpop.eup %9772 }
0x2d06   : > { %v7548_v25 = vmul.f32 %v9773_v40, %v7546_v30  ;;  %vm7553_vm12 = vweird.f32 %v9773_v40 }
0x2d07   : > { %vm7554_vm14 = vmor %vm7552_vm13, %vm7553_vm12 }
0x2d08   : > { %v7549_v44 = vsub.f32 1.0, %v7548_v25 }
0x2d0a   : > { %v7550_v55 = vmul.f32 %v9773_v40, %v7549_v44 }
0x2d0c   : > { %v7551_v10 = vadd.f32 %v9773_v40, %v7550_v55 }
0x2d0e   : > { %v7555_v24 = vsel %vm7554_vm14, %v9773_v40, %v7551_v10 }
0x2d0f   : > { %v7560_v58 = vsel %vm7557_vm8, %v7559_v48, %v7555_v24 }
0x2d10   : > { %v7586_v31 = vmul.f32 %v14315_v13, %v7560_v58 }
0x2d55   : > { %v7589_v22 = vpop.permute.xlu2 %7588 }
0x2d56   : > { %v7591_v46 = vmul.f32 %v7589_v22, %v7560_v58 }
0x2d58   : > { %7593 = vrot.lane.b32.xlu0 %v7591_v46, %s10210_s5 }
0x2dca   : > { %v7594_v50 = vpop.permute.xlu0 %7593 }
0x2dcb   : > { %v7596_v39 = vadd.f32 %v7594_v50, %v7586_v31 }
0x2dcd   : > { %9774 = vtanh.f32 %v7596_v39 }
0x2dd3   : > { %v9775_v29 = vpop.eup %9774 }
0x2dd4   : > { %7599 = vrot.lane.b32.xlu1 %v9775_v29, %s10208_s20 }
0x2e46   : > { %v7600_v63 = vpop.permute.xlu1 %7599 }
0x2e47   : > { %v14410_v41 = vmul.f32 %v7600_v63, %v7560_v58 }
0x2e49   : > { %7607 = vrot.lane.b32.xlu2 %v14410_v41, %s10210_s5 }
0x2ea3   : > { %v7608_v16 = vpop.permute.xlu2 %7607 }
0x2ea4   : > { %8541 = vmatmul.msk.f32.vlgmr.msra.gmra.mxu0 %vm920_vm7, %v7608_v16 }
0x2f21   : > { %v7628_v53 = vpop.f32.mrf.mxu0 }
0x2f22   : > { %v7629_v12 = vadd.f32 %v7628_v53, %v14403_v59 }
0x2f24   : > { %9776 = vtanh.f32 %v7629_v12  ;;  %v8542_v60 = vmul.f32 -1.442695, %v7629_v12 }
0x2f26   : > { %9778 = vpow2.f32 %v8542_v60 }
0x2f2a   : > { %v9777_v62 = vpop.eup %9776 }
0x2f2b   : > { %7653 = vrot.lane.b32.xlu0 %v9777_v62, %s10208_s20 }
0x2f2c   : > { %v9779_v19 = vpop.eup %9778 }
0x2f2d   : > { %v7634_v42 = vadd.f32 1.0, %v9779_v19 }
0x2f2f   : > { %9780 = vrcp.f32 %v7634_v42  ;;  %v7646_v27 = vand.u32 2147483648, %v7634_v42  ;;  %vm7640_vm9 = vweird.f32 %v7634_v42  ;;  %v7644_v37 = vand.u32 2147483647, %v7634_v42 }
0x2f31   : > { %v7647_v9 = vor.u32 1.1754944e-38, %v7646_v27  ;;  %vm7645_vm11 = vcmp.eq.f32.partialorder %v7644_v37, 8.507059e+37 }
0x2f35   : > { %v9781_v11 = vpop.eup %9780 }
0x2f36   : > { %v7636_v47 = vmul.f32 %v9781_v11, %v7634_v42  ;;  %vm7641_vm15 = vweird.f32 %v9781_v11 }
0x2f37   : > { %vm7642_vm10 = vmor %vm7640_vm9, %vm7641_vm15 }
0x2f38   : > { %v7637_v2 = vsub.f32 1.0, %v7636_v47 }
0x2f3a   : > { %v7638_v43 = vmul.f32 %v9781_v11, %v7637_v2 }
0x2f3c   : > { %v7639_v1 = vadd.f32 %v9781_v11, %v7638_v43 }
0x2f3e   : > { %v7643_v23 = vsel %vm7642_vm10, %v9781_v11, %v7639_v1 }
0x2f3f   : > { %v7648_v45 = vsel %vm7645_vm11, %v7647_v9, %v7643_v23 }
0x2f40   : > { %v7651_v20 = vmul.f32 %v7648_v45, %v14315_v13 }
0x2f9d   : > { %v7654_v54 = vpop.permute.xlu0 %7653 }
0x2f9e   : > { %v7656_v18 = vmul.f32 %v7654_v54, %v7648_v45 }
0x2fa0   : > { %7658 = vrot.lane.b32.xlu1 %v7656_v18, %s10210_s5 }
0x3012   : > { %v7659_v52 = vpop.permute.xlu1 %7658 }
0x3013   : > { %v7661_v35 = vadd.f32 %v7659_v52, %v7651_v20 }
0x3015   : > { %9782 = vtanh.f32 %v7661_v35 }
0x301b   : > { %v9783_v7 = vpop.eup %9782 }
0x301c   : > { %7664 = vrot.lane.b32.xlu2 %v9783_v7, %s10208_s20 }
0x3076   : > { %v7665_v21 = vpop.permute.xlu2 %7664 }
0x3077   : > { %v14420_v17 = vmul.f32 %v7665_v21, %v7648_v45 }
0x3079   : > { %7672 = vrot.lane.b32.xlu0 %v14420_v17, %s10210_s5 }
0x30eb   : > { %v7673_v8 = vpop.permute.xlu0 %7672 }
0x30ec   : > { %8543 = vmatmul.msk.f32.vlgmr.msra.gmra.mxu1 %vm920_vm7, %v7673_v8 }
0x3169   : > { %v7693_v30 = vpop.f32.mrf.mxu1 }
0x316a   : > { %v7694_v40 = vadd.f32 %v7693_v30, %v14403_v59 }
0x316c   : > { %9784 = vtanh.f32 %v7694_v40  ;;  %v8544_v44 = vmul.f32 -1.442695, %v7694_v40 }
0x316e   : > { %9786 = vpow2.f32 %v8544_v44 }
0x3172   : > { %v9785_v25 = vpop.eup %9784 }
0x3173   : > { %7718 = vrot.lane.b32.xlu1 %v9785_v25, %s10208_s20 }
0x3174   : > { %v9787_v55 = vpop.eup %9786 }
0x3175   : > { %v7699_v10 = vadd.f32 1.0, %v9787_v55 }
0x3177   : > { %9788 = vrcp.f32 %v7699_v10  ;;  %v7711_v58 = vand.u32 2147483648, %v7699_v10  ;;  %vm7705_vm13 = vweird.f32 %v7699_v10  ;;  %v7709_v46 = vand.u32 2147483647, %v7699_v10 }
0x3179   : > { %v7712_v50 = vor.u32 1.1754944e-38, %v7711_v58  ;;  %vm7710_vm8 = vcmp.eq.f32.partialorder %v7709_v46, 8.507059e+37 }
0x317d   : > { %v9789_v26 = vpop.eup %9788 }
0x317e   : > { %v7701_v4 = vmul.f32 %v9789_v26, %v7699_v10  ;;  %vm7706_vm12 = vweird.f32 %v9789_v26 }
0x317f   : > { %vm7707_vm14 = vmor %vm7705_vm13, %vm7706_vm12 }
0x3180   : > { %v7702_v24 = vsub.f32 1.0, %v7701_v4 }
0x3182   : > { %v7703_v48 = vmul.f32 %v9789_v26, %v7702_v24 }
0x3184   : > { %v7704_v22 = vadd.f32 %v9789_v26, %v7703_v48 }
0x3186   : > { %v7708_v31 = vsel %vm7707_vm14, %v9789_v26, %v7704_v22 }
0x3187   : > { %v7713_v29 = vsel %vm7710_vm8, %v7712_v50, %v7708_v31 }
0x3188   : > { %v7716_v16 = vmul.f32 %v7713_v29, %v14315_v13 }
0x31e5   : > { %v7719_v39 = vpop.permute.xlu1 %7718 }
0x31e6   : > { %v7721_v63 = vmul.f32 %v7719_v39, %v7713_v29 }
0x31e8   : > { %7723 = vrot.lane.b32.xlu2 %v7721_v63, %s10210_s5 }
0x3242   : > { %v7724_v53 = vpop.permute.xlu2 %7723 }
0x3243   : > { %v7726_v12 = vadd.f32 %v7724_v53, %v7716_v16 }
0x3245   : > { %9790 = vtanh.f32 %v7726_v12 }
0x324b   : > { %v9791_v62 = vpop.eup %9790 }
0x324c   : > { %7729 = vrot.lane.b32.xlu0 %v9791_v62, %s10208_s20 }
0x32be   : > { %v7730_v60 = vpop.permute.xlu0 %7729 }
0x32bf   : > { %v14430_v19 = vmul.f32 %v7730_v60, %v7713_v29 }
0x32c1   : > { %7737 = vrot.lane.b32.xlu1 %v14430_v19, %s10210_s5 }
0x3333   : > { %v7738_v42 = vpop.permute.xlu1 %7737 }
0x3334   : > { %8545 = vmatmul.msk.f32.vlgmr.msra.gmra.mxu2 %vm920_vm7, %v7738_v42 }
0x33b7   : > { %v7758_v11 = vpop.f32.mrf.mxu2 }
0x33b8   : > { %v7759_v47 = vadd.f32 %v7758_v11, %v14403_v59 }
0x33ba   : > { %9792 = vtanh.f32 %v7759_v47  ;;  %v8546_v43 = vmul.f32 -1.442695, %v7759_v47 }
0x33bc   : > { %9794 = vpow2.f32 %v8546_v43 }
0x33c0   : > { %v9793_v2 = vpop.eup %9792 }
0x33c1   : > { %7783 = vrot.lane.b32.xlu2 %v9793_v2, %s10208_s20 }
0x33c2   : > { %v9795_v1 = vpop.eup %9794 }
0x33c3   : > { %v7764_v27 = vadd.f32 1.0, %v9795_v1 }
0x33c5   : > { %9796 = vrcp.f32 %v7764_v27  ;;  %v7776_v18 = vand.u32 2147483648, %v7764_v27  ;;  %vm7770_vm9 = vweird.f32 %v7764_v27  ;;  %v7774_v20 = vand.u32 2147483647, %v7764_v27 }
0x33c7   : > { %v7777_v35 = vor.u32 1.1754944e-38, %v7776_v18  ;;  %vm7775_vm11 = vcmp.eq.f32.partialorder %v7774_v20, 8.507059e+37 }
0x33cb   : > { %v9797_v37 = vpop.eup %9796 }
0x33cc   : > { %v7766_v23 = vmul.f32 %v9797_v37, %v7764_v27  ;;  %vm7771_vm15 = vweird.f32 %v9797_v37 }
0x33cd   : > { %vm7772_vm10 = vmor %vm7770_vm9, %vm7771_vm15 }
0x33ce   : > { %v7767_v9 = vsub.f32 1.0, %v7766_v23 }
0x33d0   : > { %v7768_v54 = vmul.f32 %v9797_v37, %v7767_v9 }
0x33d2   : > { %v7769_v45 = vadd.f32 %v9797_v37, %v7768_v54 }
0x33d4   : > { %v7773_v52 = vsel %vm7772_vm10, %v9797_v37, %v7769_v45 }
0x33d5   : > { %v7778_v21 = vsel %vm7775_vm11, %v7777_v35, %v7773_v52 }
0x33d6   : > { %v7781_v30 = vmul.f32 %v7778_v21, %v14315_v13 }
0x341b   : > { %v7784_v7 = vpop.permute.xlu2 %7783 }
0x341c   : > { %v7786_v8 = vmul.f32 %v7784_v7, %v7778_v21 }
0x341e   : > { %7788 = vrot.lane.b32.xlu0 %v7786_v8, %s10210_s5 }
0x3490   : > { %v7789_v40 = vpop.permute.xlu0 %7788 }
0x3491   : > { %v7791_v25 = vadd.f32 %v7789_v40, %v7781_v30 }
0x3493   : > { %9798 = vtanh.f32 %v7791_v25 }
0x3499   : > { %v9799_v44 = vpop.eup %9798 }
0x349a   : > { %7794 = vrot.lane.b32.xlu1 %v9799_v44, %s10208_s20 }
0x350c   : > { %v7795_v55 = vpop.permute.xlu1 %7794 }
0x350d   : > { %v14440_v10 = vmul.f32 %v7795_v55, %v7778_v21 }
0x350f   : > { %7802 = vrot.lane.b32.xlu2 %v14440_v10, %s10210_s5 }
0x3569   : > { %v7803_v26 = vpop.permute.xlu2 %7802 }
0x356a   : > { %8547 = vmatmul.msk.f32.vlgmr.msra.gmra.mxu3 %vm920_vm7, %v7803_v26 }
0x35ed   : > { %v7823_v4 = vpop.f32.mrf.mxu3 }
0x35ee   : > { %v7824_v24 = vadd.f32 %v7823_v4, %v14403_v59 }
0x35f0   : > { %9800 = vtanh.f32 %v7824_v24  ;;  %v8548_v22 = vmul.f32 -1.442695, %v7824_v24 }
0x35f2   : > { %9802 = vpow2.f32 %v8548_v22 }
0x35f6   : > { %v9801_v48 = vpop.eup %9800 }
0x35f7   : > { %7848 = vrot.lane.b32.xlu0 %v9801_v48, %s10208_s20 }
0x35f8   : > { %v9803_v58 = vpop.eup %9802 }
0x35f9   : > { %v7829_v46 = vadd.f32 1.0, %v9803_v58 }
0x35fb   : > { %9804 = vrcp.f32 %v7829_v46  ;;  %v7841_v16 = vand.u32 2147483648, %v7829_v46  ;;  %vm7835_vm13 = vweird.f32 %v7829_v46  ;;  %v7839_v53 = vand.u32 2147483647, %v7829_v46 }
0x35fd   : > { %v7842_v62 = vor.u32 1.1754944e-38, %v7841_v16  ;;  %vm7840_vm8 = vcmp.eq.f32.partialorder %v7839_v53, 8.507059e+37 }
0x3601   : > { %v9805_v31 = vpop.eup %9804 }
0x3602   : > { %v7831_v50 = vmul.f32 %v9805_v31, %v7829_v46  ;;  %vm7836_vm12 = vweird.f32 %v9805_v31 }
0x3603   : > { %vm7837_vm14 = vmor %vm7835_vm13, %vm7836_vm12 }
0x3604   : > { %v7832_v39 = vsub.f32 1.0, %v7831_v50 }
0x3606   : > { %v7833_v29 = vmul.f32 %v9805_v31, %v7832_v39 }
0x3608   : > { %v7834_v63 = vadd.f32 %v9805_v31, %v7833_v29 }
0x360a   : > { %v7838_v12 = vsel %vm7837_vm14, %v9805_v31, %v7834_v63 }
0x360b   : > { %v7843_v42 = vsel %vm7840_vm8, %v7842_v62, %v7838_v12 }
0x360c   : > { %v7846_v47 = vmul.f32 %v7843_v42, %v14315_v13 }
0x3669   : > { %v7849_v60 = vpop.permute.xlu0 %7848 }
0x366a   : > { %v7851_v11 = vmul.f32 %v7849_v60, %v7843_v42 }
0x366c   : > { %7853 = vrot.lane.b32.xlu1 %v7851_v11, %s10210_s5 }
0x36de   : > { %v7854_v2 = vpop.permute.xlu1 %7853 }
0x36df   : > { %v7856_v43 = vadd.f32 %v7854_v2, %v7846_v47 }
0x36e1   : > { %9806 = vtanh.f32 %v7856_v43 }
0x36e7   : > { %v9807_v1 = vpop.eup %9806 }
0x36e8   : > { %7859 = vrot.lane.b32.xlu2 %v9807_v1, %s10208_s20 }
0x3742   : > { %v7860_v27 = vpop.permute.xlu2 %7859 }
0x3743   : > { %v14450_v37 = vmul.f32 %v7860_v27, %v7843_v42 }
0x3745   : > { %15007 = vst [vmem:[#allocation30_spill] sm:$0xff] %v14450_v37  ;;  %7867 = vrot.lane.b32.xlu0 %v14450_v37, %s10210_s5 }
0x37b7   : > { %v7868_v23 = vpop.permute.xlu0 %7867 }
0x37b8   : > { %8549 = vmatmul.msk.f32.vlgmr.msrb.gmra.mxu0 %vm920_vm7, %v7868_v23 }
0x3835   : > { %v7888_v9 = vpop.f32.mrf.mxu0 }
0x3836   : > { %v7889_v54 = vadd.f32 %v7888_v9, %v14403_v59  ;;  %v9845_v9 = vld [vmem:[%s14898_s6] ss:$0 sm:$0xff] }
0x3838   : > { %9808 = vtanh.f32 %v7889_v54  ;;  %v8550_v18 = vmul.f32 -1.442695, %v7889_v54  ;;  %v14471_v54 = vadd.f32 %v9845_v9, %v13473_v3  ;;  %v14483_v3 = vld [vmem:[%s10479_s11 + $0x10] sm:$0x1] }
0x383a   : > { %9810 = vpow2.f32 %v8550_v18 }
0x383e   : > { %v9809_v45 = vpop.eup %9808 }
0x383f   : > { %7913 = vrot.lane.b32.xlu1 %v9809_v45, %s10208_s20 }
0x3840   : > { %v9811_v20 = vpop.eup %9810 }
0x3841   : > { %v7894_v52 = vadd.f32 1.0, %v9811_v20 }
0x3843   : > { %9812 = vrcp.f32 %v7894_v52  ;;  %v7906_v40 = vand.u32 2147483648, %v7894_v52  ;;  %vm7900_vm9 = vweird.f32 %v7894_v52  ;;  %v7904_v25 = vand.u32 2147483647, %v7894_v52 }
0x3845   : > { %v7907_v55 = vor.u32 1.1754944e-38, %v7906_v40  ;;  %vm7905_vm11 = vcmp.eq.f32.partialorder %v7904_v25, 8.507059e+37  ;;  %v14498_v25 = vld [vmem:[%s10479_s11 + $0xb] sm:$0x1] }
0x3849   : > { %v9813_v35 = vpop.eup %9812 }
0x384a   : > { %v7896_v7 = vmul.f32 %v9813_v35, %v7894_v52  ;;  %vm7901_vm15 = vweird.f32 %v9813_v35 }
0x384b   : > { %vm7902_vm10 = vmor %vm7900_vm9, %vm7901_vm15 }
0x384c   : > { %v7897_v21 = vsub.f32 1.0, %v7896_v7 }
0x384e   : > { %v7898_v8 = vmul.f32 %v9813_v35, %v7897_v21  ;;  %v14489_v21 = vld [vmem:[%s10479_s11] sm:$0x1] }
0x3850   : > { %v7899_v30 = vadd.f32 %v9813_v35, %v7898_v8  ;;  %v14492_v8 = vld [vmem:[%s10479_s11 + $0x18] sm:$0x1] }
0x3852   : > { %v7903_v44 = vsel %vm7902_vm10, %v9813_v35, %v7899_v30  ;;  %v14480_v35 = vld [vmem:[%s10479_s11 + $0x8] sm:$0x1]  ;;  %v3735_v30 = vrot.slane %v14483_v3, 6 }
0x3853   : > { %v7908_v4 = vsel %vm7905_vm11, %v7907_v55, %v7903_v44  ;;  %v3733_v7 = vrot.slane %v14480_v35, 7  ;;  %v14501_v44 = vld [vmem:[%s10479_s11 + $0x20] sm:$0x1]  ;;  %v3737_v55 = vrot.slane %v14492_v8, 5 }
0x3854   : > { %v7911_v48 = vmul.f32 %v7908_v4, %v14315_v13 }
0x3855   : > { %v3734_v40 = vsel %vm898_vm0, %v3733_v7, %v14489_v21  ;;  %v14564_v7 = vld [vmem:[%s10479_s11 + $0x33] sm:$0x1] }
0x38b1   : > { %v7914_v26 = vpop.permute.xlu1 %7913 }
0x38b2   : > { %v7916_v24 = vmul.f32 %v7914_v26, %v7908_v4  ;;  %v14506_v26 = vld [vmem:[%s10479_s11 + $0x13] sm:$0x1] }
0x38b4   : > { %7918 = vrot.lane.b32.xlu2 %v7916_v24, %s10210_s5  ;;  %v14512_v24 = vld [vmem:[%s10479_s11 + $0x28] sm:$0x1] }
0x390e   : > { %v7919_v22 = vpop.permute.xlu2 %7918 }
0x390f   : > { %v7921_v58 = vadd.f32 %v7919_v22, %v7911_v48  ;;  %v3739_v48 = vrot.slane %v14501_v44, 4  ;;  %v14516_v22 = vld [vmem:[%s10479_s11 + $0x3] sm:$0x1] }
0x3911   : > { %9814 = vtanh.f32 %v7921_v58 }
0x3917   : > { %v9815_v46 = vpop.eup %9814 }
0x3918   : > { %7924 = vrot.lane.b32.xlu0 %v9815_v46, %s10208_s20  ;;  %v14520_v46 = vld [vmem:[%s10479_s11 + $0x1b] sm:$0x1] }
0x398a   : > { %v7925_v31 = vpop.permute.xlu0 %7924 }
0x398b   : > { %v14460_v50 = vmul.f32 %v7925_v31, %v7908_v4  ;;  %v4051_v4 = vrot.slane %v14498_v25, 7  ;;  %v4053_v31 = vrot.slane %v14506_v26, 6 }
0x398d   : > { %15008 = vst [vmem:[#allocation31_spill] sm:$0xff] %v14460_v50  ;;  %7932 = vrot.lane.b32.xlu1 %v14460_v50, %s10210_s5 }
0x39ff   : > { %v7933_v39 = vpop.permute.xlu1 %7932 }
0x3a00   : > { %8551 = vmatmul.msk.f32.vlgmr.msrb.gmra.mxu1 %vm920_vm7, %v7933_v39  ;;  %v14524_v39 = vld [vmem:[%s10479_s11 + $0x30] sm:$0x1] }
0x3a7d   : > { %v7953_v29 = vpop.f32.mrf.mxu1 }
0x3a7e   : > { %v7954_v63 = vadd.f32 %v7953_v29, %v14403_v59  ;;  %v3741_v29 = vrot.slane %v14512_v24, 3 }
0x3a80   : > { %9816 = vtanh.f32 %v7954_v63  ;;  %v8552_v53 = vmul.f32 -1.442695, %v7954_v63 }
0x3a82   : > { %9818 = vpow2.f32 %v8552_v53  ;;  %v14534_v53 = vld [vmem:[%s10479_s11 + $0x23] sm:$0x1] }
0x3a86   : > { %v9817_v16 = vpop.eup %9816 }
0x3a87   : > { %7978 = vrot.lane.b32.xlu2 %v9817_v16, %s10208_s20  ;;  %v14531_v16 = vld [vmem:[%s10479_s11 + $0xe] sm:$0x1] }
0x3a88   : > { %v9819_v12 = vpop.eup %9818 }
0x3a89   : > { %v7959_v62 = vadd.f32 1.0, %v9819_v12  ;;  %v4055_v12 = vrot.slane %v14520_v46, 5 }
0x3a8b   : > { %9820 = vrcp.f32 %v7959_v62  ;;  %v7971_v43 = vand.u32 2147483648, %v7959_v62  ;;  %vm7965_vm13 = vweird.f32 %v7959_v62  ;;  %v7969_v1 = vand.u32 2147483647, %v7959_v62 }
0x3a8c   : > { %9822 = vtanh.f32 %v14471_v54 }
0x3a8d   : > { %v7972_v23 = vor.u32 1.1754944e-38, %v7971_v43  ;;  %vm7970_vm8 = vcmp.eq.f32.partialorder %v7969_v1, 8.507059e+37  ;;  %v14550_v43 = vld [vmem:[%s10479_s11 + $0x2b] sm:$0x1]  ;;  %v4057_v1 = vrot.slane %v14534_v53, 4 }
0x3a91   : > { %v9821_v60 = vpop.eup %9820 }
0x3a92   : > { %v7961_v42 = vmul.f32 %v9821_v60, %v7959_v62  ;;  %vm7966_vm12 = vweird.f32 %v9821_v60  ;;  %v9823_v52 = vpop.eup %9822  ;;  %v14538_v62 = vld [vmem:[%s10479_s11 + $0x38] sm:$0x1] }
0x3a93   : > { %vm7967_vm14 = vmor %vm7965_vm13, %vm7966_vm12 }
0x3a94   : > { %v7962_v11 = vsub.f32 1.0, %v7961_v42 }
0x3a96   : > { %v7963_v47 = vmul.f32 %v9821_v60, %v7962_v11 }
0x3a98   : > { %v7964_v2 = vadd.f32 %v9821_v60, %v7963_v47  ;;  %v14544_v47 = vld [vmem:[%s10479_s11 + $0x16] sm:$0x1] }
0x3a9a   : > { %v7968_v27 = vsel %vm7967_vm14, %v9821_v60, %v7964_v2  ;;  %v3743_v60 = vrot.slane %v14524_v39, 2  ;;  %v4369_v2 = vrot.slane %v14531_v16, 7 }
0x3a9b   : > { %v14473_v18 = vsel %vm7970_vm8, %v7972_v23, %v7968_v27  ;;  %v14554_v27 = vld [vmem:[%s10479_s11 + $0x6] sm:$0x1]  ;;  %v3745_v23 = vrot.slane %v14538_v62, 1 }
0x3ae1   : > { %v7979_v45 = vpop.permute.xlu2 %7978 }
0x3ae2   : > { %v7981_v20 = vmul.f32 %v7979_v45, %v14473_v18 }
0x3ae4   : > { %7983 = vrot.lane.b32.xlu0 %v7981_v20, %s10210_s5  ;;  %v14560_v20 = vld [vmem:[%s10479_s11 + $0x1e] sm:$0x1] }
0x3aec   : > { %4436 = vrot.lane.b32.xlu0 %v9823_v52, %s10208_s20  ;;  %v4371_v52 = vrot.slane %v14544_v47, 6 }
0x3af4   : > { %8071 = vrot.lane.b32.xlu0 %v14351_v61, %s10210_s5  ;;  %v3736_v61 = vsel %vm901_vm1, %v3735_v30, %v3734_v40  ;;  %v4370_v30 = vsel %vm898_vm0, %v4369_v2, %v14554_v27 }
0x3af5   : > { %v3738_v58 = vsel %vm904_vm2, %v3737_v55, %v3736_v61  ;;  %v14572_v61 = vld [vmem:[%s10479_s11 + $0x26] sm:$0x1] }
0x3af6   : > { %v3740_v63 = vsel %vm907_vm3, %v3739_v48, %v3738_v58  ;;  %v14576_v48 = vld [vmem:[%s10479_s11 + $0x3b] sm:$0x1]  ;;  %v4061_v58 = vrot.slane %v14564_v7, 2 }
0x3af7   : > { %v3742_v11 = vsel %vm910_vm4, %v3741_v29, %v3740_v63  ;;  %v4375_v63 = vrot.slane %v14572_v61, 4 }
0x3af8   : > { %v3744_v45 = vsel %vm913_vm5, %v3743_v60, %v3742_v11  ;;  %v14590_v11 = vld [vmem:[%s10479_s11 + $0x36] sm:$0x1] }
0x3af9   : > { %v3746_v55 = vsel %vm916_vm6, %v3745_v23, %v3744_v45  ;;  %v4379_v45 = vrot.slane %v14590_v11, 2 }
0x3afc   : > { %8075 = vrot.lane.b32.xlu0 %v14374_v15, %s10210_s5  ;;  %v4052_v15 = vsel %vm898_vm0, %v4051_v4, %v14516_v22  ;;  %v4373_v4 = vrot.slane %v14560_v20, 5 }
0x3afd   : > { %v4054_v42 = vsel %vm901_vm1, %v4053_v31, %v4052_v15  ;;  %v4372_v31 = vsel %vm901_vm1, %v4371_v52, %v4370_v30  ;;  %v14583_v15 = vld [vmem:[%s10479_s11 + $0x2e] sm:$0x1] }
0x3afe   : > { %v4056_v9 = vsel %vm904_vm2, %v4055_v12, %v4054_v42  ;;  %v4063_v12 = vrot.slane %v14576_v48, 1  ;;  %v4374_v60 = vsel %vm904_vm2, %v4373_v4, %v4372_v31  ;;  %v4377_v2 = vrot.slane %v14583_v15, 3  ;;  %v14609_v4 = vld [vmem:[%s10479_s11 + $0xa] sm:$0x1] }
0x3aff   : > { %v4058_v40 = vsel %vm907_vm3, %v4057_v1, %v4056_v9  ;;  %v4376_v1 = vsel %vm907_vm3, %v4375_v63, %v4374_v60  ;;  %v14596_v9 = vld [vmem:[%s10479_s11 + $0x3e] sm:$0x1]  ;;  %v14620_v60 = vld [vmem:[%s10479_s11 + $0x19] sm:$0x1] }
0x3b00   : > { %v4378_v52 = vsel %vm910_vm4, %v4377_v2, %v4376_v1  ;;  %v3826_v2 = vadd.f32 %v14620_v60, %v14492_v8  ;;  %v8466_v8 = vmul.f32 -1.442695, %v14471_v54 }
0x3b01   : > { %v4380_v30 = vsel %vm913_vm5, %v4379_v45, %v4378_v52 }
0x3b04   : > { %8081 = vrot.lane.b32.xlu0 %v14385_v14, %s10210_s5  ;;  %v4059_v14 = vrot.slane %v14550_v43, 3 }
0x3b06   : > { %v4060_v29 = vsel %vm910_vm4, %v4059_v14, %v4058_v40  ;;  %v4381_v14 = vrot.slane %v14596_v9, 1 }
0x3b07   : > { %v4062_v42 = vsel %vm913_vm5, %v4061_v58, %v4060_v29  ;;  %v14615_v29 = vld [vmem:[%s10479_s11 + $0xc] sm:$0x1] }
0x3b08   : > { %v4064_v23 = vsel %vm916_vm6, %v4063_v12, %v4062_v42  ;;  %v4382_v40 = vsel %vm916_vm6, %v4381_v14, %v4380_v30  ;;  %v14623_v42 = vld [vmem:[%s10479_s11 + $0x1a] sm:$0x1] }
0x3b09   : > { %v3932_v1 = vadd.f32 %v14623_v42, %v3826_v2 }
0x3b0c   : > { %3747 = vrot.lane.b32.xlu0 %v3746_v55, %s10209_s18  ;;  %v14606_v55 = vld [vmem:[%s10479_s11 + $0x9] sm:$0x1] }
0x3b0d   : > { %v3824_v58 = vadd.f32 %v14606_v55, %v14480_v35  ;;  %v4038_v35 = vadd.f32 %v14520_v46, %v3932_v1 }
0x3b0f   : > { %v3930_v31 = vadd.f32 %v14609_v4, %v3824_v58 }
0x3b11   : > { %v4036_v63 = vadd.f32 %v14498_v25, %v3930_v31  ;;  %v7976_v25 = vmul.f32 %v14473_v18, %v14315_v13 }
0x3b13   : > { %v4142_v12 = vadd.f32 %v14615_v29, %v4036_v63 }
0x3b14   : > { %4065 = vrot.lane.b32.xlu0 %v4064_v23, %s10209_s18  ;;  %v14629_v23 = vld [vmem:[%s10479_s11 + $0x1c] sm:$0x1] }
0x3b15   : > { %v14633_v45 = vadd.f32 %v14629_v23, %v4038_v35 }
0x3b1c   : > { %4383 = vrot.lane.b32.xlu0 %v4382_v40, %s10209_s18 }
0x3b56   : > { %v7984_v52 = vpop.permute.xlu0 %7983 }
0x3b57   : > { %v7986_v14 = vadd.f32 %v7984_v52, %v7976_v25 }
0x3b59   : > { %9824 = vtanh.f32 %v7986_v14 }
0x3b5a   : > { %9826 = vpow2.f32 %v8466_v8 }
0x3b5e   : > { %v4437_v8 = vpop.permute.xlu0 %4436 }
0x3b5f   : > { %v9825_v30 = vpop.eup %9824 }
0x3b60   : > { %7989 = vrot.lane.b32.xlu1 %v9825_v30, %s10208_s20  ;;  %v9827_v40 = vpop.eup %9826 }
0x3b61   : > { %v4417_v58 = vadd.f32 1.0, %v9827_v40 }
0x3b63   : > { %9828 = vrcp.f32 %v4417_v58  ;;  %v4429_v52 = vand.u32 2147483648, %v4417_v58  ;;  %vm4423_vm9 = vweird.f32 %v4417_v58  ;;  %v4427_v14 = vand.u32 2147483647, %v4417_v58 }
0x3b65   : > { %v4430_v30 = vor.u32 1.1754944e-38, %v4429_v52  ;;  %vm4428_vm11 = vcmp.eq.f32.partialorder %v4427_v14, 8.507059e+37 }
0x3b69   : > { %v9829_v31 = vpop.eup %9828 }
0x3b6a   : > { %v4419_v46 = vmul.f32 %v9829_v31, %v4417_v58  ;;  %vm4424_vm15 = vweird.f32 %v9829_v31  ;;  %v3815_v58 = vld [vmem:[%s10479_s11 + $0x1] sm:$0x1] }
0x3b6b   : > { %vm4425_vm10 = vmor %vm4423_vm9, %vm4424_vm15 }
0x3b6c   : > { %v4420_v63 = vsub.f32 1.0, %v4419_v46  ;;  %v14655_v46 = vld [vmem:[%s10479_s11 + $0x2] sm:$0x1] }
0x3b6e   : > { %v4421_v2 = vmul.f32 %v9829_v31, %v4420_v63 }
0x3b70   : > { %v4422_v35 = vadd.f32 %v9829_v31, %v4421_v2 }
0x3b72   : > { %v4426_v54 = vsel %vm4425_vm10, %v9829_v31, %v4422_v35  ;;  %v3823_v31 = vadd.f32 %v3815_v58, %v14489_v21  ;;  %v4133_v35 = vld [vmem:[%s10479_s11 + $0x4] sm:$0x1] }
0x3b73   : > { %v14644_v40 = vsel %vm4428_vm11, %v4430_v30, %v4426_v54  ;;  %v14671_v30 = vld [vmem:[%s10479_s11 + $0xf] sm:$0x1] }
0x3b74   : > { %v3929_v63 = vadd.f32 %v14655_v46, %v3823_v31  ;;  %v8072_v31 = vpop.permute.xlu0 %8071 }
0x3b76   : > { %v4035_v2 = vadd.f32 %v14516_v22, %v3929_v63  ;;  %v14676_v63 = vld [vmem:[%s10479_s11 + $0x7] sm:$0x1] }
0x3b78   : > { %v4141_v14 = vadd.f32 %v4133_v35, %v4035_v2 }
0x3bd2   : > { %v7990_v1 = vpop.permute.xlu1 %7989 }
0x3bd3   : > { %v14640_v25 = vmul.f32 %v7990_v1, %v14473_v18  ;;  %v4439_v18 = vmul.f32 %v4437_v8, %v14644_v40  ;;  %v14660_v1 = vld [vmem:[%s10479_s11 + $0xd] sm:$0x1] }
0x3bd5   : > { %15009 = vst [vmem:[#allocation32_spill] sm:$0xff] %v14640_v25  ;;  %7997 = vrot.lane.b32.xlu2 %v14640_v25, %s10210_s5 }
0x3bdd   : > { %4441 = vrot.lane.b32.xlu2 %v4439_v18, %s10210_s5 }
0x3be5   : > { %8069 = vrot.lane.b32.xlu2 %v14345_v57, %s10210_s5  ;;  %v4248_v57 = vadd.f32 %v14660_v1, %v4142_v12 }
0x3be7   : > { %v4354_v21 = vadd.f32 %v14531_v16, %v4248_v57 }
0x3be9   : > { %v4460_v22 = vadd.f32 %v14671_v30, %v4354_v21 }
0x3beb   : > { %v8094_v12 = vadd.f32 %v8072_v31, %v4460_v22  ;;  %v3819_v31 = vld [vmem:[%s10479_s11 + $0x21] sm:$0x1] }
0x3bed   : > { %8079 = vrot.lane.b32.xlu2 %v14370_v38, %s10210_s5  ;;  %v14666_v38 = vld [vmem:[%s10479_s11 + $0x5] sm:$0x1]  ;;  %v8117_v25 = vrot.slane %v8094_v12, 7  ;;  %v4157_v12 = vrot.slane %v14615_v29, 7  ;;  %v4161_v29 = vrot.slane %v14629_v23, 5 }
0x3bee   : > { %v4247_v54 = vadd.f32 %v14666_v38, %v4141_v14 }
0x3bf0   : > { %v4353_v18 = vadd.f32 %v14554_v27, %v4247_v54  ;;  %v3839_v27 = vrot.slane %v14606_v55, 7  ;;  %v3817_v54 = vld [vmem:[%s10479_s11 + $0x11] sm:$0x1]  ;;  %v3845_v55 = vrot.slane %v3819_v31, 4 }
0x3bf1   : > { %v3841_v22 = vrot.slane %v3817_v54, 6 }
0x3bf2   : > { %v4459_v2 = vadd.f32 %v14676_v63, %v4353_v18  ;;  %v3840_v18 = vsel %vm898_vm0, %v3839_v27, %v3815_v58  ;;  %v3820_v58 = vld [vmem:[%s10479_s11 + $0x29] sm:$0x1]  ;;  %v14706_v27 = vld [vmem:[%s10479_s11 + $0x24] sm:$0x1] }
0x3c2f   : > { %v7998_v52 = vpop.permute.xlu2 %7997 }
0x3c30   : > { %8553 = vmatmul.msk.f32.vlgmr.msrb.gmra.mxu2 %vm920_vm7, %v7998_v52 }
0x3c37   : > { %v4442_v8 = vpop.permute.xlu2 %4441 }
0x3c3f   : > { %v8070_v52 = vpop.permute.xlu2 %8069 }
0x3c40   : > { %v8093_v16 = vadd.f32 %v8070_v52, %v4459_v2  ;;  %v3847_v52 = vrot.slane %v3820_v58, 3 }
0x3c42   : > { %v14680_v57 = vsel %vm898_vm0, %v8117_v25, %v8093_v16  ;;  %v3843_v25 = vrot.slane %v14620_v60, 5  ;;  %v4158_v60 = vsel %vm898_vm0, %v4157_v12, %v4133_v35  ;;  %v4163_v35 = vrot.slane %v14706_v27, 4  ;;  %v14719_v12 = vld [vmem:[%s10479_s11 + $0x2c] sm:$0x1] }
0x3cb3   : > { %v8018_v14 = vpop.f32.mrf.mxu2 }
0x3cb4   : > { %v8019_v21 = vadd.f32 %v8018_v14, %v14403_v59  ;;  %v3842_v59 = vsel %vm901_vm1, %v3841_v22, %v3840_v18  ;;  %v3821_v14 = vld [vmem:[%s10479_s11 + $0x31] sm:$0x1]  ;;  %v14710_v22 = vld [vmem:[%s10479_s11 + $0x39] sm:$0x1] }
0x3cb5   : > { %v3849_v18 = vrot.slane %v3821_v14, 2 }
0x3cb6   : > { %9830 = vtanh.f32 %v8019_v21 }
0x3cbc   : > { %v9831_v50 = vpop.eup %9830 }
0x3cbd   : > { %8043 = vrot.lane.b32.xlu1 %v9831_v50, %s10208_s20  ;;  %v14694_v50 = vld [vmem:[%s10479_s11 + $0x14] sm:$0x1] }
0x3cbe   : > { %v4159_v2 = vrot.slane %v14694_v50, 6 }
0x3cc5   : > { %8073 = vrot.lane.b32.xlu1 %v14356_v0, %s10210_s5  ;;  %v3844_v0 = vsel %vm904_vm2, %v3843_v25, %v3842_v59  ;;  %v3851_v59 = vrot.slane %v14710_v22, 1 }
0x3cc6   : > { %v3846_v16 = vsel %vm907_vm3, %v3845_v55, %v3844_v0  ;;  %v4165_v0 = vrot.slane %v14719_v12, 3 }
0x3cc7   : > { %v3848_v25 = vsel %vm910_vm4, %v3847_v52, %v3846_v16  ;;  %v14729_v16 = vld [vmem:[%s10479_s11 + $0x3c] sm:$0x1] }
0x3cc8   : > { %v3850_v55 = vsel %vm913_vm5, %v3849_v18, %v3848_v25  ;;  %v4434_v18 = vmul.f32 %v14644_v40, %v13374_v5 }
0x3cc9   : > { %v3852_v52 = vsel %vm916_vm6, %v3851_v59, %v3850_v55 }
0x3cca   : > { %v4444_v25 = vadd.f32 %v4442_v8, %v4434_v18  ;;  %v3923_v8 = vld [vmem:[%s10479_s11 + $0x12] sm:$0x1] }
0x3ccc   : > { %9832 = vtanh.f32 %v4444_v25 }
0x3ccd   : > { %8077 = vrot.lane.b32.xlu1 %v14377_v28, %s10210_s5  ;;  %v4160_v28 = vsel %vm901_vm1, %v4159_v2, %v4158_v60  ;;  %v14725_v60 = vld [vmem:[%s10479_s11 + $0x34] sm:$0x1] }
0x3cce   : > { %v4162_v23 = vsel %vm904_vm2, %v4161_v29, %v4160_v28  ;;  %v4169_v29 = vrot.slane %v14729_v16, 1 }
0x3ccf   : > { %v4164_v2 = vsel %vm907_vm3, %v4163_v35, %v4162_v23  ;;  %v8554_v23 = vmul.f32 -1.442695, %v8019_v21  ;;  %v14747_v21 = vld [vmem:[%s10479_s11 + $0x2a] sm:$0x1] }
0x3cd0   : > { %v4166_v37 = vsel %vm910_vm4, %v4165_v0, %v4164_v2  ;;  %v3825_v2 = vadd.f32 %v3817_v54, %v14483_v3  ;;  %v3925_v54 = vld [vmem:[%s10479_s11 + $0x22] sm:$0x1] }
0x3cd1   : > { %9834 = vpow2.f32 %v8554_v23  ;;  %v8104_v23 = vld [vmem:[#allocation16 + $0x18] sm:$0xff] }
0x3cd2   : > { %v9833_v59 = vpop.eup %9832  ;;  %8145 = vmatpush.msrb.mxu3 %v8104_v23 }
0x3cd5   : > { %8083 = vrot.lane.b32.xlu1 %v14388_v6, %s10210_s5  ;;  %v4167_v6 = vrot.slane %v14725_v60, 2 }
0x3cd7   : > { %v4168_v28 = vsel %vm913_vm5, %v4167_v6, %v4166_v37  ;;  %v9835_v55 = vpop.eup %9834 }
0x3cd8   : > { %v4170_v35 = vsel %vm916_vm6, %v4169_v29, %v4168_v28  ;;  %v8024_v0 = vadd.f32 1.0, %v9835_v55  ;;  %v3945_v29 = vrot.slane %v14609_v4, 7  ;;  %v3828_v28 = vadd.f32 %v3820_v58, %v14512_v24  ;;  %v4242_v58 = vld [vmem:[%s10479_s11 + $0x1d] sm:$0x1] }
0x3cd9   : > { %v4263_v4 = vrot.slane %v14660_v1, 7  ;;  %v3949_v24 = vrot.slane %v14623_v42, 5  ;;  %v3951_v42 = vrot.slane %v3925_v54, 4  ;;  %v4267_v23 = vrot.slane %v4242_v58, 5 }
0x3cda   : > { %9836 = vrcp.f32 %v8024_v0  ;;  %v3946_v3 = vsel %vm898_vm0, %v3945_v29, %v14655_v46  ;;  %v3829_v46 = vadd.f32 %v3821_v14, %v14524_v39  ;;  %vm8030_vm13 = vweird.f32 %v8024_v0 }
0x3cdb   : > { %v8034_v1 = vand.u32 2147483647, %v8024_v0  ;;  %v4264_v39 = vsel %vm898_vm0, %v4263_v4, %v14666_v38 }
0x3cdd   : > { %3853 = vrot.lane.b32.xlu1 %v3852_v52, %s10209_s18  ;;  %v3931_v52 = vadd.f32 %v3923_v8, %v3825_v2  ;;  %vm8035_vm8 = vcmp.eq.f32.partialorder %v8034_v1, 8.507059e+37 }
0x3cdf   : > { %v4037_v18 = vadd.f32 %v14506_v26, %v3931_v52  ;;  %v3934_v26 = vadd.f32 %v14747_v21, %v3828_v28  ;;  %v4250_v52 = vadd.f32 %v4242_v58, %v14633_v45  ;;  %v3830_v45 = vadd.f32 %v14710_v22, %v14538_v62  ;;  %v8101_v22 = vld [vmem:[#allocation16] sm:$0xff]  ;;  %v4244_v58 = vld [vmem:[%s10479_s11 + $0x2d] sm:$0x1] }
0x3ce0   : > { %v9837_v37 = vpop.eup %9836 }
0x3ce1   : > { %v8026_v5 = vmul.f32 %v9837_v37, %v8024_v0  ;;  %v4143_v55 = vadd.f32 %v14694_v50, %v4037_v18  ;;  %vm8031_vm12 = vweird.f32 %v9837_v37  ;;  %v4040_v29 = vadd.f32 %v14550_v43, %v3934_v26 }
0x3ce2   : > { %vm14764_vm14 = vmor %vm8030_vm13, %vm8031_vm12  ;;  %v4356_v38 = vadd.f32 %v14560_v20, %v4250_v52  ;;  %v4243_v52 = vld [vmem:[%s10479_s11 + $0x25] sm:$0x1] }
0x3ce3   : > { %v8027_v6 = vsub.f32 1.0, %v8026_v5  ;;  %v4241_v5 = vld [vmem:[%s10479_s11 + $0x15] sm:$0x1] }
0x3ce4   : > { %v4249_v50 = vadd.f32 %v4241_v5, %v4143_v55  ;;  %v4265_v18 = vrot.slane %v4241_v5, 6  ;;  %v3928_v55 = vld [vmem:[%s10479_s11 + $0x3a] sm:$0x1] }
0x3ce5   : > { %4171 = vrot.lane.b32.xlu1 %v4170_v35, %s10209_s18  ;;  %v8028_v25 = vmul.f32 %v9837_v37, %v8027_v6  ;;  %v3947_v35 = vrot.slane %v3923_v8, 6  ;;  %v8036_v8 = vand.u32 2147483648, %v8024_v0  ;;  %v3927_v6 = vld [vmem:[%s10479_s11 + $0x32] sm:$0x1]  ;;  %v3957_v28 = vrot.slane %v3928_v55, 1 }
0x3ce6   : > { %v8103_v0 = vld [vmem:[#allocation16 + $0x10] sm:$0xff]  ;;  %v4266_v26 = vsel %vm901_vm1, %v4265_v18, %v4264_v39  ;;  %v3955_v5 = vrot.slane %v3927_v6, 2 }
0x3ce7   : > { %v8029_v2 = vadd.f32 %v9837_v37, %v8028_v25  ;;  %8146 = vmatpush.msrb.mxu3 %v8103_v0 }
0x3ce9   : > { %v8033_v14 = vsel %vm14764_vm14, %v9837_v37, %v8029_v2  ;;  %v4454_v37 = vld [vmem:[%s10479_s11 + $0x1f] sm:$0x1]  ;;  %v3936_v2 = vadd.f32 %v3928_v55, %v3830_v45  ;;  %v4271_v45 = vrot.slane %v4244_v58, 3 }
0x3cea   : > { %v4462_v1 = vadd.f32 %v4454_v37, %v4356_v38 }
0x3ceb   : > { %v4042_v18 = vadd.f32 %v14576_v48, %v3936_v2  ;;  %v4456_v48 = vld [vmem:[%s10479_s11 + $0x2f] sm:$0x1]  ;;  %v8080_v2 = vpop.permute.xlu2 %8079 }
0x3ced   : > { %4447 = vrot.lane.b32.xlu1 %v9833_v59, %s10208_s20  ;;  %v3827_v59 = vadd.f32 %v3819_v31, %v14501_v44  ;;  %v3948_v44 = vsel %vm901_vm1, %v3947_v35, %v3946_v3  ;;  %v8102_v35 = vld [vmem:[#allocation16 + $0x8] sm:$0xff]  ;;  %v8037_v3 = vor.u32 1.1754944e-38, %v8036_v8 }
0x3cee   : > { %v3950_v25 = vsel %vm904_vm2, %v3949_v24, %v3948_v44  ;;  %8147 = vmatpush.msrb.mxu3 %v8102_v35 }
0x3cef   : > { %v3933_v31 = vadd.f32 %v3925_v54, %v3827_v59  ;;  %v3935_v59 = vadd.f32 %v3927_v6, %v3829_v46  ;;  %v3953_v54 = vrot.slane %v14747_v21, 3  ;;  %v3952_v62 = vsel %vm907_vm3, %v3951_v42, %v3950_v25  ;;  %v4453_v46 = vld [vmem:[%s10479_s11 + $0x17] sm:$0x1] }
0x3cf0   : > { %v14781_v24 = vsel %vm8035_vm8, %v8037_v3, %v8033_v14  ;;  %v4355_v21 = vadd.f32 %v14544_v47, %v4249_v50  ;;  %8148 = vmatpush.msrb.mxu3 %v8101_v22  ;;  %v4269_v47 = vrot.slane %v4243_v52, 4  ;;  %v4268_v6 = vsel %vm904_vm2, %v4267_v23, %v4266_v26 }
0x3cf1   : > { %v4039_v43 = vadd.f32 %v14534_v53, %v3933_v31  ;;  %v4146_v53 = vadd.f32 %v14719_v12, %v4040_v29  ;;  %v4475_v31 = vrot.slane %v14671_v30, 7  ;;  %v4041_v12 = vadd.f32 %v14564_v7, %v3935_v59 }
0x3cf2   : > { %v3954_v8 = vsel %vm910_vm4, %v3953_v54, %v3952_v62  ;;  %v4477_v29 = vrot.slane %v4453_v46, 6  ;;  %v4461_v30 = vadd.f32 %v4453_v46, %v4355_v21  ;;  %v4479_v14 = vrot.slane %v4454_v37, 5 }
0x3cf3   : > { %v4145_v44 = vadd.f32 %v14706_v27, %v4039_v43  ;;  %v4252_v42 = vadd.f32 %v4244_v58, %v4146_v53  ;;  %v8076_v27 = vpop.permute.xlu0 %8075  ;;  %v3956_v7 = vsel %vm913_vm5, %v3955_v5, %v3954_v8  ;;  %v4147_v25 = vadd.f32 %v14725_v60, %v4041_v12  ;;  %v4245_v43 = vld [vmem:[%s10479_s11 + $0x35] sm:$0x1]  ;;  %v4455_v53 = vld [vmem:[%s10479_s11 + $0x27] sm:$0x1]  ;;  %v4457_v8 = vld [vmem:[%s10479_s11 + $0x37] sm:$0x1] }
0x3cf4   : > { %v4476_v39 = vsel %vm898_vm0, %v4475_v31, %v14676_v63  ;;  %v4270_v0 = vsel %vm907_vm3, %v4269_v47, %v4268_v6  ;;  %v8096_v35 = vadd.f32 %v8076_v27, %v4462_v1  ;;  %v4273_v59 = vrot.slane %v4245_v43, 2  ;;  %v4246_v63 = vld [vmem:[%s10479_s11 + $0x3d] sm:$0x1]  ;;  %v4458_v6 = vld [vmem:[%s10479_s11 + $0x3f] sm:$0x1]  ;;  %s15015_s11 = sld [smem:[#allocation38_spill]] }
0x3cf5   : > { %v4251_v50 = vadd.f32 %v4243_v52, %v4145_v44  ;;  %v4358_v3 = vadd.f32 %v14583_v15, %v4252_v42  ;;  %v3958_v23 = vsel %vm916_vm6, %v3957_v28, %v3956_v7  ;;  %v4478_v38 = vsel %vm901_vm1, %v4477_v29, %v4476_v39 }
0x3cf6   : > { %v4148_v22 = vadd.f32 %v14729_v16, %v4042_v18  ;;  %v4253_v37 = vadd.f32 %v4245_v43, %v4147_v25  ;;  %v4481_v15 = vrot.slane %v4455_v53, 4  ;;  %v8121_v21 = vrot.slane %v8096_v35, 5 }
0x3cf7   : > { %v4357_v62 = vadd.f32 %v14572_v61, %v4251_v50  ;;  %v4464_v55 = vadd.f32 %v4456_v48, %v4358_v3  ;;  %v4480_v58 = vsel %vm904_vm2, %v4479_v14, %v4478_v38  ;;  %v4483_v12 = vrot.slane %v4456_v48, 3 }
0x3cf8   : > { %v4254_v44 = vadd.f32 %v4246_v63, %v4148_v22  ;;  %v4359_v31 = vadd.f32 %v14590_v11, %v4253_v37  ;;  %v4482_v52 = vsel %vm907_vm3, %v4481_v15, %v4480_v58  ;;  %v4485_v29 = vrot.slane %v4457_v8, 2 }
0x3cf9   : > { %v4463_v16 = vadd.f32 %v4455_v53, %v4357_v62  ;;  %v8098_v1 = vadd.f32 %v8080_v2, %v4464_v55  ;;  %v4487_v18 = vrot.slane %v4458_v6, 1  ;;  %v8041_v48 = vmul.f32 %v14781_v24, %v14315_v13 }
0x3cfa   : > { %v4465_v27 = vadd.f32 %v4457_v8, %v4359_v31  ;;  %s8176_s30 = scalar_lea.hbm %s15015_s11, %s8557_s12  ;;  %s10136_s21 = scalar_lea.hbm %s15015_s11, 16 }
0x3cfb   : > { %v8082_v7 = vpop.permute.xlu0 %8081  ;;  %v8125_v50 = vrot.slane %v8098_v1, 3  ;;  %s8180_s17 = sshll.u32 %s8176_s30, 4  ;;  %s8181_s17 = int_to_ptr.hbm [resolvable:$true] %s8180_s17 }
0x3cfc   : > { %v8099_v14 = vadd.f32 %v8082_v7, %v4465_v27  ;;  %s10130_s13 = sshra.s32 %s8181_s17, 4  ;;  %s10131_s13 = int_to_ptr.hbm [resolvable:$true] %s10130_s13 }
0x3cfd   : > { %s10132_s14 = scalar_lea.hbm %s10131_s13, 8  ;;  %p10137_p6 = scmp.lt.s32.totalorder %s10131_s13, %s15015_s11 }
0x3cfe   : > { %p10133_p13 = scmp.ne.s32.totalorder %s10131_s13, %s10132_s14  ;;  %p10138_p11 = scmp.lt.s32.totalorder %s10136_s21, %s10132_s14 }
0x3d00   : > { %p10134_p7 = pnand %p10133_p13, %p10361_p0  ;;  %p10139_p12 = por %p10138_p11, %p10137_p6 }
0x3d02   : > { %p10135_p10 = pneg %p10134_p7 }
0x3d03   : > { %v3748_v22 = vpop.permute.xlu0 %3747 }
0x3d04   : > { %p10140_p3 = pnand %p10139_p12, %p10135_p10 }
0x3d0b   : > { %v4066_v55 = vpop.permute.xlu0 %4065 }
0x3d0c   : > { %v4068_v2 = vsub.f32 %v12570_v33, %v4066_v55 }
0x3d2f   : > { %v8044_v4 = vpop.permute.xlu1 %8043 }
0x3d30   : > { %v8046_v20 = vmul.f32 %v8044_v4, %v14781_v24  ;;  %v4272_v4 = vsel %vm910_vm4, %v4271_v45, %v4270_v0 }
0x3d31   : > { %v4274_v5 = vsel %vm913_vm5, %v4273_v59, %v4272_v4  ;;  %v8127_v59 = vrot.slane %v8099_v14, 2  ;;  %v3750_v4 = vsub.f32 %v12408_v34, %v3748_v22  ;;  %v4384_v34 = vpop.permute.xlu0 %4383 }
0x3d32   : > { %8048 = vrot.lane.b32.xlu2 %v8046_v20, %s10210_s5  ;;  %v4275_v20 = vrot.slane %v4246_v63, 1  ;;  %v4386_v1 = vsub.f32 %v13435_v49, %v4384_v34 }
0x3d33   : > { %v3751_v13 = vmul.f32 %v3750_v4, %v3750_v4 }
0x3d34   : > { %v4276_v42 = vsel %vm916_vm6, %v4275_v20, %v4274_v5  ;;  %v4069_v5 = vmul.f32 %v4068_v2, %v4068_v2 }
0x3d37   : > { %v8074_v54 = vpop.permute.xlu1 %8073 }
0x3d38   : > { %v8095_v60 = vadd.f32 %v8074_v54, %v4461_v30  ;;  %v4484_v30 = vsel %vm910_vm4, %v4483_v12, %v4482_v52 }
0x3d39   : > { %v4486_v45 = vsel %vm913_vm5, %v4485_v29, %v4484_v30  ;;  %v4387_v29 = vmul.f32 %v4386_v1, %v4386_v1 }
0x3d3a   : > { %v8119_v26 = vrot.slane %v8095_v60, 6  ;;  %3959 = vrot.lane.b32.xlu2 %v3958_v23, %s10209_s18 }
0x3d3c   : > { %v8120_v61 = vsel %vm901_vm1, %v8119_v26, %v14680_v57  ;;  %v4360_v57 = vadd.f32 %v14596_v9, %v4254_v44  ;;  %v4488_v9 = vsel %vm916_vm6, %v4487_v18, %v4486_v45 }
0x3d3d   : > { %v8122_v46 = vsel %vm904_vm2, %v8121_v21, %v8120_v61 }
0x3d3e   : > { %v4466_v39 = vadd.f32 %v4458_v6, %v4360_v57 }
0x3d3f   : > { %v8078_v47 = vpop.permute.xlu1 %8077 }
0x3d40   : > { %v8097_v28 = vadd.f32 %v8078_v47, %v4463_v16 }
0x3d42   : > { %v8123_v11 = vrot.slane %v8097_v28, 4  ;;  %4277 = vrot.lane.b32.xlu2 %v4276_v42, %s10209_s18 }
0x3d44   : > { %v8124_v25 = vsel %vm907_vm3, %v8123_v11, %v8122_v46 }
0x3d45   : > { %v8126_v43 = vsel %vm910_vm4, %v8125_v50, %v8124_v25  ;;  %v15012_v25 = vld [vmem:[#allocation30_spill] sm:$0xff] }
0x3d46   : > { %v8128_v54 = vsel %vm913_vm5, %v8127_v59, %v8126_v43 }
0x3d47   : > { %v8084_v0 = vpop.permute.xlu1 %8083 }
0x3d48   : > { %v8100_v35 = vadd.f32 %v8084_v0, %v4466_v39  ;;  %v7863_v39 = vsub.f32 %v15012_v25, %v4066_v55  ;;  %v15013_v0 = vld [vmem:[#allocation31_spill] sm:$0xff] }
0x3d4a   : > { %v8129_v3 = vrot.slane %v8100_v35, 1  ;;  %4489 = vrot.lane.b32.xlu2 %v4488_v9, %s10209_s18  ;;  %v7864_v43 = vmul.f32 %v7863_v39, %v7863_v39  ;;  %v15014_v35 = vld [vmem:[#allocation32_spill] sm:$0xff]  ;;  %s613_s18 = scalar_lea.vmem [#allocation17], %s8379_s16 }
0x3d4c   : > { %v8130_v23 = vsel %vm916_vm6, %v8129_v3, %v8128_v54 }
0x3d4d   : > { %8555 = vmatmul.msk.f32.vlgmr.msrb.gmra.mxu3 %vm920_vm7, %v8130_v23 }
0x3d4f   : > { %v3854_v63 = vpop.permute.xlu1 %3853 }
0x3d50   : > { %v3856_v53 = vsub.f32 %v12417_v56, %v3854_v63 }
0x3d52   : > { %v3857_v21 = vmul.f32 %v3856_v53, %v3856_v53  ;;  %v8160_v53 = vlaneseq }
0x3d54   : > { %v3858_v61 = vadd.f32 %v3857_v21, %v3751_v13 }
0x3d57   : > { %v4172_v15 = vpop.permute.xlu1 %4171 }
0x3d58   : > { %v4174_v44 = vsub.f32 %v12886_v51, %v4172_v15  ;;  %v7798_v50 = vsub.f32 %v14440_v10, %v4172_v15 }
0x3d5a   : > { %v7799_v45 = vmul.f32 %v7798_v50, %v7798_v50 }
0x3d5f   : > { %v4448_v56 = vpop.permute.xlu1 %4447 }
0x3d60   : > { %v4450_v8 = vmul.f32 %v4448_v56, %v14644_v40 }
0x3d8c   : > { %v8049_v38 = vpop.permute.xlu2 %8048 }
0x3d8d   : > { %v8051_v60 = vadd.f32 %v8049_v38, %v8041_v48 }
0x3d8f   : > { %9838 = vtanh.f32 %v8051_v60 }
0x3d94   : > { %v3960_v37 = vpop.permute.xlu2 %3959 }
0x3d95   : > { %v9839_v62 = vpop.eup %9838  ;;  %v3962_v26 = vsub.f32 %v12435_v32, %v3960_v37  ;;  %v4175_v32 = vmul.f32 %v4174_v44, %v4174_v44 }
0x3d96   : > { %8054 = vrot.lane.b32.xlu0 %v9839_v62, %s10208_s20 }
0x3d97   : > { %v3963_v20 = vmul.f32 %v3962_v26, %v3962_v26 }
0x3d99   : > { %v3964_v16 = vadd.f32 %v3963_v20, %v3858_v61 }
0x3d9b   : > { %v4070_v12 = vadd.f32 %v4069_v5, %v3964_v16 }
0x3d9c   : > { %v4278_v58 = vpop.permute.xlu2 %4277 }
0x3d9d   : > { %v4280_v31 = vsub.f32 %v13178_v36, %v4278_v58  ;;  %v4176_v47 = vadd.f32 %v4175_v32, %v4070_v12  ;;  %v7668_v36 = vsub.f32 %v14420_v17, %v4384_v34  ;;  %v7733_v11 = vsub.f32 %v14430_v19, %v4278_v58 }
0x3d9e   : > { %v7993_v17 = vsub.f32 %v15014_v35, %v3854_v63  ;;  %v8161_v63 = vand.u32 127, %v8160_v53 }
0x3d9f   : > { %v4281_v52 = vmul.f32 %v4280_v31, %v4280_v31  ;;  %v7669_v7 = vmul.f32 %v7668_v36, %v7668_v36  ;;  %v7734_v49 = vmul.f32 %v7733_v11, %v7733_v11 }
0x3da0   : > { %v7994_v10 = vmul.f32 %v7993_v17, %v7993_v17  ;;  %vm8162_vm0 = vcmp.eq.s32.totalorder %v8161_v63, 32 }
0x3da1   : > { %v4282_v33 = vadd.f32 %v4281_v52, %v4176_v47 }
0x3da3   : > { %v4388_v57 = vadd.f32 %v4387_v29, %v4282_v33 }
0x3da4   : > { %v4490_v46 = vpop.permute.xlu2 %4489 }
0x3da5   : > { %v4492_v42 = vsub.f32 %v4450_v8, %v4490_v46  ;;  %v7603_v51 = vsub.f32 %v14410_v41, %v4490_v46  ;;  %v7928_v41 = vsub.f32 %v15013_v0, %v3960_v37 }
0x3da7   : > { %v4493_v28 = vmul.f32 %v4492_v42, %v4492_v42  ;;  %v7604_v27 = vmul.f32 %v7603_v51, %v7603_v51  ;;  %v7929_v59 = vmul.f32 %v7928_v41, %v7928_v41 }
0x3da9   : > { %v4494_v6 = vadd.f32 %v4493_v28, %v4388_v57 }
0x3dab   : > { %v7605_v30 = vadd.f32 %v7604_v27, %v4494_v6 }
0x3dad   : > { %v7670_v40 = vadd.f32 %v7669_v7, %v7605_v30 }
0x3daf   : > { %v7735_v18 = vadd.f32 %v7734_v49, %v7670_v40 }
0x3db1   : > { %v7800_v14 = vadd.f32 %v7799_v45, %v7735_v18 }
0x3db3   : > { %v7865_v9 = vadd.f32 %v7864_v43, %v7800_v14 }
0x3db5   : > { %v7930_v19 = vadd.f32 %v7929_v59, %v7865_v9 }
0x3db7   : > { %v7995_v48 = vadd.f32 %v7994_v10, %v7930_v19 }
0x3e08   : > { %v8055_v3 = vpop.permute.xlu0 %8054 }
0x3e09   : > { %v8057_v54 = vmul.f32 %v8055_v3, %v14781_v24  ;;  %v8687_v24 = vld [vmem:[%s15016_s15] ss:$0 sm:$0xff] }
0x3e0b   : > { %v8058_v23 = vsub.f32 %v8057_v54, %v3748_v22  ;;  %v8150_v22 = vpop.f32.mrf.mxu3 }
0x3e0c   : > { %v8151_v4 = vadd.f32 %v8687_v24, %v8150_v22 }
0x3e0d   : > { %v8059_v38 = vmul.f32 %v8058_v23, %v8058_v23 }
0x3e0f   : > { %v8060_v60 = vadd.f32 %v8059_v38, %v7995_v48 }
0x3e11   : > { %8154 = vrot.lane.b32.xlu1 %v8060_v60, %s10210_s5  ;;  %s8178_s5 = sshll.u32 %s613_s18, 4  ;;  %s8179_s5 = int_to_ptr.vmem [resolvable:$true] %s8178_s5 }
0x3e83   : > { %v8155_v62 = vpop.permute.xlu1 %8154 }
0x3e84   : > { %v8157_v37 = vsel %vm920_vm7, %v8155_v62, 0.0 }
0x3e85   : > { %8158 = vadd.xlane.f32.xlu2 %v8157_v37 }
0x3ef8   : > { %v8159_v26 = vpop.xlane.xlu2 %8158 }
0x3ef9   : > { %v8163_v15 = vsel %vm8162_vm0, %v8159_v26, %v8151_v4 }
0x3efa   : > { %8164 = vst [vmem:[%s613_s18] sm:$0xff] %v8163_v15 }
0x3efb   : > { %10143 = shalt.err (!%p10140_p3)
}
0x3efc   : > { %8593 = dma.vmem_to_hbm [thread:$0]  (%p10361_p0), %s8179_s5, 128, %s8181_s17, %s8166_s28  }
0x3efd PF: > { %s15018_s19 = sld [smem:[#allocation24_spill]] }
0x3efe   : > { %s15020_s12 = sld [smem:[#allocation25_spill]] }
0x3f03   : > { %s8192_s25 = sand.u32 1, %s15018_s19  }
0x3f04   : > { %p15021_p8 = scmp.ge.s32.totalorder %s15020_s12, 2  ;;  %s8193_s1 = scalar_lea.sflag [#allocation4], %s8192_s25 }
0x3f06   : > { %p8625_p9 = pnand %p15021_p8, %p10367_p5 }
0x3f08   : > { %p8626_p2 = pneg %p8625_p9 }
0x3f0a   : > { %10181 = dma.done.wait (%p8626_p2), %s8193_s1, 128  }
0x3f0b   : > { %10183 = vsyncadd (%p8626_p2), %s8193_s1, 4294967168  ;;  %s15022_s24 = sld [smem:[#allocation26_spill]]  ;;  %s15024_s21 = smov %s10190_s22 }
0x3f0c   : > { %s15023_s30 = sld [smem:[#allocation27_spill]]  ;;  %s15025_s22 = smov %s10194_s23 }
0x3f11   : > { %p31_p4 = scmp.ge.s32.totalorder %s15022_s24, 4  }
0x3f12   : > { %s15026_s23 = smov %s15023_s30 }
0x3f13   :  { %33 = sbr.rel (!%p31_p4) target bundleno = 17 (0x11), region = 161 }
0x3f18   :  { %8199 = vsyncpa [#allocation3], 1 }
0x3f19   :  { %8201 = vsyncpa [#allocation3 + $0x1], 1 }
0x3f1a   :  { %8202 = vsyncpa [#allocation6], 1 }
0x3f1b   :  { %8204 = vsyncpa [#allocation6 + $0x1], 1 }
0x3f1c   :  { %8205 = vsyncpa [#allocation9], 1 }
0x3f1d   :  { %8206 = vsyncpa [#allocation12], 1 }
0x3f1e   :  { %8207 = vsyncpa [#allocation15], 1 }
0x3f1f   :  { %8208 = vsyncpa [#allocation4], 1 }
0x3f20   :  { %8210 = vsyncpa [#allocation4 + $0x1], 1 }

</bundles_post_ra>
